<compile_context>
chip_gen: v6e
topology: v6e:2x2x1
jax: 0.10.0
libtpu: 0.0.40
codegen_flags: <defaults>
</compile_context>

<pallas_src>
import functools

import numpy as np
import jax
import jax.numpy as jnp
from jax import lax
from jax.experimental import pallas as pl
from jax.experimental.pallas import tpu as pltpu


COMPILER_PARAMS = pltpu.CompilerParams(
    dimension_semantics=("parallel",),
    vmem_limit_bytes=64 * 1024 * 1024,
)


# --------------------------- Pallas kernels ---------------------------------

def _matmul_kernel(x_ref, w_ref, o_ref):
    """1x1 conv as a plain (tm, Cin) @ (Cin, Cout) matmul."""
    o_ref[...] = jnp.dot(x_ref[...], w_ref[...],
                         preferred_element_type=jnp.float32).astype(o_ref.dtype)


def _matmul_upadd_kernel(x_ref, w_ref, r_ref, u_ref, o_ref):
    """1x1 conv + nearest-2x-upsampled residual add, fused.

    r_ref holds the residual at COARSE resolution; u_ref is a constant 0/1
    replication matrix, so u @ r reproduces the nearest upsample exactly.
    """
    acc = jnp.dot(x_ref[...], w_ref[...], preferred_element_type=jnp.float32)
    acc = acc + jnp.dot(u_ref[...], r_ref[...], preferred_element_type=jnp.float32)
    o_ref[...] = acc.astype(o_ref.dtype)


def _conv3x3_kernel(x_ref, w_ref, ml_ref, mr_ref, o_ref, *, W):
    """3x3 conv (padding=1) on one image, fused im2col.

    x_ref is the image flattened row-major and padded with W+1 zeros on each
    end, so tap (dy, dx) is the static slice starting at dy*W + dx.  The two
    precomputed column masks zero the contributions that wrapped across the
    left/right image border.
    """
    HW = o_ref.shape[0]
    acc = jnp.zeros(o_ref.shape, jnp.float32)
    for dy in range(3):
        for dx in range(3):
            s0 = dy * W + dx
            xs = x_ref[s0:s0 + HW, :]                       # (HW, Cin)
            c = jnp.dot(xs, w_ref[dy, dx], preferred_element_type=jnp.float32)
            if dx == 0:
                c = c * ml_ref[...]
            elif dx == 2:
                c = c * mr_ref[...]
            acc = acc + c
    o_ref[...] = acc.astype(o_ref.dtype)


def _fuse_kernel(p5_ref, p4_ref, p3_ref, p2_ref, u8_ref, u4_ref, u2_ref, o_ref):
    """Upsample (x8/x4/x2) the coarse p-maps and write the lane-dense fused
    block [p5 | p4 | p3 | p2] in a single pass."""
    a5 = jnp.dot(u8_ref[...], p5_ref[...], preferred_element_type=jnp.float32)
    a4 = jnp.dot(u4_ref[...], p4_ref[...], preferred_element_type=jnp.float32)
    a3 = jnp.dot(u2_ref[...], p3_ref[...], preferred_element_type=jnp.float32)
    a2 = p2_ref[...].astype(jnp.float32)
    o_ref[...] = jnp.concatenate([a5, a4, a3, a2], axis=1).astype(o_ref.dtype)


# --------------------------- tiling / constant helpers -----------------------

def _divisors_multiple_desc(n, multiple):
    return [d for d in range(n, 0, -1) if n % d == 0 and d % multiple == 0]


def _pick_block_rows(N, H, W, scales, max_pixels=4096):
    """Pick the number of fine pixels (whole image rows) per block.

    The block must (a) cover whole rows so coarse blocks align, (b) keep every
    derived block's second-minor dim a multiple of 8 or equal to the full dim,
    (c) stay below max_pixels.  Falls back to the whole batch for tiny maps.
    """
    M = N * H * W
    smax = max(scales) if scales else 1
    for tr in _divisors_multiple_desc(H, smax):
        tm = tr * W
        if tm > max_pixels:
            continue
        ok = (tm % 8 == 0) or (tm == M)
        for s in scales:
            cb, cm = tm // (s * s), M // (s * s)
            ok = ok and ((cb % 8 == 0) or (cb == cm))
        if ok:
            return tm
    return M  # whole batch in a single block (only hit for tiny pyramid levels)


def _upsample_matrix(n_fine, w_f, h_f, scale, dtype):
    """Constant 0/1 matrix P with (P @ coarse)[m] == coarse[m // scale mapping].

    Valid for blocks that are either whole rows inside one image (row count a
    multiple of `scale`) or a whole number of images.
    """
    m = np.arange(n_fine)
    r, c = m // w_f, m % w_f
    img, rr = r // h_f, r % h_f
    wc, hc = w_f // scale, h_f // scale
    coarse = img * (hc * wc) + (rr // scale) * wc + (c // scale)
    p = np.zeros((n_fine, n_fine // (scale * scale)), np.float32)
    p[m, coarse] = 1.0
    return jnp.asarray(p, dtype)


def _edge_masks(h, w):
    col = np.arange(h * w) % w
    ml = (col != 0).astype(np.float32).reshape(-1, 1)
    mr = (col != w - 1).astype(np.float32).reshape(-1, 1)
    return jnp.asarray(ml), jnp.asarray(mr)


# --------------------------- conv wrappers (glue + Pallas) ------------------

def conv1x1(x_nhwc, w_oihw):
    """PyTorch Conv2d(k=1, bias=False)."""
    n, h, w, cin = x_nhwc.shape
    cout = w_oihw.shape[0]
    M = n * h * w
    xm = x_nhwc.reshape(M, cin).astype(jnp.bfloat16)
    wm = w_oihw.reshape(cout, cin).T.astype(jnp.bfloat16)
    tm = _pick_block_rows(n, h, w, ())
    out = pl.pallas_call(
        _matmul_kernel,
        grid=(M // tm,),
        in_specs=[pl.BlockSpec((tm, cin), lambda i: (i, 0)),
                  pl.BlockSpec((cin, cout), lambda i: (0, 0))],
        out_specs=pl.BlockSpec((tm, cout), lambda i: (i, 0)),
        out_shape=jax.ShapeDtypeStruct((M, cout), jnp.bfloat16),
        compiler_params=COMPILER_PARAMS,
    )(xm, wm)
    return out.reshape(n, h, w, cout)


def conv1x1_add_up2(x_nhwc, w_oihw, res_coarse_nhwc):
    """PyTorch `Conv2d(k=1)(x) + Upsample(2, nearest)(res)` fused in one kernel."""
    n, h, w, cin = x_nhwc.shape
    cout = w_oihw.shape[0]
    assert res_coarse_nhwc.shape == (n, h // 2, w // 2, cout)
    M = n * h * w
    xm = x_nhwc.reshape(M, cin).astype(jnp.bfloat16)
    wm = w_oihw.reshape(cout, cin).T.astype(jnp.bfloat16)
    rm = res_coarse_nhwc.reshape(M // 4, cout).astype(jnp.bfloat16)
    tm = _pick_block_rows(n, h, w, (2,))
    up = _upsample_matrix(tm, w, h, 2, jnp.bfloat16)
    out = pl.pallas_call(
        _matmul_upadd_kernel,
        grid=(M // tm,),
        in_specs=[pl.BlockSpec((tm, cin), lambda i: (i, 0)),
                  pl.BlockSpec((cin, cout), lambda i: (0, 0)),
                  pl.BlockSpec((tm // 4, cout), lambda i: (i, 0)),
                  pl.BlockSpec((tm, tm // 4), lambda i: (0, 0))],
        out_specs=pl.BlockSpec((tm, cout), lambda i: (i, 0)),
        out_shape=jax.ShapeDtypeStruct((M, cout), jnp.bfloat16),
        compiler_params=COMPILER_PARAMS,
    )(xm, wm, rm, up)
    return out.reshape(n, h, w, cout)


def conv3x3(x_nhwc, w_oihw):
    """PyTorch Conv2d(k=3, padding=1, bias=False) without materializing im2col.

    Returns the output flattened per image as (N, H*W, Cout) in bf16.
    """
    n, h, w, cin = x_nhwc.shape
    cout = w_oihw.shape[0]
    hw = h * w
    xf = x_nhwc.reshape(n, hw, cin).astype(jnp.bfloat16)
    xf = jnp.pad(xf, ((0, 0), (w + 1, w + 1), (0, 0)))      # single cheap pad
    hwp = hw + 2 * w + 2
    wk = jnp.transpose(w_oihw, (2, 3, 1, 0)).astype(jnp.bfloat16)   # (3,3,Cin,Cout)
    ml, mr = _edge_masks(h, w)
    kernel = functools.partial(_conv3x3_kernel, W=w)
    out = pl.pallas_call(
        kernel,
        grid=(n,),
        in_specs=[pl.BlockSpec((None, hwp, cin), lambda i: (i, 0, 0)),
                  pl.BlockSpec((3, 3, cin, cout), lambda i: (0, 0, 0, 0)),
                  pl.BlockSpec((hw, 1), lambda i: (0, 0)),
                  pl.BlockSpec((hw, 1), lambda i: (0, 0))],
        out_specs=pl.BlockSpec((None, hw, cout), lambda i: (i, 0, 0)),
        out_shape=jax.ShapeDtypeStruct((n, hw, cout), jnp.bfloat16),
        compiler_params=COMPILER_PARAMS,
    )(xf, wk, ml, mr)
    return out


def fuse_upsample_concat(p5, p4, p3, p2, n, h2, w2, q):
    """Single-pass tail: upsample coarse p5/p4/p3 (x8/x4/x2), concat with p2
    and write the lane-dense fused (N*H2*W2, 4q) buffer."""
    M2 = n * h2 * w2
    tm = _pick_block_rows(n, h2, w2, (2, 4, 8))
    u8 = _upsample_matrix(tm, w2, h2, 8, jnp.bfloat16)
    u4 = _upsample_matrix(tm, w2, h2, 4, jnp.bfloat16)
    u2 = _upsample_matrix(tm, w2, h2, 2, jnp.bfloat16)
    p5f = p5.reshape(M2 // 64, q)
    p4f = p4.reshape(M2 // 16, q)
    p3f = p3.reshape(M2 // 4, q)
    p2f = p2.reshape(M2, q)
    out = pl.pallas_call(
        _fuse_kernel,
        grid=(M2 // tm,),
        in_specs=[pl.BlockSpec((tm // 64, q), lambda i: (i, 0)),
                  pl.BlockSpec((tm // 16, q), lambda i: (i, 0)),
                  pl.BlockSpec((tm // 4, q), lambda i: (i, 0)),
                  pl.BlockSpec((tm, q), lambda i: (i, 0)),
                  pl.BlockSpec((tm, tm // 64), lambda i: (0, 0)),
                  pl.BlockSpec((tm, tm // 16), lambda i: (0, 0)),
                  pl.BlockSpec((tm, tm // 4), lambda i: (0, 0))],
        out_specs=pl.BlockSpec((tm, 4 * q), lambda i: (i, 0)),
        out_shape=jax.ShapeDtypeStruct((M2, 4 * q), jnp.float32),
        compiler_params=COMPILER_PARAMS,
    )(p5f, p4f, p3f, p2f, u8, u4, u2)
    return out.reshape(n, h2, w2, 4 * q)


# --------------------------- parameter init ---------------------------------

def kaiming_normal(key, cout, cin, kh, kw):
    # nn.init.kaiming_normal_ defaults: fan_in mode, gain = sqrt(2)
    fan_in = cin * kh * kw
    std = (2.0 / fan_in) ** 0.5
    return jax.random.normal(key, (cout, cin, kh, kw), jnp.float32) * std


def init_fpn_params(key, in_channels, inner_channels):
    keys = jax.random.split(key, 8)
    quarter = inner_channels // 4
    return {
        "in5":  kaiming_normal(keys[0], inner_channels, in_channels[-1], 1, 1),
        "in4":  kaiming_normal(keys[1], inner_channels, in_channels[-2], 1, 1),
        "in3":  kaiming_normal(keys[2], inner_channels, in_channels[-3], 1, 1),
        "in2":  kaiming_normal(keys[3], inner_channels, in_channels[-4], 1, 1),
        "out5": kaiming_normal(keys[4], quarter, inner_channels, 3, 3),
        "out4": kaiming_normal(keys[5], quarter, inner_channels, 3, 3),
        "out3": kaiming_normal(keys[6], quarter, inner_channels, 3, 3),
        "out2": kaiming_normal(keys[7], quarter, inner_channels, 3, 3),
    }


# --------------------------- FPN forward -------------------------------------

def fpn_forward(c2, c3, c4, c5, params):
    """c2..c5 are NHWC pyramid features (strides 4/8/16/32); returns fused NCHW."""
    n, h2, w2, _ = c2.shape
    assert h2 % 8 == 0 and w2 % 8 == 0, "input spatial size must be divisible by 32"

    in5 = conv1x1(c5, params["in5"])
    # out4 = up(in5) + in4   (2x nearest upsample fused into the matmul kernel)
    out4 = conv1x1_add_up2(c4, params["in4"], in5)
    out3 = conv1x1_add_up2(c3, params["in3"], out4)
    out2 = conv1x1_add_up2(c2, params["in2"], out3)

    p5 = conv3x3(in5, params["out5"])      # (N, (H2/8)*(W2/8), q)  coarse
    p4 = conv3x3(out4, params["out4"])     # (N, (H2/4)*(W2/4), q)
    p3 = conv3x3(out3, params["out3"])     # (N, (H2/2)*(W2/2), q)
    p2 = conv3x3(out2, params["out2"])     # (N,  H2*W2,        q)

    q = params["out5"].shape[0]
    fuse = fuse_upsample_concat(p5, p4, p3, p2, n, h2, w2, q)   # (N, H2, W2, 4q)
    return jnp.transpose(fuse, (0, 3, 1, 2))                    # NCHW like PyTorch


# --------------------------- pure-JAX reference (for checking) ---------------

def _conv_ref(x_nhwc, w_oihw):
    return lax.conv_general_dilated(
        x_nhwc.astype(jnp.bfloat16),
        jnp.transpose(w_oihw, (2, 3, 1, 0)).astype(jnp.bfloat16),
        window_strides=(1, 1), padding="SAME",
        dimension_numbers=("NHWC", "HWIO", "NHWC"),
        preferred_element_type=jnp.float32)


def _up_ref(x, s):
    return jnp.repeat(jnp.repeat(x, s, axis=1), s, axis=2)


def fpn_reference(c2, c3, c4, c5, params):
    bf = jnp.bfloat16
    f32 = jnp.float32
    in5 = _conv_ref(c5, params["in5"]).astype(bf)
    out4 = (_conv_ref(c4, params["in4"]) + _up_ref(in5, 2).astype(f32)).astype(bf)
    out3 = (_conv_ref(c3, params["in3"]) + _up_ref(out4, 2).astype(f32)).astype(bf)
    out2 = (_conv_ref(c2, params["in2"]) + _up_ref(out3, 2).astype(f32)).astype(bf)
    p5 = _up_ref(_conv_ref(in5, params["out5"]).astype(bf), 8)
    p4 = _up_ref(_conv_ref(out4, params["out4"]).astype(bf), 4)
    p3 = _up_ref(_conv_ref(out3, params["out3"]).astype(bf), 2)
    p2 = _conv_ref(out2, params["out2"]).astype(bf)
    fuse = jnp.concatenate([p5, p4, p3, p2], axis=-1).astype(f32)
    return jnp.transpose(fuse, (0, 3, 1, 2))


# --------------------------- synthetic backbone (plain JAX glue) -------------
# TODO(synk): the real `backbone` is an external injected module; this is a
# tiny deterministic stand-in producing c2..c5 with the expected strides.

def make_backbone(key, in_dim, in_channels):
    keys = jax.random.split(key, 4)
    strides = (4, 8, 16, 32)
    projs = [jax.random.normal(k, (in_dim, c), jnp.float32) * (2.0 / in_dim) ** 0.5
             for k, c in zip(keys, in_channels)]

    def backbone(x_nchw):
        x_nhwc = jnp.transpose(x_nchw, (0, 2, 3, 1))
        feats = []
        for s, p in zip(strides, projs):
            xs = x_nhwc[:, ::s, ::s, :]
            feats.append(jnp.einsum("nhwc,cd->nhwd", xs, p))
        return tuple(feats)                               # c2, c3, c4, c5 (NHWC)

    return backbone


# --------------------------- main --------------------------------------------

if __name__ == "__main__":
    # Small shapes consistent with the module structure.
    in_channels = [8, 16, 32, 64]      # scaled-down [256, 512, 1024, 2048]
    inner_channels = 16                # scaled-down 256
    N, CIN, H, W = 2, 3, 64, 64        # input image, NCHW like PyTorch

    root = jax.random.PRNGKey(0)
    k_x, k_bb, k_fpn = jax.random.split(root, 3)

    x = jax.random.normal(k_x, (N, CIN, H, W), jnp.float32)
    backbone = make_backbone(k_bb, CIN, in_channels)
    params = init_fpn_params(k_fpn, in_channels, inner_channels)

    def forward(xin):
        c2, c3, c4, c5 = backbone(xin)
        return fpn_forward(c2, c3, c4, c5, params)

    def forward_ref(xin):
        c2, c3, c4, c5 = backbone(xin)
        return fpn_reference(c2, c3, c4, c5, params)

    fuse = jax.block_until_ready(jax.jit(forward)(x))
    ref = jax.block_until_ready(jax.jit(forward_ref)(x))

    expected_shape = (N, inner_channels, H // 4, W // 4)   # (2, 16, 16, 16), NCHW
    assert fuse.shape == expected_shape, (fuse.shape, expected_shape)
    assert bool(jnp.all(jnp.isfinite(fuse)))
    np.testing.assert_allclose(np.asarray(fuse), np.asarray(ref),
                               rtol=1e-2, atol=1e-2)
    print("KERNEL_OK")
</pallas_src>

<mosaic_0001>
module attributes {stable_mosaic.version = 11 : i64} {
  func.func @_matmul_kernel(%arg0: i32, %arg1: memref<8x64xbf16, #tpu.memory_space<vmem>>, %arg2: memref<64x16xbf16, #tpu.memory_space<vmem>>, %arg3: memref<8x16xbf16, #tpu.memory_space<vmem>>) attributes {dimension_semantics = [#tpu.dimension_semantics<parallel>], iteration_bounds = array<i64: 1>, scalar_prefetch = 0 : i64, scratch_operands = 0 : i64, tpu.core_type = #tpu.core_type<tc>, window_params = [{transform_indices = @transform_0, window_bounds = array<i64: 8, 64>}, {pipeline_mode = #tpu.pipeline_mode<synchronous>, transform_indices = @transform_1, window_bounds = array<i64: 64, 16>}, {transform_indices = @transform_2, window_bounds = array<i64: 8, 16>}]} {
    %c0 = arith.constant 0 : index
    %c0_0 = arith.constant 0 : index
    %0 = vector.load %arg1[%c0, %c0_0] : memref<8x64xbf16, #tpu.memory_space<vmem>>, vector<8x64xbf16>
    %c0_1 = arith.constant 0 : index
    %c0_2 = arith.constant 0 : index
    %1 = vector.load %arg2[%c0_1, %c0_2] : memref<64x16xbf16, #tpu.memory_space<vmem>>, vector<64x16xbf16>
    %cst = arith.constant dense<0.000000e+00> : vector<8x16xf32>
    %2 = tpu.matmul %0, %1, %cst {dimension_numbers = #tpu.dot_dimension_numbers<[1], [0], [0], [1], [0, 0, 1, 1], [], []>} : vector<8x64xbf16>, vector<64x16xbf16>, vector<8x16xf32> -> vector<8x16xf32>
    %3 = arith.truncf %2 : vector<8x16xf32> to vector<8x16xbf16>
    %c0_3 = arith.constant 0 : index
    %c0_4 = arith.constant 0 : index
    %4 = vector.load %arg3[%c0_3, %c0_4] : memref<8x16xbf16, #tpu.memory_space<vmem>>, vector<8x16xbf16>
    tpu.vector_store %arg3[%c0_3, %c0_4], %3 {strides = array<i32>} : memref<8x16xbf16, #tpu.memory_space<vmem>>, vector<8x16xbf16>,
    return
  }
  func.func @transform_0(%arg0: i32) -> (i32, i32) {
    %c0_i32 = arith.constant 0 : i32
    %c0_i32_0 = arith.constant 0 : i32
    return %arg0, %c0_i32 : i32, i32
  }
  func.func @transform_1(%arg0: i32) -> (i32, i32) {
    %c0_i32 = arith.constant 0 : i32
    %c0_i32_0 = arith.constant 0 : i32
    %c0_i32_1 = arith.constant 0 : i32
    return %c0_i32, %c0_i32_0 : i32, i32
  }
  func.func @transform_2(%arg0: i32) -> (i32, i32) {
    %c0_i32 = arith.constant 0 : i32
    %c0_i32_0 = arith.constant 0 : i32
    return %arg0, %c0_i32 : i32, i32
  }
}

module attributes {stable_mosaic.version = 11 : i64} {
  func.func @_matmul_upadd_kernel(%arg0: i32, %arg1: memref<32x32xbf16, #tpu.memory_space<vmem>>, %arg2: memref<32x16xbf16, #tpu.memory_space<vmem>>, %arg3: memref<8x16xbf16, #tpu.memory_space<vmem>>, %arg4: memref<32x8xbf16, #tpu.memory_space<vmem>>, %arg5: memref<32x16xbf16, #tpu.memory_space<vmem>>) attributes {dimension_semantics = [#tpu.dimension_semantics<parallel>], iteration_bounds = array<i64: 1>, scalar_prefetch = 0 : i64, scratch_operands = 0 : i64, tpu.core_type = #tpu.core_type<tc>, window_params = [{transform_indices = @transform_0, window_bounds = array<i64: 32, 32>}, {pipeline_mode = #tpu.pipeline_mode<synchronous>, transform_indices = @transform_1, window_bounds = array<i64: 32, 16>}, {transform_indices = @transform_2, window_bounds = array<i64: 8, 16>}, {pipeline_mode = #tpu.pipeline_mode<synchronous>, transform_indices = @transform_3, window_bounds = array<i64: 32, 8>}, {transform_indices = @transform_4, window_bounds = array<i64: 32, 16>}]} {
    %c0 = arith.constant 0 : index
    %c0_0 = arith.constant 0 : index
    %0 = vector.load %arg1[%c0, %c0_0] : memref<32x32xbf16, #tpu.memory_space<vmem>>, vector<32x32xbf16>
    %c0_1 = arith.constant 0 : index
    %c0_2 = arith.constant 0 : index
    %1 = vector.load %arg2[%c0_1, %c0_2] : memref<32x16xbf16, #tpu.memory_space<vmem>>, vector<32x16xbf16>
    %cst = arith.constant dense<0.000000e+00> : vector<32x16xf32>
    %2 = tpu.matmul %0, %1, %cst {dimension_numbers = #tpu.dot_dimension_numbers<[1], [0], [0], [1], [0, 0, 1, 1], [], []>} : vector<32x32xbf16>, vector<32x16xbf16>, vector<32x16xf32> -> vector<32x16xf32>
    %c0_3 = arith.constant 0 : index
    %c0_4 = arith.constant 0 : index
    %3 = vector.load %arg4[%c0_3, %c0_4] : memref<32x8xbf16, #tpu.memory_space<vmem>>, vector<32x8xbf16>
    %c0_5 = arith.constant 0 : index
    %c0_6 = arith.constant 0 : index
    %4 = vector.load %arg3[%c0_5, %c0_6] : memref<8x16xbf16, #tpu.memory_space<vmem>>, vector<8x16xbf16>
    %cst_7 = arith.constant dense<0.000000e+00> : vector<32x16xf32>
    %5 = tpu.matmul %3, %4, %cst_7 {dimension_numbers = #tpu.dot_dimension_numbers<[1], [0], [0], [1], [0, 0, 1, 1], [], []>} : vector<32x8xbf16>, vector<8x16xbf16>, vector<32x16xf32> -> vector<32x16xf32>
    %6 = arith.addf %2, %5 : vector<32x16xf32>
    %7 = arith.truncf %6 : vector<32x16xf32> to vector<32x16xbf16>
    %c0_8 = arith.constant 0 : index
    %c0_9 = arith.constant 0 : index
    %8 = vector.load %arg5[%c0_8, %c0_9] : memref<32x16xbf16, #tpu.memory_space<vmem>>, vector<32x16xbf16>
    tpu.vector_store %arg5[%c0_8, %c0_9], %7 {strides = array<i32>} : memref<32x16xbf16, #tpu.memory_space<vmem>>, vector<32x16xbf16>,
    return
  }
  func.func @transform_0(%arg0: i32) -> (i32, i32) {
    %c0_i32 = arith.constant 0 : i32
    %c0_i32_0 = arith.constant 0 : i32
    return %arg0, %c0_i32 : i32, i32
  }
  func.func @transform_1(%arg0: i32) -> (i32, i32) {
    %c0_i32 = arith.constant 0 : i32
    %c0_i32_0 = arith.constant 0 : i32
    %c0_i32_1 = arith.constant 0 : i32
    return %c0_i32, %c0_i32_0 : i32, i32
  }
  func.func @transform_2(%arg0: i32) -> (i32, i32) {
    %c0_i32 = arith.constant 0 : i32
    %c0_i32_0 = arith.constant 0 : i32
    return %arg0, %c0_i32 : i32, i32
  }
  func.func @transform_3(%arg0: i32) -> (i32, i32) {
    %c0_i32 = arith.constant 0 : i32
    %c0_i32_0 = arith.constant 0 : i32
    %c0_i32_1 = arith.constant 0 : i32
    return %c0_i32, %c0_i32_0 : i32, i32
  }
  func.func @transform_4(%arg0: i32) -> (i32, i32) {
    %c0_i32 = arith.constant 0 : i32
    %c0_i32_0 = arith.constant 0 : i32
    return %arg0, %c0_i32 : i32, i32
  }
}

module attributes {stable_mosaic.version = 11 : i64} {
  func.func @_matmul_upadd_kernel(%arg0: i32, %arg1: memref<64x16xbf16, #tpu.memory_space<vmem>>, %arg2: memref<16x16xbf16, #tpu.memory_space<vmem>>, %arg3: memref<16x16xbf16, #tpu.memory_space<vmem>>, %arg4: memref<64x16xbf16, #tpu.memory_space<vmem>>, %arg5: memref<64x16xbf16, #tpu.memory_space<vmem>>) attributes {dimension_semantics = [#tpu.dimension_semantics<parallel>], iteration_bounds = array<i64: 2>, scalar_prefetch = 0 : i64, scratch_operands = 0 : i64, tpu.core_type = #tpu.core_type<tc>, window_params = [{transform_indices = @transform_0, window_bounds = array<i64: 64, 16>}, {pipeline_mode = #tpu.pipeline_mode<synchronous>, transform_indices = @transform_1, window_bounds = array<i64: 16, 16>}, {transform_indices = @transform_2, window_bounds = array<i64: 16, 16>}, {pipeline_mode = #tpu.pipeline_mode<synchronous>, transform_indices = @transform_3, window_bounds = array<i64: 64, 16>}, {transform_indices = @transform_4, window_bounds = array<i64: 64, 16>}]} {
    %c0 = arith.constant 0 : index
    %c0_0 = arith.constant 0 : index
    %0 = vector.load %arg1[%c0, %c0_0] : memref<64x16xbf16, #tpu.memory_space<vmem>>, vector<64x16xbf16>
    %c0_1 = arith.constant 0 : index
    %c0_2 = arith.constant 0 : index
    %1 = vector.load %arg2[%c0_1, %c0_2] : memref<16x16xbf16, #tpu.memory_space<vmem>>, vector<16x16xbf16>
    %cst = arith.constant dense<0.000000e+00> : vector<64x16xf32>
    %2 = tpu.matmul %0, %1, %cst {dimension_numbers = #tpu.dot_dimension_numbers<[1], [0], [0], [1], [0, 0, 1, 1], [], []>} : vector<64x16xbf16>, vector<16x16xbf16>, vector<64x16xf32> -> vector<64x16xf32>
    %c0_3 = arith.constant 0 : index
    %c0_4 = arith.constant 0 : index
    %3 = vector.load %arg4[%c0_3, %c0_4] : memref<64x16xbf16, #tpu.memory_space<vmem>>, vector<64x16xbf16>
    %c0_5 = arith.constant 0 : index
    %c0_6 = arith.constant 0 : index
    %4 = vector.load %arg3[%c0_5, %c0_6] : memref<16x16xbf16, #tpu.memory_space<vmem>>, vector<16x16xbf16>
    %cst_7 = arith.constant dense<0.000000e+00> : vector<64x16xf32>
    %5 = tpu.matmul %3, %4, %cst_7 {dimension_numbers = #tpu.dot_dimension_numbers<[1], [0], [0], [1], [0, 0, 1, 1], [], []>} : vector<64x16xbf16>, vector<16x16xbf16>, vector<64x16xf32> -> vector<64x16xf32>
    %6 = arith.addf %2, %5 : vector<64x16xf32>
    %7 = arith.truncf %6 : vector<64x16xf32> to vector<64x16xbf16>
    %c0_8 = arith.constant 0 : index
    %c0_9 = arith.constant 0 : index
    %8 = vector.load %arg5[%c0_8, %c0_9] : memref<64x16xbf16, #tpu.memory_space<vmem>>, vector<64x16xbf16>
    tpu.vector_store %arg5[%c0_8, %c0_9], %7 {strides = array<i32>} : memref<64x16xbf16, #tpu.memory_space<vmem>>, vector<64x16xbf16>,
    return
  }
  func.func @transform_0(%arg0: i32) -> (i32, i32) {
    %c0_i32 = arith.constant 0 : i32
    %c0_i32_0 = arith.constant 0 : i32
    return %arg0, %c0_i32 : i32, i32
  }
  func.func @transform_1(%arg0: i32) -> (i32, i32) {
    %c0_i32 = arith.constant 0 : i32
    %c0_i32_0 = arith.constant 0 : i32
    %c0_i32_1 = arith.constant 0 : i32
    return %c0_i32, %c0_i32_0 : i32, i32
  }
  func.func @transform_2(%arg0: i32) -> (i32, i32) {
    %c0_i32 = arith.constant 0 : i32
    %c0_i32_0 = arith.constant 0 : i32
    return %arg0, %c0_i32 : i32, i32
  }
  func.func @transform_3(%arg0: i32) -> (i32, i32) {
    %c0_i32 = arith.constant 0 : i32
    %c0_i32_0 = arith.constant 0 : i32
    %c0_i32_1 = arith.constant 0 : i32
    return %c0_i32, %c0_i32_0 : i32, i32
  }
  func.func @transform_4(%arg0: i32) -> (i32, i32) {
    %c0_i32 = arith.constant 0 : i32
    %c0_i32_0 = arith.constant 0 : i32
    return %arg0, %c0_i32 : i32, i32
  }
}

module attributes {stable_mosaic.version = 11 : i64} {
  func.func @_matmul_upadd_kernel(%arg0: i32, %arg1: memref<256x8xbf16, #tpu.memory_space<vmem>>, %arg2: memref<8x16xbf16, #tpu.memory_space<vmem>>, %arg3: memref<64x16xbf16, #tpu.memory_space<vmem>>, %arg4: memref<256x64xbf16, #tpu.memory_space<vmem>>, %arg5: memref<256x16xbf16, #tpu.memory_space<vmem>>) attributes {dimension_semantics = [#tpu.dimension_semantics<parallel>], iteration_bounds = array<i64: 2>, scalar_prefetch = 0 : i64, scratch_operands = 0 : i64, tpu.core_type = #tpu.core_type<tc>, window_params = [{transform_indices = @transform_0, window_bounds = array<i64: 256, 8>}, {pipeline_mode = #tpu.pipeline_mode<synchronous>, transform_indices = @transform_1, window_bounds = array<i64: 8, 16>}, {transform_indices = @transform_2, window_bounds = array<i64: 64, 16>}, {pipeline_mode = #tpu.pipeline_mode<synchronous>, transform_indices = @transform_3, window_bounds = array<i64: 256, 64>}, {transform_indices = @transform_4, window_bounds = array<i64: 256, 16>}]} {
    %c0 = arith.constant 0 : index
    %c0_0 = arith.constant 0 : index
    %0 = vector.load %arg1[%c0, %c0_0] : memref<256x8xbf16, #tpu.memory_space<vmem>>, vector<256x8xbf16>
    %c0_1 = arith.constant 0 : index
    %c0_2 = arith.constant 0 : index
    %1 = vector.load %arg2[%c0_1, %c0_2] : memref<8x16xbf16, #tpu.memory_space<vmem>>, vector<8x16xbf16>
    %cst = arith.constant dense<0.000000e+00> : vector<256x16xf32>
    %2 = tpu.matmul %0, %1, %cst {dimension_numbers = #tpu.dot_dimension_numbers<[1], [0], [0], [1], [0, 0, 1, 1], [], []>} : vector<256x8xbf16>, vector<8x16xbf16>, vector<256x16xf32> -> vector<256x16xf32>
    %c0_3 = arith.constant 0 : index
    %c0_4 = arith.constant 0 : index
    %3 = vector.load %arg4[%c0_3, %c0_4] : memref<256x64xbf16, #tpu.memory_space<vmem>>, vector<256x64xbf16>
    %c0_5 = arith.constant 0 : index
    %c0_6 = arith.constant 0 : index
    %4 = vector.load %arg3[%c0_5, %c0_6] : memref<64x16xbf16, #tpu.memory_space<vmem>>, vector<64x16xbf16>
    %cst_7 = arith.constant dense<0.000000e+00> : vector<256x16xf32>
    %5 = tpu.matmul %3, %4, %cst_7 {dimension_numbers = #tpu.dot_dimension_numbers<[1], [0], [0], [1], [0, 0, 1, 1], [], []>} : vector<256x64xbf16>, vector<64x16xbf16>, vector<256x16xf32> -> vector<256x16xf32>
    %6 = arith.addf %2, %5 : vector<256x16xf32>
    %7 = arith.truncf %6 : vector<256x16xf32> to vector<256x16xbf16>
    %c0_8 = arith.constant 0 : index
    %c0_9 = arith.constant 0 : index
    %8 = vector.load %arg5[%c0_8, %c0_9] : memref<256x16xbf16, #tpu.memory_space<vmem>>, vector<256x16xbf16>
    tpu.vector_store %arg5[%c0_8, %c0_9], %7 {strides = array<i32>} : memref<256x16xbf16, #tpu.memory_space<vmem>>, vector<256x16xbf16>,
    return
  }
  func.func @transform_0(%arg0: i32) -> (i32, i32) {
    %c0_i32 = arith.constant 0 : i32
    %c0_i32_0 = arith.constant 0 : i32
    return %arg0, %c0_i32 : i32, i32
  }
  func.func @transform_1(%arg0: i32) -> (i32, i32) {
    %c0_i32 = arith.constant 0 : i32
    %c0_i32_0 = arith.constant 0 : i32
    %c0_i32_1 = arith.constant 0 : i32
    return %c0_i32, %c0_i32_0 : i32, i32
  }
  func.func @transform_2(%arg0: i32) -> (i32, i32) {
    %c0_i32 = arith.constant 0 : i32
    %c0_i32_0 = arith.constant 0 : i32
    return %arg0, %c0_i32 : i32, i32
  }
  func.func @transform_3(%arg0: i32) -> (i32, i32) {
    %c0_i32 = arith.constant 0 : i32
    %c0_i32_0 = arith.constant 0 : i32
    %c0_i32_1 = arith.constant 0 : i32
    return %c0_i32, %c0_i32_0 : i32, i32
  }
  func.func @transform_4(%arg0: i32) -> (i32, i32) {
    %c0_i32 = arith.constant 0 : i32
    %c0_i32_0 = arith.constant 0 : i32
    return %arg0, %c0_i32 : i32, i32
  }
}

module attributes {stable_mosaic.version = 11 : i64} {
  func.func @_conv3x3_kernel(%arg0: i32, %arg1: memref<1x290x16xbf16, #tpu.memory_space<vmem>>, %arg2: memref<3x3x16x4xbf16, #tpu.memory_space<vmem>>, %arg3: memref<256x1xf32, #tpu.memory_space<vmem>>, %arg4: memref<256x1xf32, #tpu.memory_space<vmem>>, %arg5: memref<1x256x4xbf16, #tpu.memory_space<vmem>>) attributes {dimension_semantics = [#tpu.dimension_semantics<parallel>], iteration_bounds = array<i64: 2>, scalar_prefetch = 0 : i64, scratch_operands = 0 : i64, tpu.core_type = #tpu.core_type<tc>, window_params = [{transform_indices = @transform_0, window_bounds = array<i64: 1, 290, 16>}, {pipeline_mode = #tpu.pipeline_mode<synchronous>, transform_indices = @transform_1, window_bounds = array<i64: 3, 3, 16, 4>}, {pipeline_mode = #tpu.pipeline_mode<synchronous>, transform_indices = @transform_2, window_bounds = array<i64: 256, 1>}, {pipeline_mode = #tpu.pipeline_mode<synchronous>, transform_indices = @transform_3, window_bounds = array<i64: 256, 1>}, {transform_indices = @transform_4, window_bounds = array<i64: 1, 256, 4>}]} {
    %cst = arith.constant 0.000000e+00 : f32
    %0 = vector.broadcast %cst : f32 to vector<256x4xf32>
    %c0 = arith.constant 0 : index
    %c0_0 = arith.constant 0 : index
    %c0_1 = arith.constant 0 : index
    %1 = vector.load %arg1[%c0, %c0_0, %c0_1] : memref<1x290x16xbf16, #tpu.memory_space<vmem>>, vector<1x256x16xbf16>
    %2 = vector.shape_cast %1 : vector<1x256x16xbf16> to vector<256x16xbf16>
    %c0_2 = arith.constant 0 : index
    %c0_3 = arith.constant 0 : index
    %c0_4 = arith.constant 0 : index
    %c0_5 = arith.constant 0 : index
    %3 = vector.load %arg2[%c0_2, %c0_3, %c0_4, %c0_5] : memref<3x3x16x4xbf16, #tpu.memory_space<vmem>>, vector<1x1x16x4xbf16>
    %4 = vector.shape_cast %3 : vector<1x1x16x4xbf16> to vector<16x4xbf16>
    %cst_6 = arith.constant dense<0.000000e+00> : vector<256x4xf32>
    %5 = tpu.matmul %2, %4, %cst_6 {dimension_numbers = #tpu.dot_dimension_numbers<[1], [0], [0], [1], [0, 0, 1, 1], [], []>} : vector<256x16xbf16>, vector<16x4xbf16>, vector<256x4xf32> -> vector<256x4xf32>
    %c0_7 = arith.constant 0 : index
    %c0_8 = arith.constant 0 : index
    %6 = vector.load %arg3[%c0_7, %c0_8] : memref<256x1xf32, #tpu.memory_space<vmem>>, vector<256x1xf32>
    %7 = vector.broadcast %6 : vector<256x1xf32> to vector<256x4xf32>
    %8 = arith.mulf %5, %7 : vector<256x4xf32>
    %9 = arith.addf %0, %8 : vector<256x4xf32>
    %c0_9 = arith.constant 0 : index
    %c1 = arith.constant 1 : index
    %c0_10 = arith.constant 0 : index
    %10 = vector.load %arg1[%c0_9, %c1, %c0_10] : memref<1x290x16xbf16, #tpu.memory_space<vmem>>, vector<1x256x16xbf16>
    %11 = vector.shape_cast %10 : vector<1x256x16xbf16> to vector<256x16xbf16>
    %c0_11 = arith.constant 0 : index
    %c1_12 = arith.constant 1 : index
    %c0_13 = arith.constant 0 : index
    %c0_14 = arith.constant 0 : index
    %12 = vector.load %arg2[%c0_11, %c1_12, %c0_13, %c0_14] : memref<3x3x16x4xbf16, #tpu.memory_space<vmem>>, vector<1x1x16x4xbf16>
    %13 = vector.shape_cast %12 : vector<1x1x16x4xbf16> to vector<16x4xbf16>
    %cst_15 = arith.constant dense<0.000000e+00> : vector<256x4xf32>
    %14 = tpu.matmul %11, %13, %cst_15 {dimension_numbers = #tpu.dot_dimension_numbers<[1], [0], [0], [1], [0, 0, 1, 1], [], []>} : vector<256x16xbf16>, vector<16x4xbf16>, vector<256x4xf32> -> vector<256x4xf32>
    %15 = arith.addf %9, %14 : vector<256x4xf32>
    %c0_16 = arith.constant 0 : index
    %c2 = arith.constant 2 : index
    %c0_17 = arith.constant 0 : index
    %16 = vector.load %arg1[%c0_16, %c2, %c0_17] : memref<1x290x16xbf16, #tpu.memory_space<vmem>>, vector<1x256x16xbf16>
    %17 = vector.shape_cast %16 : vector<1x256x16xbf16> to vector<256x16xbf16>
    %c0_18 = arith.constant 0 : index
    %c2_19 = arith.constant 2 : index
    %c0_20 = arith.constant 0 : index
    %c0_21 = arith.constant 0 : index
    %18 = vector.load %arg2[%c0_18, %c2_19, %c0_20, %c0_21] : memref<3x3x16x4xbf16, #tpu.memory_space<vmem>>, vector<1x1x16x4xbf16>
    %19 = vector.shape_cast %18 : vector<1x1x16x4xbf16> to vector<16x4xbf16>
    %cst_22 = arith.constant dense<0.000000e+00> : vector<256x4xf32>
    %20 = tpu.matmul %17, %19, %cst_22 {dimension_numbers = #tpu.dot_dimension_numbers<[1], [0], [0], [1], [0, 0, 1, 1], [], []>} : vector<256x16xbf16>, vector<16x4xbf16>, vector<256x4xf32> -> vector<256x4xf32>
    %c0_23 = arith.constant 0 : index
    %c0_24 = arith.constant 0 : index
    %21 = vector.load %arg4[%c0_23, %c0_24] : memref<256x1xf32, #tpu.memory_space<vmem>>, vector<256x1xf32>
    %22 = vector.broadcast %21 : vector<256x1xf32> to vector<256x4xf32>
    %23 = arith.mulf %20, %22 : vector<256x4xf32>
    %24 = arith.addf %15, %23 : vector<256x4xf32>
    %c0_25 = arith.constant 0 : index
    %c16 = arith.constant 16 : index
    %c0_26 = arith.constant 0 : index
    %25 = vector.load %arg1[%c0_25, %c16, %c0_26] : memref<1x290x16xbf16, #tpu.memory_space<vmem>>, vector<1x256x16xbf16>
    %26 = vector.shape_cast %25 : vector<1x256x16xbf16> to vector<256x16xbf16>
    %c1_27 = arith.constant 1 : index
    %c0_28 = arith.constant 0 : index
    %c0_29 = arith.constant 0 : index
    %c0_30 = arith.constant 0 : index
    %27 = vector.load %arg2[%c1_27, %c0_28, %c0_29, %c0_30] : memref<3x3x16x4xbf16, #tpu.memory_space<vmem>>, vector<1x1x16x4xbf16>
    %28 = vector.shape_cast %27 : vector<1x1x16x4xbf16> to vector<16x4xbf16>
    %cst_31 = arith.constant dense<0.000000e+00> : vector<256x4xf32>
    %29 = tpu.matmul %26, %28, %cst_31 {dimension_numbers = #tpu.dot_dimension_numbers<[1], [0], [0], [1], [0, 0, 1, 1], [], []>} : vector<256x16xbf16>, vector<16x4xbf16>, vector<256x4xf32> -> vector<256x4xf32>
    %c0_32 = arith.constant 0 : index
    %c0_33 = arith.constant 0 : index
    %30 = vector.load %arg3[%c0_32, %c0_33] : memref<256x1xf32, #tpu.memory_space<vmem>>, vector<256x1xf32>
    %31 = vector.broadcast %30 : vector<256x1xf32> to vector<256x4xf32>
    %32 = arith.mulf %29, %31 : vector<256x4xf32>
    %33 = arith.addf %24, %32 : vector<256x4xf32>
    %c0_34 = arith.constant 0 : index
    %c17 = arith.constant 17 : index
    %c0_35 = arith.constant 0 : index
    %34 = vector.load %arg1[%c0_34, %c17, %c0_35] : memref<1x290x16xbf16, #tpu.memory_space<vmem>>, vector<1x256x16xbf16>
    %35 = vector.shape_cast %34 : vector<1x256x16xbf16> to vector<256x16xbf16>
    %c1_36 = arith.constant 1 : index
    %c1_37 = arith.constant 1 : index
    %c0_38 = arith.constant 0 : index
    %c0_39 = arith.constant 0 : index
    %36 = vector.load %arg2[%c1_36, %c1_37, %c0_38, %c0_39] : memref<3x3x16x4xbf16, #tpu.memory_space<vmem>>, vector<1x1x16x4xbf16>
    %37 = vector.shape_cast %36 : vector<1x1x16x4xbf16> to vector<16x4xbf16>
    %cst_40 = arith.constant dense<0.000000e+00> : vector<256x4xf32>
    %38 = tpu.matmul %35, %37, %cst_40 {dimension_numbers = #tpu.dot_dimension_numbers<[1], [0], [0], [1], [0, 0, 1, 1], [], []>} : vector<256x16xbf16>, vector<16x4xbf16>, vector<256x4xf32> -> vector<256x4xf32>
    %39 = arith.addf %33, %38 : vector<256x4xf32>
    %c0_41 = arith.constant 0 : index
    %c18 = arith.constant 18 : index
    %c0_42 = arith.constant 0 : index
    %40 = vector.load %arg1[%c0_41, %c18, %c0_42] : memref<1x290x16xbf16, #tpu.memory_space<vmem>>, vector<1x256x16xbf16>
    %41 = vector.shape_cast %40 : vector<1x256x16xbf16> to vector<256x16xbf16>
    %c1_43 = arith.constant 1 : index
    %c2_44 = arith.constant 2 : index
    %c0_45 = arith.constant 0 : index
    %c0_46 = arith.constant 0 : index
    %42 = vector.load %arg2[%c1_43, %c2_44, %c0_45, %c0_46] : memref<3x3x16x4xbf16, #tpu.memory_space<vmem>>, vector<1x1x16x4xbf16>
    %43 = vector.shape_cast %42 : vector<1x1x16x4xbf16> to vector<16x4xbf16>
    %cst_47 = arith.constant dense<0.000000e+00> : vector<256x4xf32>
    %44 = tpu.matmul %41, %43, %cst_47 {dimension_numbers = #tpu.dot_dimension_numbers<[1], [0], [0], [1], [0, 0, 1, 1], [], []>} : vector<256x16xbf16>, vector<16x4xbf16>, vector<256x4xf32> -> vector<256x4xf32>
    %c0_48 = arith.constant 0 : index
    %c0_49 = arith.constant 0 : index
    %45 = vector.load %arg4[%c0_48, %c0_49] : memref<256x1xf32, #tpu.memory_space<vmem>>, vector<256x1xf32>
    %46 = vector.broadcast %45 : vector<256x1xf32> to vector<256x4xf32>
    %47 = arith.mulf %44, %46 : vector<256x4xf32>
    %48 = arith.addf %39, %47 : vector<256x4xf32>
    %c0_50 = arith.constant 0 : index
    %c32 = arith.constant 32 : index
    %c0_51 = arith.constant 0 : index
    %49 = vector.load %arg1[%c0_50, %c32, %c0_51] : memref<1x290x16xbf16, #tpu.memory_space<vmem>>, vector<1x256x16xbf16>
    %50 = vector.shape_cast %49 : vector<1x256x16xbf16> to vector<256x16xbf16>
    %c2_52 = arith.constant 2 : index
    %c0_53 = arith.constant 0 : index
    %c0_54 = arith.constant 0 : index
    %c0_55 = arith.constant 0 : index
    %51 = vector.load %arg2[%c2_52, %c0_53, %c0_54, %c0_55] : memref<3x3x16x4xbf16, #tpu.memory_space<vmem>>, vector<1x1x16x4xbf16>
    %52 = vector.shape_cast %51 : vector<1x1x16x4xbf16> to vector<16x4xbf16>
    %cst_56 = arith.constant dense<0.000000e+00> : vector<256x4xf32>
    %53 = tpu.matmul %50, %52, %cst_56 {dimension_numbers = #tpu.dot_dimension_numbers<[1], [0], [0], [1], [0, 0, 1, 1], [], []>} : vector<256x16xbf16>, vector<16x4xbf16>, vector<256x4xf32> -> vector<256x4xf32>
    %c0_57 = arith.constant 0 : index
    %c0_58 = arith.constant 0 : index
    %54 = vector.load %arg3[%c0_57, %c0_58] : memref<256x1xf32, #tpu.memory_space<vmem>>, vector<256x1xf32>
    %55 = vector.broadcast %54 : vector<256x1xf32> to vector<256x4xf32>
    %56 = arith.mulf %53, %55 : vector<256x4xf32>
    %57 = arith.addf %48, %56 : vector<256x4xf32>
    %c0_59 = arith.constant 0 : index
    %c33 = arith.constant 33 : index
    %c0_60 = arith.constant 0 : index
    %58 = vector.load %arg1[%c0_59, %c33, %c0_60] : memref<1x290x16xbf16, #tpu.memory_space<vmem>>, vector<1x256x16xbf16>
    %59 = vector.shape_cast %58 : vector<1x256x16xbf16> to vector<256x16xbf16>
    %c2_61 = arith.constant 2 : index
    %c1_62 = arith.constant 1 : index
    %c0_63 = arith.constant 0 : index
    %c0_64 = arith.constant 0 : index
    %60 = vector.load %arg2[%c2_61, %c1_62, %c0_63, %c0_64] : memref<3x3x16x4xbf16, #tpu.memory_space<vmem>>, vector<1x1x16x4xbf16>
    %61 = vector.shape_cast %60 : vector<1x1x16x4xbf16> to vector<16x4xbf16>
    %cst_65 = arith.constant dense<0.000000e+00> : vector<256x4xf32>
    %62 = tpu.matmul %59, %61, %cst_65 {dimension_numbers = #tpu.dot_dimension_numbers<[1], [0], [0], [1], [0, 0, 1, 1], [], []>} : vector<256x16xbf16>, vector<16x4xbf16>, vector<256x4xf32> -> vector<256x4xf32>
    %63 = arith.addf %57, %62 : vector<256x4xf32>
    %c0_66 = arith.constant 0 : index
    %c34 = arith.constant 34 : index
    %c0_67 = arith.constant 0 : index
    %64 = vector.load %arg1[%c0_66, %c34, %c0_67] : memref<1x290x16xbf16, #tpu.memory_space<vmem>>, vector<1x256x16xbf16>
    %65 = vector.shape_cast %64 : vector<1x256x16xbf16> to vector<256x16xbf16>
    %c2_68 = arith.constant 2 : index
    %c2_69 = arith.constant 2 : index
    %c0_70 = arith.constant 0 : index
    %c0_71 = arith.constant 0 : index
    %66 = vector.load %arg2[%c2_68, %c2_69, %c0_70, %c0_71] : memref<3x3x16x4xbf16, #tpu.memory_space<vmem>>, vector<1x1x16x4xbf16>
    %67 = vector.shape_cast %66 : vector<1x1x16x4xbf16> to vector<16x4xbf16>
    %cst_72 = arith.constant dense<0.000000e+00> : vector<256x4xf32>
    %68 = tpu.matmul %65, %67, %cst_72 {dimension_numbers = #tpu.dot_dimension_numbers<[1], [0], [0], [1], [0, 0, 1, 1], [], []>} : vector<256x16xbf16>, vector<16x4xbf16>, vector<256x4xf32> -> vector<256x4xf32>
    %c0_73 = arith.constant 0 : index
    %c0_74 = arith.constant 0 : index
    %69 = vector.load %arg4[%c0_73, %c0_74] : memref<256x1xf32, #tpu.memory_space<vmem>>, vector<256x1xf32>
    %70 = vector.broadcast %69 : vector<256x1xf32> to vector<256x4xf32>
    %71 = arith.mulf %68, %70 : vector<256x4xf32>
    %72 = arith.addf %63, %71 : vector<256x4xf32>
    %73 = arith.truncf %72 : vector<256x4xf32> to vector<256x4xbf16>
    %c0_75 = arith.constant 0 : index
    %c0_76 = arith.constant 0 : index
    %c0_77 = arith.constant 0 : index
    %74 = vector.load %arg5[%c0_75, %c0_76, %c0_77] : memref<1x256x4xbf16, #tpu.memory_space<vmem>>, vector<1x256x4xbf16>
    %75 = vector.shape_cast %74 : vector<1x256x4xbf16> to vector<256x4xbf16>
    %76 = vector.shape_cast %73 : vector<256x4xbf16> to vector<1x256x4xbf16>
    tpu.vector_store %arg5[%c0_75, %c0_76, %c0_77], %76 {strides = array<i32>} : memref<1x256x4xbf16, #tpu.memory_space<vmem>>, vector<1x256x4xbf16>,
    return
  }
  func.func @transform_0(%arg0: i32) -> (i32, i32, i32) {
    %c0_i32 = arith.constant 0 : i32
    %c0_i32_0 = arith.constant 0 : i32
    %c0_i32_1 = arith.constant 0 : i32
    return %arg0, %c0_i32, %c0_i32_0 : i32, i32, i32
  }
  func.func @transform_1(%arg0: i32) -> (i32, i32, i32, i32) {
    %c0_i32 = arith.constant 0 : i32
    %c0_i32_0 = arith.constant 0 : i32
    %c0_i32_1 = arith.constant 0 : i32
    %c0_i32_2 = arith.constant 0 : i32
    %c0_i32_3 = arith.constant 0 : i32
    return %c0_i32, %c0_i32_0, %c0_i32_1, %c0_i32_2 : i32, i32, i32, i32
  }
  func.func @transform_2(%arg0: i32) -> (i32, i32) {
    %c0_i32 = arith.constant 0 : i32
    %c0_i32_0 = arith.constant 0 : i32
    %c0_i32_1 = arith.constant 0 : i32
    return %c0_i32, %c0_i32_0 : i32, i32
  }
  func.func @transform_3(%arg0: i32) -> (i32, i32) {
    %c0_i32 = arith.constant 0 : i32
    %c0_i32_0 = arith.constant 0 : i32
    %c0_i32_1 = arith.constant 0 : i32
    return %c0_i32, %c0_i32_0 : i32, i32
  }
  func.func @transform_4(%arg0: i32) -> (i32, i32, i32) {
    %c0_i32 = arith.constant 0 : i32
    %c0_i32_0 = arith.constant 0 : i32
    %c0_i32_1 = arith.constant 0 : i32
    return %arg0, %c0_i32, %c0_i32_0 : i32, i32, i32
  }
}

module attributes {stable_mosaic.version = 11 : i64} {
  func.func @_conv3x3_kernel(%arg0: i32, %arg1: memref<1x82x16xbf16, #tpu.memory_space<vmem>>, %arg2: memref<3x3x16x4xbf16, #tpu.memory_space<vmem>>, %arg3: memref<64x1xf32, #tpu.memory_space<vmem>>, %arg4: memref<64x1xf32, #tpu.memory_space<vmem>>, %arg5: memref<1x64x4xbf16, #tpu.memory_space<vmem>>) attributes {dimension_semantics = [#tpu.dimension_semantics<parallel>], iteration_bounds = array<i64: 2>, scalar_prefetch = 0 : i64, scratch_operands = 0 : i64, tpu.core_type = #tpu.core_type<tc>, window_params = [{transform_indices = @transform_0, window_bounds = array<i64: 1, 82, 16>}, {pipeline_mode = #tpu.pipeline_mode<synchronous>, transform_indices = @transform_1, window_bounds = array<i64: 3, 3, 16, 4>}, {pipeline_mode = #tpu.pipeline_mode<synchronous>, transform_indices = @transform_2, window_bounds = array<i64: 64, 1>}, {pipeline_mode = #tpu.pipeline_mode<synchronous>, transform_indices = @transform_3, window_bounds = array<i64: 64, 1>}, {transform_indices = @transform_4, window_bounds = array<i64: 1, 64, 4>}]} {
    %cst = arith.constant 0.000000e+00 : f32
    %0 = vector.broadcast %cst : f32 to vector<64x4xf32>
    %c0 = arith.constant 0 : index
    %c0_0 = arith.constant 0 : index
    %c0_1 = arith.constant 0 : index
    %1 = vector.load %arg1[%c0, %c0_0, %c0_1] : memref<1x82x16xbf16, #tpu.memory_space<vmem>>, vector<1x64x16xbf16>
    %2 = vector.shape_cast %1 : vector<1x64x16xbf16> to vector<64x16xbf16>
    %c0_2 = arith.constant 0 : index
    %c0_3 = arith.constant 0 : index
    %c0_4 = arith.constant 0 : index
    %c0_5 = arith.constant 0 : index
    %3 = vector.load %arg2[%c0_2, %c0_3, %c0_4, %c0_5] : memref<3x3x16x4xbf16, #tpu.memory_space<vmem>>, vector<1x1x16x4xbf16>
    %4 = vector.shape_cast %3 : vector<1x1x16x4xbf16> to vector<16x4xbf16>
    %cst_6 = arith.constant dense<0.000000e+00> : vector<64x4xf32>
    %5 = tpu.matmul %2, %4, %cst_6 {dimension_numbers = #tpu.dot_dimension_numbers<[1], [0], [0], [1], [0, 0, 1, 1], [], []>} : vector<64x16xbf16>, vector<16x4xbf16>, vector<64x4xf32> -> vector<64x4xf32>
    %c0_7 = arith.constant 0 : index
    %c0_8 = arith.constant 0 : index
    %6 = vector.load %arg3[%c0_7, %c0_8] : memref<64x1xf32, #tpu.memory_space<vmem>>, vector<64x1xf32>
    %7 = vector.broadcast %6 : vector<64x1xf32> to vector<64x4xf32>
    %8 = arith.mulf %5, %7 : vector<64x4xf32>
    %9 = arith.addf %0, %8 : vector<64x4xf32>
    %c0_9 = arith.constant 0 : index
    %c1 = arith.constant 1 : index
    %c0_10 = arith.constant 0 : index
    %10 = vector.load %arg1[%c0_9, %c1, %c0_10] : memref<1x82x16xbf16, #tpu.memory_space<vmem>>, vector<1x64x16xbf16>
    %11 = vector.shape_cast %10 : vector<1x64x16xbf16> to vector<64x16xbf16>
    %c0_11 = arith.constant 0 : index
    %c1_12 = arith.constant 1 : index
    %c0_13 = arith.constant 0 : index
    %c0_14 = arith.constant 0 : index
    %12 = vector.load %arg2[%c0_11, %c1_12, %c0_13, %c0_14] : memref<3x3x16x4xbf16, #tpu.memory_space<vmem>>, vector<1x1x16x4xbf16>
    %13 = vector.shape_cast %12 : vector<1x1x16x4xbf16> to vector<16x4xbf16>
    %cst_15 = arith.constant dense<0.000000e+00> : vector<64x4xf32>
    %14 = tpu.matmul %11, %13, %cst_15 {dimension_numbers = #tpu.dot_dimension_numbers<[1], [0], [0], [1], [0, 0, 1, 1], [], []>} : vector<64x16xbf16>, vector<16x4xbf16>, vector<64x4xf32> -> vector<64x4xf32>
    %15 = arith.addf %9, %14 : vector<64x4xf32>
    %c0_16 = arith.constant 0 : index
    %c2 = arith.constant 2 : index
    %c0_17 = arith.constant 0 : index
    %16 = vector.load %arg1[%c0_16, %c2, %c0_17] : memref<1x82x16xbf16, #tpu.memory_space<vmem>>, vector<1x64x16xbf16>
    %17 = vector.shape_cast %16 : vector<1x64x16xbf16> to vector<64x16xbf16>
    %c0_18 = arith.constant 0 : index
    %c2_19 = arith.constant 2 : index
    %c0_20 = arith.constant 0 : index
    %c0_21 = arith.constant 0 : index
    %18 = vector.load %arg2[%c0_18, %c2_19, %c0_20, %c0_21] : memref<3x3x16x4xbf16, #tpu.memory_space<vmem>>, vector<1x1x16x4xbf16>
    %19 = vector.shape_cast %18 : vector<1x1x16x4xbf16> to vector<16x4xbf16>
    %cst_22 = arith.constant dense<0.000000e+00> : vector<64x4xf32>
    %20 = tpu.matmul %17, %19, %cst_22 {dimension_numbers = #tpu.dot_dimension_numbers<[1], [0], [0], [1], [0, 0, 1, 1], [], []>} : vector<64x16xbf16>, vector<16x4xbf16>, vector<64x4xf32> -> vector<64x4xf32>
    %c0_23 = arith.constant 0 : index
    %c0_24 = arith.constant 0 : index
    %21 = vector.load %arg4[%c0_23, %c0_24] : memref<64x1xf32, #tpu.memory_space<vmem>>, vector<64x1xf32>
    %22 = vector.broadcast %21 : vector<64x1xf32> to vector<64x4xf32>
    %23 = arith.mulf %20, %22 : vector<64x4xf32>
    %24 = arith.addf %15, %23 : vector<64x4xf32>
    %c0_25 = arith.constant 0 : index
    %c8 = arith.constant 8 : index
    %c0_26 = arith.constant 0 : index
    %25 = vector.load %arg1[%c0_25, %c8, %c0_26] : memref<1x82x16xbf16, #tpu.memory_space<vmem>>, vector<1x64x16xbf16>
    %26 = vector.shape_cast %25 : vector<1x64x16xbf16> to vector<64x16xbf16>
    %c1_27 = arith.constant 1 : index
    %c0_28 = arith.constant 0 : index
    %c0_29 = arith.constant 0 : index
    %c0_30 = arith.constant 0 : index
    %27 = vector.load %arg2[%c1_27, %c0_28, %c0_29, %c0_30] : memref<3x3x16x4xbf16, #tpu.memory_space<vmem>>, vector<1x1x16x4xbf16>
    %28 = vector.shape_cast %27 : vector<1x1x16x4xbf16> to vector<16x4xbf16>
    %cst_31 = arith.constant dense<0.000000e+00> : vector<64x4xf32>
    %29 = tpu.matmul %26, %28, %cst_31 {dimension_numbers = #tpu.dot_dimension_numbers<[1], [0], [0], [1], [0, 0, 1, 1], [], []>} : vector<64x16xbf16>, vector<16x4xbf16>, vector<64x4xf32> -> vector<64x4xf32>
    %c0_32 = arith.constant 0 : index
    %c0_33 = arith.constant 0 : index
    %30 = vector.load %arg3[%c0_32, %c0_33] : memref<64x1xf32, #tpu.memory_space<vmem>>, vector<64x1xf32>
    %31 = vector.broadcast %30 : vector<64x1xf32> to vector<64x4xf32>
    %32 = arith.mulf %29, %31 : vector<64x4xf32>
    %33 = arith.addf %24, %32 : vector<64x4xf32>
    %c0_34 = arith.constant 0 : index
    %c9 = arith.constant 9 : index
    %c0_35 = arith.constant 0 : index
    %34 = vector.load %arg1[%c0_34, %c9, %c0_35] : memref<1x82x16xbf16, #tpu.memory_space<vmem>>, vector<1x64x16xbf16>
    %35 = vector.shape_cast %34 : vector<1x64x16xbf16> to vector<64x16xbf16>
    %c1_36 = arith.constant 1 : index
    %c1_37 = arith.constant 1 : index
    %c0_38 = arith.constant 0 : index
    %c0_39 = arith.constant 0 : index
    %36 = vector.load %arg2[%c1_36, %c1_37, %c0_38, %c0_39] : memref<3x3x16x4xbf16, #tpu.memory_space<vmem>>, vector<1x1x16x4xbf16>
    %37 = vector.shape_cast %36 : vector<1x1x16x4xbf16> to vector<16x4xbf16>
    %cst_40 = arith.constant dense<0.000000e+00> : vector<64x4xf32>
    %38 = tpu.matmul %35, %37, %cst_40 {dimension_numbers = #tpu.dot_dimension_numbers<[1], [0], [0], [1], [0, 0, 1, 1], [], []>} : vector<64x16xbf16>, vector<16x4xbf16>, vector<64x4xf32> -> vector<64x4xf32>
    %39 = arith.addf %33, %38 : vector<64x4xf32>
    %c0_41 = arith.constant 0 : index
    %c10 = arith.constant 10 : index
    %c0_42 = arith.constant 0 : index
    %40 = vector.load %arg1[%c0_41, %c10, %c0_42] : memref<1x82x16xbf16, #tpu.memory_space<vmem>>, vector<1x64x16xbf16>
    %41 = vector.shape_cast %40 : vector<1x64x16xbf16> to vector<64x16xbf16>
    %c1_43 = arith.constant 1 : index
    %c2_44 = arith.constant 2 : index
    %c0_45 = arith.constant 0 : index
    %c0_46 = arith.constant 0 : index
    %42 = vector.load %arg2[%c1_43, %c2_44, %c0_45, %c0_46] : memref<3x3x16x4xbf16, #tpu.memory_space<vmem>>, vector<1x1x16x4xbf16>
    %43 = vector.shape_cast %42 : vector<1x1x16x4xbf16> to vector<16x4xbf16>
    %cst_47 = arith.constant dense<0.000000e+00> : vector<64x4xf32>
    %44 = tpu.matmul %41, %43, %cst_47 {dimension_numbers = #tpu.dot_dimension_numbers<[1], [0], [0], [1], [0, 0, 1, 1], [], []>} : vector<64x16xbf16>, vector<16x4xbf16>, vector<64x4xf32> -> vector<64x4xf32>
    %c0_48 = arith.constant 0 : index
    %c0_49 = arith.constant 0 : index
    %45 = vector.load %arg4[%c0_48, %c0_49] : memref<64x1xf32, #tpu.memory_space<vmem>>, vector<64x1xf32>
    %46 = vector.broadcast %45 : vector<64x1xf32> to vector<64x4xf32>
    %47 = arith.mulf %44, %46 : vector<64x4xf32>
    %48 = arith.addf %39, %47 : vector<64x4xf32>
    %c0_50 = arith.constant 0 : index
    %c16 = arith.constant 16 : index
    %c0_51 = arith.constant 0 : index
    %49 = vector.load %arg1[%c0_50, %c16, %c0_51] : memref<1x82x16xbf16, #tpu.memory_space<vmem>>, vector<1x64x16xbf16>
    %50 = vector.shape_cast %49 : vector<1x64x16xbf16> to vector<64x16xbf16>
    %c2_52 = arith.constant 2 : index
    %c0_53 = arith.constant 0 : index
    %c0_54 = arith.constant 0 : index
    %c0_55 = arith.constant 0 : index
    %51 = vector.load %arg2[%c2_52, %c0_53, %c0_54, %c0_55] : memref<3x3x16x4xbf16, #tpu.memory_space<vmem>>, vector<1x1x16x4xbf16>
    %52 = vector.shape_cast %51 : vector<1x1x16x4xbf16> to vector<16x4xbf16>
    %cst_56 = arith.constant dense<0.000000e+00> : vector<64x4xf32>
    %53 = tpu.matmul %50, %52, %cst_56 {dimension_numbers = #tpu.dot_dimension_numbers<[1], [0], [0], [1], [0, 0, 1, 1], [], []>} : vector<64x16xbf16>, vector<16x4xbf16>, vector<64x4xf32> -> vector<64x4xf32>
    %c0_57 = arith.constant 0 : index
    %c0_58 = arith.constant 0 : index
    %54 = vector.load %arg3[%c0_57, %c0_58] : memref<64x1xf32, #tpu.memory_space<vmem>>, vector<64x1xf32>
    %55 = vector.broadcast %54 : vector<64x1xf32> to vector<64x4xf32>
    %56 = arith.mulf %53, %55 : vector<64x4xf32>
    %57 = arith.addf %48, %56 : vector<64x4xf32>
    %c0_59 = arith.constant 0 : index
    %c17 = arith.constant 17 : index
    %c0_60 = arith.constant 0 : index
    %58 = vector.load %arg1[%c0_59, %c17, %c0_60] : memref<1x82x16xbf16, #tpu.memory_space<vmem>>, vector<1x64x16xbf16>
    %59 = vector.shape_cast %58 : vector<1x64x16xbf16> to vector<64x16xbf16>
    %c2_61 = arith.constant 2 : index
    %c1_62 = arith.constant 1 : index
    %c0_63 = arith.constant 0 : index
    %c0_64 = arith.constant 0 : index
    %60 = vector.load %arg2[%c2_61, %c1_62, %c0_63, %c0_64] : memref<3x3x16x4xbf16, #tpu.memory_space<vmem>>, vector<1x1x16x4xbf16>
    %61 = vector.shape_cast %60 : vector<1x1x16x4xbf16> to vector<16x4xbf16>
    %cst_65 = arith.constant dense<0.000000e+00> : vector<64x4xf32>
    %62 = tpu.matmul %59, %61, %cst_65 {dimension_numbers = #tpu.dot_dimension_numbers<[1], [0], [0], [1], [0, 0, 1, 1], [], []>} : vector<64x16xbf16>, vector<16x4xbf16>, vector<64x4xf32> -> vector<64x4xf32>
    %63 = arith.addf %57, %62 : vector<64x4xf32>
    %c0_66 = arith.constant 0 : index
    %c18 = arith.constant 18 : index
    %c0_67 = arith.constant 0 : index
    %64 = vector.load %arg1[%c0_66, %c18, %c0_67] : memref<1x82x16xbf16, #tpu.memory_space<vmem>>, vector<1x64x16xbf16>
    %65 = vector.shape_cast %64 : vector<1x64x16xbf16> to vector<64x16xbf16>
    %c2_68 = arith.constant 2 : index
    %c2_69 = arith.constant 2 : index
    %c0_70 = arith.constant 0 : index
    %c0_71 = arith.constant 0 : index
    %66 = vector.load %arg2[%c2_68, %c2_69, %c0_70, %c0_71] : memref<3x3x16x4xbf16, #tpu.memory_space<vmem>>, vector<1x1x16x4xbf16>
    %67 = vector.shape_cast %66 : vector<1x1x16x4xbf16> to vector<16x4xbf16>
    %cst_72 = arith.constant dense<0.000000e+00> : vector<64x4xf32>
    %68 = tpu.matmul %65, %67, %cst_72 {dimension_numbers = #tpu.dot_dimension_numbers<[1], [0], [0], [1], [0, 0, 1, 1], [], []>} : vector<64x16xbf16>, vector<16x4xbf16>, vector<64x4xf32> -> vector<64x4xf32>
    %c0_73 = arith.constant 0 : index
    %c0_74 = arith.constant 0 : index
    %69 = vector.load %arg4[%c0_73, %c0_74] : memref<64x1xf32, #tpu.memory_space<vmem>>, vector<64x1xf32>
    %70 = vector.broadcast %69 : vector<64x1xf32> to vector<64x4xf32>
    %71 = arith.mulf %68, %70 : vector<64x4xf32>
    %72 = arith.addf %63, %71 : vector<64x4xf32>
    %73 = arith.truncf %72 : vector<64x4xf32> to vector<64x4xbf16>
    %c0_75 = arith.constant 0 : index
    %c0_76 = arith.constant 0 : index
    %c0_77 = arith.constant 0 : index
    %74 = vector.load %arg5[%c0_75, %c0_76, %c0_77] : memref<1x64x4xbf16, #tpu.memory_space<vmem>>, vector<1x64x4xbf16>
    %75 = vector.shape_cast %74 : vector<1x64x4xbf16> to vector<64x4xbf16>
    %76 = vector.shape_cast %73 : vector<64x4xbf16> to vector<1x64x4xbf16>
    tpu.vector_store %arg5[%c0_75, %c0_76, %c0_77], %76 {strides = array<i32>} : memref<1x64x4xbf16, #tpu.memory_space<vmem>>, vector<1x64x4xbf16>,
    return
  }
  func.func @transform_0(%arg0: i32) -> (i32, i32, i32) {
    %c0_i32 = arith.constant 0 : i32
    %c0_i32_0 = arith.constant 0 : i32
    %c0_i32_1 = arith.constant 0 : i32
    return %arg0, %c0_i32, %c0_i32_0 : i32, i32, i32
  }
  func.func @transform_1(%arg0: i32) -> (i32, i32, i32, i32) {
    %c0_i32 = arith.constant 0 : i32
    %c0_i32_0 = arith.constant 0 : i32
    %c0_i32_1 = arith.constant 0 : i32
    %c0_i32_2 = arith.constant 0 : i32
    %c0_i32_3 = arith.constant 0 : i32
    return %c0_i32, %c0_i32_0, %c0_i32_1, %c0_i32_2 : i32, i32, i32, i32
  }
  func.func @transform_2(%arg0: i32) -> (i32, i32) {
    %c0_i32 = arith.constant 0 : i32
    %c0_i32_0 = arith.constant 0 : i32
    %c0_i32_1 = arith.constant 0 : i32
    return %c0_i32, %c0_i32_0 : i32, i32
  }
  func.func @transform_3(%arg0: i32) -> (i32, i32) {
    %c0_i32 = arith.constant 0 : i32
    %c0_i32_0 = arith.constant 0 : i32
    %c0_i32_1 = arith.constant 0 : i32
    return %c0_i32, %c0_i32_0 : i32, i32
  }
  func.func @transform_4(%arg0: i32) -> (i32, i32, i32) {
    %c0_i32 = arith.constant 0 : i32
    %c0_i32_0 = arith.constant 0 : i32
    %c0_i32_1 = arith.constant 0 : i32
    return %arg0, %c0_i32, %c0_i32_0 : i32, i32, i32
  }
}

module attributes {stable_mosaic.version = 11 : i64} {
  func.func @_conv3x3_kernel(%arg0: i32, %arg1: memref<1x26x16xbf16, #tpu.memory_space<vmem>>, %arg2: memref<3x3x16x4xbf16, #tpu.memory_space<vmem>>, %arg3: memref<16x1xf32, #tpu.memory_space<vmem>>, %arg4: memref<16x1xf32, #tpu.memory_space<vmem>>, %arg5: memref<1x16x4xbf16, #tpu.memory_space<vmem>>) attributes {dimension_semantics = [#tpu.dimension_semantics<parallel>], iteration_bounds = array<i64: 2>, scalar_prefetch = 0 : i64, scratch_operands = 0 : i64, tpu.core_type = #tpu.core_type<tc>, window_params = [{transform_indices = @transform_0, window_bounds = array<i64: 1, 26, 16>}, {pipeline_mode = #tpu.pipeline_mode<synchronous>, transform_indices = @transform_1, window_bounds = array<i64: 3, 3, 16, 4>}, {pipeline_mode = #tpu.pipeline_mode<synchronous>, transform_indices = @transform_2, window_bounds = array<i64: 16, 1>}, {pipeline_mode = #tpu.pipeline_mode<synchronous>, transform_indices = @transform_3, window_bounds = array<i64: 16, 1>}, {transform_indices = @transform_4, window_bounds = array<i64: 1, 16, 4>}]} {
    %cst = arith.constant 0.000000e+00 : f32
    %0 = vector.broadcast %cst : f32 to vector<16x4xf32>
    %c0 = arith.constant 0 : index
    %c0_0 = arith.constant 0 : index
    %c0_1 = arith.constant 0 : index
    %1 = vector.load %arg1[%c0, %c0_0, %c0_1] : memref<1x26x16xbf16, #tpu.memory_space<vmem>>, vector<1x16x16xbf16>
    %2 = vector.shape_cast %1 : vector<1x16x16xbf16> to vector<16x16xbf16>
    %c0_2 = arith.constant 0 : index
    %c0_3 = arith.constant 0 : index
    %c0_4 = arith.constant 0 : index
    %c0_5 = arith.constant 0 : index
    %3 = vector.load %arg2[%c0_2, %c0_3, %c0_4, %c0_5] : memref<3x3x16x4xbf16, #tpu.memory_space<vmem>>, vector<1x1x16x4xbf16>
    %4 = vector.shape_cast %3 : vector<1x1x16x4xbf16> to vector<16x4xbf16>
    %cst_6 = arith.constant dense<0.000000e+00> : vector<16x4xf32>
    %5 = tpu.matmul %2, %4, %cst_6 {dimension_numbers = #tpu.dot_dimension_numbers<[1], [0], [0], [1], [0, 0, 1, 1], [], []>} : vector<16x16xbf16>, vector<16x4xbf16>, vector<16x4xf32> -> vector<16x4xf32>
    %c0_7 = arith.constant 0 : index
    %c0_8 = arith.constant 0 : index
    %6 = vector.load %arg3[%c0_7, %c0_8] : memref<16x1xf32, #tpu.memory_space<vmem>>, vector<16x1xf32>
    %7 = vector.broadcast %6 : vector<16x1xf32> to vector<16x4xf32>
    %8 = arith.mulf %5, %7 : vector<16x4xf32>
    %9 = arith.addf %0, %8 : vector<16x4xf32>
    %c0_9 = arith.constant 0 : index
    %c1 = arith.constant 1 : index
    %c0_10 = arith.constant 0 : index
    %10 = vector.load %arg1[%c0_9, %c1, %c0_10] : memref<1x26x16xbf16, #tpu.memory_space<vmem>>, vector<1x16x16xbf16>
    %11 = vector.shape_cast %10 : vector<1x16x16xbf16> to vector<16x16xbf16>
    %c0_11 = arith.constant 0 : index
    %c1_12 = arith.constant 1 : index
    %c0_13 = arith.constant 0 : index
    %c0_14 = arith.constant 0 : index
    %12 = vector.load %arg2[%c0_11, %c1_12, %c0_13, %c0_14] : memref<3x3x16x4xbf16, #tpu.memory_space<vmem>>, vector<1x1x16x4xbf16>
    %13 = vector.shape_cast %12 : vector<1x1x16x4xbf16> to vector<16x4xbf16>
    %cst_15 = arith.constant dense<0.000000e+00> : vector<16x4xf32>
    %14 = tpu.matmul %11, %13, %cst_15 {dimension_numbers = #tpu.dot_dimension_numbers<[1], [0], [0], [1], [0, 0, 1, 1], [], []>} : vector<16x16xbf16>, vector<16x4xbf16>, vector<16x4xf32> -> vector<16x4xf32>
    %15 = arith.addf %9, %14 : vector<16x4xf32>
    %c0_16 = arith.constant 0 : index
    %c2 = arith.constant 2 : index
    %c0_17 = arith.constant 0 : index
    %16 = vector.load %arg1[%c0_16, %c2, %c0_17] : memref<1x26x16xbf16, #tpu.memory_space<vmem>>, vector<1x16x16xbf16>
    %17 = vector.shape_cast %16 : vector<1x16x16xbf16> to vector<16x16xbf16>
    %c0_18 = arith.constant 0 : index
    %c2_19 = arith.constant 2 : index
    %c0_20 = arith.constant 0 : index
    %c0_21 = arith.constant 0 : index
    %18 = vector.load %arg2[%c0_18, %c2_19, %c0_20, %c0_21] : memref<3x3x16x4xbf16, #tpu.memory_space<vmem>>, vector<1x1x16x4xbf16>
    %19 = vector.shape_cast %18 : vector<1x1x16x4xbf16> to vector<16x4xbf16>
    %cst_22 = arith.constant dense<0.000000e+00> : vector<16x4xf32>
    %20 = tpu.matmul %17, %19, %cst_22 {dimension_numbers = #tpu.dot_dimension_numbers<[1], [0], [0], [1], [0, 0, 1, 1], [], []>} : vector<16x16xbf16>, vector<16x4xbf16>, vector<16x4xf32> -> vector<16x4xf32>
    %c0_23 = arith.constant 0 : index
    %c0_24 = arith.constant 0 : index
    %21 = vector.load %arg4[%c0_23, %c0_24] : memref<16x1xf32, #tpu.memory_space<vmem>>, vector<16x1xf32>
    %22 = vector.broadcast %21 : vector<16x1xf32> to vector<16x4xf32>
    %23 = arith.mulf %20, %22 : vector<16x4xf32>
    %24 = arith.addf %15, %23 : vector<16x4xf32>
    %c0_25 = arith.constant 0 : index
    %c4 = arith.constant 4 : index
    %c0_26 = arith.constant 0 : index
    %25 = vector.load %arg1[%c0_25, %c4, %c0_26] : memref<1x26x16xbf16, #tpu.memory_space<vmem>>, vector<1x16x16xbf16>
    %26 = vector.shape_cast %25 : vector<1x16x16xbf16> to vector<16x16xbf16>
    %c1_27 = arith.constant 1 : index
    %c0_28 = arith.constant 0 : index
    %c0_29 = arith.constant 0 : index
    %c0_30 = arith.constant 0 : index
    %27 = vector.load %arg2[%c1_27, %c0_28, %c0_29, %c0_30] : memref<3x3x16x4xbf16, #tpu.memory_space<vmem>>, vector<1x1x16x4xbf16>
    %28 = vector.shape_cast %27 : vector<1x1x16x4xbf16> to vector<16x4xbf16>
    %cst_31 = arith.constant dense<0.000000e+00> : vector<16x4xf32>
    %29 = tpu.matmul %26, %28, %cst_31 {dimension_numbers = #tpu.dot_dimension_numbers<[1], [0], [0], [1], [0, 0, 1, 1], [], []>} : vector<16x16xbf16>, vector<16x4xbf16>, vector<16x4xf32> -> vector<16x4xf32>
    %c0_32 = arith.constant 0 : index
    %c0_33 = arith.constant 0 : index
    %30 = vector.load %arg3[%c0_32, %c0_33] : memref<16x1xf32, #tpu.memory_space<vmem>>, vector<16x1xf32>
    %31 = vector.broadcast %30 : vector<16x1xf32> to vector<16x4xf32>
    %32 = arith.mulf %29, %31 : vector<16x4xf32>
    %33 = arith.addf %24, %32 : vector<16x4xf32>
    %c0_34 = arith.constant 0 : index
    %c5 = arith.constant 5 : index
    %c0_35 = arith.constant 0 : index
    %34 = vector.load %arg1[%c0_34, %c5, %c0_35] : memref<1x26x16xbf16, #tpu.memory_space<vmem>>, vector<1x16x16xbf16>
    %35 = vector.shape_cast %34 : vector<1x16x16xbf16> to vector<16x16xbf16>
    %c1_36 = arith.constant 1 : index
    %c1_37 = arith.constant 1 : index
    %c0_38 = arith.constant 0 : index
    %c0_39 = arith.constant 0 : index
    %36 = vector.load %arg2[%c1_36, %c1_37, %c0_38, %c0_39] : memref<3x3x16x4xbf16, #tpu.memory_space<vmem>>, vector<1x1x16x4xbf16>
    %37 = vector.shape_cast %36 : vector<1x1x16x4xbf16> to vector<16x4xbf16>
    %cst_40 = arith.constant dense<0.000000e+00> : vector<16x4xf32>
    %38 = tpu.matmul %35, %37, %cst_40 {dimension_numbers = #tpu.dot_dimension_numbers<[1], [0], [0], [1], [0, 0, 1, 1], [], []>} : vector<16x16xbf16>, vector<16x4xbf16>, vector<16x4xf32> -> vector<16x4xf32>
    %39 = arith.addf %33, %38 : vector<16x4xf32>
    %c0_41 = arith.constant 0 : index
    %c6 = arith.constant 6 : index
    %c0_42 = arith.constant 0 : index
    %40 = vector.load %arg1[%c0_41, %c6, %c0_42] : memref<1x26x16xbf16, #tpu.memory_space<vmem>>, vector<1x16x16xbf16>
    %41 = vector.shape_cast %40 : vector<1x16x16xbf16> to vector<16x16xbf16>
    %c1_43 = arith.constant 1 : index
    %c2_44 = arith.constant 2 : index
    %c0_45 = arith.constant 0 : index
    %c0_46 = arith.constant 0 : index
    %42 = vector.load %arg2[%c1_43, %c2_44, %c0_45, %c0_46] : memref<3x3x16x4xbf16, #tpu.memory_space<vmem>>, vector<1x1x16x4xbf16>
    %43 = vector.shape_cast %42 : vector<1x1x16x4xbf16> to vector<16x4xbf16>
    %cst_47 = arith.constant dense<0.000000e+00> : vector<16x4xf32>
    %44 = tpu.matmul %41, %43, %cst_47 {dimension_numbers = #tpu.dot_dimension_numbers<[1], [0], [0], [1], [0, 0, 1, 1], [], []>} : vector<16x16xbf16>, vector<16x4xbf16>, vector<16x4xf32> -> vector<16x4xf32>
    %c0_48 = arith.constant 0 : index
    %c0_49 = arith.constant 0 : index
    %45 = vector.load %arg4[%c0_48, %c0_49] : memref<16x1xf32, #tpu.memory_space<vmem>>, vector<16x1xf32>
    %46 = vector.broadcast %45 : vector<16x1xf32> to vector<16x4xf32>
    %47 = arith.mulf %44, %46 : vector<16x4xf32>
    %48 = arith.addf %39, %47 : vector<16x4xf32>
    %c0_50 = arith.constant 0 : index
    %c8 = arith.constant 8 : index
    %c0_51 = arith.constant 0 : index
    %49 = vector.load %arg1[%c0_50, %c8, %c0_51] : memref<1x26x16xbf16, #tpu.memory_space<vmem>>, vector<1x16x16xbf16>
    %50 = vector.shape_cast %49 : vector<1x16x16xbf16> to vector<16x16xbf16>
    %c2_52 = arith.constant 2 : index
    %c0_53 = arith.constant 0 : index
    %c0_54 = arith.constant 0 : index
    %c0_55 = arith.constant 0 : index
    %51 = vector.load %arg2[%c2_52, %c0_53, %c0_54, %c0_55] : memref<3x3x16x4xbf16, #tpu.memory_space<vmem>>, vector<1x1x16x4xbf16>
    %52 = vector.shape_cast %51 : vector<1x1x16x4xbf16> to vector<16x4xbf16>
    %cst_56 = arith.constant dense<0.000000e+00> : vector<16x4xf32>
    %53 = tpu.matmul %50, %52, %cst_56 {dimension_numbers = #tpu.dot_dimension_numbers<[1], [0], [0], [1], [0, 0, 1, 1], [], []>} : vector<16x16xbf16>, vector<16x4xbf16>, vector<16x4xf32> -> vector<16x4xf32>
    %c0_57 = arith.constant 0 : index
    %c0_58 = arith.constant 0 : index
    %54 = vector.load %arg3[%c0_57, %c0_58] : memref<16x1xf32, #tpu.memory_space<vmem>>, vector<16x1xf32>
    %55 = vector.broadcast %54 : vector<16x1xf32> to vector<16x4xf32>
    %56 = arith.mulf %53, %55 : vector<16x4xf32>
    %57 = arith.addf %48, %56 : vector<16x4xf32>
    %c0_59 = arith.constant 0 : index
    %c9 = arith.constant 9 : index
    %c0_60 = arith.constant 0 : index
    %58 = vector.load %arg1[%c0_59, %c9, %c0_60] : memref<1x26x16xbf16, #tpu.memory_space<vmem>>, vector<1x16x16xbf16>
    %59 = vector.shape_cast %58 : vector<1x16x16xbf16> to vector<16x16xbf16>
    %c2_61 = arith.constant 2 : index
    %c1_62 = arith.constant 1 : index
    %c0_63 = arith.constant 0 : index
    %c0_64 = arith.constant 0 : index
    %60 = vector.load %arg2[%c2_61, %c1_62, %c0_63, %c0_64] : memref<3x3x16x4xbf16, #tpu.memory_space<vmem>>, vector<1x1x16x4xbf16>
    %61 = vector.shape_cast %60 : vector<1x1x16x4xbf16> to vector<16x4xbf16>
    %cst_65 = arith.constant dense<0.000000e+00> : vector<16x4xf32>
    %62 = tpu.matmul %59, %61, %cst_65 {dimension_numbers = #tpu.dot_dimension_numbers<[1], [0], [0], [1], [0, 0, 1, 1], [], []>} : vector<16x16xbf16>, vector<16x4xbf16>, vector<16x4xf32> -> vector<16x4xf32>
    %63 = arith.addf %57, %62 : vector<16x4xf32>
    %c0_66 = arith.constant 0 : index
    %c10 = arith.constant 10 : index
    %c0_67 = arith.constant 0 : index
    %64 = vector.load %arg1[%c0_66, %c10, %c0_67] : memref<1x26x16xbf16, #tpu.memory_space<vmem>>, vector<1x16x16xbf16>
    %65 = vector.shape_cast %64 : vector<1x16x16xbf16> to vector<16x16xbf16>
    %c2_68 = arith.constant 2 : index
    %c2_69 = arith.constant 2 : index
    %c0_70 = arith.constant 0 : index
    %c0_71 = arith.constant 0 : index
    %66 = vector.load %arg2[%c2_68, %c2_69, %c0_70, %c0_71] : memref<3x3x16x4xbf16, #tpu.memory_space<vmem>>, vector<1x1x16x4xbf16>
    %67 = vector.shape_cast %66 : vector<1x1x16x4xbf16> to vector<16x4xbf16>
    %cst_72 = arith.constant dense<0.000000e+00> : vector<16x4xf32>
    %68 = tpu.matmul %65, %67, %cst_72 {dimension_numbers = #tpu.dot_dimension_numbers<[1], [0], [0], [1], [0, 0, 1, 1], [], []>} : vector<16x16xbf16>, vector<16x4xbf16>, vector<16x4xf32> -> vector<16x4xf32>
    %c0_73 = arith.constant 0 : index
    %c0_74 = arith.constant 0 : index
    %69 = vector.load %arg4[%c0_73, %c0_74] : memref<16x1xf32, #tpu.memory_space<vmem>>, vector<16x1xf32>
    %70 = vector.broadcast %69 : vector<16x1xf32> to vector<16x4xf32>
    %71 = arith.mulf %68, %70 : vector<16x4xf32>
    %72 = arith.addf %63, %71 : vector<16x4xf32>
    %73 = arith.truncf %72 : vector<16x4xf32> to vector<16x4xbf16>
    %c0_75 = arith.constant 0 : index
    %c0_76 = arith.constant 0 : index
    %c0_77 = arith.constant 0 : index
    %74 = vector.load %arg5[%c0_75, %c0_76, %c0_77] : memref<1x16x4xbf16, #tpu.memory_space<vmem>>, vector<1x16x4xbf16>
    %75 = vector.shape_cast %74 : vector<1x16x4xbf16> to vector<16x4xbf16>
    %76 = vector.shape_cast %73 : vector<16x4xbf16> to vector<1x16x4xbf16>
    tpu.vector_store %arg5[%c0_75, %c0_76, %c0_77], %76 {strides = array<i32>} : memref<1x16x4xbf16, #tpu.memory_space<vmem>>, vector<1x16x4xbf16>,
    return
  }
  func.func @transform_0(%arg0: i32) -> (i32, i32, i32) {
    %c0_i32 = arith.constant 0 : i32
    %c0_i32_0 = arith.constant 0 : i32
    %c0_i32_1 = arith.constant 0 : i32
    return %arg0, %c0_i32, %c0_i32_0 : i32, i32, i32
  }
  func.func @transform_1(%arg0: i32) -> (i32, i32, i32, i32) {
    %c0_i32 = arith.constant 0 : i32
    %c0_i32_0 = arith.constant 0 : i32
    %c0_i32_1 = arith.constant 0 : i32
    %c0_i32_2 = arith.constant 0 : i32
    %c0_i32_3 = arith.constant 0 : i32
    return %c0_i32, %c0_i32_0, %c0_i32_1, %c0_i32_2 : i32, i32, i32, i32
  }
  func.func @transform_2(%arg0: i32) -> (i32, i32) {
    %c0_i32 = arith.constant 0 : i32
    %c0_i32_0 = arith.constant 0 : i32
    %c0_i32_1 = arith.constant 0 : i32
    return %c0_i32, %c0_i32_0 : i32, i32
  }
  func.func @transform_3(%arg0: i32) -> (i32, i32) {
    %c0_i32 = arith.constant 0 : i32
    %c0_i32_0 = arith.constant 0 : i32
    %c0_i32_1 = arith.constant 0 : i32
    return %c0_i32, %c0_i32_0 : i32, i32
  }
  func.func @transform_4(%arg0: i32) -> (i32, i32, i32) {
    %c0_i32 = arith.constant 0 : i32
    %c0_i32_0 = arith.constant 0 : i32
    %c0_i32_1 = arith.constant 0 : i32
    return %arg0, %c0_i32, %c0_i32_0 : i32, i32, i32
  }
}

module attributes {stable_mosaic.version = 11 : i64} {
  func.func @_conv3x3_kernel(%arg0: i32, %arg1: memref<1x10x16xbf16, #tpu.memory_space<vmem>>, %arg2: memref<3x3x16x4xbf16, #tpu.memory_space<vmem>>, %arg3: memref<4x1xf32, #tpu.memory_space<vmem>>, %arg4: memref<4x1xf32, #tpu.memory_space<vmem>>, %arg5: memref<1x4x4xbf16, #tpu.memory_space<vmem>>) attributes {dimension_semantics = [#tpu.dimension_semantics<parallel>], iteration_bounds = array<i64: 2>, scalar_prefetch = 0 : i64, scratch_operands = 0 : i64, tpu.core_type = #tpu.core_type<tc>, window_params = [{transform_indices = @transform_0, window_bounds = array<i64: 1, 10, 16>}, {pipeline_mode = #tpu.pipeline_mode<synchronous>, transform_indices = @transform_1, window_bounds = array<i64: 3, 3, 16, 4>}, {pipeline_mode = #tpu.pipeline_mode<synchronous>, transform_indices = @transform_2, window_bounds = array<i64: 4, 1>}, {pipeline_mode = #tpu.pipeline_mode<synchronous>, transform_indices = @transform_3, window_bounds = array<i64: 4, 1>}, {transform_indices = @transform_4, window_bounds = array<i64: 1, 4, 4>}]} {
    %cst = arith.constant 0.000000e+00 : f32
    %0 = vector.broadcast %cst : f32 to vector<4x4xf32>
    %c0 = arith.constant 0 : index
    %c0_0 = arith.constant 0 : index
    %c0_1 = arith.constant 0 : index
    %1 = vector.load %arg1[%c0, %c0_0, %c0_1] : memref<1x10x16xbf16, #tpu.memory_space<vmem>>, vector<1x4x16xbf16>
    %2 = vector.shape_cast %1 : vector<1x4x16xbf16> to vector<4x16xbf16>
    %c0_2 = arith.constant 0 : index
    %c0_3 = arith.constant 0 : index
    %c0_4 = arith.constant 0 : index
    %c0_5 = arith.constant 0 : index
    %3 = vector.load %arg2[%c0_2, %c0_3, %c0_4, %c0_5] : memref<3x3x16x4xbf16, #tpu.memory_space<vmem>>, vector<1x1x16x4xbf16>
    %4 = vector.shape_cast %3 : vector<1x1x16x4xbf16> to vector<16x4xbf16>
    %cst_6 = arith.constant dense<0.000000e+00> : vector<4x4xf32>
    %5 = tpu.matmul %2, %4, %cst_6 {dimension_numbers = #tpu.dot_dimension_numbers<[1], [0], [0], [1], [0, 0, 1, 1], [], []>} : vector<4x16xbf16>, vector<16x4xbf16>, vector<4x4xf32> -> vector<4x4xf32>
    %c0_7 = arith.constant 0 : index
    %c0_8 = arith.constant 0 : index
    %6 = vector.load %arg3[%c0_7, %c0_8] : memref<4x1xf32, #tpu.memory_space<vmem>>, vector<4x1xf32>
    %7 = vector.broadcast %6 : vector<4x1xf32> to vector<4x4xf32>
    %8 = arith.mulf %5, %7 : vector<4x4xf32>
    %9 = arith.addf %0, %8 : vector<4x4xf32>
    %c0_9 = arith.constant 0 : index
    %c1 = arith.constant 1 : index
    %c0_10 = arith.constant 0 : index
    %10 = vector.load %arg1[%c0_9, %c1, %c0_10] : memref<1x10x16xbf16, #tpu.memory_space<vmem>>, vector<1x4x16xbf16>
    %11 = vector.shape_cast %10 : vector<1x4x16xbf16> to vector<4x16xbf16>
    %c0_11 = arith.constant 0 : index
    %c1_12 = arith.constant 1 : index
    %c0_13 = arith.constant 0 : index
    %c0_14 = arith.constant 0 : index
    %12 = vector.load %arg2[%c0_11, %c1_12, %c0_13, %c0_14] : memref<3x3x16x4xbf16, #tpu.memory_space<vmem>>, vector<1x1x16x4xbf16>
    %13 = vector.shape_cast %12 : vector<1x1x16x4xbf16> to vector<16x4xbf16>
    %cst_15 = arith.constant dense<0.000000e+00> : vector<4x4xf32>
    %14 = tpu.matmul %11, %13, %cst_15 {dimension_numbers = #tpu.dot_dimension_numbers<[1], [0], [0], [1], [0, 0, 1, 1], [], []>} : vector<4x16xbf16>, vector<16x4xbf16>, vector<4x4xf32> -> vector<4x4xf32>
    %15 = arith.addf %9, %14 : vector<4x4xf32>
    %c0_16 = arith.constant 0 : index
    %c2 = arith.constant 2 : index
    %c0_17 = arith.constant 0 : index
    %16 = vector.load %arg1[%c0_16, %c2, %c0_17] : memref<1x10x16xbf16, #tpu.memory_space<vmem>>, vector<1x4x16xbf16>
    %17 = vector.shape_cast %16 : vector<1x4x16xbf16> to vector<4x16xbf16>
    %c0_18 = arith.constant 0 : index
    %c2_19 = arith.constant 2 : index
    %c0_20 = arith.constant 0 : index
    %c0_21 = arith.constant 0 : index
    %18 = vector.load %arg2[%c0_18, %c2_19, %c0_20, %c0_21] : memref<3x3x16x4xbf16, #tpu.memory_space<vmem>>, vector<1x1x16x4xbf16>
    %19 = vector.shape_cast %18 : vector<1x1x16x4xbf16> to vector<16x4xbf16>
    %cst_22 = arith.constant dense<0.000000e+00> : vector<4x4xf32>
    %20 = tpu.matmul %17, %19, %cst_22 {dimension_numbers = #tpu.dot_dimension_numbers<[1], [0], [0], [1], [0, 0, 1, 1], [], []>} : vector<4x16xbf16>, vector<16x4xbf16>, vector<4x4xf32> -> vector<4x4xf32>
    %c0_23 = arith.constant 0 : index
    %c0_24 = arith.constant 0 : index
    %21 = vector.load %arg4[%c0_23, %c0_24] : memref<4x1xf32, #tpu.memory_space<vmem>>, vector<4x1xf32>
    %22 = vector.broadcast %21 : vector<4x1xf32> to vector<4x4xf32>
    %23 = arith.mulf %20, %22 : vector<4x4xf32>
    %24 = arith.addf %15, %23 : vector<4x4xf32>
    %c0_25 = arith.constant 0 : index
    %c2_26 = arith.constant 2 : index
    %c0_27 = arith.constant 0 : index
    %25 = vector.load %arg1[%c0_25, %c2_26, %c0_27] : memref<1x10x16xbf16, #tpu.memory_space<vmem>>, vector<1x4x16xbf16>
    %26 = vector.shape_cast %25 : vector<1x4x16xbf16> to vector<4x16xbf16>
    %c1_28 = arith.constant 1 : index
    %c0_29 = arith.constant 0 : index
    %c0_30 = arith.constant 0 : index
    %c0_31 = arith.constant 0 : index
    %27 = vector.load %arg2[%c1_28, %c0_29, %c0_30, %c0_31] : memref<3x3x16x4xbf16, #tpu.memory_space<vmem>>, vector<1x1x16x4xbf16>
    %28 = vector.shape_cast %27 : vector<1x1x16x4xbf16> to vector<16x4xbf16>
    %cst_32 = arith.constant dense<0.000000e+00> : vector<4x4xf32>
    %29 = tpu.matmul %26, %28, %cst_32 {dimension_numbers = #tpu.dot_dimension_numbers<[1], [0], [0], [1], [0, 0, 1, 1], [], []>} : vector<4x16xbf16>, vector<16x4xbf16>, vector<4x4xf32> -> vector<4x4xf32>
    %c0_33 = arith.constant 0 : index
    %c0_34 = arith.constant 0 : index
    %30 = vector.load %arg3[%c0_33, %c0_34] : memref<4x1xf32, #tpu.memory_space<vmem>>, vector<4x1xf32>
    %31 = vector.broadcast %30 : vector<4x1xf32> to vector<4x4xf32>
    %32 = arith.mulf %29, %31 : vector<4x4xf32>
    %33 = arith.addf %24, %32 : vector<4x4xf32>
    %c0_35 = arith.constant 0 : index
    %c3 = arith.constant 3 : index
    %c0_36 = arith.constant 0 : index
    %34 = vector.load %arg1[%c0_35, %c3, %c0_36] : memref<1x10x16xbf16, #tpu.memory_space<vmem>>, vector<1x4x16xbf16>
    %35 = vector.shape_cast %34 : vector<1x4x16xbf16> to vector<4x16xbf16>
    %c1_37 = arith.constant 1 : index
    %c1_38 = arith.constant 1 : index
    %c0_39 = arith.constant 0 : index
    %c0_40 = arith.constant 0 : index
    %36 = vector.load %arg2[%c1_37, %c1_38, %c0_39, %c0_40] : memref<3x3x16x4xbf16, #tpu.memory_space<vmem>>, vector<1x1x16x4xbf16>
    %37 = vector.shape_cast %36 : vector<1x1x16x4xbf16> to vector<16x4xbf16>
    %cst_41 = arith.constant dense<0.000000e+00> : vector<4x4xf32>
    %38 = tpu.matmul %35, %37, %cst_41 {dimension_numbers = #tpu.dot_dimension_numbers<[1], [0], [0], [1], [0, 0, 1, 1], [], []>} : vector<4x16xbf16>, vector<16x4xbf16>, vector<4x4xf32> -> vector<4x4xf32>
    %39 = arith.addf %33, %38 : vector<4x4xf32>
    %c0_42 = arith.constant 0 : index
    %c4 = arith.constant 4 : index
    %c0_43 = arith.constant 0 : index
    %40 = vector.load %arg1[%c0_42, %c4, %c0_43] : memref<1x10x16xbf16, #tpu.memory_space<vmem>>, vector<1x4x16xbf16>
    %41 = vector.shape_cast %40 : vector<1x4x16xbf16> to vector<4x16xbf16>
    %c1_44 = arith.constant 1 : index
    %c2_45 = arith.constant 2 : index
    %c0_46 = arith.constant 0 : index
    %c0_47 = arith.constant 0 : index
    %42 = vector.load %arg2[%c1_44, %c2_45, %c0_46, %c0_47] : memref<3x3x16x4xbf16, #tpu.memory_space<vmem>>, vector<1x1x16x4xbf16>
    %43 = vector.shape_cast %42 : vector<1x1x16x4xbf16> to vector<16x4xbf16>
    %cst_48 = arith.constant dense<0.000000e+00> : vector<4x4xf32>
    %44 = tpu.matmul %41, %43, %cst_48 {dimension_numbers = #tpu.dot_dimension_numbers<[1], [0], [0], [1], [0, 0, 1, 1], [], []>} : vector<4x16xbf16>, vector<16x4xbf16>, vector<4x4xf32> -> vector<4x4xf32>
    %c0_49 = arith.constant 0 : index
    %c0_50 = arith.constant 0 : index
    %45 = vector.load %arg4[%c0_49, %c0_50] : memref<4x1xf32, #tpu.memory_space<vmem>>, vector<4x1xf32>
    %46 = vector.broadcast %45 : vector<4x1xf32> to vector<4x4xf32>
    %47 = arith.mulf %44, %46 : vector<4x4xf32>
    %48 = arith.addf %39, %47 : vector<4x4xf32>
    %c0_51 = arith.constant 0 : index
    %c4_52 = arith.constant 4 : index
    %c0_53 = arith.constant 0 : index
    %49 = vector.load %arg1[%c0_51, %c4_52, %c0_53] : memref<1x10x16xbf16, #tpu.memory_space<vmem>>, vector<1x4x16xbf16>
    %50 = vector.shape_cast %49 : vector<1x4x16xbf16> to vector<4x16xbf16>
    %c2_54 = arith.constant 2 : index
    %c0_55 = arith.constant 0 : index
    %c0_56 = arith.constant 0 : index
    %c0_57 = arith.constant 0 : index
    %51 = vector.load %arg2[%c2_54, %c0_55, %c0_56, %c0_57] : memref<3x3x16x4xbf16, #tpu.memory_space<vmem>>, vector<1x1x16x4xbf16>
    %52 = vector.shape_cast %51 : vector<1x1x16x4xbf16> to vector<16x4xbf16>
    %cst_58 = arith.constant dense<0.000000e+00> : vector<4x4xf32>
    %53 = tpu.matmul %50, %52, %cst_58 {dimension_numbers = #tpu.dot_dimension_numbers<[1], [0], [0], [1], [0, 0, 1, 1], [], []>} : vector<4x16xbf16>, vector<16x4xbf16>, vector<4x4xf32> -> vector<4x4xf32>
    %c0_59 = arith.constant 0 : index
    %c0_60 = arith.constant 0 : index
    %54 = vector.load %arg3[%c0_59, %c0_60] : memref<4x1xf32, #tpu.memory_space<vmem>>, vector<4x1xf32>
    %55 = vector.broadcast %54 : vector<4x1xf32> to vector<4x4xf32>
    %56 = arith.mulf %53, %55 : vector<4x4xf32>
    %57 = arith.addf %48, %56 : vector<4x4xf32>
    %c0_61 = arith.constant 0 : index
    %c5 = arith.constant 5 : index
    %c0_62 = arith.constant 0 : index
    %58 = vector.load %arg1[%c0_61, %c5, %c0_62] : memref<1x10x16xbf16, #tpu.memory_space<vmem>>, vector<1x4x16xbf16>
    %59 = vector.shape_cast %58 : vector<1x4x16xbf16> to vector<4x16xbf16>
    %c2_63 = arith.constant 2 : index
    %c1_64 = arith.constant 1 : index
    %c0_65 = arith.constant 0 : index
    %c0_66 = arith.constant 0 : index
    %60 = vector.load %arg2[%c2_63, %c1_64, %c0_65, %c0_66] : memref<3x3x16x4xbf16, #tpu.memory_space<vmem>>, vector<1x1x16x4xbf16>
    %61 = vector.shape_cast %60 : vector<1x1x16x4xbf16> to vector<16x4xbf16>
    %cst_67 = arith.constant dense<0.000000e+00> : vector<4x4xf32>
    %62 = tpu.matmul %59, %61, %cst_67 {dimension_numbers = #tpu.dot_dimension_numbers<[1], [0], [0], [1], [0, 0, 1, 1], [], []>} : vector<4x16xbf16>, vector<16x4xbf16>, vector<4x4xf32> -> vector<4x4xf32>
    %63 = arith.addf %57, %62 : vector<4x4xf32>
    %c0_68 = arith.constant 0 : index
    %c6 = arith.constant 6 : index
    %c0_69 = arith.constant 0 : index
    %64 = vector.load %arg1[%c0_68, %c6, %c0_69] : memref<1x10x16xbf16, #tpu.memory_space<vmem>>, vector<1x4x16xbf16>
    %65 = vector.shape_cast %64 : vector<1x4x16xbf16> to vector<4x16xbf16>
    %c2_70 = arith.constant 2 : index
    %c2_71 = arith.constant 2 : index
    %c0_72 = arith.constant 0 : index
    %c0_73 = arith.constant 0 : index
    %66 = vector.load %arg2[%c2_70, %c2_71, %c0_72, %c0_73] : memref<3x3x16x4xbf16, #tpu.memory_space<vmem>>, vector<1x1x16x4xbf16>
    %67 = vector.shape_cast %66 : vector<1x1x16x4xbf16> to vector<16x4xbf16>
    %cst_74 = arith.constant dense<0.000000e+00> : vector<4x4xf32>
    %68 = tpu.matmul %65, %67, %cst_74 {dimension_numbers = #tpu.dot_dimension_numbers<[1], [0], [0], [1], [0, 0, 1, 1], [], []>} : vector<4x16xbf16>, vector<16x4xbf16>, vector<4x4xf32> -> vector<4x4xf32>
    %c0_75 = arith.constant 0 : index
    %c0_76 = arith.constant 0 : index
    %69 = vector.load %arg4[%c0_75, %c0_76] : memref<4x1xf32, #tpu.memory_space<vmem>>, vector<4x1xf32>
    %70 = vector.broadcast %69 : vector<4x1xf32> to vector<4x4xf32>
    %71 = arith.mulf %68, %70 : vector<4x4xf32>
    %72 = arith.addf %63, %71 : vector<4x4xf32>
    %73 = arith.truncf %72 : vector<4x4xf32> to vector<4x4xbf16>
    %c0_77 = arith.constant 0 : index
    %c0_78 = arith.constant 0 : index
    %c0_79 = arith.constant 0 : index
    %74 = vector.load %arg5[%c0_77, %c0_78, %c0_79] : memref<1x4x4xbf16, #tpu.memory_space<vmem>>, vector<1x4x4xbf16>
    %75 = vector.shape_cast %74 : vector<1x4x4xbf16> to vector<4x4xbf16>
    %76 = vector.shape_cast %73 : vector<4x4xbf16> to vector<1x4x4xbf16>
    tpu.vector_store %arg5[%c0_77, %c0_78, %c0_79], %76 {strides = array<i32>} : memref<1x4x4xbf16, #tpu.memory_space<vmem>>, vector<1x4x4xbf16>,
    return
  }
  func.func @transform_0(%arg0: i32) -> (i32, i32, i32) {
    %c0_i32 = arith.constant 0 : i32
    %c0_i32_0 = arith.constant 0 : i32
    %c0_i32_1 = arith.constant 0 : i32
    return %arg0, %c0_i32, %c0_i32_0 : i32, i32, i32
  }
  func.func @transform_1(%arg0: i32) -> (i32, i32, i32, i32) {
    %c0_i32 = arith.constant 0 : i32
    %c0_i32_0 = arith.constant 0 : i32
    %c0_i32_1 = arith.constant 0 : i32
    %c0_i32_2 = arith.constant 0 : i32
    %c0_i32_3 = arith.constant 0 : i32
    return %c0_i32, %c0_i32_0, %c0_i32_1, %c0_i32_2 : i32, i32, i32, i32
  }
  func.func @transform_2(%arg0: i32) -> (i32, i32) {
    %c0_i32 = arith.constant 0 : i32
    %c0_i32_0 = arith.constant 0 : i32
    %c0_i32_1 = arith.constant 0 : i32
    return %c0_i32, %c0_i32_0 : i32, i32
  }
  func.func @transform_3(%arg0: i32) -> (i32, i32) {
    %c0_i32 = arith.constant 0 : i32
    %c0_i32_0 = arith.constant 0 : i32
    %c0_i32_1 = arith.constant 0 : i32
    return %c0_i32, %c0_i32_0 : i32, i32
  }
  func.func @transform_4(%arg0: i32) -> (i32, i32, i32) {
    %c0_i32 = arith.constant 0 : i32
    %c0_i32_0 = arith.constant 0 : i32
    %c0_i32_1 = arith.constant 0 : i32
    return %arg0, %c0_i32, %c0_i32_0 : i32, i32, i32
  }
}

module attributes {stable_mosaic.version = 11 : i64} {
  func.func @_fuse_kernel(%arg0: i32, %arg1: memref<8x4xbf16, #tpu.memory_space<vmem>>, %arg2: memref<32x4xbf16, #tpu.memory_space<vmem>>, %arg3: memref<128x4xbf16, #tpu.memory_space<vmem>>, %arg4: memref<512x4xbf16, #tpu.memory_space<vmem>>, %arg5: memref<512x8xbf16, #tpu.memory_space<vmem>>, %arg6: memref<512x32xbf16, #tpu.memory_space<vmem>>, %arg7: memref<512x128xbf16, #tpu.memory_space<vmem>>, %arg8: memref<512x16xf32, #tpu.memory_space<vmem>>) attributes {dimension_semantics = [#tpu.dimension_semantics<parallel>], iteration_bounds = array<i64: 1>, scalar_prefetch = 0 : i64, scratch_operands = 0 : i64, tpu.core_type = #tpu.core_type<tc>, window_params = [{transform_indices = @transform_0, window_bounds = array<i64: 8, 4>}, {transform_indices = @transform_1, window_bounds = array<i64: 32, 4>}, {transform_indices = @transform_2, window_bounds = array<i64: 128, 4>}, {transform_indices = @transform_3, window_bounds = array<i64: 512, 4>}, {pipeline_mode = #tpu.pipeline_mode<synchronous>, transform_indices = @transform_4, window_bounds = array<i64: 512, 8>}, {pipeline_mode = #tpu.pipeline_mode<synchronous>, transform_indices = @transform_5, window_bounds = array<i64: 512, 32>}, {pipeline_mode = #tpu.pipeline_mode<synchronous>, transform_indices = @transform_6, window_bounds = array<i64: 512, 128>}, {transform_indices = @transform_7, window_bounds = array<i64: 512, 16>}]} {
    %c0 = arith.constant 0 : index
    %c0_0 = arith.constant 0 : index
    %0 = vector.load %arg5[%c0, %c0_0] : memref<512x8xbf16, #tpu.memory_space<vmem>>, vector<512x8xbf16>
    %c0_1 = arith.constant 0 : index
    %c0_2 = arith.constant 0 : index
    %1 = vector.load %arg1[%c0_1, %c0_2] : memref<8x4xbf16, #tpu.memory_space<vmem>>, vector<8x4xbf16>
    %cst = arith.constant dense<0.000000e+00> : vector<512x4xf32>
    %2 = tpu.matmul %0, %1, %cst {dimension_numbers = #tpu.dot_dimension_numbers<[1], [0], [0], [1], [0, 0, 1, 1], [], []>} : vector<512x8xbf16>, vector<8x4xbf16>, vector<512x4xf32> -> vector<512x4xf32>
    %c0_3 = arith.constant 0 : index
    %c0_4 = arith.constant 0 : index
    %3 = vector.load %arg6[%c0_3, %c0_4] : memref<512x32xbf16, #tpu.memory_space<vmem>>, vector<512x32xbf16>
    %c0_5 = arith.constant 0 : index
    %c0_6 = arith.constant 0 : index
    %4 = vector.load %arg2[%c0_5, %c0_6] : memref<32x4xbf16, #tpu.memory_space<vmem>>, vector<32x4xbf16>
    %cst_7 = arith.constant dense<0.000000e+00> : vector<512x4xf32>
    %5 = tpu.matmul %3, %4, %cst_7 {dimension_numbers = #tpu.dot_dimension_numbers<[1], [0], [0], [1], [0, 0, 1, 1], [], []>} : vector<512x32xbf16>, vector<32x4xbf16>, vector<512x4xf32> -> vector<512x4xf32>
    %c0_8 = arith.constant 0 : index
    %c0_9 = arith.constant 0 : index
    %6 = vector.load %arg7[%c0_8, %c0_9] : memref<512x128xbf16, #tpu.memory_space<vmem>>, vector<512x128xbf16>
    %c0_10 = arith.constant 0 : index
    %c0_11 = arith.constant 0 : index
    %7 = vector.load %arg3[%c0_10, %c0_11] : memref<128x4xbf16, #tpu.memory_space<vmem>>, vector<128x4xbf16>
    %cst_12 = arith.constant dense<0.000000e+00> : vector<512x4xf32>
    %8 = tpu.matmul %6, %7, %cst_12 {dimension_numbers = #tpu.dot_dimension_numbers<[1], [0], [0], [1], [0, 0, 1, 1], [], []>} : vector<512x128xbf16>, vector<128x4xbf16>, vector<512x4xf32> -> vector<512x4xf32>
    %c0_13 = arith.constant 0 : index
    %c0_14 = arith.constant 0 : index
    %9 = vector.load %arg4[%c0_13, %c0_14] : memref<512x4xbf16, #tpu.memory_space<vmem>>, vector<512x4xbf16>
    %10 = arith.extf %9 : vector<512x4xbf16> to vector<512x4xf32>
    %11 = tpu.concatenate %2, %5, %8, %10 in 1 : vector<512x4xf32>, vector<512x4xf32>, vector<512x4xf32>, vector<512x4xf32> -> vector<512x16xf32>
    %c0_15 = arith.constant 0 : index
    %c0_16 = arith.constant 0 : index
    %12 = vector.load %arg8[%c0_15, %c0_16] : memref<512x16xf32, #tpu.memory_space<vmem>>, vector<512x16xf32>
    tpu.vector_store %arg8[%c0_15, %c0_16], %11 {strides = array<i32>} : memref<512x16xf32, #tpu.memory_space<vmem>>, vector<512x16xf32>,
    return
  }
  func.func @transform_0(%arg0: i32) -> (i32, i32) {
    %c0_i32 = arith.constant 0 : i32
    %c0_i32_0 = arith.constant 0 : i32
    return %arg0, %c0_i32 : i32, i32
  }
  func.func @transform_1(%arg0: i32) -> (i32, i32) {
    %c0_i32 = arith.constant 0 : i32
    %c0_i32_0 = arith.constant 0 : i32
    return %arg0, %c0_i32 : i32, i32
  }
  func.func @transform_2(%arg0: i32) -> (i32, i32) {
    %c0_i32 = arith.constant 0 : i32
    %c0_i32_0 = arith.constant 0 : i32
    return %arg0, %c0_i32 : i32, i32
  }
  func.func @transform_3(%arg0: i32) -> (i32, i32) {
    %c0_i32 = arith.constant 0 : i32
    %c0_i32_0 = arith.constant 0 : i32
    return %arg0, %c0_i32 : i32, i32
  }
  func.func @transform_4(%arg0: i32) -> (i32, i32) {
    %c0_i32 = arith.constant 0 : i32
    %c0_i32_0 = arith.constant 0 : i32
    %c0_i32_1 = arith.constant 0 : i32
    return %c0_i32, %c0_i32_0 : i32, i32
  }
  func.func @transform_5(%arg0: i32) -> (i32, i32) {
    %c0_i32 = arith.constant 0 : i32
    %c0_i32_0 = arith.constant 0 : i32
    %c0_i32_1 = arith.constant 0 : i32
    return %c0_i32, %c0_i32_0 : i32, i32
  }
  func.func @transform_6(%arg0: i32) -> (i32, i32) {
    %c0_i32 = arith.constant 0 : i32
    %c0_i32_0 = arith.constant 0 : i32
    %c0_i32_1 = arith.constant 0 : i32
    return %c0_i32, %c0_i32_0 : i32, i32
  }
  func.func @transform_7(%arg0: i32) -> (i32, i32) {
    %c0_i32 = arith.constant 0 : i32
    %c0_i32_0 = arith.constant 0 : i32
    return %arg0, %c0_i32 : i32, i32
  }
}

</mosaic_0001>

<bundles_post_ra>
// kernel: forward.9
= control target key start
LH: loop header
LB: loop body
LE: loop exit
PB: predicated region body
PF: predicated region fallthrough
CT: control target
= control target key end

     0   :  { %v124_v0 = vmov 0.0   ;;  %vm125_vm0 = vmmov 0   ;;  %vm45_vm1 = vcmask 523264   ;;  %vm90_vm2 = vcmask 125952   ;;  %s159_s1 = inlined_call_operand.vmem [shape: bf16[64,16], index: 1, kind: input, shape index: {}]   ;;  %s160_s0 = inlined_call_operand.vmem [shape: bf16[8,64], index: 0, kind: input, shape index: {}]   ;;  %s161_s2 = inlined_call_operand.vmem [shape: bf16[8,16], index: 2, kind: output, shape index: {}]  }
   0x1   :  { %106 = vmatprep.subr.bf16.mxu0 %v124_v0  ;;  %v120_v1 = vld [vmem:[%s159_s1 + $0x18] sm:$0xff]   ;;  %114 = vmatprep.mubr.msk.bf16.mxu0 %vm125_vm0, %v124_v0  ;;  %v121_v2 = vld [vmem:[%s159_s1 + $0x10] sm:$0xff]   ;;  %v122_v3 = vld [vmem:[%s159_s1 + $0x8] sm:$0xff]  }
   0x2   :  { %107 = vmatpush3.bf16.msra.mxu0 %v120_v1  ;;  %v123_v4 = vld [vmem:[%s159_s1] sm:$0xff]  }
   0x3   :  { %108 = vmatprep.subr.bf16.mxu0 %v124_v0  ;;  %v12_v5 = vld [vmem:[%s160_s0] sm:$0xf] }
   0x6   :  { %109 = vmatpush3.bf16.msra.mxu0 %v121_v2 }
   0x7   :  { %110 = vmatprep.subr.bf16.mxu0 %v124_v0 }
   0xa   :  { %111 = vmatpush3.bf16.msra.mxu0 %v122_v3 }
   0xb   :  { %112 = vmatprep.subr.bf16.mxu0 %v124_v0 }
   0xe   :  { %113 = vmatpush3.bf16.msra.mxu0 %v123_v4 }
  0x11   :  { %115 = vmatmul.mubr.msk.bf16.vlgmr.msra.gmra.mxu0 %vm45_vm1, %v12_v5 }
  0xd1   :  { %v83_v6 = vpop.f32.mrf.mxu0 }
  0xd2   :  { %v89_v7 = vpack.c.bf16 %v83_v6, %v83_v6 }
  0xd3   :  { %v116_v8 = vpop.f32.mrf.mxu0 }
  0xd4   :  { %91 = vst.msk [vmem:[%s161_s2] sm:$0xf] %vm90_vm2, %v89_v7 }
  0xd5   :  { %v86_v9 = vpop.f32.mrf.mxu0 }
  0xd7   :  { %v117_v10 = vpop.f32.mrf.mxu0 }

// kernel: forward.10
= control target key start
LH: loop header
LB: loop body
LE: loop exit
PB: predicated region body
PF: predicated region fallthrough
CT: control target
= control target key end

     0   :  { %vm48_vm0 = vcmask 1043456   ;;  %vm41_vm1 = vcmask 64512   ;;  %vm123_vm2 = vcmask 261120   ;;  %vm195_vm3 = vcmask 125952   ;;  %s308_s2 = inlined_call_operand.vmem [shape: bf16[8,16], index: 2, kind: input, shape index: {}]   ;;  %s309_s1 = inlined_call_operand.vmem [shape: bf16[32,16], index: 1, kind: input, shape index: {}]   ;;  %s310_s3 = inlined_call_operand.vmem [shape: bf16[32,8], index: 3, kind: input, shape index: {}]   ;;  %s311_s0 = inlined_call_operand.vmem [shape: bf16[32,32], index: 0, kind: input, shape index: {}]   ;;  %s312_s4 = inlined_call_operand.vmem [shape: bf16[32,16], index: 4, kind: output, shape index: {}]  }
   0x1   :  { %v30_v0 = vld [vmem:[%s308_s2] sm:$0xf]  ;;  %v244_v2 = vld [vmem:[%s309_s1 + $0x8] sm:$0xff]  }
   0x2   :  { %243 = vmatprep.subr.msk.bf16.mxu0 %vm48_vm0, %v30_v0  ;;  %v50_v1 = vsel %vm48_vm0, %v30_v0, 0  ;;  %v245_v3 = vld [vmem:[%s310_s3] sm:$0xff]   ;;  %235 = vmatprep.subr.bf16.mxu1 %v244_v2  ;;  %v246_v4 = vld [vmem:[%s310_s3 + $0x8] sm:$0xff]  }
   0x3   :  { %230 = vmatpush3.bf16.msra.mxu0 %v50_v1  ;;  %231 = vmatprep.mubr.msk.bf16.mxu0 %vm41_vm1, %v245_v3  ;;  %v247_v5 = vld [vmem:[%s309_s1] sm:$0xff]   ;;  %v249_v7 = vld [vmem:[%s311_s0 + $0x8] sm:$0xff]  }
   0x4   :  { %236 = vmatpush3.bf16.msra.mxu1 %v244_v2  ;;  %v248_v6 = vld [vmem:[%s311_s0] sm:$0xff]  }
   0x5   :  { %237 = vmatprep.subr.bf16.mxu1 %v247_v5  ;;  %239 = vmatprep.mubr.msk.bf16.mxu1 %vm123_vm2, %v248_v6 }
   0x6   :  { %232 = vmatmul.mubr.msk.bf16.vlgmr.msra.gmra.mxu0 %vm41_vm1, %v246_v4 }
   0x8   :  { %238 = vmatpush3.bf16.msra.mxu1 %v247_v5 }
   0xb   :  { %240 = vmatmul.mubr.msk.bf16.vlgmr.msra.gmra.mxu1 %vm123_vm2, %v249_v7 }
  0xc6   :  { %v233_v8 = vpop.f32.mrf.mxu0 }
  0xc8   :  { %v86_v9 = vpop.f32.mrf.mxu0 }
  0xca   :  { %v234_v12 = vpop.f32.mrf.mxu0 }
  0xcb   :  { %v241_v10 = vpop.f32.mrf.mxu1 }
  0xcc   :  { %v173_v11 = vadd.f32 %v241_v10, %v233_v8  ;;  %v89_v19 = vpop.f32.mrf.mxu0 }
  0xcd   :  { %v164_v13 = vpop.f32.mrf.mxu1 }
  0xce   :  { %v220_v14 = vpack.c.bf16 %v173_v11, %v173_v11  ;;  %v165_v15 = vadd.f32 %v164_v13, %v86_v9 }
  0xcf   :  { %v242_v16 = vpop.f32.mrf.mxu1 }
  0xd0   :  { %198 = vst.msk [vmem:[%s312_s4 + $0x8] sm:$0xf] %vm195_vm3, %v220_v14  ;;  %v218_v17 = vpack.c.bf16 %v165_v15, %v165_v15  ;;  %v176_v18 = vadd.f32 %v242_v16, %v234_v12 }
  0xd1   :  { %v167_v20 = vpop.f32.mrf.mxu1 }
  0xd2   :  { %196 = vst.msk [vmem:[%s312_s4] sm:$0xf] %vm195_vm3, %v218_v17  ;;  %v221_v21 = vpack.c.bf16 %v176_v18, %v176_v18  ;;  %v168_v22 = vadd.f32 %v167_v20, %v89_v19 }
  0xd4   :  { %199 = vst.msk [vmem:[%s312_s4 + $0xc] sm:$0xf] %vm195_vm3, %v221_v21  ;;  %v219_v23 = vpack.c.bf16 %v168_v22, %v168_v22 }
  0xd6   :  { %197 = vst.msk [vmem:[%s312_s4 + $0x4] sm:$0xf] %vm195_vm3, %v219_v23 }

// kernel: forward.11
= control target key start
LH: loop header
LB: loop body
LE: loop exit
PB: predicated region body
PF: predicated region fallthrough
CT: control target
= control target key end

     0   :  { %s688_s15 = smov 0   ;;  %s749_s0 = inlined_call_operand.vmem [shape: bf16[128,16], index: 0, kind: input, shape index: {}]   ;;  %s750_s1 = inlined_call_operand.vmem [shape: bf16[16,16], index: 1, kind: input, shape index: {}]   ;;  %s751_s2 = inlined_call_operand.vmem [shape: bf16[32,16], index: 2, kind: input, shape index: {}]   ;;  %s752_s3 = inlined_call_operand.vmem [shape: bf16[64,16], index: 3, kind: input, shape index: {}]   ;;  %s753_s4 = inlined_call_operand.vmem [shape: bf16[128,16], index: 4, kind: output, shape index: {}]  }
   0x1 LB: > { %s560_s16 = sadd.s32 4294967295, %s661_s15   ;;  %p564_p0 = scmp.ge.s32.totalorder %s661_s15, 1  ;;  %s661_s15 = sphi %s688_s15, %s14_s15  }
   0x2   : > { %p174_p1 = scmp.lt.s32.totalorder %s661_s15, 3 }
   0x4   : > { %p175_p2 = pnand %p564_p0, %p174_p1 }
   0x5   : > { %s567_s19 = sshll.u32 (!%p175_p2), %s560_s16, 1  ;;  %s565_s20 = sshll.u32 (!%p175_p2), %s560_s16, 3 }
   0x6   : > { %178 = sbr.rel (%p175_p2) target bundleno = 231 (0xe7), region = 36  ;;  %p212_p3 = scmp.lt.s32.totalorder (!%p175_p2), %s567_s19, 3 }
   0x7   : > { %p206_p4 = scmp.lt.s32.totalorder (!%p175_p2), %s565_s20, 15 }
   0xb   : > { %v645_v0 = vld [vmem:[%s750_s1] sm:$0xff]   ;;  %vm270_vm0 = vcmask 130048   ;;  %s755_s19 = smov (!%p212_p3, %s567_s19), 3  ;;  %s757_s20 = smov (!%p206_p4, %s565_s20), 15  ;;  %v650_v3 = vld [vmem:[%s752_s3 + $0x8] sm:$0xff]   ;;  %v653_v5 = vld [vmem:[%s752_s3 + $0x10] sm:$0xff]  }
   0xc   : > { %v649_v1 = vld [vmem:[%s752_s3] sm:$0xff]   ;;  %627 = vmatprep.subr.bf16.mxu1 %v645_v0  ;;  %s568_s23 = sshll.u32 %s755_s19, 2  ;;  %s566_s27 = sshll.u32 %s757_s20, 2  ;;  %v654_v9 = vld [vmem:[%s752_s3 + $0x18] sm:$0xff]   ;;  %vm483_vm1 = vcmask 125952  }
   0xd   : > { %628 = vmatpush3.bf16.msra.mxu1 %v645_v0  ;;  %619 = vmatprep.mubr.msk.bf16.mxu0 %vm270_vm0, %v649_v1  ;;  %s215_s26 = scalar_lea.vmem %s751_s2, %s568_s23  ;;  %s209_s30 = scalar_lea.vmem %s749_s0, %s566_s27 }
   0xe   : > { %v646_v2 = vld [vmem:[%s215_s26] sm:$0xff]   ;;  %v648_v6 = vld [vmem:[%s209_s30 + $0x8] sm:$0xff]   ;;  %v651_v7 = vld [vmem:[%s209_s30 + $0x10] sm:$0xff]   ;;  %s728_s13 = scalar_lea.vmem %s753_s4, %s566_s27 }
   0xf   : > { %v647_v4 = vld [vmem:[%s209_s30] sm:$0xff]   ;;  %617 = vmatprep.subr.bf16.mxu0 %v646_v2  ;;  %v652_v8 = vld [vmem:[%s209_s30 + $0x18] sm:$0xff]  }
  0x10   : > { %629 = vmatprep.mubr.msk.bf16.mxu1 %vm270_vm0, %v647_v4  ;;  %618 = vmatpush3.bf16.msra.mxu0 %v646_v2 }
  0x11   : > { %630 = vmatmul.mubr.msk.bf16.vlgmr.msra.gmra.mxu1 %vm270_vm0, %v648_v6 }
  0x12   : > { %633 = vmatprep.mubr.msk.bf16.mxu1 %vm270_vm0, %v651_v7 }
  0x13   : > { %620 = vmatmul.mubr.msk.bf16.vlgmr.msra.gmra.mxu0 %vm270_vm0, %v650_v3 }
  0x14   : > { %623 = vmatprep.mubr.msk.bf16.mxu0 %vm270_vm0, %v653_v5 }
  0x19   : > { %634 = vmatmul.mubr.msk.bf16.gmra.mxu1 %vm270_vm0, %v652_v8 }
  0x1b   : > { %624 = vmatmul.mubr.msk.bf16.gmra.mxu0 %vm270_vm0, %v654_v9 }
  0xd1   : > { %v631_v10 = vpop.f32.mrf.mxu1 }
  0xd3   : > { %v420_v11 = vpop.f32.mrf.mxu1  ;;  %v621_v12 = vpop.f32.mrf.mxu0 }
  0xd4   : > { %v429_v13 = vadd.f32 %v631_v10, %v621_v12 }
  0xd5   : > { %v632_v14 = vpop.f32.mrf.mxu1  ;;  %v317_v15 = vpop.f32.mrf.mxu0 }
  0xd6   : > { %v601_v16 = vpack.c.bf16 %v429_v13, %v429_v13  ;;  %v421_v17 = vadd.f32 %v420_v11, %v317_v15 }
  0xd7   : > { %v423_v18 = vpop.f32.mrf.mxu1  ;;  %v622_v19 = vpop.f32.mrf.mxu0 }
  0xd8   : > { %486 = vst.msk [vmem:[%s728_s13 + $0x8] sm:$0xf] %vm483_vm1, %v601_v16  ;;  %v599_v20 = vpack.c.bf16 %v421_v17, %v421_v17  ;;  %v432_v21 = vadd.f32 %v632_v14, %v622_v19 }
  0xd9   : > { %v635_v22 = vpop.f32.mrf.mxu1  ;;  %v320_v23 = vpop.f32.mrf.mxu0 }
  0xda   : > { %484 = vst.msk [vmem:[%s728_s13] sm:$0xf] %vm483_vm1, %v599_v20  ;;  %v602_v24 = vpack.c.bf16 %v432_v21, %v432_v21  ;;  %v424_v25 = vadd.f32 %v423_v18, %v320_v23 }
  0xdb   : > { %v436_v26 = vpop.f32.mrf.mxu1  ;;  %v625_v27 = vpop.f32.mrf.mxu0 }
  0xdc   : > { %487 = vst.msk [vmem:[%s728_s13 + $0xc] sm:$0xf] %vm483_vm1, %v602_v24  ;;  %v600_v28 = vpack.c.bf16 %v424_v25, %v424_v25  ;;  %v445_v29 = vadd.f32 %v635_v22, %v625_v27 }
  0xdd   : > { %v636_v30 = vpop.f32.mrf.mxu1  ;;  %v333_v31 = vpop.f32.mrf.mxu0 }
  0xde   : > { %485 = vst.msk [vmem:[%s728_s13 + $0x4] sm:$0xf] %vm483_vm1, %v600_v28  ;;  %v605_v32 = vpack.c.bf16 %v445_v29, %v445_v29  ;;  %v437_v33 = vadd.f32 %v436_v26, %v333_v31 }
  0xdf   : > { %v626_v34 = vpop.f32.mrf.mxu0  ;;  %v439_v37 = vpop.f32.mrf.mxu1 }
  0xe0   : > { %490 = vst.msk [vmem:[%s728_s13 + $0x18] sm:$0xf] %vm483_vm1, %v605_v32  ;;  %v603_v35 = vpack.c.bf16 %v437_v33, %v437_v33  ;;  %v448_v36 = vadd.f32 %v636_v30, %v626_v34 }
  0xe1   : > { %v336_v38 = vpop.f32.mrf.mxu0 }
  0xe2   : > { %488 = vst.msk [vmem:[%s728_s13 + $0x10] sm:$0xf] %vm483_vm1, %v603_v35  ;;  %v606_v39 = vpack.c.bf16 %v448_v36, %v448_v36  ;;  %v440_v40 = vadd.f32 %v439_v37, %v336_v38 }
  0xe4   : > { %491 = vst.msk [vmem:[%s728_s13 + $0x1c] sm:$0xf] %vm483_vm1, %v606_v39  ;;  %v604_v41 = vpack.c.bf16 %v440_v40, %v440_v40 }
  0xe6   : > { %489 = vst.msk [vmem:[%s728_s13 + $0x14] sm:$0xf] %vm483_vm1, %v604_v41 }
  0xe7 PF: > { %s14_s15 = sadd.s32 1, %s661_s15  }
  0xe8   : > { %p11_p5 = scmp.ge.s32.totalorder %s14_s15, 4  }
  0xea   :  { %13 = sbr.rel (!%p11_p5) target bundleno = 1 (0x1), region = 69 }

// kernel: forward.12
= control target key start
LH: loop header
LB: loop body
LE: loop exit
PB: predicated region body
PF: predicated region fallthrough
CT: control target
= control target key end

     0   :  { %s1468_s15 = smov 0   ;;  %s1662_s0 = inlined_call_operand.vmem [shape: bf16[512,8], index: 0, kind: input, shape index: {}]   ;;  %s1663_s1 = inlined_call_operand.vmem [shape: bf16[8,16], index: 1, kind: input, shape index: {}]   ;;  %s1664_s2 = inlined_call_operand.vmem [shape: bf16[128,16], index: 2, kind: input, shape index: {}]   ;;  %s1665_s3 = inlined_call_operand.vmem [shape: bf16[256,64], index: 3, kind: input, shape index: {}]   ;;  %s1666_s4 = inlined_call_operand.vmem [shape: bf16[512,16], index: 4, kind: output, shape index: {}]  }
   0x1 LB: > { %s1134_s16 = sadd.s32 4294967295, %s1441_s15   ;;  %p1138_p0 = scmp.ge.s32.totalorder %s1441_s15, 1  ;;  %s1441_s15 = sphi %s1468_s15, %s14_s15  }
   0x2   : > { %p174_p1 = scmp.lt.s32.totalorder %s1441_s15, 3 }
   0x4   : > { %p175_p2 = pnand %p1138_p0, %p174_p1 }
   0x5   : > { %s1141_s17 = sshll.u32 (!%p175_p2), %s1134_s16, 3  ;;  %s1139_s20 = sshll.u32 (!%p175_p2), %s1134_s16, 5 }
   0x6   : > { %178 = sbr.rel (%p175_p2) target bundleno = 291 (0x123), region = 36  ;;  %p212_p3 = scmp.lt.s32.totalorder (!%p175_p2), %s1141_s17, 15 }
   0x7   : > { %p206_p4 = scmp.lt.s32.totalorder (!%p175_p2), %s1139_s20, 63 }
   0xb   : > { %v256_v0 = vld [vmem:[%s1663_s1] sm:$0xf]  ;;  %vm740_vm0 = vcmask 1043456   ;;  %vm401_vm1 = vcmask 523264   ;;  %s1668_s17 = smov (!%p212_p3, %s1141_s17), 15  ;;  %s1670_s20 = smov (!%p206_p4, %s1139_s20), 63 }
   0xc   : > { %1390 = vmatprep.subr.msk.bf16.mxu1 %vm740_vm0, %v256_v0  ;;  %v742_v1 = vsel %vm740_vm0, %v256_v0, 0  ;;  %v1405_v2 = vld [vmem:[%s1665_s3] sm:$0xff]   ;;  %s1142_s23 = sshll.u32 %s1668_s17, 2  ;;  %s1140_s27 = sshll.u32 %s1670_s20, 2  ;;  %vm691_vm2 = vcmask 64512   ;;  %v1406_v12 = vld [vmem:[%s1665_s3 + $0x8] sm:$0xff]  }
   0xd   : > { %1357 = vmatpush3.bf16.msra.mxu1 %v742_v1  ;;  %1324 = vmatprep.mubr.msk.bf16.mxu0 %vm401_vm1, %v1405_v2  ;;  %s215_s26 = scalar_lea.vmem %s1664_s2, %s1142_s23  ;;  %s1494_s30 = scalar_lea.vmem %s1662_s0, %s1140_s27  ;;  %v1409_v13 = vld [vmem:[%s1665_s3 + $0x10] sm:$0xff]   ;;  %v1410_v16 = vld [vmem:[%s1665_s3 + $0x18] sm:$0xff]   ;;  %v1413_v17 = vld [vmem:[%s1665_s3 + $0x20] sm:$0xff]   ;;  %vm1033_vm3 = vcmask 125952  }
   0xe   : > { %v1399_v3 = vld [vmem:[%s215_s26 + $0x18] sm:$0xff]   ;;  %v1400_v4 = vld [vmem:[%s215_s26 + $0x10] sm:$0xff]   ;;  %v1401_v5 = vld [vmem:[%s215_s26 + $0x8] sm:$0xff]   ;;  %s1593_s14 = scalar_lea.vmem %s1666_s4, %s1140_s27 }
   0xf   : > { %1316 = vmatprep.subr.bf16.mxu0 %v1399_v3  ;;  %v1402_v6 = vld [vmem:[%s1494_s30] sm:$0xff]   ;;  %v1403_v7 = vld [vmem:[%s1494_s30 + $0x8] sm:$0xff]   ;;  %v1407_v8 = vld [vmem:[%s1494_s30 + $0x10] sm:$0xff]  }
  0x10   : > { %1317 = vmatpush3.bf16.msra.mxu0 %v1399_v3  ;;  %1358 = vmatprep.mubr.msk.bf16.mxu1 %vm691_vm2, %v1402_v6  ;;  %v1404_v9 = vld [vmem:[%s215_s26] sm:$0xff]   ;;  %v1408_v10 = vld [vmem:[%s1494_s30 + $0x18] sm:$0xff]   ;;  %v1412_v14 = vld [vmem:[%s1494_s30 + $0x28] sm:$0xff]  }
  0x11   : > { %1318 = vmatprep.subr.bf16.mxu0 %v1400_v4  ;;  %1359 = vmatmul.mubr.msk.bf16.vlgmr.msra.gmra.mxu1 %vm691_vm2, %v1403_v7  ;;  %v1411_v11 = vld [vmem:[%s1494_s30 + $0x20] sm:$0xff]   ;;  %v1415_v15 = vld [vmem:[%s1494_s30 + $0x30] sm:$0xff]   ;;  %v1416_v18 = vld [vmem:[%s1494_s30 + $0x38] sm:$0xff]  }
  0x12   : > { %1362 = vmatprep.mubr.msk.bf16.mxu1 %vm691_vm2, %v1407_v8  ;;  %v1419_v19 = vld [vmem:[%s1494_s30 + $0x40] sm:$0xff]   ;;  %v1414_v20 = vld [vmem:[%s1665_s3 + $0x28] sm:$0xff]   ;;  %v1417_v21 = vld [vmem:[%s1665_s3 + $0x30] sm:$0xff]  }
  0x13   : > { %v1420_v22 = vld [vmem:[%s1494_s30 + $0x48] sm:$0xff]   ;;  %v1423_v23 = vld [vmem:[%s1494_s30 + $0x50] sm:$0xff]   ;;  %v1418_v24 = vld [vmem:[%s1665_s3 + $0x38] sm:$0xff]  }
  0x14   : > { %1319 = vmatpush3.bf16.msra.mxu0 %v1400_v4  ;;  %v1421_v25 = vld [vmem:[%s1665_s3 + $0x40] sm:$0xff]   ;;  %v1424_v26 = vld [vmem:[%s1494_s30 + $0x58] sm:$0xff]   ;;  %v1422_v28 = vld [vmem:[%s1665_s3 + $0x48] sm:$0xff]  }
  0x15   : > { %1320 = vmatprep.subr.bf16.mxu0 %v1401_v5  ;;  %v1427_v27 = vld [vmem:[%s1494_s30 + $0x60] sm:$0xff]   ;;  %v1425_v29 = vld [vmem:[%s1665_s3 + $0x50] sm:$0xff]   ;;  %v1428_v30 = vld [vmem:[%s1494_s30 + $0x68] sm:$0xff]  }
  0x16   : > { %v1431_v31 = vld [vmem:[%s1494_s30 + $0x70] sm:$0xff]   ;;  %v1426_v32 = vld [vmem:[%s1665_s3 + $0x58] sm:$0xff]   ;;  %v1429_v33 = vld [vmem:[%s1665_s3 + $0x60] sm:$0xff]  }
  0x17   : > { %v1432_v34 = vld [vmem:[%s1494_s30 + $0x78] sm:$0xff]   ;;  %v1430_v35 = vld [vmem:[%s1665_s3 + $0x68] sm:$0xff]   ;;  %v1433_v36 = vld [vmem:[%s1665_s3 + $0x70] sm:$0xff]  }
  0x18   : > { %1321 = vmatpush3.bf16.msra.mxu0 %v1401_v5  ;;  %v1434_v37 = vld [vmem:[%s1665_s3 + $0x78] sm:$0xff]  }
  0x19   : > { %1322 = vmatprep.subr.bf16.mxu0 %v1404_v9  ;;  %1363 = vmatmul.mubr.msk.bf16.gmra.mxu1 %vm691_vm2, %v1408_v10 }
  0x1a   : > { %1366 = vmatprep.mubr.msk.bf16.mxu1 %vm691_vm2, %v1411_v11 }
  0x1c   : > { %1323 = vmatpush3.bf16.msra.mxu0 %v1404_v9 }
  0x1f   : > { %1325 = vmatmul.mubr.msk.bf16.vlgmr.msra.gmra.mxu0 %vm401_vm1, %v1406_v12 }
  0x20   : > { %1328 = vmatprep.mubr.msk.bf16.mxu0 %vm401_vm1, %v1409_v13 }
  0x21   : > { %1367 = vmatmul.mubr.msk.bf16.gmra.mxu1 %vm691_vm2, %v1412_v14 }
  0x22   : > { %1370 = vmatprep.mubr.msk.bf16.mxu1 %vm691_vm2, %v1415_v15 }
  0x27   : > { %1329 = vmatmul.mubr.msk.bf16.gmra.mxu0 %vm401_vm1, %v1410_v16 }
  0x28   : > { %1332 = vmatprep.mubr.msk.bf16.mxu0 %vm401_vm1, %v1413_v17 }
  0x29   : > { %1371 = vmatmul.mubr.msk.bf16.gmra.mxu1 %vm691_vm2, %v1416_v18 }
  0x2a   : > { %1374 = vmatprep.mubr.msk.bf16.mxu1 %vm691_vm2, %v1419_v19 }
  0x2f   : > { %1333 = vmatmul.mubr.msk.bf16.gmra.mxu0 %vm401_vm1, %v1414_v20 }
  0x30   : > { %1336 = vmatprep.mubr.msk.bf16.mxu0 %vm401_vm1, %v1417_v21 }
  0x31   : > { %1375 = vmatmul.mubr.msk.bf16.gmra.mxu1 %vm691_vm2, %v1420_v22 }
  0x32   : > { %1378 = vmatprep.mubr.msk.bf16.mxu1 %vm691_vm2, %v1423_v23 }
  0x37   : > { %1337 = vmatmul.mubr.msk.bf16.gmra.mxu0 %vm401_vm1, %v1418_v24 }
  0x38   : > { %1340 = vmatprep.mubr.msk.bf16.mxu0 %vm401_vm1, %v1421_v25 }
  0x39   : > { %1379 = vmatmul.mubr.msk.bf16.gmra.mxu1 %vm691_vm2, %v1424_v26 }
  0x3a   : > { %1382 = vmatprep.mubr.msk.bf16.mxu1 %vm691_vm2, %v1427_v27 }
  0x3f   : > { %1341 = vmatmul.mubr.msk.bf16.gmra.mxu0 %vm401_vm1, %v1422_v28 }
  0x40   : > { %1344 = vmatprep.mubr.msk.bf16.mxu0 %vm401_vm1, %v1425_v29 }
  0x41   : > { %1383 = vmatmul.mubr.msk.bf16.gmra.mxu1 %vm691_vm2, %v1428_v30 }
  0x42   : > { %1386 = vmatprep.mubr.msk.bf16.mxu1 %vm691_vm2, %v1431_v31 }
  0x47   : > { %1345 = vmatmul.mubr.msk.bf16.gmra.mxu0 %vm401_vm1, %v1426_v32 }
  0x48   : > { %1348 = vmatprep.mubr.msk.bf16.mxu0 %vm401_vm1, %v1429_v33 }
  0x49   : > { %1387 = vmatmul.mubr.msk.bf16.gmra.mxu1 %vm691_vm2, %v1432_v34 }
  0x4f   : > { %1349 = vmatmul.mubr.msk.bf16.gmra.mxu0 %vm401_vm1, %v1430_v35 }
  0x50   : > { %1352 = vmatprep.mubr.msk.bf16.mxu0 %vm401_vm1, %v1433_v36 }
  0x57   : > { %1353 = vmatmul.mubr.msk.bf16.gmra.mxu0 %vm401_vm1, %v1434_v37 }
  0xd1   : > { %v1360_v38 = vpop.f32.mrf.mxu1 }
  0xd3   : > { %v778_v39 = vpop.f32.mrf.mxu1 }
  0xd5   : > { %v1361_v40 = vpop.f32.mrf.mxu1 }
  0xd7   : > { %v781_v41 = vpop.f32.mrf.mxu1 }
  0xd9   : > { %v1364_v42 = vpop.f32.mrf.mxu1 }
  0xdb   : > { %v794_v43 = vpop.f32.mrf.mxu1 }
  0xdd   : > { %v1365_v45 = vpop.f32.mrf.mxu1 }
  0xdf   : > { %v1326_v44 = vpop.f32.mrf.mxu0  ;;  %v797_v48 = vpop.f32.mrf.mxu1 }
  0xe0   : > { %v787_v46 = vadd.f32 %v1360_v38, %v1326_v44 }
  0xe1   : > { %v484_v47 = vpop.f32.mrf.mxu0  ;;  %v1368_v52 = vpop.f32.mrf.mxu1 }
  0xe2   : > { %v1249_v49 = vpack.c.bf16 %v787_v46, %v787_v46  ;;  %v779_v50 = vadd.f32 %v778_v39, %v484_v47 }
  0xe3   : > { %v1327_v51 = vpop.f32.mrf.mxu0  ;;  %v810_v56 = vpop.f32.mrf.mxu1 }
  0xe4   : > { %1036 = vst.msk [vmem:[%s1593_s14 + $0x8] sm:$0xf] %vm1033_vm3, %v1249_v49  ;;  %v1247_v53 = vpack.c.bf16 %v779_v50, %v779_v50  ;;  %v790_v54 = vadd.f32 %v1361_v40, %v1327_v51 }
  0xe5   : > { %v487_v55 = vpop.f32.mrf.mxu0  ;;  %v1369_v60 = vpop.f32.mrf.mxu1 }
  0xe6   : > { %1034 = vst.msk [vmem:[%s1593_s14] sm:$0xf] %vm1033_vm3, %v1247_v53  ;;  %v1250_v57 = vpack.c.bf16 %v790_v54, %v790_v54  ;;  %v782_v58 = vadd.f32 %v781_v41, %v487_v55 }
  0xe7   : > { %v1330_v59 = vpop.f32.mrf.mxu0  ;;  %v813_v0 = vpop.f32.mrf.mxu1 }
  0xe8   : > { %1037 = vst.msk [vmem:[%s1593_s14 + $0xc] sm:$0xf] %vm1033_vm3, %v1250_v57  ;;  %v1248_v61 = vpack.c.bf16 %v782_v58, %v782_v58  ;;  %v803_v62 = vadd.f32 %v1364_v42, %v1330_v59 }
  0xe9   : > { %v500_v63 = vpop.f32.mrf.mxu0  ;;  %v1372_v4 = vpop.f32.mrf.mxu1 }
  0xea   : > { %1035 = vst.msk [vmem:[%s1593_s14 + $0x4] sm:$0xf] %vm1033_vm3, %v1248_v61  ;;  %v1253_v1 = vpack.c.bf16 %v803_v62, %v803_v62  ;;  %v795_v2 = vadd.f32 %v794_v43, %v500_v63 }
  0xeb   : > { %v1331_v3 = vpop.f32.mrf.mxu0  ;;  %v826_v8 = vpop.f32.mrf.mxu1 }
  0xec   : > { %1040 = vst.msk [vmem:[%s1593_s14 + $0x18] sm:$0xf] %vm1033_vm3, %v1253_v1  ;;  %v1251_v5 = vpack.c.bf16 %v795_v2, %v795_v2  ;;  %v806_v6 = vadd.f32 %v1365_v45, %v1331_v3 }
  0xed   : > { %v503_v7 = vpop.f32.mrf.mxu0  ;;  %v1373_v12 = vpop.f32.mrf.mxu1 }
  0xee   : > { %1038 = vst.msk [vmem:[%s1593_s14 + $0x10] sm:$0xf] %vm1033_vm3, %v1251_v5  ;;  %v1254_v9 = vpack.c.bf16 %v806_v6, %v806_v6  ;;  %v798_v10 = vadd.f32 %v797_v48, %v503_v7 }
  0xef   : > { %v1334_v11 = vpop.f32.mrf.mxu0  ;;  %v829_v16 = vpop.f32.mrf.mxu1 }
  0xf0   : > { %1041 = vst.msk [vmem:[%s1593_s14 + $0x1c] sm:$0xf] %vm1033_vm3, %v1254_v9  ;;  %v1252_v13 = vpack.c.bf16 %v798_v10, %v798_v10  ;;  %v819_v14 = vadd.f32 %v1368_v52, %v1334_v11 }
  0xf1   : > { %v516_v15 = vpop.f32.mrf.mxu0  ;;  %v1376_v20 = vpop.f32.mrf.mxu1 }
  0xf2   : > { %1039 = vst.msk [vmem:[%s1593_s14 + $0x14] sm:$0xf] %vm1033_vm3, %v1252_v13  ;;  %v1257_v17 = vpack.c.bf16 %v819_v14, %v819_v14  ;;  %v811_v18 = vadd.f32 %v810_v56, %v516_v15 }
  0xf3   : > { %v1335_v19 = vpop.f32.mrf.mxu0  ;;  %v842_v24 = vpop.f32.mrf.mxu1 }
  0xf4   : > { %1044 = vst.msk [vmem:[%s1593_s14 + $0x28] sm:$0xf] %vm1033_vm3, %v1257_v17  ;;  %v1255_v21 = vpack.c.bf16 %v811_v18, %v811_v18  ;;  %v822_v22 = vadd.f32 %v1369_v60, %v1335_v19 }
  0xf5   : > { %v519_v23 = vpop.f32.mrf.mxu0  ;;  %v1377_v28 = vpop.f32.mrf.mxu1 }
  0xf6   : > { %1042 = vst.msk [vmem:[%s1593_s14 + $0x20] sm:$0xf] %vm1033_vm3, %v1255_v21  ;;  %v1258_v25 = vpack.c.bf16 %v822_v22, %v822_v22  ;;  %v814_v26 = vadd.f32 %v813_v0, %v519_v23 }
  0xf7   : > { %v1338_v27 = vpop.f32.mrf.mxu0  ;;  %v845_v32 = vpop.f32.mrf.mxu1 }
  0xf8   : > { %1045 = vst.msk [vmem:[%s1593_s14 + $0x2c] sm:$0xf] %vm1033_vm3, %v1258_v25  ;;  %v1256_v29 = vpack.c.bf16 %v814_v26, %v814_v26  ;;  %v835_v30 = vadd.f32 %v1372_v4, %v1338_v27 }
  0xf9   : > { %v532_v31 = vpop.f32.mrf.mxu0  ;;  %v1380_v36 = vpop.f32.mrf.mxu1 }
  0xfa   : > { %1043 = vst.msk [vmem:[%s1593_s14 + $0x24] sm:$0xf] %vm1033_vm3, %v1256_v29  ;;  %v1261_v33 = vpack.c.bf16 %v835_v30, %v835_v30  ;;  %v827_v34 = vadd.f32 %v826_v8, %v532_v31 }
  0xfb   : > { %v1339_v35 = vpop.f32.mrf.mxu0  ;;  %v858_v40 = vpop.f32.mrf.mxu1 }
  0xfc   : > { %1048 = vst.msk [vmem:[%s1593_s14 + $0x38] sm:$0xf] %vm1033_vm3, %v1261_v33  ;;  %v1259_v37 = vpack.c.bf16 %v827_v34, %v827_v34  ;;  %v838_v38 = vadd.f32 %v1373_v12, %v1339_v35 }
  0xfd   : > { %v535_v39 = vpop.f32.mrf.mxu0  ;;  %v1381_v44 = vpop.f32.mrf.mxu1 }
  0xfe   : > { %1046 = vst.msk [vmem:[%s1593_s14 + $0x30] sm:$0xf] %vm1033_vm3, %v1259_v37  ;;  %v1262_v41 = vpack.c.bf16 %v838_v38, %v838_v38  ;;  %v830_v42 = vadd.f32 %v829_v16, %v535_v39 }
  0xff   : > { %v1342_v43 = vpop.f32.mrf.mxu0  ;;  %v861_v48 = vpop.f32.mrf.mxu1 }
 0x100   : > { %1049 = vst.msk [vmem:[%s1593_s14 + $0x3c] sm:$0xf] %vm1033_vm3, %v1262_v41  ;;  %v1260_v45 = vpack.c.bf16 %v830_v42, %v830_v42  ;;  %v851_v46 = vadd.f32 %v1376_v20, %v1342_v43 }
 0x101   : > { %v548_v47 = vpop.f32.mrf.mxu0  ;;  %v1384_v52 = vpop.f32.mrf.mxu1 }
 0x102   : > { %1047 = vst.msk [vmem:[%s1593_s14 + $0x34] sm:$0xf] %vm1033_vm3, %v1260_v45  ;;  %v1265_v49 = vpack.c.bf16 %v851_v46, %v851_v46  ;;  %v843_v50 = vadd.f32 %v842_v24, %v548_v47 }
 0x103   : > { %v1343_v51 = vpop.f32.mrf.mxu0  ;;  %v874_v56 = vpop.f32.mrf.mxu1 }
 0x104   : > { %1052 = vst.msk [vmem:[%s1593_s14 + $0x48] sm:$0xf] %vm1033_vm3, %v1265_v49  ;;  %v1263_v53 = vpack.c.bf16 %v843_v50, %v843_v50  ;;  %v854_v54 = vadd.f32 %v1377_v28, %v1343_v51 }
 0x105   : > { %v551_v55 = vpop.f32.mrf.mxu0  ;;  %v1385_v63 = vpop.f32.mrf.mxu1 }
 0x106   : > { %1050 = vst.msk [vmem:[%s1593_s14 + $0x40] sm:$0xf] %vm1033_vm3, %v1263_v53  ;;  %v1266_v57 = vpack.c.bf16 %v854_v54, %v854_v54  ;;  %v846_v58 = vadd.f32 %v845_v32, %v551_v55 }
 0x107   : > { %v1346_v59 = vpop.f32.mrf.mxu0  ;;  %v877_v6 = vpop.f32.mrf.mxu1 }
 0x108   : > { %1053 = vst.msk [vmem:[%s1593_s14 + $0x4c] sm:$0xf] %vm1033_vm3, %v1266_v57  ;;  %v1264_v60 = vpack.c.bf16 %v846_v58, %v846_v58  ;;  %v867_v61 = vadd.f32 %v1380_v36, %v1346_v59 }
 0x109   : > { %v564_v62 = vpop.f32.mrf.mxu0  ;;  %v1388_v13 = vpop.f32.mrf.mxu1 }
 0x10a   : > { %1051 = vst.msk [vmem:[%s1593_s14 + $0x44] sm:$0xf] %vm1033_vm3, %v1264_v60  ;;  %v1269_v0 = vpack.c.bf16 %v867_v61, %v867_v61  ;;  %v859_v1 = vadd.f32 %v858_v40, %v564_v62 }
 0x10b   : > { %v1347_v2 = vpop.f32.mrf.mxu0  ;;  %v890_v19 = vpop.f32.mrf.mxu1 }
 0x10c   : > { %1056 = vst.msk [vmem:[%s1593_s14 + $0x58] sm:$0xf] %vm1033_vm3, %v1269_v0  ;;  %v1267_v3 = vpack.c.bf16 %v859_v1, %v859_v1  ;;  %v870_v4 = vadd.f32 %v1381_v44, %v1347_v2 }
 0x10d   : > { %v567_v5 = vpop.f32.mrf.mxu0  ;;  %v1389_v26 = vpop.f32.mrf.mxu1 }
 0x10e   : > { %1054 = vst.msk [vmem:[%s1593_s14 + $0x50] sm:$0xf] %vm1033_vm3, %v1267_v3  ;;  %v1270_v7 = vpack.c.bf16 %v870_v4, %v870_v4  ;;  %v862_v8 = vadd.f32 %v861_v48, %v567_v5 }
 0x10f   : > { %v1350_v9 = vpop.f32.mrf.mxu0  ;;  %v893_v33 = vpop.f32.mrf.mxu1 }
 0x110   : > { %1057 = vst.msk [vmem:[%s1593_s14 + $0x5c] sm:$0xf] %vm1033_vm3, %v1270_v7  ;;  %v1268_v10 = vpack.c.bf16 %v862_v8, %v862_v8  ;;  %v883_v11 = vadd.f32 %v1384_v52, %v1350_v9 }
 0x111   : > { %v580_v12 = vpop.f32.mrf.mxu0 }
 0x112   : > { %1055 = vst.msk [vmem:[%s1593_s14 + $0x54] sm:$0xf] %vm1033_vm3, %v1268_v10  ;;  %v1273_v14 = vpack.c.bf16 %v883_v11, %v883_v11  ;;  %v875_v15 = vadd.f32 %v874_v56, %v580_v12 }
 0x113   : > { %v1351_v16 = vpop.f32.mrf.mxu0 }
 0x114   : > { %1060 = vst.msk [vmem:[%s1593_s14 + $0x68] sm:$0xf] %vm1033_vm3, %v1273_v14  ;;  %v1271_v17 = vpack.c.bf16 %v875_v15, %v875_v15  ;;  %v886_v18 = vadd.f32 %v1385_v63, %v1351_v16 }
 0x115   : > { %v583_v20 = vpop.f32.mrf.mxu0 }
 0x116   : > { %1058 = vst.msk [vmem:[%s1593_s14 + $0x60] sm:$0xf] %vm1033_vm3, %v1271_v17  ;;  %v1274_v21 = vpack.c.bf16 %v886_v18, %v886_v18  ;;  %v878_v22 = vadd.f32 %v877_v6, %v583_v20 }
 0x117   : > { %v1354_v23 = vpop.f32.mrf.mxu0 }
 0x118   : > { %1061 = vst.msk [vmem:[%s1593_s14 + $0x6c] sm:$0xf] %vm1033_vm3, %v1274_v21  ;;  %v1272_v24 = vpack.c.bf16 %v878_v22, %v878_v22  ;;  %v899_v25 = vadd.f32 %v1388_v13, %v1354_v23 }
 0x119   : > { %v596_v27 = vpop.f32.mrf.mxu0 }
 0x11a   : > { %1059 = vst.msk [vmem:[%s1593_s14 + $0x64] sm:$0xf] %vm1033_vm3, %v1272_v24  ;;  %v1277_v28 = vpack.c.bf16 %v899_v25, %v899_v25  ;;  %v891_v29 = vadd.f32 %v890_v19, %v596_v27 }
 0x11b   : > { %v1355_v30 = vpop.f32.mrf.mxu0 }
 0x11c   : > { %1064 = vst.msk [vmem:[%s1593_s14 + $0x78] sm:$0xf] %vm1033_vm3, %v1277_v28  ;;  %v1275_v31 = vpack.c.bf16 %v891_v29, %v891_v29  ;;  %v902_v32 = vadd.f32 %v1389_v26, %v1355_v30 }
 0x11d   : > { %v599_v34 = vpop.f32.mrf.mxu0 }
 0x11e   : > { %1062 = vst.msk [vmem:[%s1593_s14 + $0x70] sm:$0xf] %vm1033_vm3, %v1275_v31  ;;  %v1278_v35 = vpack.c.bf16 %v902_v32, %v902_v32  ;;  %v894_v36 = vadd.f32 %v893_v33, %v599_v34 }
 0x120   : > { %1065 = vst.msk [vmem:[%s1593_s14 + $0x7c] sm:$0xf] %vm1033_vm3, %v1278_v35  ;;  %v1276_v37 = vpack.c.bf16 %v894_v36, %v894_v36 }
 0x122   : > { %1063 = vst.msk [vmem:[%s1593_s14 + $0x74] sm:$0xf] %vm1033_vm3, %v1276_v37 }
 0x123 PF: > { %s14_s15 = sadd.s32 1, %s1441_s15  }
 0x124   : > { %p11_p5 = scmp.ge.s32.totalorder %s14_s15, 4  }
 0x126   :  { %13 = sbr.rel (!%p11_p5) target bundleno = 1 (0x1), region = 69 }

// kernel: forward.15
= control target key start
LH: loop header
LB: loop body
LE: loop exit
PB: predicated region body
PF: predicated region fallthrough
CT: control target
= control target key end

     0   :  { %s1912_s15 = smov 0   ;;  %s2360_s0 = inlined_call_operand.vmem [shape: bf16[2,82,16], index: 0, kind: input, shape index: {}]   ;;  %s2361_s1 = inlined_call_operand.vmem [shape: bf16[3,3,16,4], index: 1, kind: input, shape index: {}]   ;;  %s2362_s2 = inlined_call_operand.vmem [shape: f32[64,1], index: 2, kind: input, shape index: {}]   ;;  %s2363_s3 = inlined_call_operand.vmem [shape: f32[64,1], index: 3, kind: input, shape index: {}]   ;;  %s2364_s4 = inlined_call_operand.vmem [shape: bf16[2,64,4], index: 4, kind: output, shape index: {}]  }
   0x1 LB: > { %s1572_s16 = sadd.s32 4294967295, %s1884_s15   ;;  %p1576_p0 = scmp.ge.s32.totalorder %s1884_s15, 1  ;;  %s1884_s15 = sphi %s1912_s15, %s14_s15  }
   0x2   : > { %p162_p1 = scmp.lt.s32.totalorder %s1884_s15, 3 }
   0x4   : > { %p163_p2 = pnand %p1576_p0, %p162_p1 }
   0x6   : > { %166 = sbr.rel (%p163_p2) target bundleno = 292 (0x124), region = 36 }
   0xb   : > { %v1839_v0 = vld [vmem:[%s2361_s1] sm:$0xff]   ;;  %p188_p3 = scmp.lt.s32.totalorder %s1572_s16, 1  ;;  %v1842_v1 = vld [vmem:[%s2361_s1 + $0x8] sm:$0xff]   ;;  %v1843_v2 = vld [vmem:[%s2361_s1 + $0x10] sm:$0xff]   ;;  %vm235_vm0 = vcmask 130048   ;;  %v1886_v5 = vmov 0  }
   0xc   : > { %1735 = vmatprep.subr.bf16.mxu0 %v1839_v0  ;;  %1825 = vmatprep.subr.bf16.mxu1 %v1839_v0  ;;  %v1941_v4 = vld [vmem:[%s2361_s1 + $0x20] sm:$0xff]   ;;  %v1947_v7 = vld [vmem:[%s2361_s1 + $0x18] sm:$0xff]   ;;  %vm412_vm1 = vsmask.f32 7424  ;;  %vm547_vm2 = vcmask 1046528   ;;  %v2013_v53 = vld [vmem:[%s2361_s1 + $0x30] sm:$0xff]  }
   0xd   : > { %s2378_s16 = smov (!%p188_p3, %s1572_s16), 1  ;;  %1736 = vmatpush3.bf16.msra.mxu0 %v1839_v0  ;;  %1826 = vmatpush3.bf16.msra.mxu1 %v1839_v0  ;;  %v2022_v58 = vld [vmem:[%s2361_s1 + $0x28] sm:$0xff]   ;;  %vm1508_vm3 = vcmask 27648  }
   0xe   : > { %s1827_s23 = smul.u32 44, %s2378_s16  ;;  %1745 = vmatprep.subr.bf16.mxu1 %v1842_v1  ;;  %1755 = vmatprep.subr.bf16.mxu0 %v1843_v2 }
   0xf   : > { %1837 = vset.pattern.permute.xlu0 %v1886_v5  ;;  %1838 = vset.pattern.permute.xlu1 %v1886_v5 }
  0x10   : > { %s1935_s26 = scalar_lea.vmem %s2360_s0, %s1827_s23 }
  0x11   : > { %v1840_v3 = vld [vmem:[%s1935_s26] sm:$0xff]   ;;  %v1841_v6 = vld [vmem:[%s1935_s26 + $0x10] sm:$0xff]   ;;  %v1844_v8 = vld [vmem:[%s1935_s26 + $0x8] sm:$0xff]  }
  0x12   : > { %1737 = vmatprep.mubr.msk.bf16.mxu0 %vm235_vm0, %v1840_v3  ;;  %1741 = vmatprep.mubr.msk.bf16.mxu1 %vm235_vm0, %v1841_v6  ;;  %v1845_v9 = vld [vmem:[%s1935_s26 + $0x18] sm:$0xff]   ;;  %v377_v10 = vld [vmem:[%s1935_s26] sm:$0xf]  ;;  %v1956_v11 = vld [vmem:[%s1935_s26 + $0x4] sm:$0xf] }
  0x13   : > { %1738 = vmatmul.mubr.msk.bf16.vlgmr.msra.gmra.mxu0 %vm235_vm0, %v1844_v8  ;;  %v1959_v12 = vld [vmem:[%s1935_s26 + $0x8] sm:$0xf]  ;;  %1742 = vmatmul.mubr.msk.bf16.vlgmr.msra.gmra.mxu1 %vm235_vm0, %v1845_v9  ;;  %v1963_v13 = vld [vmem:[%s1935_s26 + $0xc] sm:$0xf]  ;;  %v1966_v14 = vld [vmem:[%s1935_s26 + $0x10] sm:$0xf]  ;;  %v1591_v15 = vcombine.low %v377_v10, %v1956_v11 }
  0x14   : > { %1756 = vmatpush3.bf16.msra.mxu0 %v1843_v2  ;;  %v540_v16 = vld [vmem:[%s1935_s26] sm:$0xe]  ;;  %1746 = vmatpush3.bf16.msra.mxu1 %v1842_v1  ;;  %v1592_v17 = vcombine.low %v1959_v12, %v1963_v13  ;;  %v1975_v19 = vld [vmem:[%s1935_s26 + $0x14] sm:$0xf]  ;;  %v1978_v20 = vld [vmem:[%s1935_s26 + $0x18] sm:$0xf] }
  0x15   : > { %v1603_v18 = vcombine.low %v540_v16, %v1956_v11  ;;  %1775 = vmatprep.subr.bf16.mxu0 %v1941_v4  ;;  %v1981_v21 = vld [vmem:[%s1935_s26 + $0x1c] sm:$0xf]  ;;  %v414_v22 = vshrl.u32 %v1591_v15, 16  ;;  %v416_v23 = vshll.u32 %v1591_v15, 16  ;;  %1765 = vmatprep.subr.bf16.mxu1 %v1947_v7  ;;  %v1593_v24 = vcombine.low %v1966_v14, %v1975_v19  ;;  %v813_v30 = vld [vmem:[%s1935_s26 + $0x4] sm:$0xf] }
  0x16   : > { %v1594_v25 = vcombine.low %v1978_v20, %v1981_v21  ;;  %v421_v26 = vshll.u32 %v1592_v17, 16  ;;  %v425_v27 = vshrl.u32 %v1592_v17, 16  ;;  %v549_v29 = vrot.slane %v1592_v17, 1  ;;  %v1990_v31 = vld [vmem:[%s1935_s26 + $0x8] sm:$0xf] }
  0x17   : > { %v548_v28 = vrot.slane %v1603_v18, 1  ;;  %v418_v32 = vrot.slane %v416_v23, 1  ;;  %v429_v33 = vshll.u32 %v1593_v24, 16  ;;  %v551_v34 = vrot.slane %v1593_v24, 1  ;;  %v1993_v36 = vld [vmem:[%s1935_s26 + $0xc] sm:$0xf] }
  0x18   : > { %v433_v35 = vshrl.u32 %v1593_v24, 16  ;;  %v423_v37 = vrot.slane %v421_v26, 1  ;;  %v437_v39 = vshll.u32 %v1594_v25, 16  ;;  %v553_v40 = vrot.slane %v1594_v25, 1  ;;  %v2000_v46 = vld [vmem:[%s1935_s26 + $0x10] sm:$0xf] }
  0x19   : > { %v550_v38 = vsel %vm547_vm2, %v548_v28, %v549_v29  ;;  %v1854_v41 = vld [vmem:[%s1935_s26 + $0x20] ss:$0 sps:$4 sm:$0x11]   ;;  %v419_v42 = vor.u32 %v418_v32, %v414_v22  ;;  %v431_v43 = vrot.slane %v429_v33, 1  ;;  %v552_v44 = vsel %vm547_vm2, %v549_v29, %v551_v34  ;;  %v2003_v47 = vld [vmem:[%s1935_s26 + $0x14] sm:$0xf] }
  0x1a   : > { %1757 = vmatprep.mubr.msk.bf16.mxu0 %vm235_vm0, %v550_v38  ;;  %v441_v45 = vshrl.u32 %v1594_v25, 16  ;;  %v427_v48 = vor.u32 %v425_v27, %v423_v37  ;;  %v439_v49 = vrot.slane %v437_v39, 1  ;;  %v554_v50 = vsel %vm547_vm2, %v551_v34, %v553_v40  ;;  %v2008_v52 = vld [vmem:[%s1935_s26 + $0x18] sm:$0xf]  ;;  %v2032_v61 = vld [vmem:[%s1935_s26 + $0x1c] sm:$0xf] }
  0x1b   : > { %1758 = vmatmul.mubr.msk.bf16.vlgmr.msra.gmra.mxu0 %vm235_vm0, %v552_v44  ;;  %v445_v51 = vshll.u32 %v1854_v41, 16  ;;  %v424_v54 = vsel %vm412_vm1, %v419_v42, %v423_v37  ;;  %v435_v55 = vor.u32 %v433_v35, %v431_v43  ;;  %v555_v56 = vrot.slane %v1854_v41, 1  ;;  %v2035_v62 = vld [vmem:[%s1935_s26 + $0x20] sm:$0xf]  ;;  %v315_v18 = vld [vmem:[%s2362_s2 + $0x10] sm:$0xff]  ;;  %v314_v28 = vld [vmem:[%s2362_s2 + $0x8] sm:$0xff] }
  0x1c   : > { %1776 = vmatpush3.bf16.msra.mxu0 %v1941_v4  ;;  %1761 = vmatprep.mubr.msk.bf16.mxu0 %vm235_vm0, %v554_v50  ;;  %v1622_v57 = vcombine.low %v813_v30, %v1990_v31  ;;  %v432_v59 = vsel %vm412_vm1, %v427_v48, %v431_v43  ;;  %v2028_v60 = vcombine.low %v1993_v36, %v2000_v46  ;;  %v2067_v27 = vld [vmem:[%s1935_s26 + $0x24] ss:$0 sps:$4 sm:$0x11]   ;;  %v975_v39 = vld [vmem:[%s1935_s26 + $0x4] sm:$0xe]  ;;  %v318_v42 = vld [vmem:[%s2362_s2 + $0x28] sm:$0xff] }
  0x1d   : > { %1747 = vmatprep.mubr.msk.bf16.mxu1 %vm235_vm0, %v424_v54  ;;  %1795 = vmatprep.subr.bf16.mxu0 %v2013_v53  ;;  %v440_v63 = vsel %vm412_vm1, %v435_v55, %v439_v49  ;;  %v443_v0 = vor.u32 %v441_v45, %v439_v49  ;;  %v447_v1 = vrot.slane %v445_v51, 1  ;;  %v2041_v2 = vcombine.low %v2003_v47, %v2008_v52  ;;  %v317_v37 = vld [vmem:[%s2362_s2 + $0x20] sm:$0xff]  ;;  %v1199_v54 = vld [vmem:[%s1935_s26 + $0x8] sm:$0xf]  ;;  %v1200_v55 = vld [vmem:[%s1935_s26 + $0xc] sm:$0xf] }
  0x1e   : > { %1748 = vmatmul.mubr.msk.bf16.vlgmr.msra.gmra.mxu1 %vm235_vm0, %v432_v59  ;;  %v849_v3 = vshrl.u32 %v1622_v57, 16  ;;  %v851_v4 = vshll.u32 %v1622_v57, 16  ;;  %v856_v5 = vshll.u32 %v2028_v60, 16  ;;  %v860_v6 = vshrl.u32 %v2028_v60, 16  ;;  %333 = vperm.xlu1 %1838, %v315_v18   ;;  %v642_v59 = vld [vmem:[%s2363_s3 + $0x10] sm:$0xff]  ;;  %v647_v18 = vld [vmem:[%s2363_s3 + $0x38] sm:$0xff] }
  0x1f   : > { %1766 = vmatpush3.bf16.msra.mxu1 %v1947_v7  ;;  %1751 = vmatprep.mubr.msk.bf16.mxu1 %vm235_vm0, %v440_v63  ;;  %v556_v8 = vsel %vm547_vm2, %v553_v40, %v555_v56  ;;  %v864_v9 = vshll.u32 %v2041_v2, 16  ;;  %v2052_v10 = vcombine.low %v2032_v61, %v2035_v62  ;;  %v313_v7 = vld [vmem:[%s2362_s2] sm:$0xff]  ;;  %v868_v17 = vshrl.u32 %v2041_v2, 16 }
  0x20   : > { %1785 = vmatprep.subr.bf16.mxu1 %v2022_v58  ;;  %v853_v15 = vrot.slane %v851_v4, 1  ;;  %v858_v16 = vrot.slane %v856_v5, 1  ;;  %323 = vperm.xlu0 %1837, %v313_v7   ;;  %v448_v23 = vsel %vm412_vm1, %v443_v0, %v447_v1  ;;  %v1611_v24 = vcombine.low %v1956_v11, %v1959_v12  ;;  %v316_v11 = vld [vmem:[%s2362_s2 + $0x18] sm:$0xff]  ;;  %v1869_v40 = vld [vmem:[%s2361_s1 + $0x40] sm:$0xff]   ;;  %v1873_v4 = vld [vmem:[%s1935_s26 + $0x10] sm:$0xff]  }
  0x21   : > { %v872_v22 = vshll.u32 %v2052_v10, 16  ;;  %v866_v26 = vrot.slane %v864_v9, 1  ;;  %v876_v34 = vshrl.u32 %v2052_v10, 16  ;;  %v880_v35 = vshll.u32 %v2067_v27, 16  ;;  %v640_v56 = vld [vmem:[%s2363_s3] sm:$0xff] }
  0x22   : > { %v854_v25 = vor.u32 %v853_v15, %v849_v3  ;;  %v862_v29 = vor.u32 %v860_v6, %v858_v16  ;;  %338 = vperm.xlu1 %1838, %v316_v11   ;;  %v1612_v41 = vcombine.low %v1963_v13, %v1966_v14  ;;  %v1613_v43 = vcombine.low %v1975_v19, %v1978_v20  ;;  %v1868_v13 = vld [vmem:[%s2361_s1 + $0x38] sm:$0xff]   ;;  %v319_v14 = vld [vmem:[%s2362_s2 + $0x30] sm:$0xff]  ;;  %v704_v20 = vld [vmem:[%s1935_s26 + $0x20] sm:$0xf] }
  0x23   : > { %1762 = vmatmul.mubr.msk.bf16.gmra.mxu0 %vm235_vm0, %v556_v8  ;;  %v870_v32 = vor.u32 %v868_v17, %v866_v26  ;;  %v874_v33 = vrot.slane %v872_v22, 1  ;;  %v882_v45 = vrot.slane %v880_v35, 1  ;;  %v1634_v48 = vcombine.low %v975_v39, %v1990_v31  ;;  %v320_v19 = vld [vmem:[%s2362_s2 + $0x38] sm:$0xff]  ;;  %v644_v8 = vld [vmem:[%s2363_s3 + $0x20] sm:$0xff]  ;;  %v646_v17 = vld [vmem:[%s2363_s3 + $0x30] sm:$0xff] }
  0x24   : > { %v859_v30 = vsel %vm412_vm1, %v854_v25, %v858_v16  ;;  %328 = vperm.xlu0 %1837, %v314_v28   ;;  %v867_v12 = vsel %vm412_vm1, %v862_v29, %v866_v26  ;;  %v983_v51 = vrot.slane %v2028_v60, 1  ;;  %v1614_v57 = vcombine.low %v1981_v21, %v704_v20  ;;  %v1361_v21 = vld [vmem:[%s1935_s26 + $0x8] sm:$0xe]  ;;  %v643_v60 = vld [vmem:[%s2363_s3 + $0x18] sm:$0xff]  ;;  %v1876_v26 = vld [vmem:[%s1935_s26 + $0x20] sm:$0xff]  }
  0x25   : > { %1777 = vmatprep.mubr.msk.bf16.mxu0 %vm235_vm0, %v859_v30  ;;  %v875_v38 = vsel %vm412_vm1, %v870_v32, %v874_v33  ;;  %v878_v44 = vor.u32 %v876_v34, %v874_v33  ;;  %v982_v50 = vrot.slane %v1634_v48, 1  ;;  %v1643_v63 = vcombine.low %v2000_v46, %v2003_v47  ;;  %v645_v46 = vld [vmem:[%s2363_s3 + $0x28] sm:$0xff]  ;;  %v1875_v16 = vld [vmem:[%s1935_s26 + $0x18] sm:$0xff]  }
  0x26   : > { %1752 = vmatmul.mubr.msk.bf16.gmra.mxu1 %vm235_vm0, %v448_v23  ;;  %348 = vperm.xlu1 %1838, %v318_v42   ;;  %v985_v0 = vrot.slane %v2041_v2, 1  ;;  %v987_v1 = vrot.slane %v2052_v10, 1  ;;  %v1644_v3 = vcombine.low %v2008_v52, %v2032_v61  ;;  %v1665_v6 = vcombine.low %v1361_v21, %v1200_v55  ;;  %v1090_v61 = vld [vmem:[%s1935_s26 + $0x24] sm:$0xf] }
  0x27   : > { %1767 = vmatprep.mubr.msk.bf16.mxu1 %vm235_vm0, %v1611_v24  ;;  %v883_v49 = vsel %vm412_vm1, %v878_v44, %v882_v45  ;;  %v1242_v10 = vshll.u32 %v1873_v4, 16  ;;  %v1369_v15 = vrot.slane %v1873_v4, 1  ;;  %v989_v22 = vrot.slane %v2067_v27, 1 }
  0x28   : > { %343 = vperm.xlu0 %1837, %v317_v37   ;;  %v986_v47 = vsel %vm547_vm2, %v983_v51, %v985_v0  ;;  %v988_v52 = vsel %vm547_vm2, %v985_v0, %v987_v1  ;;  %v1368_v7 = vrot.slane %v1665_v6, 1  ;;  %v1645_v23 = vcombine.low %v2035_v62, %v1090_v61  ;;  %v1877_v37 = vld [vmem:[%s1935_s26 + $0x28] ss:$0 sps:$4 sm:$0x11]   ;;  %s1681_s26 = sshll.u32 %s2378_s16, 5 }
  0x29   : > { %v1244_v25 = vrot.slane %v1242_v10, 1  ;;  %v1250_v29 = vshll.u32 %v1875_v16, 16  ;;  %v990_v30 = vsel %vm547_vm2, %v987_v1, %v989_v22  ;;  %v1246_v32 = vshrl.u32 %v1873_v4, 16  ;;  %s2327_s25 = scalar_lea.vmem %s2364_s4, %s1681_s26 }
  0x2a   : > { %358 = vperm.xlu1 %1838, %v320_v19   ;;  %v1370_v28 = vsel %vm547_vm2, %v1368_v7, %v1369_v15  ;;  %v1371_v27 = vrot.slane %v1875_v16, 1  ;;  %v1254_v62 = vshrl.u32 %v1875_v16, 16  ;;  %v1258_v11 = vshll.u32 %v1876_v26, 16 }
  0x2b   : > { %1778 = vmatmul.mubr.msk.bf16.vlgmr.msra.gmra.mxu0 %vm235_vm0, %v867_v12  ;;  %v1373_v12 = vrot.slane %v1876_v26, 1  ;;  %v1252_v34 = vrot.slane %v1250_v29, 1  ;;  %v1248_v35 = vor.u32 %v1246_v32, %v1244_v25  ;;  %v1266_v44 = vshll.u32 %v1877_v37, 16 }
  0x2c   : > { %1796 = vmatpush3.bf16.msra.mxu0 %v2013_v53  ;;  %1781 = vmatprep.mubr.msk.bf16.mxu0 %vm235_vm0, %v875_v38  ;;  %v1642_v53 = vcombine.low %v1990_v31, %v1993_v36  ;;  %v984_v31 = vsel %vm547_vm2, %v982_v50, %v983_v51  ;;  %v1653_v36 = vcombine.low %v1199_v54, %v1200_v55  ;;  %v1375_v48 = vrot.slane %v1877_v37, 1 }
  0x2d   : > { %1815 = vmatprep.subr.bf16.mxu0 %v1869_v40  ;;  %353 = vperm.xlu0 %1837, %v319_v14   ;;  %v1372_v38 = vsel %vm547_vm2, %v1369_v15, %v1371_v27  ;;  %v1256_v39 = vor.u32 %v1254_v62, %v1252_v34  ;;  %v1253_v42 = vsel %vm412_vm1, %v1248_v35, %v1252_v34  ;;  %v1268_v14 = vrot.slane %v1266_v44, 1 }
  0x2e   : > { %1768 = vmatmul.mubr.msk.bf16.vlgmr.msra.gmra.mxu1 %vm235_vm0, %v1612_v41  ;;  %v1237_v5 = vshll.u32 %v1653_v36, 16  ;;  %v1235_v2 = vshrl.u32 %v1653_v36, 16  ;;  %v1374_v41 = vsel %vm547_vm2, %v1371_v27, %v1373_v12  ;;  %v1376_v19 = vsel %vm547_vm2, %v1373_v12, %v1375_v48 }
  0x2f   : > { %1786 = vmatpush3.bf16.msra.mxu1 %v2022_v58  ;;  %1771 = vmatprep.mubr.msk.bf16.mxu1 %vm235_vm0, %v1613_v43  ;;  %v641_v58 = vld [vmem:[%s2363_s3 + $0x8] sm:$0xff]  ;;  %v1262_v43 = vshrl.u32 %v1876_v26, 16 }
  0x30   : > { %1805 = vmatprep.subr.bf16.mxu1 %v1868_v13  ;;  %655 = vperm.xlu1 %1838, %v641_v58   ;;  %v1239_v9 = vrot.slane %v1237_v5, 1 }
  0x31   : > { %650 = vperm.xlu0 %1837, %v640_v56  }
  0x32   : > { %v1240_v24 = vor.u32 %v1239_v9, %v1235_v2 }
  0x33   : > { %1782 = vmatmul.mubr.msk.bf16.gmra.mxu0 %vm235_vm0, %v883_v49 }
  0x34   : > { %1797 = vmatprep.mubr.msk.bf16.mxu0 %vm235_vm0, %v1642_v53  ;;  %665 = vperm.xlu1 %1838, %v643_v60   ;;  %v1245_v33 = vsel %vm412_vm1, %v1240_v24, %v1244_v25 }
  0x35   : > { %660 = vperm.xlu0 %1837, %v642_v59  }
  0x36   : > { %1772 = vmatmul.mubr.msk.bf16.gmra.mxu1 %vm235_vm0, %v1614_v57 }
  0x37   : > { %1787 = vmatprep.mubr.msk.bf16.mxu1 %vm235_vm0, %v984_v31 }
  0x38   : > { %675 = vperm.xlu1 %1838, %v645_v46  }
  0x39   : > { %670 = vperm.xlu0 %1837, %v644_v8  }
  0x3b   : > { %1798 = vmatmul.mubr.msk.bf16.vlgmr.msra.gmra.mxu0 %vm235_vm0, %v1643_v63 }
  0x3c   : > { %1816 = vmatpush3.bf16.msra.mxu0 %v1869_v40  ;;  %1801 = vmatprep.mubr.msk.bf16.mxu0 %vm235_vm0, %v1644_v3  ;;  %v1260_v40 = vrot.slane %v1258_v11, 1 }
  0x3d   : > { %680 = vperm.xlu0 %1837, %v646_v17   ;;  %685 = vperm.xlu1 %1838, %v647_v18  }
  0x3e   : > { %1788 = vmatmul.mubr.msk.bf16.vlgmr.msra.gmra.mxu1 %vm235_vm0, %v986_v47  ;;  %v1261_v45 = vsel %vm412_vm1, %v1256_v39, %v1260_v40 }
  0x3f   : > { %1806 = vmatpush3.bf16.msra.mxu1 %v1868_v13  ;;  %1791 = vmatprep.mubr.msk.bf16.mxu1 %vm235_vm0, %v988_v52  ;;  %v1264_v13 = vor.u32 %v1262_v43, %v1260_v40 }
  0x41   : > { %v1269_v20 = vsel %vm412_vm1, %v1264_v13, %v1268_v14 }
  0x43   : > { %1802 = vmatmul.mubr.msk.bf16.gmra.mxu0 %vm235_vm0, %v1645_v23 }
  0x44   : > { %1817 = vmatprep.mubr.msk.bf16.mxu0 %vm235_vm0, %v1370_v28 }
  0x46   : > { %1792 = vmatmul.mubr.msk.bf16.gmra.mxu1 %vm235_vm0, %v990_v30 }
  0x47   : > { %1807 = vmatprep.mubr.msk.bf16.mxu1 %vm235_vm0, %v1245_v33 }
  0x4b   : > { %1818 = vmatmul.mubr.msk.bf16.vlgmr.msra.gmra.mxu0 %vm235_vm0, %v1372_v38 }
  0x4c   : > { %1821 = vmatprep.mubr.msk.bf16.mxu0 %vm235_vm0, %v1374_v41 }
  0x4e   : > { %1808 = vmatmul.mubr.msk.bf16.vlgmr.msra.gmra.mxu1 %vm235_vm0, %v1253_v42 }
  0x4f   : > { %1811 = vmatprep.mubr.msk.bf16.mxu1 %vm235_vm0, %v1261_v45 }
  0x53   : > { %1822 = vmatmul.mubr.msk.bf16.gmra.mxu0 %vm235_vm0, %v1376_v19 }
  0x56   : > { %1812 = vmatmul.mubr.msk.bf16.gmra.mxu1 %vm235_vm0, %v1269_v20 }
  0x99   : > { %v2191_v54 = vpop.permute.xlu1 %333 }
  0x9b   : > { %v2189_v51 = vpop.permute.xlu0 %323 }
  0x9d   : > { %v2201_v21 = vpop.permute.xlu1 %338 }
  0x9f   : > { %v2199_v36 = vpop.permute.xlu0 %328 }
  0xa1   : > { %v2205_v5 = vpop.permute.xlu1 %348 }
  0xa3   : > { %v2203_v3 = vpop.permute.xlu0 %343 }
  0xa5   : > { %v2209_v9 = vpop.permute.xlu1 %358 }
  0xa8   : > { %v2207_v61 = vpop.permute.xlu0 %353 }
  0xab   : > { %v2221_v23 = vpop.permute.xlu1 %655 }
  0xac   : > { %v2217_v18 = vpop.permute.xlu0 %650 }
  0xaf   : > { %v2231_v33 = vpop.permute.xlu1 %665 }
  0xb0   : > { %v2227_v30 = vpop.permute.xlu0 %660 }
  0xb3   : > { %v2242_v39 = vpop.permute.xlu1 %675 }
  0xb4   : > { %v2237_v35 = vpop.permute.xlu0 %670 }
  0xd3   : > { %v1739_v49 = vpop.f32.mrf.mxu0  ;;  %v1743_v50 = vpop.f32.mrf.mxu1 }
  0xd4   : > { %v363_v38 = vmul.f32 %v1739_v49, %v2191_v54  ;;  %v367_v20 = vmul.f32 %v1743_v50, %v2207_v61  ;;  %v2266_v50 = vpop.permute.xlu1 %685 }
  0xd5   : > { %v282_v53 = vpop.f32.mrf.mxu0  ;;  %v2193_v55 = vpop.f32.mrf.mxu1 }
  0xd6   : > { %v361_v42 = vmul.f32 %v2189_v51, %v282_v53 }
  0xd7   : > { %v1740_v56 = vpop.f32.mrf.mxu0  ;;  %v2195_v57 = vpop.f32.mrf.mxu1 }
  0xd8   : > { %v364_v49 = vmul.f32 %v1740_v56, %v2201_v21 }
  0xd9   : > { %v285_v58 = vpop.f32.mrf.mxu0  ;;  %v2197_v31 = vpop.f32.mrf.mxu1 }
  0xdb   : > { %v1759_v59 = vpop.f32.mrf.mxu0 }
  0xdc   : > { %v690_v44 = vmul.f32 %v1759_v59, %v2227_v30  ;;  %v365_v59 = vmul.f32 %v2203_v3, %v2193_v55  ;;  %v366_v55 = vmul.f32 %v2205_v5, %v2197_v31 }
  0xdd   : > { %v609_v60 = vpop.f32.mrf.mxu0 }
  0xde   : > { %v1749_v63 = vpop.f32.mrf.mxu1  ;;  %v688_v14 = vmul.f32 %v2217_v18, %v609_v60 }
  0xdf   : > { %v1760_v0 = vpop.f32.mrf.mxu0  ;;  %v534_v43 = vadd.f32 %v1749_v63, %v363_v38 }
  0xe0   : > { %v501_v1 = vpop.f32.mrf.mxu1  ;;  %v691_v38 = vmul.f32 %v1760_v0, %v2231_v33 }
  0xe1   : > { %v612_v4 = vpop.f32.mrf.mxu0  ;;  %v532_v13 = vadd.f32 %v501_v1, %v361_v42  ;;  %v368_v1 = vmul.f32 %v2195_v57, %v2209_v9  ;;  %v698_v60 = vadd.f32 %v690_v44, %v534_v43 }
  0xe2   : > { %v1750_v6 = vpop.f32.mrf.mxu1 }
  0xe3   : > { %v1763_v8 = vpop.f32.mrf.mxu0  ;;  %v535_v42 = vadd.f32 %v1750_v6, %v364_v49 }
  0xe4   : > { %v504_v46 = vpop.f32.mrf.mxu1 }
  0xe5   : > { %v625_v47 = vpop.f32.mrf.mxu0 }
  0xe6   : > { %v1753_v52 = vpop.f32.mrf.mxu1  ;;  %v692_v0 = vmul.f32 %v2237_v35, %v625_v47 }
  0xe7   : > { %v1764_v2 = vpop.f32.mrf.mxu0 }
  0xe8   : > { %v517_v10 = vpop.f32.mrf.mxu1  ;;  %v695_v44 = vmul.f32 %v1764_v2, %v2266_v50 }
  0xe9   : > { %v2211_v7 = vpop.f32.mrf.mxu0 }
  0xea   : > { %v1754_v15 = vpop.f32.mrf.mxu1 }
  0xeb   : > { %v2213_v16 = vpop.f32.mrf.mxu0 }
  0xec   : > { %v2215_v17 = vpop.f32.mrf.mxu1 }
  0xed   : > { %v2219_v22 = vpop.f32.mrf.mxu0 }
  0xee   : > { %v1769_v24 = vpop.f32.mrf.mxu1 }
  0xef   : > { %v2223_v25 = vpop.f32.mrf.mxu0  ;;  %v799_v53 = vmul.f32 %v1769_v24, %v2191_v54 }
  0xf0   : > { %v766_v26 = vpop.f32.mrf.mxu1 }
  0xf1   : > { %v2225_v28 = vpop.f32.mrf.mxu0  ;;  %v797_v24 = vmul.f32 %v766_v26, %v2189_v51  ;;  %v807_v6 = vadd.f32 %v799_v53, %v698_v60  ;;  %v536_v26 = vadd.f32 %v517_v10, %v365_v59 }
  0xf2   : > { %v1770_v29 = vpop.f32.mrf.mxu1 }
  0xf3   : > { %v2229_v32 = vpop.f32.mrf.mxu0 }
  0xf4   : > { %v769_v27 = vpop.f32.mrf.mxu1 }
  0xf5   : > { %v2233_v62 = vpop.f32.mrf.mxu0  ;;  %v798_v49 = vmul.f32 %v769_v27, %v2199_v36  ;;  %v537_v27 = vadd.f32 %v2215_v17, %v366_v55 }
  0xf6   : > { %2365 = vst [vmem:[#allocation2_spill] sm:$0xff] %v2233_v62  ;;  %v1773_v11 = vpop.f32.mrf.mxu1  ;;  %v689_v62 = vmul.f32 %v2221_v23, %v612_v4 }
  0xf7   : > { %v2235_v12 = vpop.f32.mrf.mxu0  ;;  %v803_v31 = vmul.f32 %v1773_v11, %v2207_v61  ;;  %v969_v11 = vadd.f32 %v2213_v16, %v807_v6 }
  0xf8   : > { %2366 = vst [vmem:[#allocation3_spill] sm:$0xff] %v2235_v12  ;;  %v782_v34 = vpop.f32.mrf.mxu1  ;;  %v2256_v12 = vpop.permute.xlu0 %680 }
  0xf9   : > { %v2239_v37 = vpop.f32.mrf.mxu0  ;;  %v694_v57 = vmul.f32 %v1763_v8, %v2256_v12  ;;  %v801_v53 = vmul.f32 %v782_v34, %v2203_v3 }
  0xfa   : > { %2367 = vst [vmem:[#allocation4_spill] sm:$0xff] %v2239_v37  ;;  %v1774_v40 = vpop.f32.mrf.mxu1  ;;  %v362_v37 = vmul.f32 %v2199_v36, %v285_v58 }
  0xfb   : > { %v2244_v41 = vpop.f32.mrf.mxu0  ;;  %v804_v10 = vmul.f32 %v1774_v40, %v2209_v9 }
  0xfc   : > { %v2248_v45 = vpop.f32.mrf.mxu1  ;;  %v533_v58 = vadd.f32 %v504_v46, %v362_v37  ;;  %v800_v46 = vmul.f32 %v1770_v29, %v2201_v21  ;;  %v539_v37 = vadd.f32 %v1754_v15, %v368_v1  ;;  %v693_v29 = vmul.f32 %v2242_v39, %v2211_v7 }
  0xfd   : > { %2368 = vst [vmem:[#allocation5_spill] sm:$0xff] %v2248_v45  ;;  %v2250_v48 = vpop.f32.mrf.mxu0  ;;  %v538_v45 = vadd.f32 %v1753_v52, %v367_v20  ;;  %v699_v52 = vadd.f32 %v691_v38, %v535_v42 }
  0xfe   : > { %2369 = vst [vmem:[#allocation6_spill] sm:$0xff] %v2250_v48  ;;  %v1789_v19 = vpop.f32.mrf.mxu1  ;;  %v703_v1 = vadd.f32 %v695_v44, %v539_v37 }
  0xff   : > { %v2259_v63 = vpop.f32.mrf.mxu0  ;;  %v1076_v20 = vmul.f32 %v1789_v19, %v2227_v30  ;;  %v702_v2 = vadd.f32 %v694_v57, %v538_v45  ;;  %v808_v59 = vadd.f32 %v800_v46, %v699_v52  ;;  %v700_v19 = vadd.f32 %v692_v0, %v536_v26  ;;  %v2373_v52 = vld [vmem:[#allocation2_spill] sm:$0xff] }
 0x100   : > { %2370 = vst [vmem:[#allocation7_spill] sm:$0xff] %v2259_v63  ;;  %v1043_v56 = vpop.f32.mrf.mxu1  ;;  %v696_v63 = vadd.f32 %v688_v14, %v532_v13  ;;  %v697_v14 = vadd.f32 %v689_v62, %v533_v58  ;;  %v812_v58 = vadd.f32 %v804_v10, %v703_v1  ;;  %v1185_v57 = vmul.f32 %v2244_v41, %v2191_v54 }
 0x101   : > { %v2270_v48 = vpop.f32.mrf.mxu0  ;;  %v1074_v62 = vmul.f32 %v1043_v56, %v2217_v18  ;;  %v811_v60 = vadd.f32 %v803_v31, %v702_v2  ;;  %v1084_v34 = vadd.f32 %v1076_v20, %v969_v11  ;;  %v809_v17 = vadd.f32 %v801_v53, %v700_v19 }
 0x102   : > { %v1790_v43 = vpop.f32.mrf.mxu1  ;;  %v805_v8 = vadd.f32 %v797_v24, %v696_v63  ;;  %v806_v45 = vadd.f32 %v798_v49, %v697_v14  ;;  %v701_v56 = vadd.f32 %v693_v29, %v537_v27  ;;  %v970_v55 = vadd.f32 %v2223_v25, %v808_v59 }
 0x103   : > { %v2278_v4 = vpop.f32.mrf.mxu0  ;;  %v1077_v40 = vmul.f32 %v1790_v43, %v2231_v33  ;;  %v973_v43 = vadd.f32 %v2229_v32, %v811_v60  ;;  %v971_v14 = vadd.f32 %v2373_v52, %v809_v17 }
 0x104   : > { %v1046_v13 = vpop.f32.mrf.mxu1  ;;  %v967_v7 = vadd.f32 %v2219_v22, %v805_v8  ;;  %v968_v22 = vadd.f32 %v2225_v28, %v806_v45  ;;  %v2371_v6 = vld [vmem:[#allocation5_spill] sm:$0xff]  ;;  %v2374_v28 = vld [vmem:[#allocation3_spill] sm:$0xff] }
 0x105   : > { %v2283_v47 = vpop.f32.mrf.mxu0  ;;  %v1075_v16 = vmul.f32 %v1046_v13, %v2221_v23  ;;  %v802_v46 = vmul.f32 %v2371_v6, %v2205_v5  ;;  %v2372_v49 = vld [vmem:[#allocation6_spill] sm:$0xff]  ;;  %v1085_v25 = vadd.f32 %v1077_v40, %v970_v55  ;;  %v1193_v13 = vadd.f32 %v1185_v57, %v1084_v34 }
 0x106   : > { %v1793_v15 = vpop.f32.mrf.mxu1  ;;  %v1082_v0 = vadd.f32 %v1074_v62, %v967_v7  ;;  %v1183_v31 = vmul.f32 %v2372_v49, %v2189_v51  ;;  %v974_v8 = vadd.f32 %v2374_v28, %v812_v58  ;;  %v1189_v7 = vmul.f32 %v2278_v4, %v2207_v61 }
 0x107   : > { %v2292_v63 = vpop.f32.mrf.mxu0  ;;  %v1080_v26 = vmul.f32 %v1793_v15, %v2256_v12  ;;  %v1083_v32 = vadd.f32 %v1075_v16, %v968_v22  ;;  %v2375_v29 = vld [vmem:[#allocation7_spill] sm:$0xff]  ;;  %v810_v11 = vadd.f32 %v802_v46, %v701_v56  ;;  %v1187_v4 = vmul.f32 %v2283_v47, %v2203_v3 }
 0x108   : > { %v1059_v38 = vpop.f32.mrf.mxu1  ;;  %v1186_v53 = vmul.f32 %v2375_v29, %v2201_v21  ;;  %v1191_v15 = vadd.f32 %v1183_v31, %v1082_v0 }
 0x109   : > { %v2296_v42 = vpop.f32.mrf.mxu0  ;;  %v1078_v20 = vmul.f32 %v1059_v38, %v2237_v35  ;;  %v1088_v59 = vadd.f32 %v1080_v26, %v973_v43 }
 0x10a   : > { %v1794_v24 = vpop.f32.mrf.mxu1  ;;  %v1194_v60 = vadd.f32 %v1186_v53, %v1085_v25 }
 0x10b   : > { %v1819_v44 = vpop.f32.mrf.mxu0  ;;  %v1081_v62 = vmul.f32 %v1794_v24, %v2266_v50  ;;  %v1086_v34 = vadd.f32 %v1078_v20, %v971_v14  ;;  %v2376_v24 = vld [vmem:[#allocation4_spill] sm:$0xff]  ;;  %v1197_v57 = vadd.f32 %v1189_v7, %v1088_v59 }
 0x10c   : > { %v1062_v37 = vpop.f32.mrf.mxu1  ;;  %v1462_v54 = vmul.f32 %v1819_v44, %v2227_v30  ;;  %v1184_v30 = vmul.f32 %v2270_v48, %v2199_v36  ;;  %v972_v61 = vadd.f32 %v2376_v24, %v810_v11 }
 0x10d   : > { %v1429_v41 = vpop.f32.mrf.mxu0  ;;  %v1089_v56 = vadd.f32 %v1081_v62, %v974_v8 }
 0x10e   : > { %v1809_v2 = vpop.f32.mrf.mxu1  ;;  %v1460_v51 = vmul.f32 %v1429_v41, %v2217_v18  ;;  %v1079_v18 = vmul.f32 %v1062_v37, %v2242_v39  ;;  %v1192_v48 = vadd.f32 %v1184_v30, %v1083_v32  ;;  %v1195_v37 = vadd.f32 %v1187_v4, %v1086_v34 }
 0x10f   : > { %v1355_v10 = vadd.f32 %v1809_v2, %v1193_v13  ;;  %v1820_v27 = vpop.f32.mrf.mxu0  ;;  %v1188_v13 = vmul.f32 %v2296_v42, %v2205_v5 }
 0x110   : > { %v1322_v19 = vpop.f32.mrf.mxu1  ;;  %v1463_v38 = vmul.f32 %v1820_v27, %v2231_v33  ;;  %v1087_v46 = vadd.f32 %v1079_v18, %v972_v61 }
 0x111   : > { %v1470_v1 = vadd.f32 %v1462_v54, %v1355_v10  ;;  %v1353_v45 = vadd.f32 %v1322_v19, %v1191_v15  ;;  %v1432_v21 = vpop.f32.mrf.mxu0 }
 0x112   : > { %v1810_v36 = vpop.f32.mrf.mxu1  ;;  %v1461_v33 = vmul.f32 %v1432_v21, %v2221_v23  ;;  %v1190_v23 = vmul.f32 %v2292_v63, %v2209_v9  ;;  %v1196_v8 = vadd.f32 %v1188_v13, %v1087_v46 }
 0x113   : > { %v1684_v40 = vpack.c.bf16 %v1470_v1, %v1470_v1  ;;  %v1468_v17 = vadd.f32 %v1460_v51, %v1353_v45  ;;  %v1356_v58 = vadd.f32 %v1810_v36, %v1194_v60  ;;  %v1823_v16 = vpop.f32.mrf.mxu0 }
 0x114   : > { %v1325_v55 = vpop.f32.mrf.mxu1  ;;  %v1466_v43 = vmul.f32 %v1823_v16, %v2256_v12  ;;  %v1198_v54 = vadd.f32 %v1190_v23, %v1089_v56 }
 0x115   : > { %1511 = vst.msk [vmem:[%s2327_s25 + $0x8] sm:$0xf] %vm1508_vm3, %v1684_v40  ;;  %v1682_v0 = vpack.c.bf16 %v1468_v17, %v1468_v17  ;;  %v1471_v44 = vadd.f32 %v1463_v38, %v1356_v58  ;;  %v1354_v22 = vadd.f32 %v1325_v55, %v1192_v48  ;;  %v1445_v6 = vpop.f32.mrf.mxu0 }
 0x116   : > { %v1813_v26 = vpop.f32.mrf.mxu1  ;;  %v1464_v31 = vmul.f32 %v1445_v6, %v2237_v35 }
 0x117   : > { %1509 = vst.msk [vmem:[%s2327_s25] sm:$0xf] %vm1508_vm3, %v1682_v0  ;;  %v1685_v3 = vpack.c.bf16 %v1471_v44, %v1471_v44  ;;  %v1469_v47 = vadd.f32 %v1461_v33, %v1354_v22  ;;  %v1359_v49 = vadd.f32 %v1813_v26, %v1197_v57  ;;  %v1824_v25 = vpop.f32.mrf.mxu0 }
 0x118   : > { %v1338_v12 = vpop.f32.mrf.mxu1  ;;  %v1467_v52 = vmul.f32 %v1824_v25, %v2266_v50 }
 0x119   : > { %1512 = vst.msk [vmem:[%s2327_s25 + $0xc] sm:$0xf] %vm1508_vm3, %v1685_v3  ;;  %v1683_v9 = vpack.c.bf16 %v1469_v47, %v1469_v47  ;;  %v1474_v63 = vadd.f32 %v1466_v43, %v1359_v49  ;;  %v1357_v41 = vadd.f32 %v1338_v12, %v1195_v37  ;;  %v1448_v14 = vpop.f32.mrf.mxu0 }
 0x11a   : > { %v1814_v28 = vpop.f32.mrf.mxu1  ;;  %v1465_v32 = vmul.f32 %v1448_v14, %v2242_v39 }
 0x11b   : > { %1510 = vst.msk [vmem:[%s2327_s25 + $0x4] sm:$0xf] %vm1508_vm3, %v1683_v9  ;;  %v1688_v35 = vpack.c.bf16 %v1474_v63, %v1474_v63  ;;  %v1472_v5 = vadd.f32 %v1464_v31, %v1357_v41  ;;  %v1360_v42 = vadd.f32 %v1814_v28, %v1198_v54 }
 0x11c   : > { %v1341_v20 = vpop.f32.mrf.mxu1 }
 0x11d   : > { %1515 = vst.msk [vmem:[%s2327_s25 + $0x18] sm:$0xf] %vm1508_vm3, %v1688_v35  ;;  %v1686_v2 = vpack.c.bf16 %v1472_v5, %v1472_v5  ;;  %v1475_v29 = vadd.f32 %v1467_v52, %v1360_v42  ;;  %v1358_v53 = vadd.f32 %v1341_v20, %v1196_v8 }
 0x11f   : > { %1513 = vst.msk [vmem:[%s2327_s25 + $0x10] sm:$0xf] %vm1508_vm3, %v1686_v2  ;;  %v1689_v50 = vpack.c.bf16 %v1475_v29, %v1475_v29  ;;  %v1473_v10 = vadd.f32 %v1465_v32, %v1358_v53 }
 0x121   : > { %1516 = vst.msk [vmem:[%s2327_s25 + $0x1c] sm:$0xf] %vm1508_vm3, %v1689_v50  ;;  %v1687_v15 = vpack.c.bf16 %v1473_v10, %v1473_v10 }
 0x123   : > { %1514 = vst.msk [vmem:[%s2327_s25 + $0x14] sm:$0xf] %vm1508_vm3, %v1687_v15 }
 0x124 PF: > { %s14_s15 = sadd.s32 1, %s1884_s15  }
 0x125   : > { %p11_p4 = scmp.ge.s32.totalorder %s14_s15, 4  }
 0x127   :  { %13 = sbr.rel (!%p11_p4) target bundleno = 1 (0x1), region = 74 }

// kernel: forward.14
= control target key start
LH: loop header
LB: loop body
LE: loop exit
PB: predicated region body
PF: predicated region fallthrough
CT: control target
= control target key end

     0   :  { %s1116_s15 = smov 0   ;;  %s1245_s0 = inlined_call_operand.vmem [shape: bf16[2,26,16], index: 0, kind: input, shape index: {}]   ;;  %s1246_s1 = inlined_call_operand.vmem [shape: bf16[3,3,16,4], index: 1, kind: input, shape index: {}]   ;;  %s1247_s2 = inlined_call_operand.vmem [shape: f32[16,1], index: 2, kind: input, shape index: {}]   ;;  %s1248_s3 = inlined_call_operand.vmem [shape: f32[16,1], index: 3, kind: input, shape index: {}]   ;;  %s1249_s4 = inlined_call_operand.vmem [shape: bf16[2,16,4], index: 4, kind: output, shape index: {}]  }
   0x1 LB: > { %s911_s16 = sadd.s32 4294967295, %s1086_s15   ;;  %p915_p0 = scmp.ge.s32.totalorder %s1086_s15, 1  ;;  %s1086_s15 = sphi %s1116_s15, %s14_s15  }
   0x2   : > { %p162_p1 = scmp.lt.s32.totalorder %s1086_s15, 3 }
   0x4   : > { %p163_p2 = pnand %p915_p0, %p162_p1 }
   0x5   : > { %p188_p3 = scmp.lt.s32.totalorder (!%p163_p2), %s911_s16, 1 }
   0x6   : > { %166 = sbr.rel (%p163_p2) target bundleno = 253 (0xfd), region = 36 }
   0xb   : > { %v1059_v0 = vld [vmem:[%s1246_s1] sm:$0xff]   ;;  %v1088_v1 = vmov 0.0   ;;  %vm1089_vm0 = vmmov 0   ;;  %s1251_s16 = smov (!%p188_p3, %s911_s16), 1  ;;  %v1062_v2 = vld [vmem:[%s1246_s1 + $0x8] sm:$0xff]   ;;  %vm214_vm1 = vcmask 130048  }
   0xc   : > { %992 = vmatprep.subr.bf16.mxu0 %v1088_v1  ;;  %998 = vmatprep.subr.bf16.mxu1 %v1088_v1  ;;  %s970_s21 = sshll.u32 %s1251_s16, 4  ;;  %v1061_v3 = vld [vmem:[%s1246_s1 + $0x10] sm:$0xff]   ;;  %vm361_vm2 = vcmask 1046528   ;;  %vm289_vm3 = vsmask.f32 7424  ;;  %v1066_v22 = vld [vmem:[%s1246_s1 + $0x18] sm:$0xff]  }
   0xd   : > { %993 = vmatpush3.bf16.msra.mxu0 %v1059_v0  ;;  %994 = vmatprep.mubr.msk.bf16.mxu0 %vm1089_vm0, %v1088_v1  ;;  %s1143_s24 = scalar_lea.vmem %s1245_s0, %s970_s21  ;;  %v1067_v23 = vld [vmem:[%s1246_s1 + $0x20] sm:$0xff]   ;;  %vm507_vm4 = vsmask.f32 5376  ;;  %vm442_vm5 = vcmask 1045504   ;;  %v1090_v44 = vmov 0   ;;  %v1072_v46 = vld [vmem:[%s1246_s1 + $0x30] sm:$0xff]  }
   0xe   : > { %1004 = vmatprep.subr.bf16.mxu0 %v1088_v1  ;;  %1000 = vmatprep.mubr.msk.bf16.mxu1 %vm1089_vm0, %v1088_v1  ;;  %v1060_v4 = vld [vmem:[%s1143_s24] sm:$0xff]   ;;  %v1064_v8 = vld [vmem:[%s1143_s24 + $0x8] ss:$0 sps:$4 sm:$0x11]   ;;  %vm584_vm6 = vcmask 1044480   ;;  %v1075_v63 = vld [vmem:[%s1246_s1 + $0x38] sm:$0xff]  }
   0xf   : > { %999 = vmatpush3.bf16.msra.mxu1 %v1062_v2  ;;  %v275_v5 = vld [vmem:[%s1143_s24] sm:$0xf]  ;;  %v1152_v6 = vld [vmem:[%s1143_s24 + $0x4] sm:$0xf]  ;;  %v298_v14 = vshll.u32 %v1064_v8, 16  ;;  %v363_v15 = vrot.slane %v1064_v8, 1  ;;  %1057 = vset.pattern.permute.xlu0 %v1090_v44 }
  0x10   : > { %1010 = vmatprep.subr.bf16.mxu1 %v1088_v1  ;;  %995 = vmatmul.mubr.msk.bf16.vlgmr.msra.gmra.mxu0 %vm214_vm1, %v1060_v4  ;;  %v925_v7 = vcombine.low %v275_v5, %v1152_v6  ;;  %v354_v9 = vld [vmem:[%s1143_s24] sm:$0xe]  ;;  %v1165_v20 = vld [vmem:[%s1143_s24 + $0x8] ss:$0 sps:$4 sm:$0x77]   ;;  %s971_s23 = sshll.u32 %s1251_s16, 3 }
  0x11   : > { %1005 = vmatpush3.bf16.msra.mxu0 %v1061_v3  ;;  %1006 = vmatprep.mubr.msk.bf16.mxu0 %vm1089_vm0, %v1088_v1  ;;  %v931_v10 = vcombine.low %v354_v9, %v1152_v6  ;;  %v431_v11 = vld [vmem:[%s1143_s24] sm:$0xc]  ;;  %v300_v19 = vrot.slane %v298_v14, 1  ;;  %v1069_v26 = vld [vmem:[%s1143_s24 + $0x8] ss:$0 sps:$4 sm:$0x33]   ;;  %s197_s26 = scalar_lea.vmem %s1249_s4, %s971_s23 }
  0x12   : > { %v291_v12 = vshrl.u32 %v925_v7, 16  ;;  %v293_v13 = vshll.u32 %v925_v7, 16  ;;  %1016 = vmatprep.subr.bf16.mxu0 %v1088_v1  ;;  %v936_v17 = vcombine.low %v431_v11, %v1152_v6  ;;  %v517_v28 = vshrl.u32 %v1165_v20, 16  ;;  %v577_v39 = vld [vmem:[%s1143_s24] sm:$0x8]  ;;  %1058 = vset.pattern.permute.xlu1 %v1090_v44  ;;  %v1071_v48 = vld [vmem:[%s1246_s1 + $0x28] sm:$0xff]  }
  0x13   : > { %v362_v16 = vrot.slane %v931_v10, 1  ;;  %v520_v29 = vshll.u32 %v1165_v20, 16  ;;  %v444_v36 = vrot.slane %v1069_v26, 2  ;;  %v259_v40 = vld [vmem:[%s1247_s2] sm:$0xff]  ;;  %v704_v42 = vld [vmem:[%s1143_s24 + $0x8] sm:$0xf]  ;;  %v947_v49 = vcombine.low %v577_v39, %v1152_v6 }
  0x14   : > { %v295_v18 = vrot.slane %v293_v13, 1  ;;  %v509_v24 = vshrl.u32 %v936_v17, 16  ;;  %v512_v27 = vshll.u32 %v936_v17, 16  ;;  %v519_v33 = vrot.slane %v517_v28, 2  ;;  %v703_v41 = vld [vmem:[%s1143_s24 + $0x4] sm:$0xf]  ;;  %263 = vperm.xlu0 %1057, %v259_v40  }
  0x15   : > { %v364_v21 = vsel %vm361_vm2, %v362_v16, %v363_v15  ;;  %v522_v34 = vrot.slane %v520_v29, 3  ;;  %v443_v35 = vrot.slane %v936_v17, 2  ;;  %v415_v43 = vld [vmem:[%s1248_s3] sm:$0xff]  ;;  %v957_v50 = vcombine.low %v703_v41, %v704_v42  ;;  %v642_v52 = vld [vmem:[%s1143_s24 + $0x8] sm:$0xf] }
  0x16   : > { %v296_v25 = vor.u32 %v295_v18, %v291_v12  ;;  %v511_v30 = vrot.slane %v509_v24, 2  ;;  %v514_v32 = vrot.slane %v512_v27, 3  ;;  %419 = vperm.xlu1 %1058, %v415_v43   ;;  %v586_v51 = vrot.slane %v1165_v20, 3  ;;  %v781_v53 = vld [vmem:[%s1143_s24 + $0x4] sm:$0xe]  ;;  %v260_v54 = vld [vmem:[%s1247_s2 + $0x8] sm:$0xff] }
  0x17   : > { %v523_v38 = vor.u32 %v522_v34, %v519_v33  ;;  %v445_v47 = vsel %vm442_vm5, %v443_v35, %v444_v36  ;;  %v585_v55 = vrot.slane %v947_v49, 3  ;;  %v1078_v56 = vld [vmem:[%s1143_s24 + $0xc] ss:$0 sps:$4 sm:$0x11]   ;;  %v720_v57 = vshll.u32 %v957_v50, 16  ;;  %v1076_v60 = vld [vmem:[%s1246_s1 + $0x40] sm:$0xff]  }
  0x18   : > { %v301_v31 = vsel %vm289_vm3, %v296_v25, %v300_v19  ;;  %1007 = vmatmul.mubr.msk.bf16.vlgmr.msra.gmra.mxu0 %vm214_vm1, %v364_v21  ;;  %v515_v37 = vor.u32 %v514_v32, %v511_v30  ;;  %v416_v58 = vld [vmem:[%s1248_s3 + $0x8] sm:$0xff]  ;;  %v952_v59 = vcombine.low %v1152_v6, %v642_v52  ;;  %268 = vperm.xlu0 %1057, %v260_v54   ;;  %v718_v0 = vshrl.u32 %v957_v50, 16 }
  0x19   : > { %1001 = vmatmul.mubr.msk.bf16.vlgmr.msra.gmra.mxu1 %vm214_vm1, %v301_v31  ;;  %1017 = vmatpush3.bf16.msra.mxu0 %v1067_v23  ;;  %v963_v61 = vcombine.low %v781_v53, %v704_v42  ;;  %v587_v62 = vsel %vm584_vm6, %v585_v55, %v586_v51  ;;  %v722_v2 = vrot.slane %v720_v57, 1  ;;  %v725_v3 = vshll.u32 %v1078_v56, 16 }
  0x1a   : > { %1011 = vmatpush3.bf16.msra.mxu1 %v1066_v22  ;;  %1012 = vmatprep.mubr.msk.bf16.mxu1 %vm1089_vm0, %v1088_v1  ;;  %v524_v45 = vsel %vm507_vm4, %v515_v37, %v523_v38  ;;  %v789_v5 = vrot.slane %v1078_v56, 1  ;;  %vm853_vm7 = vcmask 27648  }
  0x1b   : > { %1018 = vmatprep.mubr.msk.bf16.mxu0 %vm1089_vm0, %v1088_v1  ;;  %1022 = vmatprep.subr.bf16.mxu1 %v1088_v1  ;;  %v788_v4 = vrot.slane %v963_v61, 1  ;;  %v723_v6 = vor.u32 %v722_v2, %v718_v0  ;;  %v727_v7 = vrot.slane %v725_v3, 1 }
  0x1c   : > { %1028 = vmatprep.subr.bf16.mxu0 %v1088_v1  ;;  %424 = vperm.xlu1 %1058, %v416_v58  }
  0x1d   : > { %v790_v8 = vsel %vm361_vm2, %v788_v4, %v789_v5  ;;  %v728_v9 = vsel %vm289_vm3, %v723_v6, %v727_v7 }
  0x20   : > { %1019 = vmatmul.mubr.msk.bf16.vlgmr.msra.gmra.mxu0 %vm214_vm1, %v524_v45 }
  0x21   : > { %1013 = vmatmul.mubr.msk.bf16.vlgmr.msra.gmra.mxu1 %vm214_vm1, %v445_v47  ;;  %1029 = vmatpush3.bf16.msra.mxu0 %v1072_v46 }
  0x22   : > { %1023 = vmatpush3.bf16.msra.mxu1 %v1071_v48  ;;  %1024 = vmatprep.mubr.msk.bf16.mxu1 %vm1089_vm0, %v1088_v1 }
  0x23   : > { %1030 = vmatprep.mubr.msk.bf16.mxu0 %vm1089_vm0, %v1088_v1  ;;  %1034 = vmatprep.subr.bf16.mxu1 %v1088_v1 }
  0x24   : > { %1040 = vmatprep.subr.bf16.mxu0 %v1088_v1 }
  0x28   : > { %1031 = vmatmul.mubr.msk.bf16.vlgmr.msra.gmra.mxu0 %vm214_vm1, %v952_v59 }
  0x29   : > { %1025 = vmatmul.mubr.msk.bf16.vlgmr.msra.gmra.mxu1 %vm214_vm1, %v587_v62  ;;  %1041 = vmatpush3.bf16.msra.mxu0 %v1076_v60 }
  0x2a   : > { %1035 = vmatpush3.bf16.msra.mxu1 %v1075_v63  ;;  %1036 = vmatprep.mubr.msk.bf16.mxu1 %vm1089_vm0, %v1088_v1 }
  0x2b   : > { %1042 = vmatprep.mubr.msk.bf16.mxu0 %vm1089_vm0, %v1088_v1 }
  0x30   : > { %1043 = vmatmul.mubr.msk.bf16.vlgmr.msra.gmra.mxu0 %vm214_vm1, %v790_v8 }
  0x31   : > { %1037 = vmatmul.mubr.msk.bf16.vlgmr.msra.gmra.mxu1 %vm214_vm1, %v728_v9 }
  0x8f   : > { %v264_v15 = vpop.permute.xlu0 %263 }
  0x91   : > { %v420_v18 = vpop.permute.xlu1 %419 }
  0x93   : > { %v269_v23 = vpop.permute.xlu0 %268 }
  0x97   : > { %v425_v28 = vpop.permute.xlu1 %424 }
  0xd0   : > { %v252_v10 = vpop.f32.mrf.mxu0 }
  0xd1   : > { %v271_v21 = vmul.f32 %v264_v15, %v252_v10 }
  0xd2   : > { %v996_v11 = vpop.f32.mrf.mxu0 }
  0xd4   : > { %v255_v12 = vpop.f32.mrf.mxu0 }
  0xd5   : > { %v272_v30 = vmul.f32 %v269_v23, %v255_v12 }
  0xd6   : > { %v997_v13 = vpop.f32.mrf.mxu0 }
  0xd8   : > { %v408_v14 = vpop.f32.mrf.mxu0 }
  0xd9   : > { %v345_v16 = vpop.f32.mrf.mxu1  ;;  %v427_v26 = vmul.f32 %v420_v18, %v408_v14 }
  0xda   : > { %v1008_v17 = vpop.f32.mrf.mxu0  ;;  %v352_v25 = vadd.f32 %v345_v16, %v271_v21 }
  0xdb   : > { %v1002_v19 = vpop.f32.mrf.mxu1 }
  0xdc   : > { %v411_v20 = vpop.f32.mrf.mxu0  ;;  %v429_v34 = vadd.f32 %v427_v26, %v352_v25 }
  0xdd   : > { %v348_v1 = vpop.f32.mrf.mxu1  ;;  %v428_v36 = vmul.f32 %v425_v28, %v411_v20 }
  0xde   : > { %v1009_v22 = vpop.f32.mrf.mxu0  ;;  %v353_v35 = vadd.f32 %v348_v1, %v272_v30 }
  0xdf   : > { %v1003_v24 = vpop.f32.mrf.mxu1 }
  0xe0   : > { %v568_v27 = vpop.f32.mrf.mxu0  ;;  %v430_v43 = vadd.f32 %v428_v36, %v353_v35 }
  0xe1   : > { %v489_v29 = vpop.f32.mrf.mxu1 }
  0xe2   : > { %v496_v31 = vmul.f32 %v489_v29, %v264_v15  ;;  %v1020_v32 = vpop.f32.mrf.mxu0 }
  0xe3   : > { %v1014_v33 = vpop.f32.mrf.mxu1 }
  0xe4   : > { %v571_v37 = vpop.f32.mrf.mxu0  ;;  %v498_v39 = vadd.f32 %v496_v31, %v429_v34 }
  0xe5   : > { %v492_v38 = vpop.f32.mrf.mxu1 }
  0xe6   : > { %v497_v40 = vmul.f32 %v492_v38, %v269_v23  ;;  %v1021_v41 = vpop.f32.mrf.mxu0  ;;  %v575_v46 = vadd.f32 %v568_v27, %v498_v39 }
  0xe7   : > { %v1015_v42 = vpop.f32.mrf.mxu1 }
  0xe8   : > { %v692_v44 = vpop.f32.mrf.mxu0  ;;  %v499_v47 = vadd.f32 %v497_v40, %v430_v43 }
  0xe9   : > { %v631_v45 = vpop.f32.mrf.mxu1  ;;  %v699_v55 = vmul.f32 %v692_v44, %v264_v15 }
  0xea   : > { %v638_v48 = vmul.f32 %v631_v45, %v420_v18  ;;  %v1032_v49 = vpop.f32.mrf.mxu0  ;;  %v576_v54 = vadd.f32 %v571_v37, %v499_v47 }
  0xeb   : > { %v1026_v50 = vpop.f32.mrf.mxu1 }
  0xec   : > { %v640_v51 = vadd.f32 %v638_v48, %v575_v46  ;;  %v695_v52 = vpop.f32.mrf.mxu0 }
  0xed   : > { %v634_v53 = vpop.f32.mrf.mxu1  ;;  %v700_v0 = vmul.f32 %v695_v52, %v269_v23 }
  0xee   : > { %v639_v56 = vmul.f32 %v634_v53, %v425_v28  ;;  %v1033_v57 = vpop.f32.mrf.mxu0  ;;  %v701_v60 = vadd.f32 %v699_v55, %v640_v51 }
  0xef   : > { %v1027_v58 = vpop.f32.mrf.mxu1 }
  0xf0   : > { %v641_v59 = vadd.f32 %v639_v56, %v576_v54  ;;  %v834_v61 = vpop.f32.mrf.mxu0 }
  0xf1   : > { %v772_v62 = vpop.f32.mrf.mxu1  ;;  %v841_v63 = vmul.f32 %v834_v61, %v420_v18 }
  0xf2   : > { %v779_v2 = vadd.f32 %v772_v62, %v701_v60  ;;  %v1044_v3 = vpop.f32.mrf.mxu0  ;;  %v702_v6 = vadd.f32 %v700_v0, %v641_v59 }
  0xf3   : > { %v1038_v4 = vpop.f32.mrf.mxu1 }
  0xf4   : > { %v843_v5 = vadd.f32 %v841_v63, %v779_v2  ;;  %v837_v7 = vpop.f32.mrf.mxu0 }
  0xf5   : > { %v775_v8 = vpop.f32.mrf.mxu1  ;;  %v842_v9 = vmul.f32 %v837_v7, %v425_v28 }
  0xf6   : > { %v972_v10 = vpack.c.bf16 %v843_v5, %v843_v5  ;;  %v780_v11 = vadd.f32 %v775_v8, %v702_v6  ;;  %v1045_v12 = vpop.f32.mrf.mxu0 }
  0xf7   : > { %v1039_v13 = vpop.f32.mrf.mxu1 }
  0xf8   : > { %854 = vst.msk [vmem:[%s197_s26] sm:$0xf] %vm853_vm7, %v972_v10  ;;  %v844_v14 = vadd.f32 %v842_v9, %v780_v11 }
  0xfa   : > { %v973_v15 = vpack.c.bf16 %v844_v14, %v844_v14 }
  0xfc   : > { %855 = vst.msk [vmem:[%s197_s26 + $0x4] sm:$0xf] %vm853_vm7, %v973_v15 }
  0xfd PF: > { %s14_s15 = sadd.s32 1, %s1086_s15  }
  0xfe   : > { %p11_p4 = scmp.ge.s32.totalorder %s14_s15, 4  }
 0x100   :  { %13 = sbr.rel (!%p11_p4) target bundleno = 1 (0x1), region = 74 }

// kernel: forward.13
= control target key start
LH: loop header
LB: loop body
LE: loop exit
PB: predicated region body
PF: predicated region fallthrough
CT: control target
= control target key end

     0   :  { %s982_s15 = smov 0   ;;  %s1082_s0 = inlined_call_operand.vmem [shape: bf16[2,10,16], index: 0, kind: input, shape index: {}]   ;;  %s1083_s1 = inlined_call_operand.vmem [shape: bf16[3,3,16,4], index: 1, kind: input, shape index: {}]   ;;  %s1084_s2 = inlined_call_operand.vmem [shape: f32[4,1], index: 2, kind: input, shape index: {}]   ;;  %s1085_s3 = inlined_call_operand.vmem [shape: f32[4,1], index: 3, kind: input, shape index: {}]   ;;  %s1086_s4 = inlined_call_operand.vmem [shape: bf16[2,4,4], index: 4, kind: output, shape index: {}]  }
   0x1 LB: > { %s796_s16 = sadd.s32 4294967295, %s952_s15   ;;  %p800_p0 = scmp.ge.s32.totalorder %s952_s15, 1  ;;  %s952_s15 = sphi %s982_s15, %s14_s15  }
   0x2   : > { %p162_p1 = scmp.lt.s32.totalorder %s952_s15, 3 }
   0x4   : > { %p163_p2 = pnand %p800_p0, %p162_p1 }
   0x5   : > { %p187_p3 = scmp.lt.s32.totalorder (!%p163_p2), %s796_s16, 1 }
   0x6   : > { %166 = sbr.rel (%p163_p2) target bundleno = 248 (0xf8), region = 36 }
   0xb   : > { %v931_v0 = vld [vmem:[%s1083_s1] sm:$0xff]   ;;  %v954_v1 = vmov 0.0   ;;  %vm955_vm0 = vmmov 0   ;;  %s1088_s16 = smov (!%p187_p3, %s796_s16), 1  ;;  %v933_v2 = vld [vmem:[%s1083_s1 + $0x8] sm:$0xff]   ;;  %vm206_vm1 = vcmask 130048  }
   0xc   : > { %865 = vmatprep.subr.bf16.mxu0 %v954_v1  ;;  %871 = vmatprep.subr.bf16.mxu1 %v954_v1  ;;  %s846_s21 = sshll.u32 %s1088_s16, 3  ;;  %v932_v3 = vld [vmem:[%s1083_s1 + $0x10] sm:$0xff]   ;;  %v956_v4 = vmov 0   ;;  %v936_v15 = vld [vmem:[%s1083_s1 + $0x18] sm:$0xff]   ;;  %v937_v16 = vld [vmem:[%s1083_s1 + $0x20] sm:$0xff]   ;;  %s803_s19 = sshll.u32 %s1088_s16, 1 }
   0xd   : > { %866 = vmatpush3.bf16.msra.mxu0 %v931_v0  ;;  %867 = vmatprep.mubr.msk.bf16.mxu0 %vm955_vm0, %v954_v1  ;;  %s1012_s26 = scalar_lea.vmem %s1082_s0, %s846_s21  ;;  %v250_v20 = vld [vmem:[%s1084_s2] sm:$0xf]  ;;  %v939_v22 = vld [vmem:[%s1083_s1 + $0x28] sm:$0xff]   ;;  %v940_v23 = vld [vmem:[%s1083_s1 + $0x30] sm:$0xff]   ;;  %s195_s22 = scalar_lea.vmem %s1086_s4, %s803_s19  ;;  %vm741_vm2 = vcmask 25600  }
   0xe   : > { %877 = vmatprep.subr.bf16.mxu0 %v954_v1  ;;  %873 = vmatprep.mubr.msk.bf16.mxu1 %vm955_vm0, %v954_v1  ;;  %v197_v5 = vld [vmem:[%s1012_s26] sm:$0x3]  ;;  %v613_v24 = vld [vmem:[%s1012_s26] sm:$0xc]  ;;  %v614_v25 = vld [vmem:[%s1012_s26 + $0x4] sm:$0x1] }
   0xf   : > { %872 = vmatpush3.bf16.msra.mxu1 %v933_v2  ;;  %930 = vset.pattern.permute.xlu0 %v956_v4  ;;  %v934_v6 = vld [vmem:[%s1012_s26] ss:$0 sps:$4 sm:$0x77]   ;;  %v836_v27 = vcombine.low %v613_v24, %v614_v25  ;;  %v942_v32 = vld [vmem:[%s1083_s1 + $0x38] sm:$0xff]   ;;  %v681_v34 = vld [vmem:[%s1012_s26] sm:$0x8] }
  0x10   : > { %883 = vmatprep.subr.bf16.mxu1 %v954_v1  ;;  %868 = vmatmul.mubr.msk.bf16.vlgmr.msra.gmra.mxu0 %vm206_vm1, %v197_v5  ;;  %v935_v7 = vld [vmem:[%s1012_s26] ss:$0 sps:$4 sm:$0x66]   ;;  %v266_v9 = vshrl.u32 %v934_v6, 16  ;;  %v268_v10 = vshll.u32 %v934_v6, 16  ;;  %v841_v37 = vcombine.low %v681_v34, %v614_v25 }
  0x11   : > { %878 = vmatpush3.bf16.msra.mxu0 %v932_v3  ;;  %879 = vmatprep.mubr.msk.bf16.mxu0 %vm955_vm0, %v954_v1  ;;  %v938_v8 = vld [vmem:[%s1012_s26] ss:$0 sps:$4 sm:$0xee]   ;;  %v329_v11 = vrot.slane %v935_v7, 1  ;;  %v624_v30 = vshrl.u32 %v836_v27, 16  ;;  %v627_v31 = vshll.u32 %v836_v27, 16 }
  0x12   : > { %889 = vmatprep.subr.bf16.mxu0 %v954_v1  ;;  %v446_v12 = vshrl.u32 %v938_v8, 16  ;;  %v270_v13 = vrot.slane %v268_v10, 1  ;;  %v449_v14 = vshll.u32 %v938_v8, 16  ;;  %253 = vperm.xlu0 %930, %v250_v20   ;;  %v941_v26 = vld [vmem:[%s1012_s26] ss:$0 sps:$4 sm:$0xcc]  }
  0x13   : > { %v379_v28 = vld [vmem:[%s1085_s3] sm:$0xf]  ;;  %v510_v29 = vrot.slane %v941_v26, 2  ;;  %v626_v35 = vrot.slane %v624_v30, 2  ;;  %v629_v36 = vrot.slane %v627_v31, 3  ;;  %v688_v39 = vrot.slane %v841_v37, 3 }
  0x14   : > { %v271_v17 = vor.u32 %v270_v13, %v266_v9  ;;  %v448_v18 = vrot.slane %v446_v12, 1  ;;  %v451_v19 = vrot.slane %v449_v14, 2  ;;  %v943_v33 = vld [vmem:[%s1083_s1 + $0x40] sm:$0xff]  }
  0x15   : > { %v630_v38 = vor.u32 %v629_v36, %v626_v35 }
  0x16   : > { %874 = vmatmul.mubr.msk.bf16.vlgmr.msra.gmra.mxu1 %vm206_vm1, %v271_v17  ;;  %v452_v21 = vor.u32 %v451_v19, %v448_v18  ;;  %382 = vperm.xlu0 %930, %v379_v28  }
  0x17   : > { %884 = vmatpush3.bf16.msra.mxu1 %v936_v15  ;;  %885 = vmatprep.mubr.msk.bf16.mxu1 %vm955_vm0, %v954_v1 }
  0x18   : > { %880 = vmatmul.mubr.msk.bf16.vlgmr.msra.gmra.mxu0 %vm206_vm1, %v329_v11  ;;  %895 = vmatprep.subr.bf16.mxu1 %v954_v1 }
  0x19   : > { %890 = vmatpush3.bf16.msra.mxu0 %v937_v16  ;;  %891 = vmatprep.mubr.msk.bf16.mxu0 %vm955_vm0, %v954_v1 }
  0x1a   : > { %901 = vmatprep.subr.bf16.mxu0 %v954_v1 }
  0x1e   : > { %886 = vmatmul.mubr.msk.bf16.vlgmr.msra.gmra.mxu1 %vm206_vm1, %v329_v11 }
  0x1f   : > { %896 = vmatpush3.bf16.msra.mxu1 %v939_v22  ;;  %897 = vmatprep.mubr.msk.bf16.mxu1 %vm955_vm0, %v954_v1 }
  0x20   : > { %892 = vmatmul.mubr.msk.bf16.vlgmr.msra.gmra.mxu0 %vm206_vm1, %v452_v21  ;;  %907 = vmatprep.subr.bf16.mxu1 %v954_v1 }
  0x21   : > { %902 = vmatpush3.bf16.msra.mxu0 %v940_v23  ;;  %903 = vmatprep.mubr.msk.bf16.mxu0 %vm955_vm0, %v954_v1 }
  0x22   : > { %913 = vmatprep.subr.bf16.mxu0 %v954_v1 }
  0x26   : > { %898 = vmatmul.mubr.msk.bf16.vlgmr.msra.gmra.mxu1 %vm206_vm1, %v510_v29 }
  0x27   : > { %908 = vmatpush3.bf16.msra.mxu1 %v942_v32  ;;  %909 = vmatprep.mubr.msk.bf16.mxu1 %vm955_vm0, %v954_v1 }
  0x28   : > { %904 = vmatmul.mubr.msk.bf16.vlgmr.msra.gmra.mxu0 %vm206_vm1, %v510_v29 }
  0x29   : > { %914 = vmatpush3.bf16.msra.mxu0 %v943_v33  ;;  %915 = vmatprep.mubr.msk.bf16.mxu0 %vm955_vm0, %v954_v1 }
  0x2e   : > { %910 = vmatmul.mubr.msk.bf16.vlgmr.msra.gmra.mxu1 %vm206_vm1, %v630_v38 }
  0x30   : > { %916 = vmatmul.mubr.msk.bf16.vlgmr.msra.gmra.mxu0 %vm206_vm1, %v688_v39 }
  0x8d   : > { %v254_v44 = vpop.permute.xlu0 %253 }
  0x91   : > { %v383_v49 = vpop.permute.xlu0 %382 }
  0xd0   : > { %v244_v40 = vpop.f32.mrf.mxu0 }
  0xd1   : > { %v256_v52 = vmul.f32 %v254_v44, %v244_v40 }
  0xd2   : > { %v869_v41 = vpop.f32.mrf.mxu0 }
  0xd4   : > { %v247_v42 = vpop.f32.mrf.mxu0 }
  0xd6   : > { %v870_v43 = vpop.f32.mrf.mxu0  ;;  %v315_v45 = vpop.f32.mrf.mxu1 }
  0xd7   : > { %v321_v55 = vadd.f32 %v315_v45, %v256_v52 }
  0xd8   : > { %v373_v46 = vpop.f32.mrf.mxu0  ;;  %v875_v47 = vpop.f32.mrf.mxu1 }
  0xd9   : > { %v385_v56 = vmul.f32 %v383_v49, %v373_v46 }
  0xda   : > { %v881_v48 = vpop.f32.mrf.mxu0  ;;  %v318_v50 = vpop.f32.mrf.mxu1 }
  0xdb   : > { %v386_v62 = vadd.f32 %v385_v56, %v321_v55 }
  0xdc   : > { %v376_v51 = vpop.f32.mrf.mxu0  ;;  %v876_v53 = vpop.f32.mrf.mxu1 }
  0xde   : > { %v882_v54 = vpop.f32.mrf.mxu0  ;;  %v430_v57 = vpop.f32.mrf.mxu1 }
  0xdf   : > { %v436_v59 = vmul.f32 %v430_v57, %v254_v44 }
  0xe0   : > { %v496_v58 = vpop.f32.mrf.mxu0  ;;  %v887_v60 = vpop.f32.mrf.mxu1 }
  0xe1   : > { %v437_v1 = vadd.f32 %v436_v59, %v386_v62 }
  0xe2   : > { %v893_v61 = vpop.f32.mrf.mxu0  ;;  %v433_v63 = vpop.f32.mrf.mxu1 }
  0xe3   : > { %v502_v6 = vadd.f32 %v496_v58, %v437_v1 }
  0xe4   : > { %v499_v0 = vpop.f32.mrf.mxu0  ;;  %v888_v2 = vpop.f32.mrf.mxu1 }
  0xe6   : > { %v894_v3 = vpop.f32.mrf.mxu0  ;;  %v554_v4 = vpop.f32.mrf.mxu1 }
  0xe7   : > { %v560_v7 = vmul.f32 %v554_v4, %v383_v49 }
  0xe8   : > { %v605_v5 = vpop.f32.mrf.mxu0  ;;  %v899_v8 = vpop.f32.mrf.mxu1 }
  0xe9   : > { %v561_v10 = vadd.f32 %v560_v7, %v502_v6  ;;  %v611_v11 = vmul.f32 %v605_v5, %v254_v44 }
  0xea   : > { %v905_v9 = vpop.f32.mrf.mxu0  ;;  %v557_v12 = vpop.f32.mrf.mxu1 }
  0xeb   : > { %v612_v16 = vadd.f32 %v611_v11, %v561_v10 }
  0xec   : > { %v608_v13 = vpop.f32.mrf.mxu0  ;;  %v900_v14 = vpop.f32.mrf.mxu1 }
  0xee   : > { %v906_v15 = vpop.f32.mrf.mxu0  ;;  %v674_v17 = vpop.f32.mrf.mxu1 }
  0xef   : > { %v680_v19 = vadd.f32 %v674_v17, %v612_v16 }
  0xf0   : > { %v732_v18 = vpop.f32.mrf.mxu0  ;;  %v911_v21 = vpop.f32.mrf.mxu1 }
  0xf1   : > { %v738_v20 = vmul.f32 %v732_v18, %v383_v49 }
  0xf2   : > { %v917_v22 = vpop.f32.mrf.mxu0  ;;  %v677_v24 = vpop.f32.mrf.mxu1 }
  0xf3   : > { %v739_v23 = vadd.f32 %v738_v20, %v680_v19 }
  0xf4   : > { %v735_v25 = vpop.f32.mrf.mxu0  ;;  %v912_v27 = vpop.f32.mrf.mxu1 }
  0xf5   : > { %v740_v26 = vpack.c.bf16 %v739_v23, %v739_v23 }
  0xf6   : > { %v918_v28 = vpop.f32.mrf.mxu0 }
  0xf7   : > { %742 = vst.msk [vmem:[%s195_s22] sm:$0x3] %vm741_vm2, %v740_v26 }
  0xf8 PF: > { %s14_s15 = sadd.s32 1, %s952_s15  }
  0xf9   : > { %p11_p4 = scmp.ge.s32.totalorder %s14_s15, 4  }
  0xfb   :  { %13 = sbr.rel (!%p11_p4) target bundleno = 1 (0x1), region = 74 }

// kernel: forward.16
= control target key start
LH: loop header
LB: loop body
LE: loop exit
PB: predicated region body
PF: predicated region fallthrough
CT: control target
= control target key end

     0   :  { %s5398_s15 = smov 0   ;;  %s7122_s0 = inlined_call_operand.vmem [shape: bf16[2,290,16], index: 0, kind: input, shape index: {}]   ;;  %s7123_s1 = inlined_call_operand.vmem [shape: bf16[3,3,16,4], index: 1, kind: input, shape index: {}]   ;;  %s7124_s2 = inlined_call_operand.vmem [shape: f32[256,1], index: 2, kind: input, shape index: {}]   ;;  %s7125_s3 = inlined_call_operand.vmem [shape: f32[256,1], index: 3, kind: input, shape index: {}]   ;;  %s7126_s4 = inlined_call_operand.vmem [shape: bf16[2,256,4], index: 4, kind: output, shape index: {}]  }
   0x1 LB: > { %s4434_s16 = sadd.s32 4294967295, %s5370_s15   ;;  %p4438_p0 = scmp.ge.s32.totalorder %s5370_s15, 1  ;;  %s5370_s15 = sphi %s5398_s15, %s14_s15  }
   0x2   : > { %p162_p1 = scmp.lt.s32.totalorder %s5370_s15, 3 }
   0x4   : > { %p163_p2 = pnand %p4438_p0, %p162_p1 }
   0x6   : > { %166 = sbr.rel (%p163_p2) target bundleno = 506 (0x1fa), region = 36 }
   0xb   : > { %v5253_v0 = vld [vmem:[%s7123_s1] sm:$0xff]   ;;  %p188_p3 = scmp.lt.s32.totalorder %s4434_s16, 1  ;;  %v5256_v1 = vld [vmem:[%s7123_s1 + $0x8] sm:$0xff]   ;;  %v5257_v2 = vld [vmem:[%s7123_s1 + $0x10] sm:$0xff]   ;;  %vm319_vm0 = vcmask 130048   ;;  %v5372_v5 = vmov 0  }
   0xc   : > { %4933 = vmatprep.subr.bf16.mxu0 %v5253_v0  ;;  %5239 = vmatprep.subr.bf16.mxu1 %v5253_v0  ;;  %v529_v3 = vld [vmem:[%s7124_s2] sm:$0xff]  ;;  %v531_v4 = vld [vmem:[%s7124_s2 + $0x10] sm:$0xff]  ;;  %v530_v6 = vld [vmem:[%s7124_s2 + $0x8] sm:$0xff]  ;;  %vm1291_vm1 = vcmask 1046528   ;;  %vm904_vm2 = vsmask.f32 7424 }
   0xd   : > { %s7522_s16 = smov (!%p188_p3, %s4434_s16), 1  ;;  %4934 = vmatpush3.bf16.msra.mxu0 %v5253_v0  ;;  %5240 = vmatpush3.bf16.msra.mxu1 %v5253_v0  ;;  %v5437_v9 = vld [vmem:[%s7123_s1 + $0x18] sm:$0xff]   ;;  %v5444_v11 = vld [vmem:[%s7123_s1 + $0x20] sm:$0xff]   ;;  %v534_v38 = vld [vmem:[%s7124_s2 + $0x28] sm:$0xff]  ;;  %vm4346_vm3 = vcmask 27648  }
   0xe   : > { %s5241_s23 = smul.u32 148, %s7522_s16  ;;  %4967 = vmatprep.subr.bf16.mxu1 %v5256_v1  ;;  %5001 = vmatprep.subr.bf16.mxu0 %v5257_v2  ;;  %v532_v13 = vld [vmem:[%s7124_s2 + $0x18] sm:$0xff]  ;;  %v533_v16 = vld [vmem:[%s7124_s2 + $0x20] sm:$0xff]  ;;  %v535_v42 = vld [vmem:[%s7124_s2 + $0x30] sm:$0xff] }
   0xf   : > { %5251 = vset.pattern.permute.xlu0 %v5372_v5  ;;  %5252 = vset.pattern.permute.xlu1 %v5372_v5  ;;  %v536_v46 = vld [vmem:[%s7124_s2 + $0x38] sm:$0xff]  ;;  %v537_v49 = vld [vmem:[%s7124_s2 + $0x40] sm:$0xff]  ;;  %v538_v53 = vld [vmem:[%s7124_s2 + $0x48] sm:$0xff] }
  0x10   : > { %s5427_s30 = scalar_lea.vmem %s7122_s0, %s5241_s23  ;;  %563 = vperm.xlu0 %5251, %v529_v3   ;;  %573 = vperm.xlu1 %5252, %v531_v4   ;;  %v539_v57 = vld [vmem:[%s7124_s2 + $0x50] sm:$0xff]  ;;  %v540_v63 = vld [vmem:[%s7124_s2 + $0x58] sm:$0xff] }
  0x11   : > { %v5254_v7 = vld [vmem:[%s5427_s30] sm:$0xff]   ;;  %v5258_v10 = vld [vmem:[%s5427_s30 + $0x8] sm:$0xff]   ;;  %v5260_v14 = vld [vmem:[%s5427_s30 + $0x10] sm:$0xff]  }
  0x12   : > { %v5255_v8 = vld [vmem:[%s5427_s30 + $0x40] sm:$0xff]   ;;  %4935 = vmatprep.mubr.msk.bf16.mxu0 %vm319_vm0, %v5254_v7  ;;  %v5259_v12 = vld [vmem:[%s5427_s30 + $0x48] sm:$0xff]   ;;  %v5261_v15 = vld [vmem:[%s5427_s30 + $0x50] sm:$0xff]  }
  0x13   : > { %4951 = vmatprep.mubr.msk.bf16.mxu1 %vm319_vm0, %v5255_v8  ;;  %4936 = vmatmul.mubr.msk.bf16.vlgmr.msra.gmra.mxu0 %vm319_vm0, %v5258_v10  ;;  %v5262_v17 = vld [vmem:[%s5427_s30 + $0x18] sm:$0xff]   ;;  %v5264_v19 = vld [vmem:[%s5427_s30 + $0x20] sm:$0xff]   ;;  %v5266_v21 = vld [vmem:[%s5427_s30 + $0x28] sm:$0xff]  }
  0x14   : > { %568 = vperm.xlu0 %5251, %v530_v6   ;;  %4952 = vmatmul.mubr.msk.bf16.vlgmr.msra.gmra.mxu1 %vm319_vm0, %v5259_v12  ;;  %v5263_v18 = vld [vmem:[%s5427_s30 + $0x58] sm:$0xff]   ;;  %v5265_v20 = vld [vmem:[%s5427_s30 + $0x60] sm:$0xff]   ;;  %v5267_v22 = vld [vmem:[%s5427_s30 + $0x68] sm:$0xff]  }
  0x15   : > { %5002 = vmatpush3.bf16.msra.mxu0 %v5257_v2  ;;  %4968 = vmatpush3.bf16.msra.mxu1 %v5256_v1  ;;  %v5268_v23 = vld [vmem:[%s5427_s30 + $0x30] sm:$0xff]   ;;  %v785_v24 = vld [vmem:[%s5427_s30] sm:$0xf]  ;;  %v786_v25 = vld [vmem:[%s5427_s30 + $0x4] sm:$0xf] }
  0x16   : > { %4939 = vmatprep.mubr.msk.bf16.mxu0 %vm319_vm0, %v5260_v14  ;;  %4955 = vmatprep.mubr.msk.bf16.mxu1 %vm319_vm0, %v5261_v15  ;;  %v4477_v26 = vcombine.low %v785_v24, %v786_v25  ;;  %v5273_v27 = vld [vmem:[%s5427_s30 + $0x8] sm:$0xff]   ;;  %v1284_v28 = vld [vmem:[%s5427_s30] sm:$0xe]  ;;  %v5269_v29 = vld [vmem:[%s5427_s30 + $0x70] sm:$0xff]  }
  0x17   : > { %5035 = vmatprep.subr.bf16.mxu1 %v5437_v9  ;;  %5069 = vmatprep.subr.bf16.mxu0 %v5444_v11  ;;  %v4513_v30 = vcombine.low %v1284_v28, %v786_v25  ;;  %v913_v33 = vshll.u32 %v5273_v27, 16  ;;  %v5277_v35 = vld [vmem:[%s5427_s30 + $0x10] sm:$0xff]   ;;  %v1293_v37 = vrot.slane %v5273_v27, 1  ;;  %v5487_v41 = vld [vmem:[%s5427_s30 + $0x18] sm:$0xff]   ;;  %v917_v47 = vshrl.u32 %v5273_v27, 16  ;;  %v5279_v56 = vld [vmem:[%s5427_s30 + $0x20] sm:$0xff]  }
  0x18   : > { %578 = vperm.xlu1 %5252, %v532_v13   ;;  %583 = vperm.xlu0 %5251, %v533_v16   ;;  %v906_v31 = vshrl.u32 %v4477_v26, 16  ;;  %v908_v32 = vshll.u32 %v4477_v26, 16  ;;  %v5270_v43 = vld [vmem:[%s5427_s30 + $0x38] sm:$0xff]   ;;  %v921_v45 = vshll.u32 %v5277_v35, 16  ;;  %v925_v51 = vshrl.u32 %v5277_v35, 16  ;;  %v5515_v61 = vld [vmem:[%s5427_s30 + $0x28] sm:$0xff]  }
  0x19   : > { %v1292_v36 = vrot.slane %v4513_v30, 1  ;;  %v915_v40 = vrot.slane %v913_v33, 1  ;;  %v5271_v44 = vld [vmem:[%s5427_s30 + $0x78] sm:$0xff]   ;;  %v929_v52 = vshll.u32 %v5487_v41, 16  ;;  %v1295_v55 = vrot.slane %v5277_v35, 1  ;;  %v541_v2 = vld [vmem:[%s7124_s2 + $0x60] sm:$0xff] }
  0x1a   : > { %v910_v34 = vrot.slane %v908_v32, 1  ;;  %v923_v54 = vrot.slane %v921_v45, 1  ;;  %v1297_v62 = vrot.slane %v5487_v41, 1  ;;  %v937_v1 = vshll.u32 %v5279_v56, 16  ;;  %v542_v10 = vld [vmem:[%s7124_s2 + $0x68] sm:$0xff]  ;;  %v5281_v14 = vld [vmem:[%s5427_s30 + $0x30] sm:$0xff]  }
  0x1b   : > { %4940 = vmatmul.mubr.msk.bf16.gmra.mxu0 %vm319_vm0, %v5262_v17  ;;  %v1294_v48 = vsel %vm1291_vm1, %v1292_v36, %v1293_v37  ;;  %v919_v58 = vor.u32 %v917_v47, %v915_v40  ;;  %v931_v60 = vrot.slane %v929_v52, 1  ;;  %v1296_v0 = vsel %vm1291_vm1, %v1293_v37, %v1295_v55  ;;  %v543_v15 = vld [vmem:[%s7124_s2 + $0x70] sm:$0xff]  ;;  %v5283_v32 = vld [vmem:[%s5427_s30 + $0x40] sm:$0xff]  }
  0x1c   : > { %4956 = vmatmul.mubr.msk.bf16.gmra.mxu1 %vm319_vm0, %v5263_v18  ;;  %4943 = vmatprep.mubr.msk.bf16.mxu0 %vm319_vm0, %v5264_v19  ;;  %v911_v39 = vor.u32 %v910_v34, %v906_v31  ;;  %v927_v59 = vor.u32 %v925_v51, %v923_v54  ;;  %v933_v4 = vshrl.u32 %v5487_v41, 16  ;;  %v941_v6 = vshrl.u32 %v5279_v56, 16  ;;  %v547_v33 = vld [vmem:[%s7124_s2 + $0x90] sm:$0xff] }
  0x1d   : > { %4959 = vmatprep.mubr.msk.bf16.mxu1 %vm319_vm0, %v5265_v20  ;;  %588 = vperm.xlu1 %5252, %v534_v38   ;;  %v924_v3 = vsel %vm904_vm2, %v919_v58, %v923_v54  ;;  %v945_v7 = vshll.u32 %v5515_v61, 16  ;;  %v1298_v8 = vsel %vm1291_vm1, %v1295_v55, %v1297_v62  ;;  %v939_v12 = vrot.slane %v937_v1, 1  ;;  %v5545_v20 = vld [vmem:[%s5427_s30 + $0x38] sm:$0xff]   ;;  %v5572_v38 = vld [vmem:[%s5427_s30 + $0x48] sm:$0xff]   ;;  %v5597_v51 = vld [vmem:[%s7123_s1 + $0x30] sm:$0xff]  }
  0x1e   : > { %593 = vperm.xlu0 %5251, %v535_v42   ;;  %v916_v50 = vsel %vm904_vm2, %v911_v39, %v915_v40  ;;  %v932_v5 = vsel %vm904_vm2, %v927_v59, %v931_v60  ;;  %v1299_v13 = vrot.slane %v5279_v56, 1  ;;  %v935_v16 = vor.u32 %v933_v4, %v931_v60  ;;  %v548_v39 = vld [vmem:[%s7124_s2 + $0x98] sm:$0xff]  ;;  %v549_v42 = vld [vmem:[%s7124_s2 + $0xa0] sm:$0xff]  ;;  %v551_v55 = vld [vmem:[%s7124_s2 + $0xb0] sm:$0xff] }
  0x1f   : > { %v1301_v17 = vrot.slane %v5515_v61, 1  ;;  %v943_v18 = vor.u32 %v941_v6, %v939_v12  ;;  %v947_v19 = vrot.slane %v945_v7, 1  ;;  %v949_v25 = vshrl.u32 %v5515_v61, 16  ;;  %v5613_v61 = vld [vmem:[%s5427_s30 + $0x58] sm:$0xff]  }
  0x20   : > { %v957_v27 = vshrl.u32 %v5281_v14, 16  ;;  %v961_v28 = vshll.u32 %v5545_v20, 16  ;;  %v1303_v31 = vrot.slane %v5281_v14, 1  ;;  %v1305_v35 = vrot.slane %v5545_v20, 1  ;;  %v5631_v6 = vld [vmem:[%s5427_s30 + $0x18] sm:$0xff]  }
  0x21   : > { %598 = vperm.xlu1 %5252, %v536_v46   ;;  %v1302_v24 = vsel %vm1291_vm1, %v1299_v13, %v1301_v17  ;;  %v948_v26 = vsel %vm904_vm2, %v943_v18, %v947_v19  ;;  %v951_v34 = vor.u32 %v949_v25, %v947_v19  ;;  %v969_v41 = vshll.u32 %v5283_v32, 16  ;;  %v5587_v46 = vld [vmem:[%s7123_s1 + $0x28] sm:$0xff]  }
  0x22   : > { %603 = vperm.xlu0 %5251, %v537_v49   ;;  %v963_v37 = vrot.slane %v961_v28, 1  ;;  %v1304_v40 = vsel %vm1291_vm1, %v1301_v17, %v1303_v31  ;;  %v965_v45 = vshrl.u32 %v5545_v20, 16  ;;  %v977_v49 = vshll.u32 %v5572_v38, 16  ;;  %v5649_v19 = vld [vmem:[%s5427_s30 + $0x68] sm:$0xff]   ;;  %v555_v20 = vld [vmem:[%s7124_s2 + $0xd0] sm:$0xff] }
  0x23   : > { %4944 = vmatmul.mubr.msk.bf16.gmra.mxu0 %vm319_vm0, %v5266_v21  ;;  %v1300_v21 = vsel %vm1291_vm1, %v1297_v62, %v1299_v13  ;;  %v1307_v52 = vrot.slane %v5283_v32, 1  ;;  %v971_v54 = vrot.slane %v969_v41, 1  ;;  %v981_v60 = vshrl.u32 %v5572_v38, 16  ;;  %v552_v62 = vld [vmem:[%s7124_s2 + $0xb8] sm:$0xff]  ;;  %v5668_v25 = vld [vmem:[%s5427_s30 + $0x28] sm:$0xff]   ;;  %v559_v41 = vld [vmem:[%s7124_s2 + $0xf0] sm:$0xff] }
  0x24   : > { %4960 = vmatmul.mubr.msk.bf16.gmra.mxu1 %vm319_vm0, %v5267_v22  ;;  %4947 = vmatprep.mubr.msk.bf16.mxu0 %vm319_vm0, %v5268_v23  ;;  %v545_v22 = vld [vmem:[%s7124_s2 + $0x80] sm:$0xff]  ;;  %v940_v23 = vsel %vm904_vm2, %v935_v16, %v939_v12  ;;  %v967_v56 = vor.u32 %v965_v45, %v963_v37  ;;  %v979_v59 = vrot.slane %v977_v49, 1  ;;  %v1313_v18 = vrot.slane %v5613_v61, 1  ;;  %v5704_v45 = vld [vmem:[%s5427_s30 + $0x30] sm:$0xff]   ;;  %v5708_v49 = vld [vmem:[%s5427_s30 + $0x78] sm:$0xff]  }
  0x25   : > { %4963 = vmatprep.mubr.msk.bf16.mxu1 %vm319_vm0, %v5269_v29  ;;  %608 = vperm.xlu1 %5252, %v538_v53   ;;  %v546_v29 = vld [vmem:[%s7124_s2 + $0x88] sm:$0xff]  ;;  %v1308_v1 = vsel %vm1291_vm1, %v1305_v35, %v1307_v52  ;;  %v5637_v12 = vld [vmem:[%s5427_s30 + $0x60] sm:$0xff]   ;;  %v997_v28 = vshrl.u32 %v5613_v61, 16 }
  0x26   : > { %613 = vperm.xlu0 %5251, %v539_v57   ;;  %v550_v53 = vld [vmem:[%s7124_s2 + $0xa8] sm:$0xff]  ;;  %v1309_v57 = vrot.slane %v5572_v38, 1  ;;  %v972_v4 = vsel %vm904_vm2, %v967_v56, %v971_v54  ;;  %v983_v16 = vor.u32 %v981_v60, %v979_v59  ;;  %v5684_v38 = vld [vmem:[%s5427_s30 + $0x70] sm:$0xff]   ;;  %v5725_v60 = vld [vmem:[%s5427_s30 + $0x38] sm:$0xff]  }
  0x27   : > { %v1017_v56 = vshll.u32 %v5684_v38, 16 }
  0x29   : > { %618 = vperm.xlu1 %5252, %v540_v63  }
  0x2a   : > { %623 = vperm.xlu0 %5251, %v541_v2  }
  0x2b   : > { %4948 = vmatmul.mubr.msk.bf16.gmra.mxu0 %vm319_vm0, %v5270_v43 }
  0x2c   : > { %4964 = vmatmul.mubr.msk.bf16.gmra.mxu1 %vm319_vm0, %v5271_v44  ;;  %5003 = vmatprep.mubr.msk.bf16.mxu0 %vm319_vm0, %v1294_v48  ;;  %v1306_v44 = vsel %vm1291_vm1, %v1303_v31, %v1305_v35  ;;  %v973_v48 = vshrl.u32 %v5283_v32, 16  ;;  %v1009_v32 = vshll.u32 %v5649_v19, 16 }
  0x2d   : > { %4969 = vmatprep.mubr.msk.bf16.mxu1 %vm319_vm0, %v916_v50  ;;  %628 = vperm.xlu1 %5252, %v542_v10   ;;  %v5592_v50 = vld [vmem:[%s5427_s30 + $0x50] sm:$0xff]   ;;  %v993_v10 = vshll.u32 %v5613_v61, 16 }
  0x2e   : > { %633 = vperm.xlu0 %5251, %v543_v15   ;;  %v975_v58 = vor.u32 %v973_v48, %v971_v54  ;;  %v985_v63 = vshll.u32 %v5592_v50, 16  ;;  %v989_v2 = vshrl.u32 %v5592_v50, 16  ;;  %v1311_v13 = vrot.slane %v5592_v50, 1  ;;  %v560_v54 = vld [vmem:[%s7124_s2 + $0xf8] sm:$0xff] }
  0x2f   : > { %v2698_v15 = vrot.slane %v5631_v6, 1  ;;  %v1011_v48 = vrot.slane %v1009_v32, 1 }
  0x30   : > { %v987_v17 = vrot.slane %v985_v63, 1  ;;  %v1314_v31 = vsel %vm1291_vm1, %v1311_v13, %v1313_v18 }
  0x32   : > { %643 = vperm.xlu0 %5251, %v545_v22   ;;  %v995_v22 = vrot.slane %v993_v10, 1 }
  0x33   : > { %5004 = vmatmul.mubr.msk.bf16.vlgmr.msra.gmra.mxu0 %vm319_vm0, %v1296_v0  ;;  %v5621_v0 = vld [vmem:[%s5427_s30 + $0x10] sm:$0xff]  }
  0x34   : > { %4970 = vmatmul.mubr.msk.bf16.vlgmr.msra.gmra.mxu1 %vm319_vm0, %v924_v3  ;;  %5070 = vmatpush3.bf16.msra.mxu0 %v5444_v11  ;;  %v544_v11 = vld [vmem:[%s7124_s2 + $0x78] sm:$0xff]  ;;  %v553_v3 = vld [vmem:[%s7124_s2 + $0xc0] sm:$0xff]  ;;  %v2696_v7 = vrot.slane %v5621_v0, 1 }
  0x35   : > { %5036 = vmatpush3.bf16.msra.mxu1 %v5437_v9  ;;  %4973 = vmatprep.mubr.msk.bf16.mxu1 %vm319_vm0, %v932_v5  ;;  %v953_v9 = vshll.u32 %v5281_v14, 16  ;;  %v1310_v5 = vsel %vm1291_vm1, %v1307_v52, %v1309_v57  ;;  %v554_v14 = vld [vmem:[%s7124_s2 + $0xc8] sm:$0xff] }
  0x36   : > { %5007 = vmatprep.mubr.msk.bf16.mxu0 %vm319_vm0, %v1298_v8  ;;  %638 = vperm.xlu1 %5252, %v544_v11   ;;  %v980_v8 = vsel %vm904_vm2, %v975_v58, %v979_v59  ;;  %v556_v11 = vld [vmem:[%s7124_s2 + $0xd8] sm:$0xff]  ;;  %v2190_v52 = vld [vmem:[%s5427_s30 + $0x8] sm:$0xf]  ;;  %v1021_v59 = vshrl.u32 %v5684_v38, 16 }
  0x37   : > { %v955_v30 = vrot.slane %v953_v9, 1  ;;  %653 = vperm.xlu0 %5251, %v547_v33   ;;  %5103 = vmatprep.subr.bf16.mxu1 %v5587_v46  ;;  %v991_v9 = vor.u32 %v989_v2, %v987_v17 }
  0x38   : > { %5137 = vmatprep.subr.bf16.mxu0 %v5597_v51 }
  0x39   : > { %v959_v36 = vor.u32 %v957_v27, %v955_v30  ;;  %v956_v43 = vsel %vm904_vm2, %v951_v34, %v955_v30  ;;  %v1312_v27 = vsel %vm1291_vm1, %v1309_v57, %v1311_v13  ;;  %v557_v30 = vld [vmem:[%s7124_s2 + $0xe0] sm:$0xff]  ;;  %v2702_v34 = vrot.slane %v5668_v25, 1 }
  0x3a   : > { %648 = vperm.xlu1 %5252, %v546_v29   ;;  %v1315_v29 = vrot.slane %v5637_v12, 1  ;;  %v996_v35 = vsel %vm904_vm2, %v991_v9, %v995_v22  ;;  %v1540_v57 = vld [vmem:[%s7125_s3] sm:$0xff]  ;;  %v1029_v9 = vshrl.u32 %v5708_v49, 16 }
  0x3b   : > { %5008 = vmatmul.mubr.msk.bf16.gmra.mxu0 %vm319_vm0, %v1300_v21  ;;  %v964_v47 = vsel %vm904_vm2, %v959_v36, %v963_v37  ;;  %663 = vperm.xlu0 %5251, %v549_v42   ;;  %v5661_v21 = vsel %vm1291_vm1, %v2696_v7, %v2698_v15  ;;  %v1005_v37 = vshrl.u32 %v5637_v12, 16  ;;  %v5291_v13 = vld [vmem:[%s5427_s30 + $0x80] ss:$0 sps:$4 sm:$0x11]  }
  0x3c   : > { %4974 = vmatmul.mubr.msk.bf16.gmra.mxu1 %vm319_vm0, %v940_v23  ;;  %5011 = vmatprep.mubr.msk.bf16.mxu0 %vm319_vm0, %v1302_v24  ;;  %v1001_v23 = vshll.u32 %v5637_v12, 16  ;;  %v5665_v24 = vld [vmem:[%s5427_s30 + $0x20] sm:$0xff]   ;;  %v1316_v58 = vsel %vm1291_vm1, %v1313_v18, %v1315_v29  ;;  %v1319_v12 = vrot.slane %v5684_v38, 1 }
  0x3d   : > { %4977 = vmatprep.mubr.msk.bf16.mxu1 %vm319_vm0, %v948_v26  ;;  %v988_v26 = vsel %vm904_vm2, %v983_v16, %v987_v17  ;;  %v2700_v33 = vrot.slane %v5665_v24, 1  ;;  %v1542_v16 = vld [vmem:[%s7125_s3 + $0x10] sm:$0xff] }
  0x3e   : > { %658 = vperm.xlu1 %5252, %v548_v39   ;;  %v1003_v36 = vrot.slane %v1001_v23, 1  ;;  %v558_v39 = vld [vmem:[%s7124_s2 + $0xe8] sm:$0xff] }
  0x3f   : > { %673 = vperm.xlu0 %5251, %v551_v55   ;;  %v5695_v42 = vsel %vm1291_vm1, %v2698_v15, %v2700_v33  ;;  %v2704_v55 = vrot.slane %v5704_v45, 1  ;;  %v1019_v15 = vrot.slane %v1017_v56, 1  ;;  %v5806_v56 = vld [vmem:[%s5427_s30 + $0x68] sm:$0xff]  }
  0x40   : > { %v1007_v50 = vor.u32 %v1005_v37, %v1003_v36 }
  0x41   : > { %v5728_v61 = vsel %vm1291_vm1, %v2702_v34, %v2704_v55  ;;  %v1023_v23 = vor.u32 %v1021_v59, %v1019_v15 }
  0x42   : > { %668 = vperm.xlu1 %5252, %v550_v53   ;;  %v5712_v53 = vld [vmem:[%s5427_s30 + $0xc] sm:$0xf] }
  0x43   : > { %5012 = vmatmul.mubr.msk.bf16.gmra.mxu0 %vm319_vm0, %v1304_v40  ;;  %683 = vperm.xlu0 %5251, %v553_v3   ;;  %v1317_v40 = vrot.slane %v5649_v19, 1  ;;  %v4568_v2 = vcombine.low %v2190_v52, %v5712_v53  ;;  %v5737_v3 = vld [vmem:[%s5427_s30 + $0x40] sm:$0xff]  }
  0x44   : > { %4978 = vmatmul.mubr.msk.bf16.gmra.mxu1 %vm319_vm0, %v956_v43  ;;  %5015 = vmatprep.mubr.msk.bf16.mxu0 %vm319_vm0, %v1306_v44  ;;  %v5698_v43 = vsel %vm1291_vm1, %v2700_v33, %v2702_v34  ;;  %v1013_v44 = vshrl.u32 %v5649_v19, 16  ;;  %v2708_v18 = vrot.slane %v5737_v3, 1  ;;  %v2317_v34 = vshll.u32 %v5621_v0, 16 }
  0x45   : > { %4981 = vmatprep.mubr.msk.bf16.mxu1 %vm319_vm0, %v964_v47  ;;  %v999_v47 = vor.u32 %v997_v28, %v995_v22  ;;  %v1318_v63 = vsel %vm1291_vm1, %v1315_v29, %v1317_v40  ;;  %v2312_v22 = vshll.u32 %v4568_v2, 16  ;;  %v1320_v33 = vsel %vm1291_vm1, %v1317_v40, %v1319_v12 }
  0x46   : > { %678 = vperm.xlu1 %5252, %v552_v62   ;;  %v1015_v10 = vor.u32 %v1013_v44, %v1011_v48  ;;  %v2310_v37 = vshrl.u32 %v4568_v2, 16  ;;  %v1323_v40 = vrot.slane %v5291_v13, 1  ;;  %v1546_v44 = vld [vmem:[%s7125_s3 + $0x30] sm:$0xff]  ;;  %v2319_v52 = vrot.slane %v2317_v34, 1 }
  0x47   : > { %693 = vperm.xlu0 %5251, %v555_v20   ;;  %v1004_v62 = vsel %vm904_vm2, %v999_v47, %v1003_v36  ;;  %v2314_v38 = vrot.slane %v2312_v22, 1  ;;  %v2341_v34 = vshll.u32 %v5668_v25, 16 }
  0x48   : > { %v1020_v32 = vsel %vm904_vm2, %v1015_v10, %v1019_v15  ;;  %v1548_v10 = vld [vmem:[%s7125_s3 + $0x40] sm:$0xff] }
  0x4a   : > { %688 = vperm.xlu1 %5252, %v554_v14   ;;  %v1541_v14 = vld [vmem:[%s7125_s3 + $0x8] sm:$0xff] }
  0x4b   : > { %5016 = vmatmul.mubr.msk.bf16.gmra.mxu0 %vm319_vm0, %v1308_v1  ;;  %703 = vperm.xlu0 %5251, %v557_v30   ;;  %v1025_v1 = vshll.u32 %v5708_v49, 16  ;;  %v1033_v30 = vshll.u32 %v5291_v13, 16 }
  0x4c   : > { %4982 = vmatmul.mubr.msk.bf16.gmra.mxu1 %vm319_vm0, %v972_v4  ;;  %5019 = vmatprep.mubr.msk.bf16.mxu0 %vm319_vm0, %v1310_v5  ;;  %v1012_v4 = vsel %vm904_vm2, %v1007_v50, %v1011_v48  ;;  %v5741_v5 = vld [vmem:[%s5427_s30 + $0x48] sm:$0xff]   ;;  %v5794_v48 = vld [vmem:[%s5427_s30 + $0x58] sm:$0xff]  }
  0x4d   : > { %4985 = vmatprep.mubr.msk.bf16.mxu1 %vm319_vm0, %v980_v8  ;;  %v2706_v8 = vrot.slane %v5725_v60, 1  ;;  %v2710_v20 = vrot.slane %v5741_v5, 1  ;;  %v1035_v47 = vrot.slane %v1033_v30, 1  ;;  %v1551_v30 = vld [vmem:[%s7125_s3 + $0x58] sm:$0xff] }
  0x4e   : > { %698 = vperm.xlu1 %5252, %v556_v11   ;;  %v1321_v11 = vrot.slane %v5708_v49, 1 }
  0x4f   : > { %713 = vperm.xlu0 %5251, %v559_v41   ;;  %v5756_v17 = vsel %vm1291_vm1, %v2704_v55, %v2706_v8  ;;  %v5767_v28 = vsel %vm1291_vm1, %v2706_v8, %v2708_v18  ;;  %v5770_v29 = vsel %vm1291_vm1, %v2708_v18, %v2710_v20  ;;  %v2315_v55 = vor.u32 %v2314_v38, %v2310_v37  ;;  %v5834_v18 = vld [vmem:[%s5427_s30 + $0x70] sm:$0xff]   ;;  %v5299_v38 = vld [vmem:[%s5427_s30 + $0x18] sm:$0xff]  }
  0x50   : > { %v1322_v36 = vsel %vm1291_vm1, %v1319_v12, %v1321_v11  ;;  %v1324_v2 = vsel %vm1291_vm1, %v1321_v11, %v1323_v40  ;;  %v2325_v8 = vshll.u32 %v5631_v6, 16  ;;  %v5292_v12 = vld [vmem:[%s5427_s30 + $0x8] sm:$0xff]  }
  0x51   : > { %v2320_v13 = vsel %vm904_vm2, %v2315_v55, %v2319_v52  ;;  %v1549_v11 = vld [vmem:[%s7125_s3 + $0x48] sm:$0xff]  ;;  %v1554_v55 = vld [vmem:[%s7125_s3 + $0x70] sm:$0xff] }
  0x52   : > { %708 = vperm.xlu1 %5252, %v558_v39   ;;  %v1545_v39 = vld [vmem:[%s7125_s3 + $0x28] sm:$0xff]  ;;  %v2327_v22 = vrot.slane %v2325_v8, 1 }
  0x53   : > { %5020 = vmatmul.mubr.msk.bf16.gmra.mxu0 %vm319_vm0, %v1312_v27  ;;  %1574 = vperm.xlu0 %5251, %v1540_v57   ;;  %v1543_v27 = vld [vmem:[%s7125_s3 + $0x18] sm:$0xff]  ;;  %v2714_v57 = vrot.slane %v5794_v48, 1 }
  0x54   : > { %4986 = vmatmul.mubr.msk.bf16.gmra.mxu1 %vm319_vm0, %v988_v26  ;;  %5023 = vmatprep.mubr.msk.bf16.mxu0 %vm319_vm0, %v1314_v31  ;;  %v1027_v26 = vrot.slane %v1025_v1, 1  ;;  %v5773_v31 = vld [vmem:[%s5427_s30 + $0x50] sm:$0xff]  }
  0x55   : > { %4989 = vmatprep.mubr.msk.bf16.mxu1 %vm319_vm0, %v996_v35  ;;  %v1544_v35 = vld [vmem:[%s7125_s3 + $0x20] sm:$0xff]  ;;  %v2712_v19 = vrot.slane %v5773_v31, 1 }
  0x56   : > { %718 = vperm.xlu1 %5252, %v560_v54   ;;  %v1028_v41 = vsel %vm904_vm2, %v1023_v23, %v1027_v26  ;;  %v1031_v50 = vor.u32 %v1029_v9, %v1027_v26  ;;  %v5802_v54 = vld [vmem:[%s5427_s30 + $0x60] sm:$0xff]   ;;  %v2337_v23 = vshrl.u32 %v5665_v24, 16  ;;  %v2720_v26 = vrot.slane %v5834_v18, 1 }
  0x57   : > { %1584 = vperm.xlu0 %5251, %v1542_v16   ;;  %v5797_v49 = vsel %vm1291_vm1, %v2710_v20, %v2712_v19  ;;  %v5813_v59 = vsel %vm1291_vm1, %v2712_v19, %v2714_v57  ;;  %v2329_v20 = vshrl.u32 %v5631_v6, 16  ;;  %v1550_v6 = vld [vmem:[%s7125_s3 + $0x50] sm:$0xff]  ;;  %v2345_v19 = vshrl.u32 %v5668_v25, 16 }
  0x58   : > { %v1036_v1 = vsel %vm904_vm2, %v1031_v50, %v1035_v47  ;;  %v2349_v50 = vshll.u32 %v5704_v45, 16 }
  0x5a   : > { %1579 = vperm.xlu1 %5252, %v1541_v14   ;;  %v2333_v14 = vshll.u32 %v5665_v24, 16  ;;  %v5856_v24 = vld [vmem:[%s5427_s30 + $0x78] sm:$0xff]  }
  0x5b   : > { %5024 = vmatmul.mubr.msk.bf16.gmra.mxu0 %vm319_vm0, %v1316_v58  ;;  %1594 = vperm.xlu0 %5251, %v1544_v35   ;;  %v1547_v58 = vld [vmem:[%s7125_s3 + $0x38] sm:$0xff]  ;;  %v5859_v35 = vld [vmem:[%s5427_s30 + $0x88] ss:$0 sps:$4 sm:$0x11]  }
  0x5c   : > { %4990 = vmatmul.mubr.msk.bf16.gmra.mxu1 %vm319_vm0, %v1004_v62  ;;  %5027 = vmatprep.mubr.msk.bf16.mxu0 %vm319_vm0, %v1318_v63  ;;  %v2716_v62 = vrot.slane %v5802_v54, 1  ;;  %v2718_v63 = vrot.slane %v5806_v56, 1 }
  0x5d   : > { %4993 = vmatprep.mubr.msk.bf16.mxu1 %vm319_vm0, %v1012_v4  ;;  %v2321_v4 = vshrl.u32 %v5621_v0, 16 }
  0x5e   : > { %1589 = vperm.xlu1 %5252, %v1543_v27   ;;  %v5828_v15 = vsel %vm1291_vm1, %v2714_v57, %v2716_v62  ;;  %v5831_v16 = vsel %vm1291_vm1, %v2716_v62, %v2718_v63  ;;  %v2335_v27 = vrot.slane %v2333_v14, 1  ;;  %v5863_v37 = vsel %vm1291_vm1, %v2718_v63, %v2720_v26 }
  0x5f   : > { %1604 = vperm.xlu0 %5251, %v1546_v44   ;;  %v2323_v9 = vor.u32 %v2321_v4, %v2319_v52  ;;  %v1552_v44 = vld [vmem:[%s7125_s3 + $0x60] sm:$0xff]  ;;  %v2722_v52 = vrot.slane %v5856_v24, 1  ;;  %v2343_v63 = vrot.slane %v2341_v34, 1  ;;  %v2357_v14 = vshll.u32 %v5725_v60, 16  ;;  %v1559_v34 = vld [vmem:[%s7125_s3 + $0x98] sm:$0xff] }
  0x60   : > { %v5907_v4 = vld [vmem:[%s7123_s1 + $0x40] sm:$0xff]  }
  0x61   : > { %v2328_v40 = vsel %vm904_vm2, %v2323_v9, %v2327_v22  ;;  %v5897_v0 = vsel %vm1291_vm1, %v2720_v26, %v2722_v52  ;;  %v1556_v9 = vld [vmem:[%s7125_s3 + $0x80] sm:$0xff]  ;;  %v2359_v26 = vrot.slane %v2357_v14, 1  ;;  %v2393_v14 = vshrl.u32 %v5794_v48, 16 }
  0x62   : > { %1599 = vperm.xlu1 %5252, %v1545_v39   ;;  %v2331_v39 = vor.u32 %v2329_v20, %v2327_v22  ;;  %v1555_v20 = vld [vmem:[%s7125_s3 + $0x78] sm:$0xff] }
  0x63   : > { %5028 = vmatmul.mubr.msk.bf16.gmra.mxu0 %vm319_vm0, %v1320_v33  ;;  %1614 = vperm.xlu0 %5251, %v1548_v10   ;;  %v5297_v33 = vld [vmem:[%s5427_s30 + $0x10] sm:$0xff]   ;;  %v2347_v10 = vor.u32 %v2345_v19, %v2343_v63  ;;  %v1560_v19 = vld [vmem:[%s7125_s3 + $0xa0] sm:$0xff] }
  0x64   : > { %4994 = vmatmul.mubr.msk.bf16.gmra.mxu1 %vm319_vm0, %v1020_v32  ;;  %5031 = vmatprep.mubr.msk.bf16.mxu0 %vm319_vm0, %v1322_v36  ;;  %v2688_v32 = vld [vmem:[%s5427_s30 + $0x8] sm:$0xe]  ;;  %v2336_v62 = vsel %vm904_vm2, %v2331_v39, %v2335_v27  ;;  %v2369_v39 = vshrl.u32 %v5737_v3, 16 }
  0x65   : > { %4997 = vmatprep.mubr.msk.bf16.mxu1 %vm319_vm0, %v1028_v41  ;;  %v4604_v36 = vcombine.low %v2688_v32, %v5712_v53  ;;  %v5868_v41 = vld [vmem:[%s5427_s30 + $0x80] sm:$0xff]   ;;  %v1553_v53 = vld [vmem:[%s7125_s3 + $0x68] sm:$0xff] }
  0x66   : > { %1609 = vperm.xlu1 %5252, %v1547_v58   ;;  %v2724_v25 = vrot.slane %v5868_v41, 1  ;;  %v2726_v58 = vrot.slane %v5859_v35, 1 }
  0x67   : > { %1624 = vperm.xlu0 %5251, %v1550_v6   ;;  %v2695_v47 = vrot.slane %v4604_v36, 1  ;;  %v2365_v6 = vshll.u32 %v5737_v3, 16  ;;  %v5305_v36 = vld [vmem:[%s5427_s30 + $0x30] sm:$0xff]   ;;  %v1561_v3 = vld [vmem:[%s7125_s3 + $0xa8] sm:$0xff] }
  0x68   : > { %v5910_v8 = vsel %vm1291_vm1, %v2724_v25, %v2726_v58  ;;  %v5309_v58 = vld [vmem:[%s5427_s30 + $0x40] sm:$0xff]  }
  0x69   : > { %v5886_v57 = vsel %vm1291_vm1, %v2695_v47, %v2696_v7  ;;  %v5900_v7 = vsel %vm1291_vm1, %v2722_v52, %v2724_v25  ;;  %v2367_v32 = vrot.slane %v2365_v6, 1  ;;  %v2377_v47 = vshrl.u32 %v5741_v5, 16  ;;  %v5315_v6 = vld [vmem:[%s5427_s30 + $0x58] sm:$0xff]  }
  0x6a   : > { %1619 = vperm.xlu1 %5252, %v1549_v11   ;;  %v2353_v11 = vshrl.u32 %v5704_v45, 16  ;;  %v1557_v45 = vld [vmem:[%s7125_s3 + $0x88] sm:$0xff] }
  0x6b   : > { %5032 = vmatmul.mubr.msk.bf16.gmra.mxu0 %vm319_vm0, %v1324_v2  ;;  %1634 = vperm.xlu0 %5251, %v1552_v44   ;;  %v2339_v2 = vor.u32 %v2337_v23, %v2335_v27  ;;  %v2361_v23 = vshrl.u32 %v5725_v60, 16  ;;  %v1558_v60 = vld [vmem:[%s7125_s3 + $0x90] sm:$0xff]  ;;  %v2371_v52 = vor.u32 %v2369_v39, %v2367_v32 }
  0x6c   : > { %4998 = vmatmul.mubr.msk.bf16.gmra.mxu1 %vm319_vm0, %v1036_v1  ;;  %5071 = vmatprep.mubr.msk.bf16.mxu0 %vm319_vm0, %v2320_v13  ;;  %v5894_v1 = vld [vmem:[%s7123_s1 + $0x38] sm:$0xff]   ;;  %v5301_v13 = vld [vmem:[%s5427_s30 + $0x20] sm:$0xff]  }
  0x6d   : > { %5037 = vmatprep.mubr.msk.bf16.mxu1 %vm319_vm0, %v5292_v12  ;;  %v2351_v12 = vrot.slane %v2349_v50, 1  ;;  %v2381_v50 = vshll.u32 %v5773_v31, 16 }
  0x6e   : > { %1629 = vperm.xlu1 %5252, %v1551_v30   ;;  %v2363_v30 = vor.u32 %v2361_v23, %v2359_v26  ;;  %v5313_v23 = vld [vmem:[%s5427_s30 + $0x50] sm:$0xff]  }
  0x6f   : > { %1644 = vperm.xlu0 %5251, %v1554_v55   ;;  %v2352_v22 = vsel %vm904_vm2, %v2347_v10, %v2351_v12  ;;  %v2355_v27 = vor.u32 %v2353_v11, %v2351_v12  ;;  %v2383_v55 = vrot.slane %v2381_v50, 1  ;;  %v5311_v10 = vld [vmem:[%s5427_s30 + $0x48] sm:$0xff]   ;;  %v2385_v12 = vshrl.u32 %v5773_v31, 16 }
  0x70   : > { %v2368_v44 = vsel %vm904_vm2, %v2363_v30, %v2367_v32  ;;  %v1565_v31 = vld [vmem:[%s7125_s3 + $0xc8] sm:$0xff]  ;;  %v1568_v30 = vld [vmem:[%s7125_s3 + $0xe0] sm:$0xff]  ;;  %v2421_v50 = vshll.u32 %v5856_v24, 16 }
  0x71   : > { %v2387_v11 = vor.u32 %v2385_v12, %v2383_v55 }
  0x72   : > { %1639 = vperm.xlu1 %5252, %v1553_v53  }
  0x73   : > { %5072 = vmatmul.mubr.msk.bf16.vlgmr.msra.gmra.mxu0 %vm319_vm0, %v2328_v40  ;;  %1654 = vperm.xlu0 %5251, %v1556_v9   ;;  %v5307_v40 = vld [vmem:[%s5427_s30 + $0x38] sm:$0xff]  }
  0x74   : > { %5038 = vmatmul.mubr.msk.bf16.vlgmr.msra.gmra.mxu1 %vm319_vm0, %v5297_v33  ;;  %5138 = vmatpush3.bf16.msra.mxu0 %v5597_v51  ;;  %v5303_v51 = vld [vmem:[%s5427_s30 + $0x28] sm:$0xff]   ;;  %v2373_v33 = vshll.u32 %v5741_v5, 16  ;;  %v1562_v5 = vld [vmem:[%s7125_s3 + $0xb0] sm:$0xff] }
  0x75   : > { %5104 = vmatpush3.bf16.msra.mxu1 %v5587_v46  ;;  %5041 = vmatprep.mubr.msk.bf16.mxu1 %vm319_vm0, %v5299_v38  ;;  %v2344_v46 = vsel %vm904_vm2, %v2339_v2, %v2343_v63  ;;  %v2360_v38 = vsel %vm904_vm2, %v2355_v27, %v2359_v26  ;;  %v1563_v63 = vld [vmem:[%s7125_s3 + $0xb8] sm:$0xff]  ;;  %v2405_v26 = vshll.u32 %v5806_v56, 16 }
  0x76   : > { %5075 = vmatprep.mubr.msk.bf16.mxu0 %vm319_vm0, %v2336_v62  ;;  %5171 = vmatprep.subr.bf16.mxu1 %v5894_v1  ;;  %v2375_v53 = vrot.slane %v2373_v33, 1  ;;  %v2389_v62 = vshll.u32 %v5794_v48, 16  ;;  %v1566_v48 = vld [vmem:[%s7125_s3 + $0xd0] sm:$0xff] }
  0x77   : > { %5205 = vmatprep.subr.bf16.mxu0 %v5907_v4  ;;  %1649 = vperm.xlu1 %5252, %v1555_v20   ;;  %v2397_v20 = vshll.u32 %v5802_v54, 16 }
  0x78   : > { %1664 = vperm.xlu0 %5251, %v1558_v60   ;;  %v2379_v25 = vor.u32 %v2377_v47, %v2375_v53  ;;  %v2376_v2 = vsel %vm904_vm2, %v2371_v52, %v2375_v53  ;;  %v2401_v60 = vshrl.u32 %v5802_v54, 16  ;;  %v1569_v54 = vld [vmem:[%s7125_s3 + $0xe8] sm:$0xff]  ;;  %v1571_v53 = vld [vmem:[%s7125_s3 + $0xf8] sm:$0xff] }
  0x7b   : > { %5076 = vmatmul.mubr.msk.bf16.gmra.mxu0 %vm319_vm0, %v2344_v46  ;;  %1659 = vperm.xlu1 %5252, %v1557_v45   ;;  %v2391_v46 = vrot.slane %v2389_v62, 1  ;;  %v1567_v45 = vld [vmem:[%s7125_s3 + $0xd8] sm:$0xff]  ;;  %v2429_v62 = vshll.u32 %v5868_v41, 16 }
  0x7c   : > { %5042 = vmatmul.mubr.msk.bf16.gmra.mxu1 %vm319_vm0, %v5301_v13  ;;  %5079 = vmatprep.mubr.msk.bf16.mxu0 %vm319_vm0, %v2352_v22  ;;  %v1564_v13 = vld [vmem:[%s7125_s3 + $0xc0] sm:$0xff]  ;;  %v2399_v22 = vrot.slane %v2397_v20, 1  ;;  %v2437_v20 = vshll.u32 %v5859_v35, 16 }
  0x7d   : > { %5045 = vmatprep.mubr.msk.bf16.mxu1 %vm319_vm0, %v5303_v51  ;;  %1674 = vperm.xlu0 %5251, %v1560_v19   ;;  %v2384_v51 = vsel %vm904_vm2, %v2379_v25, %v2383_v55  ;;  %v2395_v9 = vor.u32 %v2393_v14, %v2391_v46  ;;  %v2392_v27 = vsel %vm904_vm2, %v2387_v11, %v2391_v46  ;;  %v5319_v25 = vld [vmem:[%s5427_s30 + $0x68] sm:$0xff]   ;;  %v2433_v14 = vshrl.u32 %v5868_v41, 16  ;;  %v5323_v46 = vld [vmem:[%s5427_s30 + $0x78] sm:$0xff]  }
  0x7e   : > { %v2403_v39 = vor.u32 %v2401_v60, %v2399_v22 }
  0x7f   : > { %1669 = vperm.xlu1 %5252, %v1559_v34   ;;  %v2400_v33 = vsel %vm904_vm2, %v2395_v9, %v2399_v22  ;;  %v2409_v34 = vshrl.u32 %v5806_v56, 16  ;;  %v1570_v56 = vld [vmem:[%s7125_s3 + $0xf0] sm:$0xff]  ;;  %v2439_v22 = vrot.slane %v2437_v20, 1 }
  0x80   : > { %v3401_v20 = vld [vmem:[%s5427_s30 + $0x10] sm:$0xf] }
  0x81   : > { %1684 = vperm.xlu0 %5251, %v1562_v5   ;;  %v2417_v5 = vshrl.u32 %v5834_v18, 16 }
  0x83   : > { %5080 = vmatmul.mubr.msk.bf16.gmra.mxu0 %vm319_vm0, %v2360_v38  ;;  %1679 = vperm.xlu1 %5252, %v1561_v3   ;;  %v2407_v38 = vrot.slane %v2405_v26, 1  ;;  %v5317_v3 = vld [vmem:[%s5427_s30 + $0x60] sm:$0xff]   ;;  %v5328_v26 = vld [vmem:[%s5427_s30 + $0x10] sm:$0xff]  }
  0x84   : > { %5046 = vmatmul.mubr.msk.bf16.gmra.mxu1 %vm319_vm0, %v5305_v36  ;;  %5083 = vmatprep.mubr.msk.bf16.mxu0 %vm319_vm0, %v2368_v44  ;;  %v2413_v36 = vshll.u32 %v5834_v18, 16 }
  0x85   : > { %5049 = vmatprep.mubr.msk.bf16.mxu1 %vm319_vm0, %v5307_v40  ;;  %1694 = vperm.xlu0 %5251, %v1564_v13   ;;  %v2411_v19 = vor.u32 %v2409_v34, %v2407_v38  ;;  %v2408_v52 = vsel %vm904_vm2, %v2403_v39, %v2407_v38  ;;  %v5321_v13 = vld [vmem:[%s5427_s30 + $0x70] sm:$0xff]   ;;  %v5333_v39 = vld [vmem:[%s5427_s30 + $0x28] sm:$0xff]  }
  0x86   : > { %v2415_v40 = vrot.slane %v2413_v36, 1  ;;  %v5332_v36 = vld [vmem:[%s5427_s30 + $0x20] sm:$0xff]  }
  0x87   : > { %1689 = vperm.xlu1 %5252, %v1563_v63   ;;  %v2423_v63 = vrot.slane %v2421_v50, 1 }
  0x88   : > { %v2416_v55 = vsel %vm904_vm2, %v2411_v19, %v2415_v40  ;;  %v2419_v18 = vor.u32 %v2417_v5, %v2415_v40  ;;  %v5336_v40 = vld [vmem:[%s5427_s30 + $0x40] sm:$0xff]  }
  0x89   : > { %1704 = vperm.xlu0 %5251, %v1566_v48  }
  0x8b   : > { %5084 = vmatmul.mubr.msk.bf16.gmra.mxu0 %vm319_vm0, %v2376_v2  ;;  %1699 = vperm.xlu1 %5252, %v1565_v31   ;;  %v6000_v32 = vpop.permute.xlu0 %563  ;;  %v6015_v44 = vpop.permute.xlu1 %573 }
  0x8c   : > { %5050 = vmatmul.mubr.msk.bf16.gmra.mxu1 %vm319_vm0, %v5309_v58  ;;  %5087 = vmatprep.mubr.msk.bf16.mxu0 %vm319_vm0, %v2384_v51  ;;  %7218 = vst [vmem:[#allocation2_spill] sm:$0xff] %v6000_v32  ;;  %7219 = vst [vmem:[#allocation3_spill] sm:$0xff] %v6015_v44  ;;  %v2425_v58 = vshrl.u32 %v5856_v24, 16  ;;  %v2431_v24 = vrot.slane %v2429_v62, 1  ;;  %v2424_v51 = vsel %vm904_vm2, %v2419_v18, %v2423_v63 }
  0x8d   : > { %5053 = vmatprep.mubr.msk.bf16.mxu1 %vm319_vm0, %v5311_v10  ;;  %1714 = vperm.xlu0 %5251, %v1568_v30  }
  0x8e   : > { %v2427_v12 = vor.u32 %v2425_v58, %v2423_v63  ;;  %v2435_v9 = vor.u32 %v2433_v14, %v2431_v24  ;;  %v5340_v58 = vld [vmem:[%s5427_s30 + $0x60] sm:$0xff]   ;;  %v5341_v14 = vld [vmem:[%s5427_s30 + $0x68] sm:$0xff]  }
  0x8f   : > { %1709 = vperm.xlu1 %5252, %v1567_v45   ;;  %v6017_v47 = vpop.permute.xlu0 %568 }
  0x90   : > { %v2432_v31 = vsel %vm904_vm2, %v2427_v12, %v2431_v24 }
  0x91   : > { %1724 = vperm.xlu0 %5251, %v1570_v56   ;;  %v5334_v56 = vld [vmem:[%s5427_s30 + $0x30] sm:$0xff]  }
  0x93   : > { %5088 = vmatmul.mubr.msk.bf16.gmra.mxu0 %vm319_vm0, %v2392_v27  ;;  %1719 = vperm.xlu1 %5252, %v1569_v54   ;;  %v6031_v2 = vpop.permute.xlu1 %578  ;;  %v6035_v10 = vpop.permute.xlu0 %583 }
  0x94   : > { %5054 = vmatmul.mubr.msk.bf16.gmra.mxu1 %vm319_vm0, %v5313_v23  ;;  %5091 = vmatprep.mubr.msk.bf16.mxu0 %vm319_vm0, %v2400_v33  ;;  %v5325_v23 = vld [vmem:[%s5427_s30 + $0x80] sm:$0xff]   ;;  %v5331_v33 = vld [vmem:[%s5427_s30 + $0x18] sm:$0xff]  }
  0x95   : > { %5057 = vmatprep.mubr.msk.bf16.mxu1 %vm319_vm0, %v5315_v6  ;;  %v2440_v6 = vsel %vm904_vm2, %v2435_v9, %v2439_v22 }
  0x97   : > { %1729 = vperm.xlu1 %5252, %v1571_v53  }
  0x98   : > { %v6044_v11 = vpop.permute.xlu1 %588 }
  0x99   : > { %v6046_v48 = vpop.permute.xlu0 %593 }
  0x9b   : > { %5092 = vmatmul.mubr.msk.bf16.gmra.mxu0 %vm319_vm0, %v2408_v52  ;;  %v5338_v52 = vld [vmem:[%s5427_s30 + $0x50] sm:$0xff]  }
  0x9c   : > { %5058 = vmatmul.mubr.msk.bf16.gmra.mxu1 %vm319_vm0, %v5317_v3  ;;  %5095 = vmatprep.mubr.msk.bf16.mxu0 %vm319_vm0, %v2416_v55  ;;  %v6052_v35 = vpop.permute.xlu1 %598  ;;  %v5337_v3 = vld [vmem:[%s5427_s30 + $0x48] sm:$0xff]   ;;  %v5339_v55 = vld [vmem:[%s5427_s30 + $0x58] sm:$0xff]  }
  0x9d   : > { %5061 = vmatprep.mubr.msk.bf16.mxu1 %vm319_vm0, %v5319_v25  ;;  %v6054_v41 = vpop.permute.xlu0 %603 }
  0xa0   : > { %v6059_v45 = vpop.permute.xlu1 %608 }
  0xa1   : > { %v6061_v27 = vpop.permute.xlu0 %613 }
  0xa3   : > { %5096 = vmatmul.mubr.msk.bf16.gmra.mxu0 %vm319_vm0, %v2424_v51 }
  0xa4   : > { %5062 = vmatmul.mubr.msk.bf16.gmra.mxu1 %vm319_vm0, %v5321_v13  ;;  %5099 = vmatprep.mubr.msk.bf16.mxu0 %vm319_vm0, %v2432_v31  ;;  %v6068_v60 = vpop.permute.xlu1 %618 }
  0xa5   : > { %5065 = vmatprep.mubr.msk.bf16.mxu1 %vm319_vm0, %v5323_v46  ;;  %v6070_v30 = vpop.permute.xlu0 %623  ;;  %v3402_v46 = vld [vmem:[%s5427_s30 + $0x14] sm:$0xf] }
  0xa6   : > { %7220 = vst [vmem:[#allocation4_spill] sm:$0xff] %v6070_v30 }
  0xa8   : > { %v6073_v34 = vpop.permute.xlu1 %628 }
  0xa9   : > { %7221 = vst [vmem:[#allocation5_spill] sm:$0xff] %v6073_v34  ;;  %v6076_v38 = vpop.permute.xlu0 %633  ;;  %v6298_v34 = vld [vmem:[%s5427_s30 + $0x40] sm:$0xff]  }
  0xaa   : > { %7222 = vst [vmem:[#allocation6_spill] sm:$0xff] %v6076_v38 }
  0xab   : > { %5100 = vmatmul.mubr.msk.bf16.gmra.mxu0 %vm319_vm0, %v2440_v6 }
  0xac   : > { %5066 = vmatmul.mubr.msk.bf16.gmra.mxu1 %vm319_vm0, %v5325_v23  ;;  %5139 = vmatprep.mubr.msk.bf16.mxu0 %vm319_vm0, %v5328_v26  ;;  %v4659_v23 = vcombine.low %v3401_v20, %v3402_v46 }
  0xad   : > { %5105 = vmatprep.mubr.msk.bf16.mxu1 %vm319_vm0, %v5886_v57  ;;  %v6088_v54 = vpop.permute.xlu0 %643 }
  0xae   : > { %7224 = vst [vmem:[#allocation8_spill] sm:$0xff] %v6088_v54  ;;  %v6271_v54 = vld [vmem:[%s5427_s30 + $0x38] sm:$0xff]  }
  0xb1   : > { %v6085_v57 = vpop.permute.xlu1 %638 }
  0xb2   : > { %7223 = vst [vmem:[#allocation7_spill] sm:$0xff] %v6085_v57 }
  0xb3   : > { %5140 = vmatmul.mubr.msk.bf16.vlgmr.msra.gmra.mxu0 %vm319_vm0, %v5331_v33 }
  0xb4   : > { %5106 = vmatmul.mubr.msk.bf16.vlgmr.msra.gmra.mxu1 %vm319_vm0, %v5661_v21  ;;  %5206 = vmatpush3.bf16.msra.mxu0 %v5907_v4  ;;  %v6094_v21 = vpop.permute.xlu0 %653  ;;  %v5335_v4 = vld [vmem:[%s5427_s30 + $0x38] sm:$0xff]  }
  0xb5   : > { %5172 = vmatpush3.bf16.msra.mxu1 %v5894_v1  ;;  %5109 = vmatprep.mubr.msk.bf16.mxu1 %vm319_vm0, %v5695_v42  ;;  %v6092_v19 = vpop.permute.xlu1 %648  ;;  %7226 = vst [vmem:[#allocation10_spill] sm:$0xff] %v6094_v21 }
  0xb6   : > { %5143 = vmatprep.mubr.msk.bf16.mxu0 %vm319_vm0, %v5332_v36  ;;  %7225 = vst [vmem:[#allocation9_spill] sm:$0xff] %v6092_v19 }
  0xb8   : > { %v6104_v1 = vpop.permute.xlu0 %663 }
  0xb9   : > { %v6102_v42 = vpop.permute.xlu1 %658  ;;  %7228 = vst [vmem:[#allocation12_spill] sm:$0xff] %v6104_v1 }
  0xba   : > { %7227 = vst [vmem:[#allocation11_spill] sm:$0xff] %v6102_v42 }
  0xbb   : > { %5144 = vmatmul.mubr.msk.bf16.gmra.mxu0 %vm319_vm0, %v5333_v39 }
  0xbc   : > { %5110 = vmatmul.mubr.msk.bf16.gmra.mxu1 %vm319_vm0, %v5698_v43  ;;  %5147 = vmatprep.mubr.msk.bf16.mxu0 %vm319_vm0, %v5334_v56  ;;  %v6110_v53 = vpop.permute.xlu0 %673 }
  0xbd   : > { %5113 = vmatprep.mubr.msk.bf16.mxu1 %vm319_vm0, %v5728_v61  ;;  %v6108_v50 = vpop.permute.xlu1 %668  ;;  %7230 = vst [vmem:[#allocation14_spill] sm:$0xff] %v6110_v53 }
  0xbe   : > { %7229 = vst [vmem:[#allocation13_spill] sm:$0xff] %v6108_v50 }
  0xc0   : > { %v6120_v61 = vpop.permute.xlu0 %683 }
  0xc1   : > { %v6118_v43 = vpop.permute.xlu1 %678  ;;  %7232 = vst [vmem:[#allocation16_spill] sm:$0xff] %v6120_v61 }
  0xc2   : > { %7231 = vst [vmem:[#allocation15_spill] sm:$0xff] %v6118_v43 }
  0xc3   : > { %5148 = vmatmul.mubr.msk.bf16.gmra.mxu0 %vm319_vm0, %v5335_v4  ;;  %v6195_v4 = vld [vmem:[%s5427_s30 + $0x18] sm:$0xff]  }
  0xc4   : > { %5114 = vmatmul.mubr.msk.bf16.gmra.mxu1 %vm319_vm0, %v5756_v17  ;;  %5151 = vmatprep.mubr.msk.bf16.mxu0 %vm319_vm0, %v5336_v40  ;;  %v6126_v25 = vpop.permute.xlu0 %693  ;;  %v3523_v40 = vshll.u32 %v4659_v23, 16 }
  0xc5   : > { %5117 = vmatprep.mubr.msk.bf16.mxu1 %vm319_vm0, %v5767_v28  ;;  %v6124_v5 = vpop.permute.xlu1 %688  ;;  %7234 = vst [vmem:[#allocation18_spill] sm:$0xff] %v6126_v25 }
  0xc6   : > { %7233 = vst [vmem:[#allocation17_spill] sm:$0xff] %v6124_v5 }
  0xc8   : > { %v6136_v28 = vpop.permute.xlu0 %703 }
  0xc9   : > { %v6134_v17 = vpop.permute.xlu1 %698  ;;  %7236 = vst [vmem:[#allocation20_spill] sm:$0xff] %v6136_v28  ;;  %v3525_v28 = vrot.slane %v3523_v40, 1 }
  0xca   : > { %7235 = vst [vmem:[#allocation19_spill] sm:$0xff] %v6134_v17 }
  0xcb   : > { %5152 = vmatmul.mubr.msk.bf16.gmra.mxu0 %vm319_vm0, %v5337_v3  ;;  %v3899_v3 = vld [vmem:[%s5427_s30 + $0x10] sm:$0xe] }
  0xcc   : > { %5118 = vmatmul.mubr.msk.bf16.gmra.mxu1 %vm319_vm0, %v5770_v29  ;;  %5155 = vmatprep.mubr.msk.bf16.mxu0 %vm319_vm0, %v5338_v52  ;;  %v6142_v63 = vpop.permute.xlu0 %713 }
  0xcd   : > { %5121 = vmatprep.mubr.msk.bf16.mxu1 %vm319_vm0, %v5797_v49  ;;  %v6140_v62 = vpop.permute.xlu1 %708  ;;  %7238 = vst [vmem:[#allocation22_spill] sm:$0xff] %v6142_v63  ;;  %v3528_v63 = vshll.u32 %v6195_v4, 16 }
  0xce   : > { %7237 = vst [vmem:[#allocation21_spill] sm:$0xff] %v6140_v62 }
  0xd0   : > { %v6160_v13 = vpop.permute.xlu0 %1574 }
  0xd1   : > { %v6156_v12 = vpop.permute.xlu1 %718  ;;  %7242 = vst [vmem:[#allocation26_spill] sm:$0xff] %v6160_v13 }
  0xd2   : > { %7240 = vst [vmem:[#allocation24_spill] sm:$0xff] %v6156_v12  ;;  %v3521_v12 = vshrl.u32 %v4659_v23, 16 }
  0xd3   : > { %v6144_v29 = vpop.f32.mrf.mxu0  ;;  %5156 = vmatmul.mubr.msk.bf16.gmra.mxu0 %vm319_vm0, %v5339_v55 }
  0xd4   : > { %v6147_v18 = vpop.f32.mrf.mxu1  ;;  %5122 = vmatmul.mubr.msk.bf16.gmra.mxu1 %vm319_vm0, %v5813_v59  ;;  %5159 = vmatprep.mubr.msk.bf16.mxu0 %vm319_vm0, %v5340_v58  ;;  %v5342_v59 = vld [vmem:[%s5427_s30 + $0x70] sm:$0xff]   ;;  %v6176_v6 = vpop.permute.xlu0 %1584 }
  0xd5   : > { %7239 = vst [vmem:[#allocation23_spill] sm:$0xff] %v6147_v18  ;;  %v6152_v49 = vpop.f32.mrf.mxu0  ;;  %5125 = vmatprep.mubr.msk.bf16.mxu1 %vm319_vm0, %v5828_v15  ;;  %v6172_v22 = vpop.permute.xlu1 %1579  ;;  %7246 = vst [vmem:[#allocation30_spill] sm:$0xff] %v6176_v6 }
  0xd6   : > { %v6158_v24 = vpop.f32.mrf.mxu1  ;;  %7244 = vst [vmem:[#allocation28_spill] sm:$0xff] %v6172_v22 }
  0xd7   : > { %7241 = vst [vmem:[#allocation25_spill] sm:$0xff] %v6158_v24  ;;  %v6162_v51 = vpop.f32.mrf.mxu0 }
  0xd8   : > { %v6167_v31 = vpop.f32.mrf.mxu1  ;;  %v6198_v52 = vpop.permute.xlu0 %1594 }
  0xd9   : > { %7243 = vst [vmem:[#allocation27_spill] sm:$0xff] %v6167_v31  ;;  %v6170_v9 = vpop.f32.mrf.mxu0  ;;  %v6190_v39 = vpop.permute.xlu1 %1589  ;;  %7250 = vst [vmem:[#allocation34_spill] sm:$0xff] %v6198_v52 }
  0xda   : > { %v6174_v15 = vpop.f32.mrf.mxu1  ;;  %7248 = vst [vmem:[#allocation32_spill] sm:$0xff] %v6190_v39 }
  0xdb   : > { %7245 = vst [vmem:[#allocation29_spill] sm:$0xff] %v6174_v15  ;;  %v6178_v26 = vpop.f32.mrf.mxu0  ;;  %5160 = vmatmul.mubr.msk.bf16.gmra.mxu0 %vm319_vm0, %v5341_v14  ;;  %v5344_v14 = vld [vmem:[%s5427_s30 + $0x80] sm:$0xff]  }
  0xdc   : > { %v6181_v33 = vpop.f32.mrf.mxu1  ;;  %5126 = vmatmul.mubr.msk.bf16.gmra.mxu1 %vm319_vm0, %v5831_v16  ;;  %5163 = vmatprep.mubr.msk.bf16.mxu0 %vm319_vm0, %v5342_v59  ;;  %v5343_v16 = vld [vmem:[%s5427_s30 + $0x78] sm:$0xff]   ;;  %v6213_v5 = vpop.permute.xlu0 %1604 }
  0xdd   : > { %7247 = vst [vmem:[#allocation31_spill] sm:$0xff] %v6181_v33  ;;  %v6186_v36 = vpop.f32.mrf.mxu0  ;;  %5129 = vmatprep.mubr.msk.bf16.mxu1 %vm319_vm0, %v5863_v37  ;;  %v4695_v37 = vcombine.low %v3899_v3, %v3402_v46  ;;  %v6208_v59 = vpop.permute.xlu1 %1599  ;;  %7254 = vst [vmem:[#allocation38_spill] sm:$0xff] %v6213_v5  ;;  %v5349_v46 = vld [vmem:[%s5427_s30 + $0x20] sm:$0xff]   ;;  %v3907_v3 = vrot.slane %v6195_v4, 1 }
  0xde   : > { %v6192_v56 = vpop.f32.mrf.mxu1  ;;  %7252 = vst [vmem:[#allocation36_spill] sm:$0xff] %v6208_v59  ;;  %v3536_v1 = vshll.u32 %v5349_v46, 16 }
  0xdf   : > { %7249 = vst [vmem:[#allocation33_spill] sm:$0xff] %v6192_v56  ;;  %v6200_v55 = vpop.f32.mrf.mxu0  ;;  %v3906_v40 = vrot.slane %v4695_v37, 1  ;;  %v3532_v37 = vshrl.u32 %v6195_v4, 16 }
  0xe0   : > { %v6203_v58 = vpop.f32.mrf.mxu1  ;;  %v3538_v4 = vrot.slane %v3536_v1, 1 }
  0xe1   : > { %7251 = vst [vmem:[#allocation35_spill] sm:$0xff] %v6203_v58  ;;  %v6206_v20 = vpop.f32.mrf.mxu0  ;;  %v6229_v25 = vpop.permute.xlu1 %1609  ;;  %v3908_v56 = vsel %vm1291_vm1, %v3906_v40, %v3907_v3  ;;  %v3909_v40 = vrot.slane %v5349_v46, 1 }
  0xe2   : > { %v6210_v62 = vpop.f32.mrf.mxu1  ;;  %7256 = vst [vmem:[#allocation40_spill] sm:$0xff] %v6229_v25  ;;  %v6239_v58 = vpop.permute.xlu0 %1614 }
  0xe3   : > { %7253 = vst [vmem:[#allocation37_spill] sm:$0xff] %v6210_v62  ;;  %v6215_v17 = vpop.f32.mrf.mxu0  ;;  %5164 = vmatmul.mubr.msk.bf16.gmra.mxu0 %vm319_vm0, %v5343_v16  ;;  %v3526_v16 = vor.u32 %v3525_v28, %v3521_v12  ;;  %v6234_v62 = vld [vmem:[%s5427_s30 + $0x28] sm:$0xff]   ;;  %7258 = vst [vmem:[#allocation42_spill] sm:$0xff] %v6239_v58 }
  0xe4   : > { %v6218_v61 = vpop.f32.mrf.mxu1  ;;  %5130 = vmatmul.mubr.msk.bf16.gmra.mxu1 %vm319_vm0, %v5897_v0  ;;  %5167 = vmatprep.mubr.msk.bf16.mxu0 %vm319_vm0, %v5344_v14  ;;  %v5345_v14 = vld [vmem:[%s5427_s30 + $0x88] sm:$0xff]   ;;  %v3544_v12 = vshll.u32 %v6234_v62, 16 }
  0xe5   : > { %7255 = vst [vmem:[#allocation39_spill] sm:$0xff] %v6218_v61  ;;  %v6224_v23 = vpop.f32.mrf.mxu0  ;;  %5133 = vmatprep.mubr.msk.bf16.mxu1 %vm319_vm0, %v5900_v7  ;;  %v3530_v61 = vrot.slane %v3528_v63, 1  ;;  %v3540_v63 = vshrl.u32 %v5349_v46, 16 }
  0xe6   : > { %v6231_v50 = vpop.f32.mrf.mxu1  ;;  %v6266_v15 = vpop.permute.xlu0 %1624  ;;  %v3546_v42 = vrot.slane %v3544_v12, 1 }
  0xe7   : > { %7257 = vst [vmem:[#allocation41_spill] sm:$0xff] %v6231_v50  ;;  %v6236_v0 = vpop.f32.mrf.mxu0  ;;  %v3531_v28 = vsel %vm904_vm2, %v3526_v16, %v3530_v61  ;;  %v5351_v16 = vld [vmem:[%s5427_s30 + $0x30] sm:$0xff]   ;;  %v3534_v19 = vor.u32 %v3532_v37, %v3530_v61  ;;  %7263 = vst [vmem:[#allocation47_spill] sm:$0xff] %v6266_v15  ;;  %v3548_v61 = vshrl.u32 %v6234_v62, 16 }
  0xe8   : > { %v6241_v43 = vpop.f32.mrf.mxu1  ;;  %v3552_v46 = vshll.u32 %v5351_v16, 16  ;;  %v3556_v18 = vshrl.u32 %v5351_v16, 16  ;;  %v3913_v21 = vrot.slane %v5351_v16, 1  ;;  %v3915_v16 = vrot.slane %v6271_v54, 1 }
  0xe9   : > { %7259 = vst [vmem:[#allocation43_spill] sm:$0xff] %v6241_v43  ;;  %v6243_v7 = vpop.f32.mrf.mxu0  ;;  %v6254_v43 = vpop.permute.xlu1 %1619 }
  0xea   : > { %v6247_v50 = vpop.f32.mrf.mxu1  ;;  %7261 = vst [vmem:[#allocation45_spill] sm:$0xff] %v6254_v43 }
  0xeb   : > { %7260 = vst [vmem:[#allocation44_spill] sm:$0xff] %v6247_v50  ;;  %v6251_v33 = vpop.f32.mrf.mxu0  ;;  %5168 = vmatmul.mubr.msk.bf16.gmra.mxu0 %vm319_vm0, %v5345_v14  ;;  %v3911_v14 = vrot.slane %v6234_v62, 1  ;;  %v723_v62 = vmul.f32 %v6144_v29, %v6015_v44  ;;  %v721_v29 = vmul.f32 %v6000_v32, %v6152_v49 }
  0xec   : > { %v6256_v53 = vpop.f32.mrf.mxu1  ;;  %5134 = vmatmul.mubr.msk.bf16.gmra.mxu1 %vm319_vm0, %v5910_v8  ;;  %5207 = vmatprep.mubr.msk.bf16.mxu0 %vm319_vm0, %v3908_v56  ;;  %v3910_v56 = vsel %vm1291_vm1, %v3907_v3, %v3909_v40 }
  0xed   : > { %7262 = vst [vmem:[#allocation46_spill] sm:$0xff] %v6256_v53  ;;  %v6262_v50 = vpop.f32.mrf.mxu0  ;;  %5173 = vmatprep.mubr.msk.bf16.mxu1 %vm319_vm0, %v3531_v28  ;;  %v3542_v53 = vor.u32 %v3540_v63, %v3538_v4  ;;  %v3539_v28 = vsel %vm904_vm2, %v3534_v19, %v3538_v4  ;;  %v3912_v24 = vsel %vm1291_vm1, %v3909_v40, %v3911_v14  ;;  %v6292_v19 = vpop.permute.xlu0 %1634 }
  0xee   : > { %v6268_v31 = vpop.f32.mrf.mxu1  ;;  %7269 = vst [vmem:[#allocation53_spill] sm:$0xff] %v6292_v19 }
  0xef   : > { %7264 = vst [vmem:[#allocation48_spill] sm:$0xff] %v6268_v31  ;;  %v6273_v8 = vpop.f32.mrf.mxu0  ;;  %v6283_v31 = vpop.permute.xlu1 %1629  ;;  %v3547_v12 = vsel %vm904_vm2, %v3542_v53, %v3546_v42  ;;  %v3554_v53 = vrot.slane %v3552_v46, 1 }
  0xf0   : > { %v6275_v1 = vpop.f32.mrf.mxu1  ;;  %7267 = vst [vmem:[#allocation51_spill] sm:$0xff] %v6283_v31 }
  0xf1   : > { %7265 = vst [vmem:[#allocation49_spill] sm:$0xff] %v6275_v1  ;;  %v6279_v37 = vpop.f32.mrf.mxu0  ;;  %v3560_v1 = vshll.u32 %v6271_v54, 16 }
  0xf2   : > { %7266 = vst [vmem:[#allocation50_spill] sm:$0xff] %v6279_v37  ;;  %v6285_v63 = vpop.f32.mrf.mxu1 }
  0xf3   : > { %7268 = vst [vmem:[#allocation52_spill] sm:$0xff] %v6285_v63  ;;  %v5005_v3 = vpop.f32.mrf.mxu0  ;;  %5208 = vmatmul.mubr.msk.bf16.vlgmr.msra.gmra.mxu0 %vm319_vm0, %v3910_v56  ;;  %v3550_v63 = vor.u32 %v3548_v61, %v3546_v42  ;;  %v6306_v42 = vld [vmem:[%s5427_s30 + $0x48] sm:$0xff]  }
  0xf4   : > { %v4971_v4 = vpop.f32.mrf.mxu1  ;;  %v1734_v40 = vmul.f32 %v5005_v3, %v6176_v6  ;;  %5174 = vmatmul.mubr.msk.bf16.vlgmr.msra.gmra.mxu1 %vm319_vm0, %v3539_v28  ;;  %5211 = vmatprep.mubr.msk.bf16.mxu0 %vm319_vm0, %v3912_v24  ;;  %v3558_v6 = vor.u32 %v3556_v18, %v3554_v53  ;;  %v3562_v28 = vrot.slane %v3560_v1, 1  ;;  %v724_v24 = vmul.f32 %v6162_v51, %v6031_v2 }
  0xf5   : > { %v1254_v44 = vadd.f32 %v4971_v4, %v723_v62  ;;  %v1413_v56 = vpop.f32.mrf.mxu0  ;;  %5177 = vmatprep.mubr.msk.bf16.mxu1 %vm319_vm0, %v3547_v12  ;;  %v3914_v62 = vsel %vm1291_vm1, %v3911_v14, %v3913_v21  ;;  %v6313_v4 = vpop.permute.xlu1 %1639  ;;  %v3564_v18 = vshrl.u32 %v6271_v54, 16  ;;  %v3568_v1 = vshll.u32 %v6298_v34, 16 }
  0xf6   : > { %v1125_v37 = vpop.f32.mrf.mxu1  ;;  %v1732_v3 = vmul.f32 %v6160_v13, %v1413_v56  ;;  %7270 = vst [vmem:[#allocation54_spill] sm:$0xff] %v6313_v4  ;;  %v3555_v56 = vsel %vm904_vm2, %v3550_v63, %v3554_v53  ;;  %v722_v51 = vmul.f32 %v6017_v47, %v6170_v9  ;;  %v3916_v14 = vsel %vm1291_vm1, %v3913_v21, %v3915_v16 }
  0xf7   : > { %v6310_v61 = vadd.f32 %v1734_v40, %v1254_v44  ;;  %v1252_v46 = vadd.f32 %v1125_v37, %v721_v29  ;;  %v5006_v49 = vpop.f32.mrf.mxu0  ;;  %v6324_v29 = vpop.permute.xlu0 %1644  ;;  %v3563_v63 = vsel %vm904_vm2, %v3558_v6, %v3562_v28  ;;  %v3572_v54 = vshrl.u32 %v6298_v34, 16 }
  0xf8   : > { %v4972_v12 = vpop.f32.mrf.mxu1  ;;  %v1735_v32 = vmul.f32 %v5006_v49, %v6190_v39  ;;  %7271 = vst [vmem:[#allocation55_spill] sm:$0xff] %v6324_v29  ;;  %v3576_v53 = vshll.u32 %v6306_v42, 16  ;;  %v727_v9 = vmul.f32 %v6178_v26, %v6046_v48  ;;  %v3917_v21 = vrot.slane %v6298_v34, 1  ;;  %v6340_v39 = vld [vmem:[%s5427_s30 + $0x50] sm:$0xff]  }
  0xf9   : > { %v6321_v44 = vadd.f32 %v1732_v3, %v1252_v46  ;;  %v1255_v37 = vadd.f32 %v4972_v12, %v724_v24  ;;  %v1416_v40 = vpop.f32.mrf.mxu0  ;;  %v3566_v6 = vor.u32 %v3564_v18, %v3562_v28  ;;  %v3919_v34 = vrot.slane %v6306_v42, 1 }
  0xfa   : > { %v1128_v13 = vpop.f32.mrf.mxu1  ;;  %v1733_v49 = vmul.f32 %v6172_v22, %v1416_v40  ;;  %v3570_v22 = vrot.slane %v3568_v1, 1  ;;  %v3578_v1 = vrot.slane %v3576_v53, 1  ;;  %v3584_v53 = vshll.u32 %v6340_v39, 16 }
  0xfb   : > { %v6332_v3 = vadd.f32 %v1735_v32, %v1255_v37  ;;  %v1253_v24 = vadd.f32 %v1128_v13, %v722_v51  ;;  %v5009_v46 = vpop.f32.mrf.mxu0  ;;  %5212 = vmatmul.mubr.msk.bf16.gmra.mxu0 %vm319_vm0, %v3914_v62  ;;  %v725_v32 = vmul.f32 %v6035_v10, %v6186_v36  ;;  %v6348_v51 = vpop.permute.xlu1 %1649  ;;  %v6352_v37 = vld [vmem:[%s5427_s30 + $0x58] sm:$0xff]   ;;  %v728_v36 = vmul.f32 %v6200_v55, %v6052_v35 }
  0xfc   : > { %v4975_v12 = vpop.f32.mrf.mxu1  ;;  %v1738_v40 = vmul.f32 %v5009_v46, %v6213_v5  ;;  %5178 = vmatmul.mubr.msk.bf16.gmra.mxu1 %vm319_vm0, %v3555_v56  ;;  %5215 = vmatprep.mubr.msk.bf16.mxu0 %vm319_vm0, %v3916_v14  ;;  %7272 = vst [vmem:[#allocation56_spill] sm:$0xff] %v6348_v51  ;;  %v3574_v18 = vor.u32 %v3572_v54, %v3570_v22  ;;  %v3580_v54 = vshrl.u32 %v6306_v42, 16  ;;  %v3592_v42 = vshll.u32 %v6352_v37, 16 }
  0xfd   : > { %v6344_v13 = vadd.f32 %v1733_v49, %v1253_v24  ;;  %v1258_v26 = vadd.f32 %v4975_v12, %v727_v9  ;;  %v1429_v62 = vpop.f32.mrf.mxu0  ;;  %5181 = vmatprep.mubr.msk.bf16.mxu1 %vm319_vm0, %v3563_v63  ;;  %v3918_v63 = vsel %vm1291_vm1, %v3915_v16, %v3917_v21  ;;  %v6359_v24 = vpop.permute.xlu0 %1654  ;;  %v726_v55 = vmul.f32 %v6044_v11, %v6206_v20 }
  0xfe   : > { %v1141_v56 = vpop.f32.mrf.mxu1  ;;  %v1736_v28 = vmul.f32 %v6198_v52, %v1429_v62  ;;  %7273 = vst [vmem:[#allocation57_spill] sm:$0xff] %v6359_v24  ;;  %v3571_v62 = vsel %vm904_vm2, %v3566_v6, %v3570_v22  ;;  %v3920_v16 = vsel %vm1291_vm1, %v3917_v21, %v3919_v34  ;;  %v3588_v22 = vshrl.u32 %v6340_v39, 16 }
  0xff   : > { %v6356_v14 = vadd.f32 %v1738_v40, %v1258_v26  ;;  %v1256_v49 = vadd.f32 %v1141_v56, %v725_v32  ;;  %v5010_v9 = vpop.f32.mrf.mxu0  ;;  %v731_v6 = vmul.f32 %v6215_v17, %v6061_v27  ;;  %v3921_v21 = vrot.slane %v6340_v39, 1 }
 0x100   : > { %v4976_v46 = vpop.f32.mrf.mxu1  ;;  %v1739_v12 = vmul.f32 %v5010_v9, %v6229_v25  ;;  %v3579_v9 = vsel %vm904_vm2, %v3574_v18, %v3578_v1  ;;  %v3586_v17 = vrot.slane %v3584_v53, 1  ;;  %v3594_v53 = vrot.slane %v3592_v42, 1 }
 0x101   : > { %v6367_v40 = vadd.f32 %v1736_v28, %v1256_v49  ;;  %v1259_v32 = vadd.f32 %v4976_v46, %v728_v36  ;;  %v1432_v26 = vpop.f32.mrf.mxu0  ;;  %v6380_v49 = vpop.permute.xlu1 %1659  ;;  %v730_v42 = vmul.f32 %v6059_v45, %v6243_v7 }
 0x102   : > { %v1144_v56 = vpop.f32.mrf.mxu1  ;;  %v1737_v52 = vmul.f32 %v6208_v59, %v1432_v26  ;;  %7274 = vst [vmem:[#allocation58_spill] sm:$0xff] %v6380_v49  ;;  %v3582_v26 = vor.u32 %v3580_v54, %v3578_v1  ;;  %v3590_v54 = vor.u32 %v3588_v22, %v3586_v17 }
 0x103   : > { %v6376_v20 = vadd.f32 %v1739_v12, %v1259_v32  ;;  %v1257_v28 = vadd.f32 %v1144_v56, %v726_v55  ;;  %v5013_v36 = vpop.f32.mrf.mxu0  ;;  %5216 = vmatmul.mubr.msk.bf16.gmra.mxu0 %vm319_vm0, %v3918_v63  ;;  %v6386_v12 = vld [vmem:[%s5427_s30 + $0x60] sm:$0xff]   ;;  %v729_v55 = vmul.f32 %v6054_v41, %v6224_v23  ;;  %v732_v23 = vmul.f32 %v6236_v0, %v6068_v60 }
 0x104   : > { %v4979_v46 = vpop.f32.mrf.mxu1  ;;  %v1742_v18 = vmul.f32 %v5013_v36, %v6266_v15  ;;  %5182 = vmatmul.mubr.msk.bf16.gmra.mxu1 %vm319_vm0, %v3571_v62  ;;  %5219 = vmatprep.mubr.msk.bf16.mxu0 %vm319_vm0, %v3920_v16  ;;  %v6394_v36 = vpop.permute.xlu0 %1664  ;;  %v6398_v16 = vld [vmem:[%s5427_s30 + $0x68] sm:$0xff]   ;;  %v3587_v15 = vsel %vm904_vm2, %v3582_v26, %v3586_v17  ;;  %v3600_v22 = vshll.u32 %v6386_v12, 16  ;;  %v3595_v17 = vsel %vm904_vm2, %v3590_v54, %v3594_v53 }
 0x105   : > { %v6390_v63 = vadd.f32 %v1737_v52, %v1257_v28  ;;  %v1262_v39 = vadd.f32 %v4979_v46, %v731_v6  ;;  %v1445_v32 = vpop.f32.mrf.mxu0  ;;  %5185 = vmatprep.mubr.msk.bf16.mxu1 %vm319_vm0, %v3579_v9  ;;  %7275 = vst [vmem:[#allocation59_spill] sm:$0xff] %v6394_v36  ;;  %v3922_v9 = vsel %vm1291_vm1, %v3919_v34, %v3921_v21  ;;  %v3608_v7 = vshll.u32 %v6398_v16, 16 }
 0x106   : > { %v1157_v62 = vpop.f32.mrf.mxu1  ;;  %v1740_v1 = vmul.f32 %v6239_v58, %v1445_v32  ;;  %v3596_v32 = vshrl.u32 %v6352_v37, 16  ;;  %v7283_v59 = vrot.slane %v6398_v16, 1 }
 0x107   : > { %v6402_v52 = vadd.f32 %v1742_v18, %v1262_v39  ;;  %v1260_v6 = vadd.f32 %v1157_v62, %v729_v55  ;;  %v5014_v28 = vpop.f32.mrf.mxu0  ;;  %v7276_v55 = vrot.slane %v6352_v37, 1  ;;  %v6416_v39 = vpop.permute.xlu1 %1669 }
 0x108   : > { %v4980_v46 = vpop.f32.mrf.mxu1  ;;  %v1743_v56 = vmul.f32 %v5014_v28, %v6283_v31  ;;  %7277 = vst [vmem:[#allocation60_spill] sm:$0xff] %v6416_v39  ;;  %v3604_v28 = vshrl.u32 %v6386_v12, 16  ;;  %v3602_v31 = vrot.slane %v3600_v22, 1  ;;  %v3610_v22 = vrot.slane %v3608_v7, 1 }
 0x109   : > { %v6411_v58 = vadd.f32 %v1740_v1, %v1260_v6  ;;  %v1263_v0 = vadd.f32 %v4980_v46, %v732_v23  ;;  %v1448_v18 = vpop.f32.mrf.mxu0  ;;  %v3924_v34 = vsel %vm1291_vm1, %v3921_v21, %v7276_v55  ;;  %v735_v1 = vmul.f32 %v6251_v33, %v6076_v38  ;;  %v6427_v21 = vpop.permute.xlu0 %1674  ;;  %v6430_v55 = vld [vmem:[%s5427_s30 + $0x70] sm:$0xff]  }
 0x10a   : > { %v1160_v62 = vpop.f32.mrf.mxu1  ;;  %v1741_v26 = vmul.f32 %v6254_v43, %v1448_v18  ;;  %7278 = vst [vmem:[#allocation61_spill] sm:$0xff] %v6427_v21  ;;  %v3598_v43 = vor.u32 %v3596_v32, %v3594_v53  ;;  %v3925_v33 = vrot.slane %v6386_v12, 1  ;;  %v3606_v32 = vor.u32 %v3604_v28, %v3602_v31 }
 0x10b   : > { %v6424_v23 = vadd.f32 %v1743_v56, %v1263_v0  ;;  %v1261_v6 = vadd.f32 %v1160_v62, %v730_v42  ;;  %v5017_v46 = vpop.f32.mrf.mxu0  ;;  %5220 = vmatmul.mubr.msk.bf16.gmra.mxu0 %vm319_vm0, %v3922_v9  ;;  %v6437_v56 = vld [vmem:[%s5427_s30 + $0x78] sm:$0xff]   ;;  %v733_v9 = vmul.f32 %v6070_v30, %v6262_v50  ;;  %v3612_v12 = vshrl.u32 %v6398_v16, 16 }
 0x10c   : > { %v4983_v18 = vpop.f32.mrf.mxu1  ;;  %v1746_v54 = vmul.f32 %v5017_v46, %v6324_v29  ;;  %5186 = vmatmul.mubr.msk.bf16.gmra.mxu1 %vm319_vm0, %v3587_v15  ;;  %5223 = vmatprep.mubr.msk.bf16.mxu0 %vm319_vm0, %v3924_v34  ;;  %v736_v34 = vmul.f32 %v6273_v8, %v6085_v57  ;;  %v7280_v28 = vrot.slane %v6352_v37, 1  ;;  %v3624_v46 = vshll.u32 %v6437_v56, 16  ;;  %v7281_v8 = vld [vmem:[#allocation50_spill] sm:$0xff] }
 0x10d   : > { %v6441_v42 = vadd.f32 %v1741_v26, %v1261_v6  ;;  %v1266_v0 = vadd.f32 %v4983_v18, %v735_v1  ;;  %v1461_v62 = vpop.f32.mrf.mxu0  ;;  %5189 = vmatprep.mubr.msk.bf16.mxu1 %vm319_vm0, %v3595_v17  ;;  %v6451_v1 = vpop.permute.xlu1 %1679  ;;  %v3616_v17 = vshll.u32 %v6430_v55, 16  ;;  %v3611_v37 = vsel %vm904_vm2, %v3606_v32, %v3610_v22 }
 0x10e   : > { %v1173_v15 = vpop.f32.mrf.mxu1  ;;  %v1744_v53 = vmul.f32 %v6292_v19, %v1461_v62  ;;  %7279 = vst [vmem:[#allocation62_spill] sm:$0xff] %v6451_v1  ;;  %v3603_v62 = vsel %vm904_vm2, %v3598_v43, %v3602_v31  ;;  %v3926_v7 = vsel %vm1291_vm1, %v7280_v28, %v3925_v33  ;;  %v3614_v28 = vor.u32 %v3612_v12, %v3610_v22 }
 0x10f   : > { %v6449_v29 = vadd.f32 %v1746_v54, %v1266_v0  ;;  %v1264_v50 = vadd.f32 %v1173_v15, %v733_v9  ;;  %v5018_v26 = vpop.f32.mrf.mxu0  ;;  %v7282_v54 = vld [vmem:[#allocation5_spill] sm:$0xff]  ;;  %v3620_v25 = vshrl.u32 %v6430_v55, 16  ;;  %v3929_v32 = vrot.slane %v6430_v55, 1 }
 0x110   : > { %v4984_v6 = vpop.f32.mrf.mxu1  ;;  %v1747_v18 = vmul.f32 %v5018_v26, %v6348_v51  ;;  %v734_v0 = vmul.f32 %v7282_v54, %v7281_v8  ;;  %v3928_v26 = vsel %vm1291_vm1, %v3925_v33, %v7283_v59  ;;  %v6467_v51 = vpop.permute.xlu0 %1684  ;;  %v7285_v8 = vld [vmem:[#allocation10_spill] sm:$0xff]  ;;  %v3618_v59 = vrot.slane %v3616_v17, 1 }
 0x111   : > { %v6462_v9 = vadd.f32 %v1744_v53, %v1264_v50  ;;  %v1267_v15 = vadd.f32 %v4984_v6, %v736_v34  ;;  %v1464_v19 = vpop.f32.mrf.mxu0  ;;  %7284 = vst [vmem:[#allocation50_spill] sm:$0xff] %v6467_v51  ;;  %v7286_v53 = vld [vmem:[#allocation23_spill] sm:$0xff]  ;;  %v6478_v33 = vld [vmem:[%s5427_s30 + $0x80] sm:$0xff]   ;;  %v3626_v22 = vrot.slane %v3624_v46, 1  ;;  %v3628_v12 = vshrl.u32 %v6437_v56, 16 }
 0x112   : > { %v1176_v43 = vpop.f32.mrf.mxu1  ;;  %v1745_v31 = vmul.f32 %v6313_v4, %v1464_v19  ;;  %v739_v50 = vmul.f32 %v7286_v53, %v7285_v8  ;;  %v6490_v53 = vpop.permute.xlu1 %1689  ;;  %v3622_v55 = vor.u32 %v3620_v25, %v3618_v59  ;;  %v6495_v46 = vld [vmem:[%s5427_s30 + $0x88] sm:$0xff]   ;;  %v7296_v25 = vrot.slane %v6398_v16, 1 }
 0x113   : > { %v6474_v5 = vadd.f32 %v1747_v18, %v1267_v15  ;;  %v1265_v34 = vadd.f32 %v1176_v43, %v734_v0  ;;  %v5021_v6 = vpop.f32.mrf.mxu0  ;;  %5224 = vmatmul.mubr.msk.bf16.gmra.mxu0 %vm319_vm0, %v3926_v7  ;;  %v7288_v18 = vld [vmem:[#allocation25_spill] sm:$0xff]  ;;  %v7289_v0 = vld [vmem:[#allocation8_spill] sm:$0xff]  ;;  %7291 = vst [vmem:[#allocation63_spill] sm:$0xff] %v6490_v53  ;;  %v7293_v4 = vld [vmem:[#allocation27_spill] sm:$0xff]  ;;  %v3636_v16 = vshrl.u32 %v6478_v33, 16 }
 0x114   : > { %v4987_v54 = vpop.f32.mrf.mxu1  ;;  %v1750_v19 = vmul.f32 %v5021_v6, %v6394_v36  ;;  %5190 = vmatmul.mubr.msk.bf16.gmra.mxu1 %vm319_vm0, %v3603_v62  ;;  %5227 = vmatprep.mubr.msk.bf16.mxu0 %vm319_vm0, %v3928_v26  ;;  %v737_v15 = vmul.f32 %v7289_v0, %v7288_v18  ;;  %v3931_v62 = vrot.slane %v6437_v56, 1  ;;  %v7292_v36 = vld [vmem:[#allocation11_spill] sm:$0xff]  ;;  %v3619_v0 = vsel %vm904_vm2, %v3614_v28, %v3618_v59 }
 0x115   : > { %7287 = vst [vmem:[#allocation23_spill] sm:$0xff] %v6474_v5  ;;  %v6487_v7 = vadd.f32 %v1745_v31, %v1265_v34  ;;  %v1270_v17 = vadd.f32 %v4987_v54, %v739_v50  ;;  %v1477_v43 = vpop.f32.mrf.mxu0  ;;  %5193 = vmatprep.mubr.msk.bf16.mxu1 %vm319_vm0, %v3611_v37  ;;  %v740_v8 = vmul.f32 %v7293_v4, %v7292_v36  ;;  %v6501_v50 = vpop.permute.xlu0 %1694  ;;  %v3632_v37 = vshll.u32 %v6478_v33, 16  ;;  %v7298_v4 = vld [vmem:[#allocation9_spill] sm:$0xff] }
 0x116   : > { %v1189_v6 = vpop.f32.mrf.mxu1  ;;  %v1748_v26 = vmul.f32 %v6359_v24, %v1477_v43  ;;  %7295 = vst [vmem:[#allocation64_spill] sm:$0xff] %v6501_v50  ;;  %v3930_v43 = vsel %vm1291_vm1, %v7296_v25, %v3929_v32  ;;  %v3630_v24 = vor.u32 %v3628_v12, %v3626_v22  ;;  %v3932_v36 = vsel %vm1291_vm1, %v3929_v32, %v3931_v62  ;;  %v7299_v12 = vld [vmem:[#allocation14_spill] sm:$0xff]  ;;  %v6523_v32 = vpop.permute.xlu1 %1699 }
 0x117   : > { %7290 = vst [vmem:[#allocation25_spill] sm:$0xff] %v6487_v7  ;;  %v6499_v18 = vadd.f32 %v1750_v19, %v1270_v17  ;;  %v1268_v31 = vadd.f32 %v1189_v6, %v737_v15  ;;  %v5022_v54 = vpop.f32.mrf.mxu0  ;;  %v7297_v7 = vld [vmem:[#allocation29_spill] sm:$0xff]  ;;  %v3627_v28 = vsel %vm904_vm2, %v3622_v55, %v3626_v22  ;;  %v3640_v59 = vshll.u32 %v6495_v46, 16  ;;  %v5363_v55 = vld [vmem:[%s5427_s30 + $0x90] ss:$0 sps:$4 sm:$0x11]  }
 0x118   : > { %v4988_v34 = vpop.f32.mrf.mxu1  ;;  %v1751_v56 = vmul.f32 %v5022_v54, %v6416_v39  ;;  %v738_v19 = vmul.f32 %v7298_v4, %v7297_v7  ;;  %v7300_v54 = vld [vmem:[#allocation31_spill] sm:$0xff]  ;;  %7301 = vst [vmem:[#allocation29_spill] sm:$0xff] %v6523_v32  ;;  %v3933_v22 = vrot.slane %v6478_v33, 1  ;;  %s4747_s30 = sshll.u32 %s7522_s16, 7 }
 0x119   : > { %7294 = vst [vmem:[#allocation27_spill] sm:$0xff] %v6499_v18  ;;  %v6511_v17 = vadd.f32 %v1748_v26, %v1268_v31  ;;  %v1271_v15 = vadd.f32 %v4988_v34, %v740_v8  ;;  %v1480_v6 = vpop.f32.mrf.mxu0  ;;  %v743_v25 = vmul.f32 %v7300_v54, %v7299_v12  ;;  %v3634_v31 = vrot.slane %v3632_v37, 1  ;;  %v7302_v54 = vld [vmem:[#allocation33_spill] sm:$0xff]  ;;  %v6535_v37 = vpop.permute.xlu0 %1704  ;;  %v7306_v33 = vld [vmem:[#allocation15_spill] sm:$0xff]  ;;  %s6893_s29 = scalar_lea.vmem %s7126_s4, %s4747_s30 }
 0x11a   : > { %v1192_v18 = vpop.f32.mrf.mxu1  ;;  %v1749_v5 = vmul.f32 %v6380_v49, %v1480_v6  ;;  %7305 = vst [vmem:[#allocation33_spill] sm:$0xff] %v6535_v37  ;;  %v3642_v49 = vrot.slane %v3640_v59, 1  ;;  %v7307_v39 = vld [vmem:[#allocation35_spill] sm:$0xff] }
 0x11b   : > { %v6520_v7 = vadd.f32 %v1751_v56, %v1271_v15  ;;  %v1269_v26 = vadd.f32 %v1192_v18, %v738_v19  ;;  %v5025_v8 = vpop.f32.mrf.mxu0  ;;  %5228 = vmatmul.mubr.msk.bf16.gmra.mxu0 %vm319_vm0, %v3930_v43  ;;  %v7303_v56 = vld [vmem:[#allocation12_spill] sm:$0xff]  ;;  %v744_v12 = vmul.f32 %v7307_v39, %v7306_v33 }
 0x11c   : > { %v4991_v34 = vpop.f32.mrf.mxu1  ;;  %v1754_v6 = vmul.f32 %v5025_v8, %v6467_v51  ;;  %5194 = vmatmul.mubr.msk.bf16.gmra.mxu1 %vm319_vm0, %v3619_v0  ;;  %5231 = vmatprep.mubr.msk.bf16.mxu0 %vm319_vm0, %v3932_v36  ;;  %v741_v15 = vmul.f32 %v7303_v56, %v7302_v54  ;;  %v3935_v8 = vrot.slane %v6495_v46, 1  ;;  %v3638_v36 = vor.u32 %v3636_v16, %v3634_v31  ;;  %v7309_v16 = vld [vmem:[#allocation13_spill] sm:$0xff] }
 0x11d   : > { %v6532_v18 = vadd.f32 %v1749_v5, %v1269_v26  ;;  %v1274_v19 = vadd.f32 %v4991_v34, %v743_v25  ;;  %v1493_v43 = vpop.f32.mrf.mxu0  ;;  %5197 = vmatprep.mubr.msk.bf16.mxu1 %vm319_vm0, %v3627_v28  ;;  %v3635_v25 = vsel %vm904_vm2, %v3630_v24, %v3634_v31  ;;  %v3934_v54 = vsel %vm1291_vm1, %v3931_v62, %v3933_v22  ;;  %v7311_v62 = vld [vmem:[#allocation18_spill] sm:$0xff] }
 0x11e   : > { %v1205_v51 = vpop.f32.mrf.mxu1  ;;  %v1752_v0 = vmul.f32 %v6427_v21, %v1493_v43  ;;  %v3644_v56 = vshrl.u32 %v6495_v46, 16  ;;  %v7308_v43 = vld [vmem:[#allocation37_spill] sm:$0xff] }
 0x11f   : > { %7304 = vst [vmem:[#allocation31_spill] sm:$0xff] %v6532_v18  ;;  %v6541_v4 = vadd.f32 %v1754_v6, %v1274_v19  ;;  %v1272_v5 = vadd.f32 %v1205_v51, %v741_v15  ;;  %v5026_v26 = vpop.f32.mrf.mxu0  ;;  %v3648_v18 = vshll.u32 %v5363_v55, 16  ;;  %v742_v59 = vmul.f32 %v7309_v16, %v7308_v43  ;;  %v6551_v19 = vpop.permute.xlu1 %1709 }
 0x120   : > { %v4992_v34 = vpop.f32.mrf.mxu1  ;;  %v1755_v28 = vmul.f32 %v5026_v26, %v6490_v53  ;;  %7310 = vst [vmem:[#allocation35_spill] sm:$0xff] %v6551_v19  ;;  %v3936_v51 = vsel %vm1291_vm1, %v3933_v22, %v3935_v8  ;;  %v3643_v15 = vsel %vm904_vm2, %v3638_v36, %v3642_v49  ;;  %v7312_v26 = vld [vmem:[#allocation39_spill] sm:$0xff]  ;;  %v3646_v22 = vor.u32 %v3644_v56, %v3642_v49 }
 0x121   : > { %v6549_v21 = vadd.f32 %v1752_v0, %v1272_v5  ;;  %v1275_v39 = vadd.f32 %v4992_v34, %v744_v12  ;;  %v1496_v6 = vpop.f32.mrf.mxu0  ;;  %v747_v46 = vmul.f32 %v7312_v26, %v7311_v62  ;;  %v6561_v12 = vpop.permute.xlu0 %1714  ;;  %v3937_v36 = vrot.slane %v5363_v55, 1  ;;  %v7314_v34 = vld [vmem:[#allocation41_spill] sm:$0xff] }
 0x122   : > { %v1208_v24 = vpop.f32.mrf.mxu1  ;;  %v1753_v31 = vmul.f32 %v6451_v1, %v1496_v6  ;;  %7313 = vst [vmem:[#allocation37_spill] sm:$0xff] %v6561_v12  ;;  %v7315_v6 = vld [vmem:[#allocation16_spill] sm:$0xff] }
 0x123   : > { %v6558_v53 = vadd.f32 %v1755_v28, %v1275_v39  ;;  %v1273_v33 = vadd.f32 %v1208_v24, %v742_v59  ;;  %v5029_v43 = vpop.f32.mrf.mxu0  ;;  %5232 = vmatmul.mubr.msk.bf16.gmra.mxu0 %vm319_vm0, %v3934_v54  ;;  %v745_v26 = vmul.f32 %v7315_v6, %v7314_v34  ;;  %v3650_v54 = vrot.slane %v3648_v18, 1 }
 0x124   : > { %v4995_v0 = vpop.f32.mrf.mxu1  ;;  %v1758_v5 = vmul.f32 %v5029_v43, %v6535_v37  ;;  %5198 = vmatmul.mubr.msk.bf16.gmra.mxu1 %vm319_vm0, %v3635_v25  ;;  %5235 = vmatprep.mubr.msk.bf16.mxu0 %vm319_vm0, %v3936_v51  ;;  %v7316_v43 = vld [vmem:[#allocation19_spill] sm:$0xff]  ;;  %v6576_v51 = vpop.permute.xlu1 %1719 }
 0x125   : > { %v6568_v28 = vadd.f32 %v1753_v31, %v1273_v33  ;;  %v1278_v59 = vadd.f32 %v4995_v0, %v747_v46  ;;  %v1509_v39 = vpop.f32.mrf.mxu0  ;;  %5201 = vmatprep.mubr.msk.bf16.mxu1 %vm319_vm0, %v3643_v15  ;;  %v7317_v37 = vld [vmem:[#allocation43_spill] sm:$0xff]  ;;  %7318 = vst [vmem:[#allocation39_spill] sm:$0xff] %v6576_v51  ;;  %v3938_v31 = vsel %vm1291_vm1, %v3935_v8, %v3937_v36  ;;  %v7319_v46 = vld [vmem:[#allocation44_spill] sm:$0xff]  ;;  %v7320_v15 = vld [vmem:[#allocation17_spill] sm:$0xff]  ;;  %v6584_v6 = vpop.permute.xlu0 %1724 }
 0x126   : > { %v1221_v24 = vpop.f32.mrf.mxu1  ;;  %v1756_v1 = vmul.f32 %v6501_v50, %v1509_v39  ;;  %v748_v25 = vmul.f32 %v7317_v37, %v7316_v43  ;;  %v746_v18 = vmul.f32 %v7320_v15, %v7319_v46  ;;  %7321 = vst [vmem:[#allocation41_spill] sm:$0xff] %v6584_v6  ;;  %v3651_v37 = vsel %vm904_vm2, %v3646_v22, %v3650_v54 }
 0x127   : > { %v6574_v49 = vadd.f32 %v1758_v5, %v1278_v59  ;;  %v1276_v56 = vadd.f32 %v1221_v24, %v745_v26  ;;  %v5030_v55 = vpop.f32.mrf.mxu0  ;;  %v7322_v59 = vld [vmem:[#allocation22_spill] sm:$0xff] }
 0x128   : > { %v4996_v34 = vpop.f32.mrf.mxu1  ;;  %v1759_v33 = vmul.f32 %v5030_v55, %v6551_v19  ;;  %v7323_v24 = vld [vmem:[#allocation46_spill] sm:$0xff] }
 0x129   : > { %v6582_v0 = vadd.f32 %v1756_v1, %v1276_v56  ;;  %v1279_v39 = vadd.f32 %v4996_v34, %v748_v25  ;;  %v1512_v50 = vpop.f32.mrf.mxu0  ;;  %v751_v43 = vmul.f32 %v7323_v24, %v7322_v59  ;;  %v7324_v56 = vld [vmem:[#allocation48_spill] sm:$0xff] }
 0x12a   : > { %v1224_v5 = vpop.f32.mrf.mxu1  ;;  %v1757_v26 = vmul.f32 %v6523_v32, %v1512_v50  ;;  %v7325_v34 = vld [vmem:[#allocation20_spill] sm:$0xff]  ;;  %v6599_v32 = vpop.permute.xlu1 %1729 }
 0x12b   : > { %v6590_v55 = vadd.f32 %v1759_v33, %v1279_v39  ;;  %v1277_v8 = vadd.f32 %v1224_v5, %v746_v18  ;;  %v5033_v36 = vpop.f32.mrf.mxu0  ;;  %5236 = vmatmul.mubr.msk.bf16.gmra.mxu0 %vm319_vm0, %v3938_v31  ;;  %v749_v22 = vmul.f32 %v7325_v34, %v7324_v56  ;;  %7326 = vst [vmem:[#allocation43_spill] sm:$0xff] %v6599_v32  ;;  %v7327_v39 = vld [vmem:[#allocation24_spill] sm:$0xff]  ;;  %v7328_v5 = vld [vmem:[#allocation49_spill] sm:$0xff] }
 0x12c   : > { %v4999_v1 = vpop.f32.mrf.mxu1  ;;  %v1762_v25 = vmul.f32 %v5033_v36, %v6584_v6  ;;  %5202 = vmatmul.mubr.msk.bf16.gmra.mxu1 %vm319_vm0, %v3651_v37  ;;  %v752_v31 = vmul.f32 %v7328_v5, %v7327_v39  ;;  %v7329_v56 = vld [vmem:[#allocation52_spill] sm:$0xff] }
 0x12d   : > { %v6597_v54 = vadd.f32 %v1757_v26, %v1277_v8  ;;  %v1282_v50 = vadd.f32 %v4999_v1, %v751_v43  ;;  %v1525_v46 = vpop.f32.mrf.mxu0  ;;  %v7330_v26 = vld [vmem:[#allocation21_spill] sm:$0xff] }
 0x12e   : > { %v1237_v33 = vpop.f32.mrf.mxu1  ;;  %v1760_v18 = vmul.f32 %v6561_v12, %v1525_v46  ;;  %v750_v8 = vmul.f32 %v7330_v26, %v7329_v56 }
 0x12f   : > { %v6604_v24 = vadd.f32 %v1762_v25, %v1282_v50  ;;  %v1280_v36 = vadd.f32 %v1237_v33, %v749_v22  ;;  %v5034_v6 = vpop.f32.mrf.mxu0  ;;  %v7331_v33 = vld [vmem:[#allocation3_spill] sm:$0xff] }
 0x130   : > { %v5000_v37 = vpop.f32.mrf.mxu1  ;;  %v1763_v19 = vmul.f32 %v5034_v6, %v6599_v32 }
 0x131   : > { %v6609_v43 = vadd.f32 %v1760_v18, %v1280_v36  ;;  %v1283_v1 = vadd.f32 %v5000_v37, %v752_v31  ;;  %v1528_v34 = vpop.f32.mrf.mxu0  ;;  %v7332_v18 = vld [vmem:[#allocation2_spill] sm:$0xff] }
 0x132   : > { %v1240_v59 = vpop.f32.mrf.mxu1  ;;  %v1761_v46 = vmul.f32 %v6576_v51, %v1528_v34 }
 0x133   : > { %v6612_v12 = vadd.f32 %v1763_v19, %v1283_v1  ;;  %v1281_v5 = vadd.f32 %v1240_v59, %v750_v8  ;;  %v5073_v25 = vpop.f32.mrf.mxu0 }
 0x134   : > { %v5039_v50 = vpop.f32.mrf.mxu1 }
 0x135   : > { %v6614_v22 = vadd.f32 %v1761_v46, %v1281_v5  ;;  %v2128_v39 = vmul.f32 %v5039_v50, %v7331_v33  ;;  %v2529_v6 = vpop.f32.mrf.mxu0 }
 0x136   : > { %v1999_v32 = vpop.f32.mrf.mxu1 }
 0x137   : > { %v2160_v56 = vadd.f32 %v2128_v39, %v6310_v61  ;;  %v2126_v36 = vmul.f32 %v1999_v32, %v7332_v18  ;;  %v5074_v31 = vpop.f32.mrf.mxu0 }
 0x138   : > { %v5040_v37 = vpop.f32.mrf.mxu1 }
 0x139   : > { %v6619_v26 = vadd.f32 %v5073_v25, %v2160_v56  ;;  %v2158_v19 = vadd.f32 %v2126_v36, %v6321_v44  ;;  %v2129_v59 = vmul.f32 %v5040_v37, %v6031_v2  ;;  %v2532_v34 = vpop.f32.mrf.mxu0 }
 0x13a   : > { %v2002_v8 = vpop.f32.mrf.mxu1 }
 0x13b   : > { %v6623_v1 = vadd.f32 %v2529_v6, %v2158_v19  ;;  %v2161_v46 = vadd.f32 %v2129_v59, %v6332_v3  ;;  %v2127_v5 = vmul.f32 %v2002_v8, %v6017_v47  ;;  %v5077_v50 = vpop.f32.mrf.mxu0 }
 0x13c   : > { %v5043_v61 = vpop.f32.mrf.mxu1 }
 0x13d   : > { %v6627_v39 = vadd.f32 %v5074_v31, %v2161_v46  ;;  %v2159_v32 = vadd.f32 %v2127_v5, %v6344_v13  ;;  %v2132_v25 = vmul.f32 %v5043_v61, %v6046_v48  ;;  %v2545_v56 = vpop.f32.mrf.mxu0 }
 0x13e   : > { %v2015_v44 = vpop.f32.mrf.mxu1 }
 0x13f   : > { %v6631_v36 = vadd.f32 %v2532_v34, %v2159_v32  ;;  %v2164_v37 = vadd.f32 %v2132_v25, %v6356_v14  ;;  %v2130_v6 = vmul.f32 %v2015_v44, %v6035_v10  ;;  %v5078_v19 = vpop.f32.mrf.mxu0 }
 0x140   : > { %v5044_v3 = vpop.f32.mrf.mxu1 }
 0x141   : > { %v6635_v59 = vadd.f32 %v5077_v50, %v2164_v37  ;;  %v2162_v8 = vadd.f32 %v2130_v6, %v6367_v40  ;;  %v2133_v31 = vmul.f32 %v5044_v3, %v6052_v35  ;;  %v2548_v46 = vpop.f32.mrf.mxu0 }
 0x142   : > { %v2018_v13 = vpop.f32.mrf.mxu1 }
 0x143   : > { %v6639_v5 = vadd.f32 %v2545_v56, %v2162_v8  ;;  %v2165_v61 = vadd.f32 %v2133_v31, %v6376_v20  ;;  %v2131_v34 = vmul.f32 %v2018_v13, %v6044_v11  ;;  %v5081_v32 = vpop.f32.mrf.mxu0 }
 0x144   : > { %v5047_v14 = vpop.f32.mrf.mxu1 }
 0x145   : > { %v6643_v25 = vadd.f32 %v5078_v19, %v2165_v61  ;;  %v2163_v44 = vadd.f32 %v2131_v34, %v6390_v63  ;;  %v2136_v50 = vmul.f32 %v5047_v14, %v6061_v27  ;;  %v2561_v37 = vpop.f32.mrf.mxu0 }
 0x146   : > { %v2031_v40 = vpop.f32.mrf.mxu1 }
 0x147   : > { %v6647_v6 = vadd.f32 %v2548_v46, %v2163_v44  ;;  %v2168_v3 = vadd.f32 %v2136_v50, %v6402_v52  ;;  %v2134_v56 = vmul.f32 %v2031_v40, %v6054_v41  ;;  %v5082_v8 = vpop.f32.mrf.mxu0 }
 0x148   : > { %v5048_v20 = vpop.f32.mrf.mxu1 }
 0x149   : > { %v6651_v31 = vadd.f32 %v5081_v32, %v2168_v3  ;;  %v2166_v13 = vadd.f32 %v2134_v56, %v6411_v58  ;;  %v2137_v19 = vmul.f32 %v5048_v20, %v6068_v60  ;;  %v2564_v61 = vpop.f32.mrf.mxu0 }
 0x14a   : > { %v2034_v63 = vpop.f32.mrf.mxu1 }
 0x14b   : > { %v6655_v34 = vadd.f32 %v2561_v37, %v2166_v13  ;;  %v2169_v14 = vadd.f32 %v2137_v19, %v6424_v23  ;;  %v2135_v46 = vmul.f32 %v2034_v63, %v6059_v45  ;;  %v5085_v44 = vpop.f32.mrf.mxu0 }
 0x14c   : > { %v5051_v52 = vpop.f32.mrf.mxu1 }
 0x14d   : > { %v6659_v50 = vadd.f32 %v5082_v8, %v2169_v14  ;;  %v2167_v40 = vadd.f32 %v2135_v46, %v6441_v42  ;;  %v2140_v32 = vmul.f32 %v5051_v52, %v6076_v38  ;;  %v2577_v3 = vpop.f32.mrf.mxu0  ;;  %v7335_v52 = vld [vmem:[#allocation23_spill] sm:$0xff] }
 0x14e   : > { %v2047_v58 = vpop.f32.mrf.mxu1 }
 0x14f   : > { %v6663_v56 = vadd.f32 %v2564_v61, %v2167_v40  ;;  %v2172_v20 = vadd.f32 %v2140_v32, %v6449_v29  ;;  %v2138_v37 = vmul.f32 %v2047_v58, %v6070_v30  ;;  %v5086_v13 = vpop.f32.mrf.mxu0  ;;  %v7336_v61 = vld [vmem:[#allocation5_spill] sm:$0xff] }
 0x150   : > { %v5052_v23 = vpop.f32.mrf.mxu1  ;;  %v7338_v58 = vld [vmem:[#allocation25_spill] sm:$0xff] }
 0x151   : > { %v6667_v19 = vadd.f32 %v5085_v44, %v2172_v20  ;;  %v2170_v63 = vadd.f32 %v2138_v37, %v6462_v9  ;;  %v2141_v8 = vmul.f32 %v5052_v23, %v6085_v57  ;;  %v2580_v14 = vpop.f32.mrf.mxu0  ;;  %v7339_v44 = vld [vmem:[#allocation10_spill] sm:$0xff]  ;;  %v7341_v23 = vld [vmem:[#allocation27_spill] sm:$0xff] }
 0x152   : > { %v2050_v42 = vpop.f32.mrf.mxu1 }
 0x153   : > { %7333 = vst [vmem:[#allocation44_spill] sm:$0xff] %v6667_v19  ;;  %v6671_v46 = vadd.f32 %v2577_v3, %v2170_v63  ;;  %v2173_v51 = vadd.f32 %v2141_v8, %v7335_v52  ;;  %v2139_v40 = vmul.f32 %v2050_v42, %v7336_v61  ;;  %v5089_v38 = vpop.f32.mrf.mxu0  ;;  %v7342_v3 = vld [vmem:[#allocation8_spill] sm:$0xff] }
 0x154   : > { %v5055_v29 = vpop.f32.mrf.mxu1 }
 0x155   : > { %7334 = vst [vmem:[#allocation46_spill] sm:$0xff] %v6671_v46  ;;  %v6675_v32 = vadd.f32 %v5086_v13, %v2173_v51  ;;  %v2171_v30 = vadd.f32 %v2139_v40, %v7338_v58  ;;  %v2144_v20 = vmul.f32 %v5055_v29, %v7339_v44  ;;  %v2593_v19 = vpop.f32.mrf.mxu0  ;;  %v7344_v51 = vld [vmem:[#allocation11_spill] sm:$0xff] }
 0x156   : > { %v2063_v9 = vpop.f32.mrf.mxu1 }
 0x157   : > { %7337 = vst [vmem:[#allocation48_spill] sm:$0xff] %v6675_v32  ;;  %v6679_v37 = vadd.f32 %v2580_v14, %v2171_v30  ;;  %v2176_v57 = vadd.f32 %v2144_v20, %v7341_v23  ;;  %v2142_v63 = vmul.f32 %v2063_v9, %v7342_v3  ;;  %v5090_v46 = vpop.f32.mrf.mxu0  ;;  %v7346_v30 = vld [vmem:[#allocation9_spill] sm:$0xff]  ;;  %v7348_v9 = vld [vmem:[#allocation31_spill] sm:$0xff] }
 0x158   : > { %v5056_v8 = vpop.f32.mrf.mxu1 }
 0x159   : > { %7340 = vst [vmem:[#allocation49_spill] sm:$0xff] %v6679_v37  ;;  %v6683_v52 = vadd.f32 %v5089_v38, %v2176_v57  ;;  %v2174_v42 = vadd.f32 %v2142_v63, %v6511_v17  ;;  %v2145_v13 = vmul.f32 %v5056_v8, %v7344_v51  ;;  %v2596_v61 = vpop.f32.mrf.mxu0  ;;  %v7349_v38 = vld [vmem:[#allocation14_spill] sm:$0xff] }
 0x15a   : > { %v2066_v40 = vpop.f32.mrf.mxu1 }
 0x15b   : > { %7343 = vst [vmem:[#allocation52_spill] sm:$0xff] %v6683_v52  ;;  %v6687_v58 = vadd.f32 %v2593_v19, %v2174_v42  ;;  %v2177_v29 = vadd.f32 %v2145_v13, %v6520_v7  ;;  %v2143_v14 = vmul.f32 %v2066_v40, %v7346_v30  ;;  %v5093_v44 = vpop.f32.mrf.mxu0  ;;  %v7351_v19 = vld [vmem:[#allocation12_spill] sm:$0xff] }
 0x15c   : > { %v5059_v20 = vpop.f32.mrf.mxu1 }
 0x15d   : > { %7345 = vst [vmem:[#allocation3_spill] sm:$0xff] %v6687_v58  ;;  %v6691_v23 = vadd.f32 %v5090_v46, %v2177_v29  ;;  %v2175_v3 = vadd.f32 %v2143_v14, %v7348_v9  ;;  %v2148_v57 = vmul.f32 %v5059_v20, %v7349_v38  ;;  %v2609_v52 = vpop.f32.mrf.mxu0  ;;  %v7353_v46 = vld [vmem:[#allocation15_spill] sm:$0xff] }
 0x15e   : > { %v2079_v17 = vpop.f32.mrf.mxu1 }
 0x15f   : > { %7347 = vst [vmem:[#allocation2_spill] sm:$0xff] %v6691_v23  ;;  %v6695_v63 = vadd.f32 %v2596_v61, %v2175_v3  ;;  %v2180_v8 = vadd.f32 %v2148_v57, %v6541_v4  ;;  %v2146_v42 = vmul.f32 %v2079_v17, %v7351_v19  ;;  %v5094_v51 = vpop.f32.mrf.mxu0 }
 0x160   : > { %v5060_v7 = vpop.f32.mrf.mxu1 }
 0x161   : > { %7350 = vst [vmem:[#allocation23_spill] sm:$0xff] %v6695_v63  ;;  %v6699_v13 = vadd.f32 %v5093_v44, %v2180_v8  ;;  %v2178_v40 = vadd.f32 %v2146_v42, %v6549_v21  ;;  %v2149_v29 = vmul.f32 %v5060_v7, %v7353_v46  ;;  %v2612_v30 = vpop.f32.mrf.mxu0 }
 0x162   : > { %v2082_v14 = vpop.f32.mrf.mxu1 }
 0x163   : > { %7352 = vst [vmem:[#allocation25_spill] sm:$0xff] %v6699_v13  ;;  %v6703_v9 = vadd.f32 %v2609_v52, %v2178_v40  ;;  %v2181_v20 = vadd.f32 %v2149_v29, %v6558_v53  ;;  %v2147_v61 = vmul.f32 %v2082_v14, %v7309_v16  ;;  %v5097_v3 = vpop.f32.mrf.mxu0  ;;  %v7357_v52 = vld [vmem:[#allocation16_spill] sm:$0xff] }
 0x164   : > { %v5063_v4 = vpop.f32.mrf.mxu1 }
 0x165   : > { %7354 = vst [vmem:[#allocation27_spill] sm:$0xff] %v6703_v9  ;;  %v6707_v57 = vadd.f32 %v5094_v51, %v2181_v20  ;;  %v2179_v17 = vadd.f32 %v2147_v61, %v6568_v28  ;;  %v2152_v44 = vmul.f32 %v5063_v4, %v7311_v62  ;;  %v2625_v8 = vpop.f32.mrf.mxu0  ;;  %v7359_v51 = vld [vmem:[#allocation19_spill] sm:$0xff] }
 0x166   : > { %v2095_v21 = vpop.f32.mrf.mxu1 }
 0x167   : > { %7355 = vst [vmem:[#allocation31_spill] sm:$0xff] %v6707_v57  ;;  %v6711_v42 = vadd.f32 %v2612_v30, %v2179_v17  ;;  %v2184_v7 = vadd.f32 %v2152_v44, %v6574_v49  ;;  %v2150_v40 = vmul.f32 %v2095_v21, %v7357_v52  ;;  %v5098_v46 = vpop.f32.mrf.mxu0 }
 0x168   : > { %v5064_v53 = vpop.f32.mrf.mxu1 }
 0x169   : > { %7356 = vst [vmem:[#allocation65_spill] sm:$0xff] %v6711_v42  ;;  %v6715_v29 = vadd.f32 %v5097_v3, %v2184_v7  ;;  %v2182_v14 = vadd.f32 %v2150_v40, %v6582_v0  ;;  %v2153_v20 = vmul.f32 %v5064_v53, %v7359_v51  ;;  %v2628_v16 = vpop.f32.mrf.mxu0  ;;  %v7362_v3 = vld [vmem:[#allocation22_spill] sm:$0xff] }
 0x16a   : > { %v2098_v28 = vpop.f32.mrf.mxu1 }
 0x16b   : > { %7358 = vst [vmem:[#allocation66_spill] sm:$0xff] %v6715_v29  ;;  %v6719_v61 = vadd.f32 %v2625_v8, %v2182_v14  ;;  %v2185_v4 = vadd.f32 %v2153_v20, %v6590_v55  ;;  %v2151_v30 = vmul.f32 %v2098_v28, %v7320_v15  ;;  %v5101_v17 = vpop.f32.mrf.mxu0  ;;  %v7364_v8 = vld [vmem:[#allocation20_spill] sm:$0xff] }
 0x16c   : > { %v5067_v49 = vpop.f32.mrf.mxu1 }
 0x16d   : > { %7360 = vst [vmem:[#allocation67_spill] sm:$0xff] %v6719_v61  ;;  %v6723_v44 = vadd.f32 %v5098_v46, %v2185_v4  ;;  %v2183_v21 = vadd.f32 %v2151_v30, %v6597_v54  ;;  %v2156_v7 = vmul.f32 %v5067_v49, %v7362_v3  ;;  %v2641_v52 = vpop.f32.mrf.mxu0  ;;  %v7366_v46 = vld [vmem:[#allocation24_spill] sm:$0xff] }
 0x16e   : > { %v2111_v0 = vpop.f32.mrf.mxu1 }
 0x16f   : > { %7361 = vst [vmem:[#allocation68_spill] sm:$0xff] %v6723_v44  ;;  %v6727_v40 = vadd.f32 %v2628_v16, %v2183_v21  ;;  %v2188_v53 = vadd.f32 %v2156_v7, %v6604_v24  ;;  %v2154_v14 = vmul.f32 %v2111_v0, %v7364_v8  ;;  %v5102_v51 = vpop.f32.mrf.mxu0  ;;  %v7368_v16 = vld [vmem:[#allocation21_spill] sm:$0xff] }
 0x170   : > { %v5068_v55 = vpop.f32.mrf.mxu1 }
 0x171   : > { %7363 = vst [vmem:[#allocation69_spill] sm:$0xff] %v6727_v40  ;;  %v6731_v20 = vadd.f32 %v5101_v17, %v2188_v53  ;;  %v2186_v28 = vadd.f32 %v2154_v14, %v6609_v43  ;;  %v2157_v4 = vmul.f32 %v5068_v55, %v7366_v46  ;;  %v2644_v15 = vpop.f32.mrf.mxu0 }
 0x172   : > { %v2114_v54 = vpop.f32.mrf.mxu1 }
 0x173   : > { %7365 = vst [vmem:[#allocation70_spill] sm:$0xff] %v6731_v20  ;;  %v6735_v30 = vadd.f32 %v2641_v52, %v2186_v28  ;;  %v2189_v49 = vadd.f32 %v2157_v4, %v6612_v12  ;;  %v2155_v21 = vmul.f32 %v2114_v54, %v7368_v16  ;;  %v6739_v3 = vpop.f32.mrf.mxu0 }
 0x174   : > { %v5107_v24 = vpop.f32.mrf.mxu1 }
 0x175   : > { %7367 = vst [vmem:[#allocation71_spill] sm:$0xff] %v6735_v30  ;;  %v6741_v7 = vadd.f32 %v5102_v51, %v2189_v49  ;;  %v2187_v17 = vadd.f32 %v2155_v21, %v6614_v22  ;;  %v6744_v0 = vpop.f32.mrf.mxu0 }
 0x176   : > { %v2816_v43 = vpop.f32.mrf.mxu1 }
 0x177   : > { %7369 = vst [vmem:[#allocation72_spill] sm:$0xff] %v6741_v7  ;;  %v6746_v53 = vadd.f32 %v2644_v15, %v2187_v17  ;;  %v6748_v14 = vpop.f32.mrf.mxu0 }
 0x178   : > { %v5108_v52 = vpop.f32.mrf.mxu1 }
 0x179   : > { %7370 = vst [vmem:[#allocation73_spill] sm:$0xff] %v6746_v53  ;;  %v6750_v55 = vpop.f32.mrf.mxu0 }
 0x17a   : > { %v2819_v12 = vpop.f32.mrf.mxu1 }
 0x17b   : > { %v6752_v28 = vpop.f32.mrf.mxu0 }
 0x17c   : > { %v5111_v4 = vpop.f32.mrf.mxu1 }
 0x17d   : > { %v6754_v54 = vpop.f32.mrf.mxu0 }
 0x17e   : > { %v6756_v51 = vpop.f32.mrf.mxu1 }
 0x17f   : > { %v6758_v49 = vpop.f32.mrf.mxu0 }
 0x180   : > { %v6760_v22 = vpop.f32.mrf.mxu1 }
 0x181   : > { %v6762_v21 = vpop.f32.mrf.mxu0 }
 0x182   : > { %v6764_v15 = vpop.f32.mrf.mxu1 }
 0x183   : > { %v6766_v17 = vpop.f32.mrf.mxu0 }
 0x184   : > { %v6768_v16 = vpop.f32.mrf.mxu1 }
 0x185   : > { %v6770_v53 = vpop.f32.mrf.mxu0 }
 0x186   : > { %v6772_v46 = vpop.f32.mrf.mxu1 }
 0x187   : > { %v6774_v7 = vpop.f32.mrf.mxu0 }
 0x188   : > { %v6776_v8 = vpop.f32.mrf.mxu1 }
 0x189   : > { %v6778_v30 = vpop.f32.mrf.mxu0 }
 0x18a   : > { %7371 = vst [vmem:[#allocation74_spill] sm:$0xff] %v6778_v30  ;;  %v6780_v20 = vpop.f32.mrf.mxu1 }
 0x18b   : > { %v6782_v40 = vpop.f32.mrf.mxu0 }
 0x18c   : > { %7372 = vst [vmem:[#allocation75_spill] sm:$0xff] %v6782_v40  ;;  %v6784_v44 = vpop.f32.mrf.mxu1 }
 0x18d   : > { %v6786_v61 = vpop.f32.mrf.mxu0 }
 0x18e   : > { %7373 = vst [vmem:[#allocation76_spill] sm:$0xff] %v6786_v61  ;;  %v6788_v62 = vpop.f32.mrf.mxu1 }
 0x18f   : > { %v6790_v29 = vpop.f32.mrf.mxu0 }
 0x190   : > { %7374 = vst [vmem:[#allocation77_spill] sm:$0xff] %v6790_v29  ;;  %v6792_v42 = vpop.f32.mrf.mxu1 }
 0x191   : > { %7375 = vst [vmem:[#allocation78_spill] sm:$0xff] %v6792_v42  ;;  %v6794_v57 = vpop.f32.mrf.mxu0 }
 0x192   : > { %7376 = vst [vmem:[#allocation79_spill] sm:$0xff] %v6794_v57  ;;  %v6796_v19 = vpop.f32.mrf.mxu1 }
 0x193   : > { %7377 = vst [vmem:[#allocation80_spill] sm:$0xff] %v6796_v19  ;;  %v6798_v9 = vpop.f32.mrf.mxu0 }
 0x194   : > { %7378 = vst [vmem:[#allocation81_spill] sm:$0xff] %v6798_v9  ;;  %v6800_v38 = vpop.f32.mrf.mxu1 }
 0x195   : > { %7379 = vst [vmem:[#allocation82_spill] sm:$0xff] %v6800_v38  ;;  %v6802_v13 = vpop.f32.mrf.mxu0 }
 0x196   : > { %7380 = vst [vmem:[#allocation83_spill] sm:$0xff] %v6802_v13  ;;  %v6804_v63 = vpop.f32.mrf.mxu1 }
 0x197   : > { %7381 = vst [vmem:[#allocation84_spill] sm:$0xff] %v6804_v63  ;;  %v6806_v23 = vpop.f32.mrf.mxu0 }
 0x198   : > { %7382 = vst [vmem:[#allocation85_spill] sm:$0xff] %v6806_v23  ;;  %v6808_v58 = vpop.f32.mrf.mxu1 }
 0x199   : > { %7383 = vst [vmem:[#allocation86_spill] sm:$0xff] %v6808_v58  ;;  %v6810_v37 = vpop.f32.mrf.mxu0 }
 0x19a   : > { %7384 = vst [vmem:[#allocation87_spill] sm:$0xff] %v6810_v37  ;;  %v6812_v29 = vpop.f32.mrf.mxu1 }
 0x19b   : > { %7385 = vst [vmem:[#allocation88_spill] sm:$0xff] %v6812_v29  ;;  %v6814_v32 = vpop.f32.mrf.mxu0 }
 0x19c   : > { %7386 = vst [vmem:[#allocation89_spill] sm:$0xff] %v6814_v32  ;;  %v6816_v57 = vpop.f32.mrf.mxu1 }
 0x19d   : > { %7387 = vst [vmem:[#allocation90_spill] sm:$0xff] %v6816_v57  ;;  %v6818_v61 = vpop.f32.mrf.mxu0 }
 0x19e   : > { %7388 = vst [vmem:[#allocation91_spill] sm:$0xff] %v6818_v61  ;;  %v6820_v9 = vpop.f32.mrf.mxu1 }
 0x19f   : > { %7389 = vst [vmem:[#allocation92_spill] sm:$0xff] %v6820_v9  ;;  %v6822_v38 = vpop.f32.mrf.mxu0 }
 0x1a0   : > { %7390 = vst [vmem:[#allocation93_spill] sm:$0xff] %v6822_v38  ;;  %v6824_v13 = vpop.f32.mrf.mxu1 }
 0x1a1   : > { %7391 = vst [vmem:[#allocation94_spill] sm:$0xff] %v6824_v13  ;;  %v6826_v63 = vpop.f32.mrf.mxu0  ;;  %v7402_v13 = vld [vmem:[#allocation30_spill] sm:$0xff] }
 0x1a2   : > { %7392 = vst [vmem:[#allocation95_spill] sm:$0xff] %v6826_v63  ;;  %v6828_v23 = vpop.f32.mrf.mxu1  ;;  %v2945_v63 = vmul.f32 %v5107_v24, %v7402_v13  ;;  %v3339_v24 = vmul.f32 %v6739_v3, %v7331_v33 }
 0x1a3   : > { %7393 = vst [vmem:[#allocation96_spill] sm:$0xff] %v6828_v23  ;;  %v6830_v58 = vpop.f32.mrf.mxu0 }
 0x1a4   : > { %7394 = vst [vmem:[#allocation97_spill] sm:$0xff] %v6830_v58  ;;  %v6832_v37 = vpop.f32.mrf.mxu1  ;;  %v7405_v58 = vld [vmem:[#allocation26_spill] sm:$0xff] }
 0x1a5   : > { %7395 = vst [vmem:[#allocation98_spill] sm:$0xff] %v6832_v37  ;;  %v6834_v29 = vpop.f32.mrf.mxu0  ;;  %v2943_v37 = vmul.f32 %v2816_v43, %v7405_v58 }
 0x1a6   : > { %7396 = vst [vmem:[#allocation99_spill] sm:$0xff] %v6834_v29  ;;  %v6836_v32 = vpop.f32.mrf.mxu1 }
 0x1a7   : > { %7397 = vst [vmem:[#allocation100_spill] sm:$0xff] %v6836_v32  ;;  %v6838_v57 = vpop.f32.mrf.mxu0  ;;  %v7408_v32 = vld [vmem:[#allocation32_spill] sm:$0xff]  ;;  %v2975_v43 = vadd.f32 %v2943_v37, %v6623_v1  ;;  %v3340_v37 = vmul.f32 %v6748_v14, %v6031_v2  ;;  %v3343_v14 = vmul.f32 %v6752_v28, %v6046_v48  ;;  %v3341_v48 = vmul.f32 %v6754_v54, %v6035_v10  ;;  %v7419_v10 = vld [vmem:[#allocation42_spill] sm:$0xff] }
 0x1a8   : > { %7398 = vst [vmem:[#allocation101_spill] sm:$0xff] %v6838_v57  ;;  %v6840_v61 = vpop.f32.mrf.mxu1  ;;  %v2977_v57 = vadd.f32 %v2945_v63, %v6619_v26  ;;  %v3337_v26 = vmul.f32 %v6744_v0, %v7332_v18  ;;  %v3338_v18 = vmul.f32 %v6750_v55, %v6017_v47 }
 0x1a9   : > { %7399 = vst [vmem:[#allocation102_spill] sm:$0xff] %v6840_v61  ;;  %v6842_v9 = vpop.f32.mrf.mxu0  ;;  %v2946_v61 = vmul.f32 %v5108_v52, %v7408_v32 }
 0x1aa   : > { %7400 = vst [vmem:[#allocation103_spill] sm:$0xff] %v6842_v9  ;;  %v6844_v38 = vpop.f32.mrf.mxu1  ;;  %v7410_v9 = vld [vmem:[#allocation28_spill] sm:$0xff]  ;;  %v3371_v52 = vadd.f32 %v3339_v24, %v2977_v57 }
 0x1ab   : > { %7401 = vst [vmem:[#allocation104_spill] sm:$0xff] %v6844_v38  ;;  %v6847_v19 = vpop.f32.mrf.mxu0  ;;  %v2944_v38 = vmul.f32 %v2819_v12, %v7410_v9  ;;  %v2978_v63 = vadd.f32 %v2946_v61, %v6627_v39  ;;  %v7416_v57 = vld [vmem:[#allocation40_spill] sm:$0xff] }
 0x1ac   : > { %7403 = vst [vmem:[#allocation30_spill] sm:$0xff] %v6847_v19  ;;  %v6849_v23 = vpop.f32.mrf.mxu1  ;;  %v2950_v61 = vmul.f32 %v6760_v22, %v7416_v57 }
 0x1ad   : > { %7404 = vst [vmem:[#allocation105_spill] sm:$0xff] %v6849_v23  ;;  %v6852_v40 = vpop.f32.mrf.mxu0 }
 0x1ae   : > { %7406 = vst [vmem:[#allocation26_spill] sm:$0xff] %v6852_v40  ;;  %v6854_v29 = vpop.f32.mrf.mxu1  ;;  %v7413_v40 = vld [vmem:[#allocation38_spill] sm:$0xff] }
 0x1af   : > { %7407 = vst [vmem:[#allocation106_spill] sm:$0xff] %v6854_v29  ;;  %v6858_v42 = vpop.f32.mrf.mxu0  ;;  %v2949_v29 = vmul.f32 %v5111_v4, %v7413_v40 }
 0x1b0   : > { %7409 = vst [vmem:[#allocation32_spill] sm:$0xff] %v6858_v42  ;;  %v6861_v30 = vpop.f32.mrf.mxu1  ;;  %v2976_v42 = vadd.f32 %v2944_v38, %v6631_v36 }
 0x1b1   : > { %7411 = vst [vmem:[#allocation28_spill] sm:$0xff] %v6861_v30  ;;  %v6866_v19 = vpop.f32.mrf.mxu0  ;;  %v7415_v30 = vld [vmem:[#allocation34_spill] sm:$0xff]  ;;  %v2981_v39 = vadd.f32 %v2949_v29, %v6635_v59 }
 0x1b2   : > { %7412 = vst [vmem:[#allocation107_spill] sm:$0xff] %v6866_v19  ;;  %v6869_v23 = vpop.f32.mrf.mxu1  ;;  %v2947_v33 = vmul.f32 %v6756_v51, %v7415_v30  ;;  %v3369_v19 = vadd.f32 %v3337_v26, %v2975_v43  ;;  %v3372_v51 = vadd.f32 %v3340_v37, %v2978_v63 }
 0x1b3   : > { %7414 = vst [vmem:[#allocation38_spill] sm:$0xff] %v6869_v23  ;;  %v5209_v12 = vpop.f32.mrf.mxu0 }
 0x1b4   : > { %v5175_v3 = vpop.f32.mrf.mxu1  ;;  %v4156_v1 = vmul.f32 %v5209_v12, %v7402_v13  ;;  %v2979_v24 = vadd.f32 %v2947_v33, %v6639_v5  ;;  %v7418_v5 = vld [vmem:[#allocation47_spill] sm:$0xff] }
 0x1b5   : > { %v3869_v4 = vadd.f32 %v5175_v3, %v3371_v52  ;;  %v4027_v23 = vpop.f32.mrf.mxu0  ;;  %v2953_v28 = vmul.f32 %v6768_v16, %v7418_v5  ;;  %v3375_v52 = vadd.f32 %v3343_v14, %v2981_v39  ;;  %v3344_v3 = vmul.f32 %v6758_v49, %v6052_v35  ;;  %v7420_v49 = vld [vmem:[#allocation51_spill] sm:$0xff] }
 0x1b6   : > { %v3740_v36 = vpop.f32.mrf.mxu1  ;;  %v4154_v38 = vmul.f32 %v4027_v23, %v7405_v58  ;;  %v3370_v58 = vadd.f32 %v3338_v18, %v2976_v42  ;;  %v7417_v23 = vld [vmem:[#allocation36_spill] sm:$0xff]  ;;  %v2951_v16 = vmul.f32 %v6772_v46, %v7419_v10  ;;  %v2954_v46 = vmul.f32 %v6776_v8, %v7420_v49 }
 0x1b7   : > { %v4188_v13 = vadd.f32 %v4156_v1, %v3869_v4  ;;  %v3867_v0 = vadd.f32 %v3740_v36, %v3369_v19  ;;  %v5210_v2 = vpop.f32.mrf.mxu0  ;;  %v2948_v19 = vmul.f32 %v6764_v15, %v7417_v23  ;;  %v3342_v36 = vmul.f32 %v6762_v21, %v6044_v11  ;;  %v7421_v21 = vld [vmem:[#allocation45_spill] sm:$0xff] }
 0x1b8   : > { %v5176_v47 = vpop.f32.mrf.mxu1  ;;  %v4157_v59 = vmul.f32 %v5210_v2, %v7408_v32  ;;  %v2982_v32 = vadd.f32 %v2950_v61, %v6643_v25  ;;  %v2985_v35 = vadd.f32 %v2953_v28, %v6651_v31  ;;  %v3347_v2 = vmul.f32 %v6766_v17, %v6061_v27 }
 0x1b9   : > { %v4750_v29 = vpack.c.bf16 %v4188_v13, %v4188_v13  ;;  %v4186_v55 = vadd.f32 %v4154_v38, %v3867_v0  ;;  %v3870_v22 = vadd.f32 %v5176_v47, %v3372_v51  ;;  %v4030_v43 = vpop.f32.mrf.mxu0  ;;  %v2980_v37 = vadd.f32 %v2948_v19, %v6647_v6 }
 0x1ba   : > { %v3743_v26 = vpop.f32.mrf.mxu1  ;;  %v4155_v63 = vmul.f32 %v4030_v43, %v7410_v9  ;;  %v3373_v9 = vadd.f32 %v3341_v48, %v2979_v24  ;;  %v3376_v0 = vadd.f32 %v3344_v3, %v2982_v32  ;;  %v2983_v11 = vadd.f32 %v2951_v16, %v6655_v34  ;;  %v7427_v16 = vld [vmem:[#allocation44_spill] sm:$0xff] }
 0x1bb   : > { %4349 = vst.msk [vmem:[%s6893_s29 + $0x8] sm:$0xf] %vm4346_vm3, %v4750_v29  ;;  %v4748_v42 = vpack.c.bf16 %v4186_v55, %v4186_v55  ;;  %v4189_v15 = vadd.f32 %v4157_v59, %v3870_v22  ;;  %v3868_v12 = vadd.f32 %v3743_v26, %v3370_v58  ;;  %v5213_v33 = vpop.f32.mrf.mxu0  ;;  %v2952_v31 = vmul.f32 %v6780_v20, %v7421_v21  ;;  %v7422_v29 = vld [vmem:[#allocation55_spill] sm:$0xff]  ;;  %v7423_v26 = vld [vmem:[#allocation53_spill] sm:$0xff] }
 0x1bc   : > { %v5179_v54 = vpop.f32.mrf.mxu1  ;;  %v4160_v1 = vmul.f32 %v5213_v33, %v7413_v40  ;;  %v3374_v59 = vadd.f32 %v3342_v36, %v2980_v37  ;;  %v3345_v19 = vmul.f32 %v6770_v53, %v6054_v41  ;;  %v2986_v27 = vadd.f32 %v2954_v46, %v6659_v50 }
 0x1bd   : > { %4347 = vst.msk [vmem:[%s6893_s29] sm:$0xf] %vm4346_vm3, %v4748_v42  ;;  %v4751_v25 = vpack.c.bf16 %v4189_v15, %v4189_v15  ;;  %v4187_v4 = vadd.f32 %v4155_v63, %v3868_v12  ;;  %v3873_v18 = vadd.f32 %v5179_v54, %v3375_v52  ;;  %v4043_v39 = vpop.f32.mrf.mxu0  ;;  %v3379_v20 = vadd.f32 %v3347_v2, %v2985_v35  ;;  %v7424_v15 = vld [vmem:[#allocation74_spill] sm:$0xff]  ;;  %v7434_v2 = vld [vmem:[#allocation76_spill] sm:$0xff] }
 0x1be   : > { %v3756_v38 = vpop.f32.mrf.mxu1  ;;  %v4158_v40 = vmul.f32 %v4043_v39, %v7415_v30  ;;  %v3348_v28 = vmul.f32 %v6774_v7, %v6068_v60  ;;  %v2984_v41 = vadd.f32 %v2952_v31, %v6663_v56  ;;  %v2955_v63 = vmul.f32 %v6788_v62, %v7423_v26  ;;  %v7425_v60 = vld [vmem:[#allocation56_spill] sm:$0xff]  ;;  %v7426_v7 = vld [vmem:[#allocation78_spill] sm:$0xff] }
 0x1bf   : > { %4350 = vst.msk [vmem:[%s6893_s29 + $0xc] sm:$0xf] %vm4346_vm3, %v4751_v25  ;;  %v4749_v6 = vpack.c.bf16 %v4187_v4, %v4187_v4  ;;  %v4192_v61 = vadd.f32 %v4160_v1, %v3873_v18  ;;  %v3871_v13 = vadd.f32 %v3756_v38, %v3373_v9  ;;  %v5214_v51 = vpop.f32.mrf.mxu0  ;;  %v3346_v12 = vmul.f32 %v7424_v15, %v6059_v45  ;;  %v7428_v25 = vld [vmem:[#allocation6_spill] sm:$0xff]  ;;  %v7429_v4 = vld [vmem:[#allocation75_spill] sm:$0xff]  ;;  %v7431_v39 = vld [vmem:[#allocation80_spill] sm:$0xff] }
 0x1c0   : > { %v5180_v8 = vpop.f32.mrf.mxu1  ;;  %v4161_v14 = vmul.f32 %v5214_v51, %v7416_v57  ;;  %v2957_v57 = vmul.f32 %v6784_v44, %v7422_v29  ;;  %v2958_v56 = vmul.f32 %v7426_v7, %v7425_v60  ;;  %v3380_v3 = vadd.f32 %v3348_v28, %v2986_v27  ;;  %v7430_v45 = vld [vmem:[#allocation54_spill] sm:$0xff]  ;;  %v7433_v51 = vld [vmem:[#allocation4_spill] sm:$0xff] }
 0x1c1   : > { %4348 = vst.msk [vmem:[%s6893_s29 + $0x4] sm:$0xf] %vm4346_vm3, %v4749_v6  ;;  %v4754_v30 = vpack.c.bf16 %v4192_v61, %v4192_v61  ;;  %v4190_v24 = vadd.f32 %v4158_v40, %v3871_v13  ;;  %v3874_v47 = vadd.f32 %v5180_v8, %v3376_v0  ;;  %v4046_v58 = vpop.f32.mrf.mxu0  ;;  %v3351_v18 = vmul.f32 %v7429_v4, %v7428_v25  ;;  %v7432_v38 = vld [vmem:[#allocation46_spill] sm:$0xff]  ;;  %v7435_v31 = vld [vmem:[#allocation48_spill] sm:$0xff]  ;;  %v7450_v4 = vld [vmem:[#allocation3_spill] sm:$0xff] }
 0x1c2   : > { %v3759_v34 = vpop.f32.mrf.mxu1  ;;  %v4159_v17 = vmul.f32 %v4046_v58, %v7417_v23  ;;  %v3377_v23 = vadd.f32 %v3345_v19, %v2983_v11  ;;  %v2989_v54 = vadd.f32 %v2957_v57, %v7427_v16  ;;  %v2956_v36 = vmul.f32 %v7431_v39, %v7430_v45  ;;  %v7445_v15 = vld [vmem:[#allocation52_spill] sm:$0xff] }
 0x1c3   : > { %4353 = vst.msk [vmem:[%s6893_s29 + $0x18] sm:$0xf] %vm4346_vm3, %v4754_v30  ;;  %v4752_v55 = vpack.c.bf16 %v4190_v24, %v4190_v24  ;;  %v4193_v22 = vadd.f32 %v4161_v14, %v3874_v47  ;;  %v3872_v43 = vadd.f32 %v3759_v34, %v3374_v59  ;;  %v5217_v48 = vpop.f32.mrf.mxu0  ;;  %v2987_v40 = vadd.f32 %v2955_v63, %v7432_v38  ;;  %v7436_v14 = vld [vmem:[#allocation59_spill] sm:$0xff]  ;;  %v7437_v30 = vld [vmem:[#allocation82_spill] sm:$0xff] }
 0x1c4   : > { %v5183_v50 = vpop.f32.mrf.mxu1  ;;  %v4164_v53 = vmul.f32 %v5217_v48, %v7418_v5  ;;  %v3349_v11 = vmul.f32 %v7434_v2, %v7433_v51  ;;  %v2990_v8 = vadd.f32 %v2958_v56, %v7435_v31  ;;  %v2961_v24 = vmul.f32 %v7437_v30, %v7436_v14  ;;  %v7442_v48 = vld [vmem:[#allocation84_spill] sm:$0xff]  ;;  %v7455_v2 = vld [vmem:[#allocation50_spill] sm:$0xff] }
 0x1c5   : > { %4351 = vst.msk [vmem:[%s6893_s29 + $0x10] sm:$0xf] %vm4346_vm3, %v4752_v55  ;;  %v4755_v44 = vpack.c.bf16 %v4193_v22, %v4193_v22  ;;  %v4191_v52 = vadd.f32 %v4159_v17, %v3872_v43  ;;  %v3877_v32 = vadd.f32 %v5183_v50, %v3379_v20  ;;  %v4059_v42 = vpop.f32.mrf.mxu0  ;;  %v3383_v27 = vadd.f32 %v3351_v18, %v2989_v54  ;;  %v7438_v17 = vld [vmem:[#allocation7_spill] sm:$0xff]  ;;  %v7439_v20 = vld [vmem:[#allocation77_spill] sm:$0xff] }
 0x1c6   : > { %v3772_v33 = vpop.f32.mrf.mxu1  ;;  %v4162_v5 = vmul.f32 %v4059_v42, %v7419_v10  ;;  %v3378_v10 = vadd.f32 %v3346_v12, %v2984_v41  ;;  %v3352_v57 = vmul.f32 %v7439_v20, %v7438_v17  ;;  %v7440_v55 = vld [vmem:[#allocation49_spill] sm:$0xff]  ;;  %v3381_v63 = vadd.f32 %v3349_v11, %v2987_v40  ;;  %v7456_v11 = vld [vmem:[#allocation90_spill] sm:$0xff] }
 0x1c7   : > { %4354 = vst.msk [vmem:[%s6893_s29 + $0x1c] sm:$0xf] %vm4346_vm3, %v4755_v44  ;;  %v4753_v62 = vpack.c.bf16 %v4191_v52, %v4191_v52  ;;  %v4196_v1 = vadd.f32 %v4164_v53, %v3877_v32  ;;  %v3875_v9 = vadd.f32 %v3772_v33, %v3377_v23  ;;  %v5218_v37 = vpop.f32.mrf.mxu0  ;;  %v2988_v22 = vadd.f32 %v2956_v36, %v7440_v55  ;;  %v7441_v43 = vld [vmem:[#allocation57_spill] sm:$0xff]  ;;  %v7444_v32 = vld [vmem:[#allocation79_spill] sm:$0xff] }
 0x1c8   : > { %v5184_v35 = vpop.f32.mrf.mxu1  ;;  %v4165_v46 = vmul.f32 %v5218_v37, %v7420_v49  ;;  %v2959_v28 = vmul.f32 %v7442_v48, %v7441_v43  ;;  %v7443_v52 = vld [vmem:[#allocation5_spill] sm:$0xff]  ;;  %v2993_v12 = vadd.f32 %v2961_v24, %v7445_v15  ;;  %v3384_v33 = vadd.f32 %v3352_v57, %v2990_v8  ;;  %v7457_v24 = vld [vmem:[#allocation2_spill] sm:$0xff]  ;;  %v7461_v57 = vld [vmem:[#allocation92_spill] sm:$0xff] }
 0x1c9   : > { %4352 = vst.msk [vmem:[%s6893_s29 + $0x14] sm:$0xf] %vm4346_vm3, %v4753_v62  ;;  %v4758_v6 = vpack.c.bf16 %v4196_v1, %v4196_v1  ;;  %v4194_v61 = vadd.f32 %v4162_v5, %v3875_v9  ;;  %v3878_v13 = vadd.f32 %v5184_v35, %v3380_v3  ;;  %v4062_v0 = vpop.f32.mrf.mxu0  ;;  %v3350_v42 = vmul.f32 %v7444_v32, %v7443_v52  ;;  %v7446_v5 = vld [vmem:[#allocation60_spill] sm:$0xff]  ;;  %v7447_v3 = vld [vmem:[#allocation86_spill] sm:$0xff]  ;;  %v7449_v37 = vld [vmem:[#allocation81_spill] sm:$0xff] }
 0x1ca   : > { %v3775_v47 = vpop.f32.mrf.mxu1  ;;  %v4163_v49 = vmul.f32 %v4062_v0, %v7421_v21  ;;  %v7448_v9 = vld [vmem:[#allocation10_spill] sm:$0xff]  ;;  %v2991_v18 = vadd.f32 %v2959_v28, %v7450_v4  ;;  %v7454_v0 = vld [vmem:[#allocation83_spill] sm:$0xff]  ;;  %v2965_v31 = vmul.f32 %v7456_v11, %v7455_v2  ;;  %v7460_v20 = vld [vmem:[#allocation61_spill] sm:$0xff] }
 0x1cb   : > { %4357 = vst.msk [vmem:[%s6893_s29 + $0x28] sm:$0xf] %vm4346_vm3, %v4758_v6  ;;  %v4756_v59 = vpack.c.bf16 %v4194_v61, %v4194_v61  ;;  %v4197_v58 = vadd.f32 %v4165_v46, %v3878_v13  ;;  %v3876_v19 = vadd.f32 %v3775_v47, %v3378_v10  ;;  %v5221_v34 = vpop.f32.mrf.mxu0  ;;  %v3355_v25 = vmul.f32 %v7449_v37, %v7448_v9  ;;  %v7451_v35 = vld [vmem:[#allocation58_spill] sm:$0xff]  ;;  %v7452_v46 = vld [vmem:[#allocation88_spill] sm:$0xff]  ;;  %v7462_v28 = vld [vmem:[#allocation23_spill] sm:$0xff] }
 0x1cc   : > { %v5187_v41 = vpop.f32.mrf.mxu1  ;;  %v4168_v50 = vmul.f32 %v5221_v34, %v7422_v29  ;;  %v2962_v29 = vmul.f32 %v7447_v3, %v7446_v5  ;;  %v2960_v10 = vmul.f32 %v7452_v46, %v7451_v35  ;;  %v7453_v13 = vld [vmem:[#allocation8_spill] sm:$0xff]  ;;  %v7459_v34 = vld [vmem:[#allocation85_spill] sm:$0xff]  ;;  %v2963_v55 = vmul.f32 %v7461_v57, %v7460_v20  ;;  %v7466_v15 = vld [vmem:[#allocation63_spill] sm:$0xff] }
 0x1cd   : > { %4355 = vst.msk [vmem:[%s6893_s29 + $0x20] sm:$0xf] %vm4346_vm3, %v4756_v59  ;;  %v4759_v21 = vpack.c.bf16 %v4197_v58, %v4197_v58  ;;  %v4195_v53 = vadd.f32 %v4163_v49, %v3876_v19  ;;  %v3881_v23 = vadd.f32 %v5187_v41, %v3383_v27  ;;  %v4075_v44 = vpop.f32.mrf.mxu0  ;;  %v3353_v51 = vmul.f32 %v7454_v0, %v7453_v13  ;;  %v7458_v27 = vld [vmem:[#allocation11_spill] sm:$0xff]  ;;  %v7465_v32 = vld [vmem:[#allocation25_spill] sm:$0xff]  ;;  %v7471_v4 = vld [vmem:[#allocation62_spill] sm:$0xff] }
 0x1ce   : > { %v3788_v7 = vpop.f32.mrf.mxu1  ;;  %v4166_v56 = vmul.f32 %v4075_v44, %v7423_v26  ;;  %v3382_v26 = vadd.f32 %v3350_v42, %v2988_v22  ;;  %v3387_v30 = vadd.f32 %v3355_v25, %v2993_v12  ;;  %v2994_v47 = vadd.f32 %v2962_v29, %v7457_v24  ;;  %v7464_v44 = vld [vmem:[#allocation87_spill] sm:$0xff]  ;;  %v7467_v12 = vld [vmem:[#allocation94_spill] sm:$0xff] }
 0x1cf   : > { %4358 = vst.msk [vmem:[%s6893_s29 + $0x2c] sm:$0xf] %vm4346_vm3, %v4759_v21  ;;  %v4757_v16 = vpack.c.bf16 %v4195_v53, %v4195_v53  ;;  %v4200_v54 = vadd.f32 %v4168_v50, %v3881_v23  ;;  %v3879_v62 = vadd.f32 %v3788_v7, %v3381_v63  ;;  %v5222_v1 = vpop.f32.mrf.mxu0  ;;  %v3356_v17 = vmul.f32 %v7459_v34, %v7458_v27  ;;  %v7463_v63 = vld [vmem:[#allocation9_spill] sm:$0xff]  ;;  %v7470_v37 = vld [vmem:[#allocation27_spill] sm:$0xff] }
 0x1d0   : > { %v5188_v39 = vpop.f32.mrf.mxu1  ;;  %v4169_v36 = vmul.f32 %v5222_v1, %v7425_v60  ;;  %v2992_v41 = vadd.f32 %v2960_v10, %v7462_v28  ;;  %v3354_v52 = vmul.f32 %v7464_v44, %v7463_v63  ;;  %v2997_v42 = vadd.f32 %v2965_v31, %v7465_v32  ;;  %v7469_v1 = vld [vmem:[#allocation89_spill] sm:$0xff]  ;;  %v7475_v0 = vld [vmem:[#allocation31_spill] sm:$0xff] }
 0x1d1   : > { %4356 = vst.msk [vmem:[%s6893_s29 + $0x24] sm:$0xf] %vm4346_vm3, %v4757_v16  ;;  %v4762_v38 = vpack.c.bf16 %v4200_v54, %v4200_v54  ;;  %v4198_v40 = vadd.f32 %v4166_v56, %v3879_v62  ;;  %v3882_v6 = vadd.f32 %v5188_v39, %v3384_v33  ;;  %v4078_v61 = vpop.f32.mrf.mxu0  ;;  %v2966_v7 = vmul.f32 %v7467_v12, %v7466_v15  ;;  %v7468_v62 = vld [vmem:[#allocation14_spill] sm:$0xff]  ;;  %v7480_v34 = vld [vmem:[#allocation65_spill] sm:$0xff]  ;;  %v7485_v44 = vld [vmem:[#allocation35_spill] sm:$0xff] }
 0x1d2   : > { %v3791_v8 = vpop.f32.mrf.mxu1  ;;  %v4167_v60 = vmul.f32 %v4078_v61, %v7430_v45  ;;  %v3385_v45 = vadd.f32 %v3353_v51, %v2991_v18  ;;  %v3388_v16 = vadd.f32 %v3356_v17, %v2994_v47  ;;  %v3359_v9 = vmul.f32 %v7469_v1, %v7468_v62  ;;  %v7472_v18 = vld [vmem:[#allocation96_spill] sm:$0xff]  ;;  %v7474_v61 = vld [vmem:[#allocation91_spill] sm:$0xff]  ;;  %v7490_v1 = vld [vmem:[#allocation29_spill] sm:$0xff] }
 0x1d3   : > { %4361 = vst.msk [vmem:[%s6893_s29 + $0x38] sm:$0xf] %vm4346_vm3, %v4762_v38  ;;  %v4760_v49 = vpack.c.bf16 %v4198_v40, %v4198_v40  ;;  %v4201_v59 = vadd.f32 %v4169_v36, %v3882_v6  ;;  %v3880_v58 = vadd.f32 %v3791_v8, %v3382_v26  ;;  %v5225_v19 = vpop.f32.mrf.mxu0  ;;  %v2995_v25 = vadd.f32 %v2963_v55, %v7470_v37  ;;  %v7473_v6 = vld [vmem:[#allocation12_spill] sm:$0xff] }
 0x1d4   : > { %v5191_v22 = vpop.f32.mrf.mxu1  ;;  %v4172_v48 = vmul.f32 %v5225_v19, %v7436_v14  ;;  %v2964_v39 = vmul.f32 %v7472_v18, %v7471_v4  ;;  %v3386_v38 = vadd.f32 %v3354_v52, %v2992_v41  ;;  %v3357_v13 = vmul.f32 %v7474_v61, %v7473_v6  ;;  %v7479_v19 = vld [vmem:[#allocation93_spill] sm:$0xff]  ;;  %v7486_v52 = vld [vmem:[#allocation102_spill] sm:$0xff]  ;;  %v7495_v61 = vld [vmem:[#allocation68_spill] sm:$0xff] }
 0x1d5   : > { %4359 = vst.msk [vmem:[%s6893_s29 + $0x30] sm:$0xf] %vm4346_vm3, %v4760_v49  ;;  %v4763_v50 = vpack.c.bf16 %v4201_v59, %v4201_v59  ;;  %v4199_v21 = vadd.f32 %v4167_v60, %v3880_v58  ;;  %v3885_v53 = vadd.f32 %v5191_v22, %v3387_v30  ;;  %v4091_v23 = vpop.f32.mrf.mxu0  ;;  %v2998_v51 = vadd.f32 %v2966_v7, %v7475_v0  ;;  %v7476_v60 = vld [vmem:[#allocation33_spill] sm:$0xff]  ;;  %v7477_v30 = vld [vmem:[#allocation98_spill] sm:$0xff]  ;;  %v7478_v58 = vld [vmem:[#allocation15_spill] sm:$0xff] }
 0x1d6   : > { %v3804_v56 = vpop.f32.mrf.mxu1  ;;  %v4170_v14 = vmul.f32 %v4091_v23, %v7441_v43  ;;  %v3391_v8 = vadd.f32 %v3359_v9, %v2997_v42  ;;  %v3360_v27 = vmul.f32 %v7479_v19, %v7478_v58  ;;  %v2996_v17 = vadd.f32 %v2964_v39, %v7480_v34  ;;  %v7481_v22 = vld [vmem:[#allocation64_spill] sm:$0xff]  ;;  %v7484_v23 = vld [vmem:[#allocation95_spill] sm:$0xff]  ;;  %v7487_v7 = vld [vmem:[#allocation66_spill] sm:$0xff] }
 0x1d7   : > { %4362 = vst.msk [vmem:[%s6893_s29 + $0x3c] sm:$0xf] %vm4346_vm3, %v4763_v50  ;;  %v4761_v33 = vpack.c.bf16 %v4199_v21, %v4199_v21  ;;  %v4204_v3 = vadd.f32 %v4172_v48, %v3885_v53  ;;  %v3883_v29 = vadd.f32 %v3804_v56, %v3385_v45  ;;  %v5226_v54 = vpop.f32.mrf.mxu0  ;;  %v7482_v48 = vld [vmem:[#allocation100_spill] sm:$0xff]  ;;  %v7483_v53 = vld [vmem:[#allocation13_spill] sm:$0xff]  ;;  %v2970_v32 = vmul.f32 %v7486_v52, %v7485_v44  ;;  %v7492_v39 = vld [vmem:[#allocation67_spill] sm:$0xff] }
 0x1d8   : > { %v5192_v36 = vpop.f32.mrf.mxu1  ;;  %v4173_v26 = vmul.f32 %v5226_v54, %v7446_v5  ;;  %v2969_v5 = vmul.f32 %v7477_v30, %v7476_v60  ;;  %v2967_v45 = vmul.f32 %v7482_v48, %v7481_v22  ;;  %v3358_v63 = vmul.f32 %v7484_v23, %v7483_v53  ;;  %v7489_v54 = vld [vmem:[#allocation97_spill] sm:$0xff]  ;;  %v7491_v9 = vld [vmem:[#allocation104_spill] sm:$0xff]  ;;  %v7505_v23 = vld [vmem:[#allocation70_spill] sm:$0xff] }
 0x1d9   : > { %4360 = vst.msk [vmem:[%s6893_s29 + $0x34] sm:$0xf] %vm4346_vm3, %v4761_v33  ;;  %v4766_v43 = vpack.c.bf16 %v4204_v3, %v4204_v3  ;;  %v4202_v46 = vadd.f32 %v4170_v14, %v3883_v29  ;;  %v3886_v10 = vadd.f32 %v5192_v36, %v3388_v16  ;;  %v4094_v40 = vpop.f32.mrf.mxu0  ;;  %v3392_v12 = vadd.f32 %v3360_v27, %v2998_v51  ;;  %v7488_v16 = vld [vmem:[#allocation18_spill] sm:$0xff]  ;;  %v7496_v0 = vld [vmem:[#allocation41_spill] sm:$0xff] }
 0x1da   : > { %v3807_v11 = vpop.f32.mrf.mxu1  ;;  %v4171_v31 = vmul.f32 %v4094_v40, %v7451_v35  ;;  %v3389_v35 = vadd.f32 %v3357_v13, %v2995_v25  ;;  %v3001_v56 = vadd.f32 %v2969_v5, %v7487_v7  ;;  %v3363_v62 = vmul.f32 %v7489_v54, %v7488_v16  ;;  %v7494_v40 = vld [vmem:[#allocation99_spill] sm:$0xff]  ;;  %v7497_v51 = vld [vmem:[#allocation105_spill] sm:$0xff] }
 0x1db   : > { %4365 = vst.msk [vmem:[%s6893_s29 + $0x48] sm:$0xf] %vm4346_vm3, %v4766_v43  ;;  %v4764_v24 = vpack.c.bf16 %v4202_v46, %v4202_v46  ;;  %v4205_v47 = vadd.f32 %v4173_v26, %v3886_v10  ;;  %v3884_v49 = vadd.f32 %v3807_v11, %v3386_v38  ;;  %v5229_v59 = vpop.f32.mrf.mxu0  ;;  %v2968_v37 = vmul.f32 %v7491_v9, %v7490_v1  ;;  %v7493_v38 = vld [vmem:[#allocation16_spill] sm:$0xff]  ;;  %v7500_v19 = vld [vmem:[#allocation69_spill] sm:$0xff]  ;;  %v7510_v54 = vld [vmem:[#allocation71_spill] sm:$0xff] }
 0x1dc   : > { %v5195_v57 = vpop.f32.mrf.mxu1  ;;  %v4176_v55 = vmul.f32 %v5229_v59, %v7455_v2  ;;  %v2999_v36 = vadd.f32 %v2967_v45, %v7492_v39  ;;  %v3361_v6 = vmul.f32 %v7494_v40, %v7493_v38  ;;  %v3002_v13 = vadd.f32 %v2970_v32, %v7495_v61  ;;  %v7499_v59 = vld [vmem:[#allocation101_spill] sm:$0xff] }
 0x1dd   : > { %4363 = vst.msk [vmem:[%s6893_s29 + $0x40] sm:$0xf] %vm4346_vm3, %v4764_v24  ;;  %v4767_v28 = vpack.c.bf16 %v4205_v47, %v4205_v47  ;;  %v4203_v41 = vadd.f32 %v4171_v31, %v3884_v49  ;;  %v3889_v50 = vadd.f32 %v5195_v57, %v3391_v8  ;;  %v4107_v21 = vpop.f32.mrf.mxu0  ;;  %v2973_v11 = vmul.f32 %v7497_v51, %v7496_v0  ;;  %v7498_v49 = vld [vmem:[#allocation19_spill] sm:$0xff]  ;;  %v7501_v34 = vld [vmem:[#allocation37_spill] sm:$0xff] }
 0x1de   : > { %v3820_v42 = vpop.f32.mrf.mxu1  ;;  %v4174_v2 = vmul.f32 %v4107_v21, %v7460_v20  ;;  %v3390_v20 = vadd.f32 %v3358_v63, %v2996_v17  ;;  %v3395_v24 = vadd.f32 %v3363_v62, %v3001_v56  ;;  %v3364_v58 = vmul.f32 %v7499_v59, %v7498_v49  ;;  %v7502_v17 = vld [vmem:[#allocation106_spill] sm:$0xff]  ;;  %v7504_v21 = vld [vmem:[#allocation103_spill] sm:$0xff]  ;;  %v7518_v59 = vld [vmem:[#allocation73_spill] sm:$0xff] }
 0x1df   : > { %4366 = vst.msk [vmem:[%s6893_s29 + $0x4c] sm:$0xf] %vm4346_vm3, %v4767_v28  ;;  %v4765_v14 = vpack.c.bf16 %v4203_v41, %v4203_v41  ;;  %v4208_v33 = vadd.f32 %v4176_v55, %v3889_v50  ;;  %v3887_v3 = vadd.f32 %v3820_v42, %v3389_v35  ;;  %v5230_v29 = vpop.f32.mrf.mxu0  ;;  %v3000_v27 = vadd.f32 %v2968_v37, %v7500_v19  ;;  %v7503_v50 = vld [vmem:[#allocation17_spill] sm:$0xff] }
 0x1e0   : > { %v5196_v25 = vpop.f32.mrf.mxu1  ;;  %v4177_v18 = vmul.f32 %v5230_v29, %v7466_v15  ;;  %v2971_v57 = vmul.f32 %v7502_v17, %v7501_v34  ;;  %v3393_v28 = vadd.f32 %v3361_v6, %v2999_v36  ;;  %v3362_v53 = vmul.f32 %v7504_v21, %v7503_v50  ;;  %v7509_v29 = vld [vmem:[#allocation30_spill] sm:$0xff] }
 0x1e1   : > { %4364 = vst.msk [vmem:[%s6893_s29 + $0x44] sm:$0xf] %vm4346_vm3, %v4765_v14  ;;  %v4770_v26 = vpack.c.bf16 %v4208_v33, %v4208_v33  ;;  %v4206_v43 = vadd.f32 %v4174_v2, %v3887_v3  ;;  %v3890_v46 = vadd.f32 %v5196_v25, %v3392_v12  ;;  %v4110_v10 = vpop.f32.mrf.mxu0  ;;  %v3005_v63 = vadd.f32 %v2973_v11, %v7505_v23  ;;  %v7506_v2 = vld [vmem:[#allocation43_spill] sm:$0xff]  ;;  %v7507_v12 = vld [vmem:[#allocation28_spill] sm:$0xff]  ;;  %v7508_v3 = vld [vmem:[#allocation22_spill] sm:$0xff] }
 0x1e2   : > { %v3823_v31 = vpop.f32.mrf.mxu1  ;;  %v4175_v15 = vmul.f32 %v4110_v10, %v7471_v4  ;;  %v3396_v42 = vadd.f32 %v3364_v58, %v3002_v13  ;;  %v3367_v16 = vmul.f32 %v7509_v29, %v7508_v3  ;;  %v3003_v62 = vadd.f32 %v2971_v57, %v7510_v54  ;;  %v7511_v25 = vld [vmem:[#allocation39_spill] sm:$0xff]  ;;  %v7514_v10 = vld [vmem:[#allocation26_spill] sm:$0xff]  ;;  %v7515_v13 = vld [vmem:[#allocation72_spill] sm:$0xff] }
 0x1e3   : > { %4369 = vst.msk [vmem:[%s6893_s29 + $0x58] sm:$0xf] %vm4346_vm3, %v4770_v26  ;;  %v4768_v8 = vpack.c.bf16 %v4206_v43, %v4206_v43  ;;  %v4209_v30 = vadd.f32 %v4177_v18, %v3890_v46  ;;  %v3888_v5 = vadd.f32 %v3823_v31, %v3390_v20  ;;  %v5233_v47 = vpop.f32.mrf.mxu0  ;;  %v7512_v18 = vld [vmem:[#allocation38_spill] sm:$0xff]  ;;  %v7513_v46 = vld [vmem:[#allocation20_spill] sm:$0xff]  ;;  %v7519_v57 = vld [vmem:[#allocation21_spill] sm:$0xff] }
 0x1e4   : > { %v5199_v55 = vpop.f32.mrf.mxu1  ;;  %v4180_v35 = vmul.f32 %v5233_v47, %v7476_v60  ;;  %v2974_v60 = vmul.f32 %v7507_v12, %v7506_v2  ;;  %v2972_v20 = vmul.f32 %v7512_v18, %v7511_v25  ;;  %v3365_v38 = vmul.f32 %v7514_v10, %v7513_v46 }
 0x1e5   : > { %4367 = vst.msk [vmem:[%s6893_s29 + $0x50] sm:$0xf] %vm4346_vm3, %v4768_v8  ;;  %v4771_v4 = vpack.c.bf16 %v4209_v30, %v4209_v30  ;;  %v4207_v48 = vadd.f32 %v4175_v15, %v3888_v5  ;;  %v3893_v45 = vadd.f32 %v5199_v55, %v3395_v24  ;;  %v4123_v41 = vpop.f32.mrf.mxu0  ;;  %v3399_v61 = vadd.f32 %v3367_v16, %v3005_v63  ;;  %v7516_v8 = vld [vmem:[#allocation24_spill] sm:$0xff]  ;;  %v7520_v55 = vld [vmem:[#allocation107_spill] sm:$0xff] }
 0x1e6   : > { %v3836_v52 = vpop.f32.mrf.mxu1  ;;  %v4178_v32 = vmul.f32 %v4123_v41, %v7481_v22  ;;  %v3394_v22 = vadd.f32 %v3362_v53, %v3000_v27  ;;  %v7517_v30 = vld [vmem:[#allocation32_spill] sm:$0xff]  ;;  %v3397_v49 = vadd.f32 %v3365_v38, %v3003_v62  ;;  %v3004_v58 = vadd.f32 %v2972_v20, %v7518_v59 }
 0x1e7   : > { %4370 = vst.msk [vmem:[%s6893_s29 + $0x5c] sm:$0xf] %vm4346_vm3, %v4771_v4  ;;  %v4769_v7 = vpack.c.bf16 %v4207_v48, %v4207_v48  ;;  %v4212_v56 = vadd.f32 %v4180_v35, %v3893_v45  ;;  %v3891_v14 = vadd.f32 %v3836_v52, %v3393_v28  ;;  %v5234_v33 = vpop.f32.mrf.mxu0  ;;  %v3368_v5 = vmul.f32 %v7517_v30, %v7516_v8 }
 0x1e8   : > { %v5200_v9 = vpop.f32.mrf.mxu1  ;;  %v4181_v37 = vmul.f32 %v5234_v33, %v7485_v44  ;;  %v3006_v44 = vadd.f32 %v2974_v60, %v7515_v13  ;;  %v3366_v35 = vmul.f32 %v7520_v55, %v7519_v57 }
 0x1e9   : > { %4368 = vst.msk [vmem:[%s6893_s29 + $0x54] sm:$0xf] %vm4346_vm3, %v4769_v7  ;;  %v4774_v39 = vpack.c.bf16 %v4212_v56, %v4212_v56  ;;  %v4210_v36 = vadd.f32 %v4178_v32, %v3891_v14  ;;  %v3894_v26 = vadd.f32 %v5200_v9, %v3396_v42  ;;  %v4126_v43 = vpop.f32.mrf.mxu0 }
 0x1ea   : > { %v3839_v40 = vpop.f32.mrf.mxu1  ;;  %v4179_v6 = vmul.f32 %v4126_v43, %v7490_v1  ;;  %v3400_v41 = vadd.f32 %v3368_v5, %v3006_v44 }
 0x1eb   : > { %4373 = vst.msk [vmem:[%s6893_s29 + $0x68] sm:$0xf] %vm4346_vm3, %v4774_v39  ;;  %v4772_v51 = vpack.c.bf16 %v4210_v36, %v4210_v36  ;;  %v4213_v11 = vadd.f32 %v4181_v37, %v3894_v26  ;;  %v3892_v31 = vadd.f32 %v3839_v40, %v3394_v22  ;;  %v5237_v15 = vpop.f32.mrf.mxu0 }
 0x1ec   : > { %v5203_v24 = vpop.f32.mrf.mxu1  ;;  %v4184_v47 = vmul.f32 %v5237_v15, %v7496_v0 }
 0x1ed   : > { %4371 = vst.msk [vmem:[%s6893_s29 + $0x60] sm:$0xf] %vm4346_vm3, %v4772_v51  ;;  %v4775_v1 = vpack.c.bf16 %v4213_v11, %v4213_v11  ;;  %v4211_v19 = vadd.f32 %v4179_v6, %v3892_v31  ;;  %v3897_v27 = vadd.f32 %v5203_v24, %v3399_v61  ;;  %v4139_v17 = vpop.f32.mrf.mxu0 }
 0x1ee   : > { %v3852_v4 = vpop.f32.mrf.mxu1  ;;  %v4182_v48 = vmul.f32 %v4139_v17, %v7501_v34  ;;  %v3398_v34 = vadd.f32 %v3366_v35, %v3004_v58 }
 0x1ef   : > { %4374 = vst.msk [vmem:[%s6893_s29 + $0x6c] sm:$0xf] %vm4346_vm3, %v4775_v1  ;;  %v4773_v0 = vpack.c.bf16 %v4211_v19, %v4211_v19  ;;  %v4216_v45 = vadd.f32 %v4184_v47, %v3897_v27  ;;  %v3895_v28 = vadd.f32 %v3852_v4, %v3397_v49  ;;  %v5238_v50 = vpop.f32.mrf.mxu0 }
 0x1f0   : > { %v5204_v21 = vpop.f32.mrf.mxu1  ;;  %v4185_v53 = vmul.f32 %v5238_v50, %v7506_v2 }
 0x1f1   : > { %4372 = vst.msk [vmem:[%s6893_s29 + $0x64] sm:$0xf] %vm4346_vm3, %v4773_v0  ;;  %v4778_v23 = vpack.c.bf16 %v4216_v45, %v4216_v45  ;;  %v4214_v63 = vadd.f32 %v4182_v48, %v3895_v28  ;;  %v3898_v52 = vadd.f32 %v5204_v21, %v3400_v41  ;;  %v4142_v32 = vpop.f32.mrf.mxu0 }
 0x1f2   : > { %v3855_v42 = vpop.f32.mrf.mxu1  ;;  %v4183_v12 = vmul.f32 %v4142_v32, %v7511_v25 }
 0x1f3   : > { %4377 = vst.msk [vmem:[%s6893_s29 + $0x78] sm:$0xf] %vm4346_vm3, %v4778_v23  ;;  %v4776_v60 = vpack.c.bf16 %v4214_v63, %v4214_v63  ;;  %v4217_v7 = vadd.f32 %v4185_v53, %v3898_v52  ;;  %v3896_v56 = vadd.f32 %v3855_v42, %v3398_v34 }
 0x1f5   : > { %4375 = vst.msk [vmem:[%s6893_s29 + $0x70] sm:$0xf] %vm4346_vm3, %v4776_v60  ;;  %v4779_v2 = vpack.c.bf16 %v4217_v7, %v4217_v7  ;;  %v4215_v14 = vadd.f32 %v4183_v12, %v3896_v56 }
 0x1f7   : > { %4378 = vst.msk [vmem:[%s6893_s29 + $0x7c] sm:$0xf] %vm4346_vm3, %v4779_v2  ;;  %v4777_v33 = vpack.c.bf16 %v4215_v14, %v4215_v14 }
 0x1f9   : > { %4376 = vst.msk [vmem:[%s6893_s29 + $0x74] sm:$0xf] %vm4346_vm3, %v4777_v33 }
 0x1fa PF: > { %s14_s15 = sadd.s32 1, %s5370_s15  }
 0x1fb   : > { %p11_p4 = scmp.ge.s32.totalorder %s14_s15, 4  }
 0x1fd   :  { %13 = sbr.rel (!%p11_p4) target bundleno = 1 (0x1), region = 74 }

// kernel: forward.17
= control target key start
LH: loop header
LB: loop body
LE: loop exit
PB: predicated region body
PF: predicated region fallthrough
CT: control target
= control target key end

     0   :  { %vm349_vm0 = vcmask 1043456   ;;  %vm252_vm1 = vcmask 64512   ;;  %vm882_vm2 = vcmask 261120   ;;  %s3959_s19 = smov 12   ;;  %vm2773_vm3 = vcmask 31744   ;;  %s5403_s0 = inlined_call_operand.vmem [shape: bf16[8,4], index: 0, kind: input, shape index: {}]   ;;  %s5404_s4 = inlined_call_operand.vmem [shape: bf16[512,8], index: 4, kind: input, shape index: {}]   ;;  %s5405_s1 = inlined_call_operand.vmem [shape: bf16[32,4], index: 1, kind: input, shape index: {}]   ;;  %s5406_s2 = inlined_call_operand.vmem [shape: bf16[128,4], index: 2, kind: input, shape index: {}]   ;;  %s5407_s5 = inlined_call_operand.vmem [shape: bf16[512,32], index: 5, kind: input, shape index: {}]   ;;  %s5408_s6 = inlined_call_operand.vmem [shape: bf16[512,128], index: 6, kind: input, shape index: {}]   ;;  %s5409_s3 = inlined_call_operand.vmem [shape: bf16[512,4], index: 3, kind: input, shape index: {}]   ;;  %s5410_s7 = inlined_call_operand.vmem [shape: f32[512,16], index: 7, kind: output, shape index: {}]  }
   0x1   :  { %v91_v0 = vld [vmem:[%s5403_s0] sm:$0xf]  ;;  %v3855_v4 = vld [vmem:[%s5404_s4 + $0x8] sm:$0xff]   ;;  %v3858_v7 = vld [vmem:[%s5406_s2 + $0x38] sm:$0xff]   ;;  %vm2902_vm4 = vcmask 97280   ;;  %vm2967_vm5 = vcmask 130048  }
   0x2   :  { %3688 = vmatprep.subr.msk.bf16.mxu0 %vm349_vm0, %v91_v0  ;;  %3689 = vmatprep.subr.msk.bf16.mxu1 %vm349_vm0, %v91_v0  ;;  %v351_v1 = vsel %vm349_vm0, %v91_v0, 0  ;;  %v3853_v2 = vld [vmem:[%s5404_s4] sm:$0xff]   ;;  %v3856_v5 = vld [vmem:[%s5404_s4 + $0x88] sm:$0xff]   ;;  %v3859_v8 = vld [vmem:[%s5404_s4 + $0x10] sm:$0xff]  }
   0x3   :  { %3473 = vmatpush3.bf16.msra.mxu0 %v351_v1  ;;  %3687 = vmatpush3.bf16.msra.mxu1 %v351_v1  ;;  %v3854_v3 = vld [vmem:[%s5404_s4 + $0x80] sm:$0xff]   ;;  %v3857_v6 = vld [vmem:[%s5405_s1 + $0x8] sm:$0xff]   ;;  %v3860_v9 = vld [vmem:[%s5404_s4 + $0x90] sm:$0xff]  }
   0x4   :  { %3474 = vmatprep.mubr.msk.bf16.mxu0 %vm252_vm1, %v3853_v2  ;;  %3506 = vmatprep.mubr.msk.bf16.mxu1 %vm252_vm1, %v3854_v3  ;;  %v3861_v10 = vld [vmem:[%s5404_s4 + $0x18] sm:$0xff]   ;;  %v3863_v12 = vld [vmem:[%s5406_s2 + $0x30] sm:$0xff]   ;;  %v3864_v13 = vld [vmem:[%s5404_s4 + $0x20] sm:$0xff]  }
   0x5   :  { %3538 = vmatprep.subr.bf16.mxu1 %v3857_v6  ;;  %3606 = vmatprep.subr.bf16.mxu0 %v3858_v7  ;;  %v3862_v11 = vld [vmem:[%s5404_s4 + $0x98] sm:$0xff]   ;;  %v3865_v14 = vld [vmem:[%s5404_s4 + $0xa0] sm:$0xff]   ;;  %v3866_v15 = vld [vmem:[%s5404_s4 + $0x28] sm:$0xff]  }
   0x6   :  { %3475 = vmatmul.mubr.msk.bf16.vlgmr.msra.gmra.mxu0 %vm252_vm1, %v3855_v4  ;;  %3507 = vmatmul.mubr.msk.bf16.vlgmr.msra.gmra.mxu1 %vm252_vm1, %v3856_v5  ;;  %v3868_v16 = vld [vmem:[%s5406_s2 + $0x28] sm:$0xff]   ;;  %v3869_v18 = vld [vmem:[%s5404_s4 + $0x30] sm:$0xff]   ;;  %v3873_v20 = vld [vmem:[%s5406_s2 + $0x20] sm:$0xff]  }
   0x7   :  { %3539 = vmatpush3.bf16.msra.mxu1 %v3857_v6  ;;  %3607 = vmatpush3.bf16.msra.mxu0 %v3858_v7  ;;  %v3867_v17 = vld [vmem:[%s5404_s4 + $0xa8] sm:$0xff]   ;;  %v3870_v19 = vld [vmem:[%s5404_s4 + $0xb0] sm:$0xff]   ;;  %v3871_v21 = vld [vmem:[%s5404_s4 + $0x38] sm:$0xff]  }
   0x8   :  { %3478 = vmatprep.mubr.msk.bf16.mxu0 %vm252_vm1, %v3859_v8  ;;  %3510 = vmatprep.mubr.msk.bf16.mxu1 %vm252_vm1, %v3860_v9  ;;  %v3872_v22 = vld [vmem:[%s5404_s4 + $0xb8] sm:$0xff]   ;;  %v3874_v23 = vld [vmem:[%s5404_s4 + $0x40] sm:$0xff]   ;;  %v3876_v27 = vld [vmem:[%s5404_s4 + $0x48] sm:$0xff]  }
   0x9   :  { %3608 = vmatprep.subr.bf16.mxu0 %v3863_v12  ;;  %v3875_v24 = vld [vmem:[%s5404_s4 + $0xc0] sm:$0xff]   ;;  %v3879_v26 = vld [vmem:[%s5406_s2 + $0x18] sm:$0xff]   ;;  %v3884_v28 = vld [vmem:[%s5406_s2 + $0x10] sm:$0xff]  }
   0xa   :  { %v3878_v25 = vld [vmem:[%s5405_s1] sm:$0xff]   ;;  %v3877_v29 = vld [vmem:[%s5404_s4 + $0xc8] sm:$0xff]   ;;  %v3880_v30 = vld [vmem:[%s5404_s4 + $0x50] sm:$0xff]  }
   0xb   :  { %3609 = vmatpush3.bf16.msra.mxu0 %v3863_v12  ;;  %3540 = vmatprep.subr.bf16.mxu1 %v3878_v25  ;;  %v3881_v31 = vld [vmem:[%s5404_s4 + $0xd0] sm:$0xff]   ;;  %v3889_v32 = vld [vmem:[%s5406_s2 + $0x8] sm:$0xff]   ;;  %v3882_v33 = vld [vmem:[%s5404_s4 + $0x58] sm:$0xff]  }
   0xc   :  { %3610 = vmatprep.subr.bf16.mxu0 %v3868_v16  ;;  %3541 = vmatpush3.bf16.msra.mxu1 %v3878_v25  ;;  %v3883_v34 = vld [vmem:[%s5404_s4 + $0xd8] sm:$0xff]   ;;  %v3885_v35 = vld [vmem:[%s5404_s4 + $0x60] sm:$0xff]   ;;  %v3887_v38 = vld [vmem:[%s5404_s4 + $0x68] sm:$0xff]  }
   0xd   :  { %v3894_v36 = vld [vmem:[%s5406_s2] sm:$0xff]   ;;  %v3888_v39 = vld [vmem:[%s5404_s4 + $0xe8] sm:$0xff]   ;;  %v3890_v40 = vld [vmem:[%s5404_s4 + $0x70] sm:$0xff]  }
   0xe   :  { %3479 = vmatmul.mubr.msk.bf16.gmra.mxu0 %vm252_vm1, %v3861_v10  ;;  %3511 = vmatmul.mubr.msk.bf16.gmra.mxu1 %vm252_vm1, %v3862_v11  ;;  %v3886_v37 = vld [vmem:[%s5404_s4 + $0xe0] sm:$0xff]   ;;  %v3891_v41 = vld [vmem:[%s5404_s4 + $0xf0] sm:$0xff]   ;;  %v3892_v42 = vld [vmem:[%s5404_s4 + $0x78] sm:$0xff]  }
   0xf   :  { %3482 = vmatprep.mubr.msk.bf16.mxu0 %vm252_vm1, %v3864_v13  ;;  %3514 = vmatprep.mubr.msk.bf16.mxu1 %vm252_vm1, %v3865_v14  ;;  %v3893_v43 = vld [vmem:[%s5404_s4 + $0xf8] sm:$0xff]   ;;  %v3896_v44 = vld [vmem:[%s5408_s6] sm:$0xff]   ;;  %v3897_v46 = vld [vmem:[%s5407_s5 + $0x8] sm:$0xff]  }
  0x10   :  { %3611 = vmatpush3.bf16.msra.mxu0 %v3868_v16  ;;  %v3895_v45 = vld [vmem:[%s5407_s5] sm:$0xff]   ;;  %v3898_v47 = vld [vmem:[%s5408_s6 + $0x8] sm:$0xff]   ;;  %v3901_v48 = vld [vmem:[%s5408_s6 + $0x10] sm:$0xff]  }
  0x11   :  { %3612 = vmatprep.subr.bf16.mxu0 %v3873_v20  ;;  %v3899_v49 = vld [vmem:[%s5407_s5 + $0x10] sm:$0xff]   ;;  %v3900_v50 = vld [vmem:[%s5407_s5 + $0x18] sm:$0xff]   ;;  %v3905_v52 = vld [vmem:[%s5408_s6 + $0x20] sm:$0xff]  }
  0x12   :  { %v3902_v51 = vld [vmem:[%s5408_s6 + $0x18] sm:$0xff]   ;;  %v3903_v53 = vld [vmem:[%s5407_s5 + $0x20] sm:$0xff]   ;;  %v3334_v54 = vld [vmem:[%s5409_s3 + $0x8] sm:$0xff]  }
  0x13   :  { %v3207_v55 = vld [vmem:[%s5409_s3] sm:$0xff]   ;;  %v3212_v56 = vunpack.c.l.bf16 %v3334_v54  ;;  %v3213_v57 = vunpack.c.h.bf16 %v3334_v54  ;;  %v3904_v60 = vld [vmem:[%s5407_s5 + $0x28] sm:$0xff]   ;;  %v3336_v0 = vld [vmem:[%s5409_s3 + $0x18] sm:$0xff]  }
  0x14   :  { %3613 = vmatpush3.bf16.msra.mxu0 %v3873_v20  ;;  %v3208_v58 = vunpack.c.l.bf16 %v3207_v55  ;;  %v3209_v59 = vunpack.c.h.bf16 %v3207_v55  ;;  %v3906_v61 = vld [vmem:[%s5408_s6 + $0x28] sm:$0xff]   ;;  %v3335_v1 = vld [vmem:[%s5409_s3 + $0x10] sm:$0xff]   ;;  %v3220_v3 = vunpack.c.l.bf16 %v3336_v0  ;;  %v3221_v4 = vunpack.c.h.bf16 %v3336_v0  ;;  %v3337_v11 = vld [vmem:[%s5409_s3 + $0x20] sm:$0xff]  }
  0x15   :  { %3614 = vmatprep.subr.bf16.mxu0 %v3879_v26  ;;  %v3698_v62 = vpack.i.bf16 %v3213_v57, %v3212_v56  ;;  %v3909_v2 = vld [vmem:[%s5408_s6 + $0x30] sm:$0xff]   ;;  %v3216_v5 = vunpack.c.l.bf16 %v3335_v1  ;;  %v3217_v6 = vunpack.c.h.bf16 %v3335_v1  ;;  %v3338_v10 = vld [vmem:[%s5409_s3 + $0x28] sm:$0xff]   ;;  %v3340_v12 = vld [vmem:[%s5409_s3 + $0x38] sm:$0xff]   ;;  %v3225_v16 = vunpack.c.h.bf16 %v3337_v11 }
  0x16   :  { %3483 = vmatmul.mubr.msk.bf16.gmra.mxu0 %vm252_vm1, %v3866_v15  ;;  %3515 = vmatmul.mubr.msk.bf16.gmra.mxu1 %vm252_vm1, %v3867_v17  ;;  %v3693_v63 = vpack.i.bf16 %v3209_v59, %v3208_v58  ;;  %v3907_v7 = vld [vmem:[%s5407_s5 + $0x30] sm:$0xff]   ;;  %v3708_v8 = vpack.i.bf16 %v3221_v4, %v3220_v3  ;;  %v3228_v13 = vunpack.c.l.bf16 %v3338_v10  ;;  %v3229_v14 = vunpack.c.h.bf16 %v3338_v10  ;;  %v3350_v58 = vld [vmem:[%s5409_s3 + $0x88] sm:$0xff]   ;;  %v3918_v59 = vld [vmem:[%s5408_s6 + $0x58] sm:$0xff]  }
  0x17   :  { %3486 = vmatprep.mubr.msk.bf16.mxu0 %vm252_vm1, %v3869_v18  ;;  %3518 = vmatprep.mubr.msk.bf16.mxu1 %vm252_vm1, %v3870_v19  ;;  %v3703_v9 = vpack.i.bf16 %v3217_v6, %v3216_v5  ;;  %v3224_v15 = vunpack.c.l.bf16 %v3337_v11  ;;  %v3339_v17 = vld [vmem:[%s5409_s3 + $0x30] sm:$0xff]   ;;  %v3342_v18 = vld [vmem:[%s5409_s3 + $0x48] sm:$0xff]   ;;  %v3910_v19 = vld [vmem:[%s5408_s6 + $0x38] sm:$0xff]  }
  0x18   :  { %3615 = vmatpush3.bf16.msra.mxu0 %v3879_v26  ;;  %3699 = vrot.lane.b32.xlu1 %v3698_v62, %s3959_s19  ;;  %v3718_v20 = vpack.i.bf16 %v3229_v14, %v3228_v13  ;;  %v3232_v25 = vunpack.c.l.bf16 %v3339_v17  ;;  %v3233_v26 = vunpack.c.h.bf16 %v3339_v17  ;;  %v3347_v54 = vld [vmem:[%s5409_s3 + $0x70] sm:$0xff]   ;;  %v3916_v3 = vld [vmem:[%s5407_s5 + $0x58] sm:$0xff]   ;;  %v3921_v4 = vld [vmem:[%s5408_s6 + $0x60] sm:$0xff]  }
  0x19   :  { %3616 = vmatprep.subr.bf16.mxu0 %v3884_v28  ;;  %3694 = vrot.lane.b32.xlu0 %v3693_v63, %s3959_s19  ;;  %v3264_v0 = vunpack.c.l.bf16 %v3347_v54  ;;  %v3265_v1 = vunpack.c.h.bf16 %v3347_v54  ;;  %v3919_v5 = vld [vmem:[%s5407_s5 + $0x60] sm:$0xff]   ;;  %v3351_v13 = vld [vmem:[%s5409_s3 + $0x90] sm:$0xff]  }
  0x1c   :  { %3617 = vmatpush3.bf16.msra.mxu0 %v3884_v28  ;;  %3709 = vrot.lane.b32.xlu1 %v3708_v8, %s3959_s19  ;;  %v3911_v28 = vld [vmem:[%s5407_s5 + $0x40] sm:$0xff]   ;;  %v3277_v8 = vunpack.c.h.bf16 %v3350_v58 }
  0x1d   :  { %3618 = vmatprep.subr.bf16.mxu0 %v3889_v32  ;;  %3704 = vrot.lane.b32.xlu0 %v3703_v9, %s3959_s19  ;;  %v3763_v9 = vpack.i.bf16 %v3265_v1, %v3264_v0  ;;  %v3933_v0 = vld [vmem:[%s5408_s6 + $0x90] sm:$0xff]  }
  0x1e   :  { %3487 = vmatmul.mubr.msk.bf16.gmra.mxu0 %vm252_vm1, %v3871_v21  ;;  %3519 = vmatmul.mubr.msk.bf16.gmra.mxu1 %vm252_vm1, %v3872_v22  ;;  %v3236_v21 = vunpack.c.l.bf16 %v3340_v12  ;;  %v3237_v22 = vunpack.c.h.bf16 %v3340_v12  ;;  %v3352_v12 = vld [vmem:[%s5409_s3 + $0x98] sm:$0xff]   ;;  %v3931_v1 = vld [vmem:[%s5407_s5 + $0x90] sm:$0xff]  }
  0x1f   :  { %3490 = vmatprep.mubr.msk.bf16.mxu0 %vm252_vm1, %v3874_v23  ;;  %3522 = vmatprep.mubr.msk.bf16.mxu1 %vm252_vm1, %v3875_v24  ;;  %v3908_v23 = vld [vmem:[%s5407_s5 + $0x38] sm:$0xff]   ;;  %v3713_v24 = vpack.i.bf16 %v3225_v16, %v3224_v15  ;;  %v3284_v15 = vunpack.c.l.bf16 %v3352_v12  ;;  %v3285_v16 = vunpack.c.h.bf16 %v3352_v12  ;;  %v3937_v12 = vld [vmem:[%s5408_s6 + $0xa0] sm:$0xff]  }
  0x20   :  { %3619 = vmatpush3.bf16.msra.mxu0 %v3889_v32  ;;  %3719 = vrot.lane.b32.xlu1 %v3718_v20, %s3959_s19  ;;  %v3244_v32 = vunpack.c.l.bf16 %v3342_v18  ;;  %v3354_v20 = vld [vmem:[%s5409_s3 + $0xa8] sm:$0xff]  }
  0x21   :  { %3620 = vmatprep.subr.bf16.mxu0 %v3894_v36  ;;  %3714 = vrot.lane.b32.xlu0 %v3713_v24, %s3959_s19  ;;  %v3925_v24 = vld [vmem:[%s5408_s6 + $0x70] sm:$0xff]  }
  0x24   :  { %3621 = vmatpush3.bf16.msra.mxu0 %v3894_v36 }
  0x26   :  { %3491 = vmatmul.mubr.msk.bf16.gmra.mxu0 %vm252_vm1, %v3876_v27  ;;  %3523 = vmatmul.mubr.msk.bf16.gmra.mxu1 %vm252_vm1, %v3877_v29  ;;  %v3341_v27 = vld [vmem:[%s5409_s3 + $0x40] sm:$0xff]  }
  0x27   :  { %3494 = vmatprep.mubr.msk.bf16.mxu0 %vm252_vm1, %v3880_v30  ;;  %3526 = vmatprep.mubr.msk.bf16.mxu1 %vm252_vm1, %v3881_v31  ;;  %v3913_v29 = vld [vmem:[%s5408_s6 + $0x40] sm:$0xff]   ;;  %v3344_v30 = vld [vmem:[%s5409_s3 + $0x58] sm:$0xff]   ;;  %v3728_v31 = vpack.i.bf16 %v3237_v22, %v3236_v21  ;;  %v3241_v36 = vunpack.c.h.bf16 %v3341_v27  ;;  %v3922_v21 = vld [vmem:[%s5408_s6 + $0x68] sm:$0xff]  }
  0x28   :  { %v3353_v22 = vld [vmem:[%s5409_s3 + $0xa0] sm:$0xff]  }
  0x29   :  { %3729 = vrot.lane.b32.xlu1 %v3728_v31, %s3959_s19  ;;  %v3289_v31 = vunpack.c.h.bf16 %v3353_v22 }
  0x2e   :  { %3495 = vmatmul.mubr.msk.bf16.gmra.mxu0 %vm252_vm1, %v3882_v33  ;;  %3527 = vmatmul.mubr.msk.bf16.gmra.mxu1 %vm252_vm1, %v3883_v34  ;;  %v3245_v33 = vunpack.c.h.bf16 %v3342_v18  ;;  %v3723_v34 = vpack.i.bf16 %v3233_v26, %v3232_v25  ;;  %v3280_v18 = vunpack.c.l.bf16 %v3351_v13  ;;  %v3923_v25 = vld [vmem:[%s5407_s5 + $0x70] sm:$0xff]   ;;  %v3788_v26 = vpack.i.bf16 %v3285_v16, %v3284_v15  ;;  %v3936_v15 = vld [vmem:[%s5407_s5 + $0xa8] sm:$0xff]  }
  0x2f   :  { %3498 = vmatprep.mubr.msk.bf16.mxu0 %vm252_vm1, %v3885_v35  ;;  %3530 = vmatprep.mubr.msk.bf16.mxu1 %vm252_vm1, %v3886_v37  ;;  %v3240_v35 = vunpack.c.l.bf16 %v3341_v27  ;;  %v3343_v37 = vld [vmem:[%s5409_s3 + $0x50] sm:$0xff]   ;;  %v3292_v27 = vunpack.c.l.bf16 %v3354_v20 }
  0x30   :  { %3724 = vrot.lane.b32.xlu0 %v3723_v34, %s3959_s19  ;;  %v3941_v16 = vld [vmem:[%s5408_s6 + $0xb0] sm:$0xff]  }
  0x36   :  { %3499 = vmatmul.mubr.msk.bf16.gmra.mxu0 %vm252_vm1, %v3887_v38  ;;  %3531 = vmatmul.mubr.msk.bf16.gmra.mxu1 %vm252_vm1, %v3888_v39  ;;  %v3346_v38 = vld [vmem:[%s5409_s3 + $0x68] sm:$0xff]  }
  0x37   :  { %3502 = vmatprep.mubr.msk.bf16.mxu0 %vm252_vm1, %v3890_v40  ;;  %3534 = vmatprep.mubr.msk.bf16.mxu1 %vm252_vm1, %v3891_v41  ;;  %v3914_v39 = vld [vmem:[%s5408_s6 + $0x48] sm:$0xff]   ;;  %v3738_v40 = vpack.i.bf16 %v3245_v33, %v3244_v32  ;;  %v3252_v41 = vunpack.c.l.bf16 %v3344_v30  ;;  %v3356_v32 = vld [vmem:[%s5409_s3 + $0xb8] sm:$0xff]   ;;  %v3355_v33 = vld [vmem:[%s5409_s3 + $0xb0] sm:$0xff]  }
  0x39   :  { %3739 = vrot.lane.b32.xlu1 %v3738_v40, %s3959_s19  ;;  %v3358_v40 = vld [vmem:[%s5409_s3 + $0xc8] sm:$0xff]  }
  0x3e   :  { %3503 = vmatmul.mubr.msk.bf16.gmra.mxu0 %vm252_vm1, %v3892_v42  ;;  %3535 = vmatmul.mubr.msk.bf16.gmra.mxu1 %vm252_vm1, %v3893_v43  ;;  %v3253_v42 = vunpack.c.h.bf16 %v3344_v30  ;;  %v3345_v43 = vld [vmem:[%s5409_s3 + $0x60] sm:$0xff]   ;;  %v3288_v30 = vunpack.c.l.bf16 %v3353_v22  ;;  %v3946_v22 = vld [vmem:[%s5408_s6 + $0xc8] sm:$0xff]  }
  0x3f   :  { %3622 = vmatprep.mubr.bf16.mxu0 %v3896_v44  ;;  %3542 = vmatprep.mubr.msk.bf16.mxu1 %vm882_vm2, %v3895_v45  ;;  %v3912_v44 = vld [vmem:[%s5407_s5 + $0x48] sm:$0xff]   ;;  %v3733_v45 = vpack.i.bf16 %v3241_v36, %v3240_v35  ;;  %v3256_v56 = vunpack.c.l.bf16 %v3345_v43  ;;  %v3257_v57 = vunpack.c.h.bf16 %v3345_v43  ;;  %v3300_v35 = vunpack.c.l.bf16 %v3356_v32  ;;  %v3924_v43 = vld [vmem:[%s5407_s5 + $0x78] sm:$0xff]  }
  0x40   :  { %v3301_v36 = vunpack.c.h.bf16 %v3356_v32  ;;  %v3957_v32 = vld [vmem:[%s5408_s6 + $0xf0] sm:$0xff]  }
  0x41   :  { %3734 = vrot.lane.b32.xlu0 %v3733_v45, %s3959_s19  ;;  %v3753_v63 = vpack.i.bf16 %v3257_v57, %v3256_v56  ;;  %v3927_v45 = vld [vmem:[%s5407_s5 + $0x80] sm:$0xff]  }
  0x46   :  { %3623 = vmatmul.mubr.bf16.vlgmr.msra.gmra.mxu0 %v3898_v47  ;;  %3543 = vmatmul.mubr.msk.bf16.vlgmr.msra.gmra.mxu1 %vm882_vm2, %v3897_v46  ;;  %v3248_v46 = vunpack.c.l.bf16 %v3343_v37  ;;  %v3249_v47 = vunpack.c.h.bf16 %v3343_v37  ;;  %v3793_v37 = vpack.i.bf16 %v3289_v31, %v3288_v30  ;;  %v3954_v30 = vld [vmem:[%s5408_s6 + $0xe8] sm:$0xff]  }
  0x47   :  { %3626 = vmatprep.mubr.bf16.mxu0 %v3901_v48  ;;  %3546 = vmatprep.mubr.msk.bf16.mxu1 %vm882_vm2, %v3899_v49  ;;  %v3915_v48 = vld [vmem:[%s5407_s5 + $0x50] sm:$0xff]   ;;  %v3952_v31 = vld [vmem:[%s5407_s5 + $0xe8] sm:$0xff]  }
  0x48   :  { %v3917_v49 = vld [vmem:[%s5408_s6 + $0x50] sm:$0xff]   ;;  %v3743_v55 = vpack.i.bf16 %v3249_v47, %v3248_v46  ;;  %v3808_v46 = vpack.i.bf16 %v3301_v36, %v3300_v35  ;;  %v3308_v47 = vunpack.c.l.bf16 %v3358_v40  ;;  %v3956_v35 = vld [vmem:[%s5407_s5 + $0xf8] sm:$0xff]  }
  0x4a   :  { %3744 = vrot.lane.b32.xlu0 %v3743_v55, %s3959_s19 }
  0x4e   :  { %3627 = vmatmul.mubr.bf16.gmra.mxu0 %v3902_v51  ;;  %3547 = vmatmul.mubr.msk.bf16.gmra.mxu1 %vm882_vm2, %v3900_v50  ;;  %v3348_v50 = vld [vmem:[%s5409_s3 + $0x78] sm:$0xff]   ;;  %v3748_v51 = vpack.i.bf16 %v3253_v42, %v3252_v41  ;;  %v3357_v42 = vld [vmem:[%s5409_s3 + $0xc0] sm:$0xff]  }
  0x4f   :  { %3630 = vmatprep.mubr.bf16.mxu0 %v3905_v52  ;;  %3550 = vmatprep.mubr.msk.bf16.mxu1 %vm882_vm2, %v3903_v53  ;;  %v3260_v52 = vunpack.c.l.bf16 %v3346_v38  ;;  %v3261_v53 = vunpack.c.h.bf16 %v3346_v38  ;;  %v3269_v62 = vunpack.c.h.bf16 %v3348_v50  ;;  %v3296_v38 = vunpack.c.l.bf16 %v3355_v33  ;;  %v3926_v41 = vld [vmem:[%s5408_s6 + $0x78] sm:$0xff]  }
  0x50   :  { %3749 = vrot.lane.b32.xlu1 %v3748_v51, %s3959_s19  ;;  %3754 = vrot.lane.b32.xlu0 %v3753_v63, %s3959_s19  ;;  %v3305_v51 = vunpack.c.h.bf16 %v3357_v42  ;;  %v3928_v63 = vld [vmem:[%s5407_s5 + $0x88] sm:$0xff]  }
  0x54   :  { %3764 = vrot.lane.b32.xlu0 %v3763_v9, %s3959_s19 }
  0x56   :  { %3631 = vmatmul.mubr.bf16.gmra.mxu0 %v3906_v61  ;;  %3551 = vmatmul.mubr.msk.bf16.gmra.mxu1 %vm882_vm2, %v3904_v60  ;;  %v3758_v60 = vpack.i.bf16 %v3261_v53, %v3260_v52  ;;  %v3268_v61 = vunpack.c.l.bf16 %v3348_v50  ;;  %v3304_v50 = vunpack.c.l.bf16 %v3357_v42  ;;  %v3360_v52 = vld [vmem:[%s5409_s3 + $0xd8] sm:$0xff]   ;;  %v3359_v53 = vld [vmem:[%s5409_s3 + $0xd0] sm:$0xff]  }
  0x57   :  { %3634 = vmatprep.mubr.bf16.mxu0 %v3909_v2  ;;  %3554 = vmatprep.mubr.msk.bf16.mxu1 %vm882_vm2, %v3907_v7  ;;  %v3349_v2 = vld [vmem:[%s5409_s3 + $0x80] sm:$0xff]   ;;  %v3276_v7 = vunpack.c.l.bf16 %v3350_v58  ;;  %v3316_v55 = vunpack.c.l.bf16 %v3360_v52  ;;  %v3317_v56 = vunpack.c.h.bf16 %v3360_v52  ;;  %v3312_v58 = vunpack.c.l.bf16 %v3359_v53 }
  0x58   :  { %3759 = vrot.lane.b32.xlu1 %v3758_v60, %s3959_s19  ;;  %v3768_v6 = vpack.i.bf16 %v3269_v62, %v3268_v61  ;;  %v3272_v10 = vunpack.c.l.bf16 %v3349_v2  ;;  %v3273_v11 = vunpack.c.h.bf16 %v3349_v2  ;;  %v3813_v57 = vpack.i.bf16 %v3305_v51, %v3304_v50  ;;  %v3362_v60 = vld [vmem:[%s5409_s3 + $0xe8] sm:$0xff]   ;;  %v3361_v62 = vld [vmem:[%s5409_s3 + $0xe0] sm:$0xff]  }
  0x59   :  { %v3778_v14 = vpack.i.bf16 %v3277_v8, %v3276_v7  ;;  %v3930_v61 = vld [vmem:[%s5408_s6 + $0x88] sm:$0xff]   ;;  %v3828_v2 = vpack.i.bf16 %v3317_v56, %v3316_v55  ;;  %v3321_v7 = vunpack.c.h.bf16 %v3361_v62 }
  0x5a   :  { %v3773_v17 = vpack.i.bf16 %v3273_v11, %v3272_v10  ;;  %v3934_v10 = vld [vmem:[%s5408_s6 + $0x98] sm:$0xff]  }
  0x5b   :  { %v3932_v11 = vld [vmem:[%s5407_s5 + $0x98] sm:$0xff]  }
  0x5c   :  { %3769 = vrot.lane.b32.xlu1 %v3768_v6, %s3959_s19  ;;  %3774 = vrot.lane.b32.xlu0 %v3773_v17, %s3959_s19  ;;  %v3320_v6 = vunpack.c.l.bf16 %v3361_v62  ;;  %v3939_v17 = vld [vmem:[%s5407_s5 + $0xb0] sm:$0xff]  }
  0x5e   :  { %3635 = vmatmul.mubr.bf16.gmra.mxu0 %v3910_v19  ;;  %3555 = vmatmul.mubr.msk.bf16.gmra.mxu1 %vm882_vm2, %v3908_v23  ;;  %v3281_v19 = vunpack.c.h.bf16 %v3351_v13  ;;  %v3920_v23 = vld [vmem:[%s5407_s5 + $0x68] sm:$0xff]   ;;  %v3833_v9 = vpack.i.bf16 %v3321_v7, %v3320_v6  ;;  %v3935_v13 = vld [vmem:[%s5407_s5 + $0xa0] sm:$0xff]  }
  0x5f   :  { %3638 = vmatprep.mubr.bf16.mxu0 %v3913_v29  ;;  %3558 = vmatprep.mubr.msk.bf16.mxu1 %vm882_vm2, %v3911_v28  ;;  %v3293_v28 = vunpack.c.h.bf16 %v3354_v20  ;;  %v3945_v20 = vld [vmem:[%s5408_s6 + $0xc0] sm:$0xff]  }
  0x60   :  { %3779 = vrot.lane.b32.xlu1 %v3778_v14, %s3959_s19  ;;  %v3783_v29 = vpack.i.bf16 %v3281_v19, %v3280_v18  ;;  %v3938_v14 = vld [vmem:[%s5408_s6 + $0xa8] sm:$0xff]   ;;  %v3942_v18 = vld [vmem:[%s5408_s6 + $0xb8] sm:$0xff]  }
  0x61   :  { %v3798_v34 = vpack.i.bf16 %v3293_v28, %v3292_v27  ;;  %v3940_v19 = vld [vmem:[%s5407_s5 + $0xb8] sm:$0xff]   ;;  %v3953_v28 = vld [vmem:[%s5408_s6 + $0xe0] sm:$0xff]  }
  0x62   :  { %3784 = vrot.lane.b32.xlu0 %v3783_v29, %s3959_s19  ;;  %v3948_v27 = vld [vmem:[%s5407_s5 + $0xd8] sm:$0xff]   ;;  %v3951_v29 = vld [vmem:[%s5407_s5 + $0xe0] sm:$0xff]  }
  0x64   :  { %3789 = vrot.lane.b32.xlu1 %v3788_v26, %s3959_s19  ;;  %v3950_v26 = vld [vmem:[%s5408_s6 + $0xd8] sm:$0xff]  }
  0x66   :  { %3639 = vmatmul.mubr.bf16.gmra.mxu0 %v3914_v39  ;;  %3559 = vmatmul.mubr.msk.bf16.gmra.mxu1 %vm882_vm2, %v3912_v44  ;;  %v3297_v39 = vunpack.c.h.bf16 %v3355_v33  ;;  %v3929_v44 = vld [vmem:[%s5408_s6 + $0x80] sm:$0xff]   ;;  %v3955_v33 = vld [vmem:[%s5407_s5 + $0xf0] sm:$0xff]  }
  0x67   :  { %3642 = vmatprep.mubr.bf16.mxu0 %v3917_v49  ;;  %3562 = vmatprep.mubr.msk.bf16.mxu1 %vm882_vm2, %v3915_v48  ;;  %v3309_v48 = vunpack.c.h.bf16 %v3358_v40 }
  0x68   :  { %3799 = vrot.lane.b32.xlu1 %v3798_v34, %s3959_s19  ;;  %3794 = vrot.lane.b32.xlu0 %v3793_v37, %s3959_s19  ;;  %v3803_v49 = vpack.i.bf16 %v3297_v39, %v3296_v38  ;;  %v3958_v34 = vld [vmem:[%s5408_s6 + $0xf8] sm:$0xff]  }
  0x69   :  { %v3818_v54 = vpack.i.bf16 %v3309_v48, %v3308_v47 }
  0x6c   :  { %3809 = vrot.lane.b32.xlu1 %v3808_v46, %s3959_s19  ;;  %3804 = vrot.lane.b32.xlu0 %v3803_v49, %s3959_s19 }
  0x6e   :  { %3643 = vmatmul.mubr.bf16.gmra.mxu0 %v3918_v59  ;;  %3563 = vmatmul.mubr.msk.bf16.gmra.mxu1 %vm882_vm2, %v3916_v3  ;;  %v3313_v59 = vunpack.c.h.bf16 %v3359_v53  ;;  %v3324_v3 = vunpack.c.l.bf16 %v3362_v60 }
  0x6f   :  { %3646 = vmatprep.mubr.bf16.mxu0 %v3921_v4  ;;  %3566 = vmatprep.mubr.msk.bf16.mxu1 %vm882_vm2, %v3919_v5  ;;  %v3325_v4 = vunpack.c.h.bf16 %v3362_v60 }
  0x70   :  { %3819 = vrot.lane.b32.xlu1 %v3818_v54, %s3959_s19  ;;  %3814 = vrot.lane.b32.xlu0 %v3813_v57, %s3959_s19  ;;  %v3823_v5 = vpack.i.bf16 %v3313_v59, %v3312_v58 }
  0x71   :  { %v3838_v8 = vpack.i.bf16 %v3325_v4, %v3324_v3 }
  0x74   :  { %3829 = vrot.lane.b32.xlu1 %v3828_v2, %s3959_s19  ;;  %3824 = vrot.lane.b32.xlu0 %v3823_v5, %s3959_s19 }
  0x76   :  { %3647 = vmatmul.mubr.bf16.gmra.mxu0 %v3922_v21  ;;  %3567 = vmatmul.mubr.msk.bf16.gmra.mxu1 %vm882_vm2, %v3920_v23  ;;  %v3943_v21 = vld [vmem:[%s5407_s5 + $0xc0] sm:$0xff]   ;;  %v3944_v23 = vld [vmem:[%s5407_s5 + $0xc8] sm:$0xff]  }
  0x77   :  { %3650 = vmatprep.mubr.bf16.mxu0 %v3925_v24  ;;  %3570 = vmatprep.mubr.msk.bf16.mxu1 %vm882_vm2, %v3923_v25  ;;  %v3949_v24 = vld [vmem:[%s5408_s6 + $0xd0] sm:$0xff]   ;;  %s3961_s6 = smov 4  }
  0x78   :  { %3839 = vrot.lane.b32.xlu1 %v3838_v8, %s3959_s19  ;;  %3834 = vrot.lane.b32.xlu0 %v3833_v9, %s3959_s19  ;;  %v3947_v25 = vld [vmem:[%s5407_s5 + $0xd0] sm:$0xff]   ;;  %s3960_s5 = smov 8  }
  0x7e   :  { %3651 = vmatmul.mubr.bf16.gmra.mxu0 %v3926_v41  ;;  %3571 = vmatmul.mubr.msk.bf16.gmra.mxu1 %vm882_vm2, %v3924_v43 }
  0x7f   :  { %3654 = vmatprep.mubr.bf16.mxu0 %v3929_v44  ;;  %3574 = vmatprep.mubr.msk.bf16.mxu1 %vm882_vm2, %v3927_v45 }
  0x86   :  { %3655 = vmatmul.mubr.bf16.gmra.mxu0 %v3930_v61  ;;  %3575 = vmatmul.mubr.msk.bf16.gmra.mxu1 %vm882_vm2, %v3928_v63 }
  0x87   :  { %3658 = vmatprep.mubr.bf16.mxu0 %v3933_v0  ;;  %3578 = vmatprep.mubr.msk.bf16.mxu1 %vm882_vm2, %v3931_v1 }
  0x8e   :  { %3659 = vmatmul.mubr.bf16.gmra.mxu0 %v3934_v10  ;;  %3579 = vmatmul.mubr.msk.bf16.gmra.mxu1 %vm882_vm2, %v3932_v11 }
  0x8f   :  { %3662 = vmatprep.mubr.bf16.mxu0 %v3937_v12  ;;  %3582 = vmatprep.mubr.msk.bf16.mxu1 %vm882_vm2, %v3935_v13 }
  0x96   :  { %3663 = vmatmul.mubr.bf16.gmra.mxu0 %v3938_v14  ;;  %3583 = vmatmul.mubr.msk.bf16.gmra.mxu1 %vm882_vm2, %v3936_v15 }
  0x97   :  { %3666 = vmatprep.mubr.bf16.mxu0 %v3941_v16  ;;  %3586 = vmatprep.mubr.msk.bf16.mxu1 %vm882_vm2, %v3939_v17 }
  0x9e   :  { %3667 = vmatmul.mubr.bf16.gmra.mxu0 %v3942_v18  ;;  %3587 = vmatmul.mubr.msk.bf16.gmra.mxu1 %vm882_vm2, %v3940_v19 }
  0x9f   :  { %3670 = vmatprep.mubr.bf16.mxu0 %v3945_v20  ;;  %3590 = vmatprep.mubr.msk.bf16.mxu1 %vm882_vm2, %v3943_v21 }
  0xa6   :  { %3671 = vmatmul.mubr.bf16.gmra.mxu0 %v3946_v22  ;;  %3591 = vmatmul.mubr.msk.bf16.gmra.mxu1 %vm882_vm2, %v3944_v23 }
  0xa7   :  { %3674 = vmatprep.mubr.bf16.mxu0 %v3949_v24  ;;  %3594 = vmatprep.mubr.msk.bf16.mxu1 %vm882_vm2, %v3947_v25 }
  0xae   :  { %3675 = vmatmul.mubr.bf16.gmra.mxu0 %v3950_v26  ;;  %3595 = vmatmul.mubr.msk.bf16.gmra.mxu1 %vm882_vm2, %v3948_v27 }
  0xaf   :  { %3678 = vmatprep.mubr.bf16.mxu0 %v3953_v28  ;;  %3598 = vmatprep.mubr.msk.bf16.mxu1 %vm882_vm2, %v3951_v29 }
  0xb6   :  { %3679 = vmatmul.mubr.bf16.gmra.mxu0 %v3954_v30  ;;  %3599 = vmatmul.mubr.msk.bf16.gmra.mxu1 %vm882_vm2, %v3952_v31 }
  0xb7   :  { %3682 = vmatprep.mubr.bf16.mxu0 %v3957_v32  ;;  %3602 = vmatprep.mubr.msk.bf16.mxu1 %vm882_vm2, %v3955_v33 }
  0xbe   :  { %3683 = vmatmul.mubr.bf16.gmra.mxu0 %v3958_v34  ;;  %3603 = vmatmul.mubr.msk.bf16.gmra.mxu1 %vm882_vm2, %v3956_v35 }
  0xc6   :  { %v4507_v36 = vpop.f32.mrf.mxu0  ;;  %v4509_v37 = vpop.f32.mrf.mxu1 }
  0xc7   :  { %5424 = vst [vmem:[#allocation2_spill] sm:$0xff] %v4509_v37 }
  0xc8   :  { %v4511_v38 = vpop.f32.mrf.mxu0  ;;  %v4513_v39 = vpop.f32.mrf.mxu1 }
  0xc9   :  { %5425 = vst [vmem:[#allocation3_spill] sm:$0xff] %v4513_v39 }
  0xca   :  { %v4515_v40 = vpop.f32.mrf.mxu0  ;;  %v4517_v41 = vpop.f32.mrf.mxu1 }
  0xcb   :  { %5426 = vst [vmem:[#allocation4_spill] sm:$0xff] %v4517_v41 }
  0xcc   :  { %v4519_v42 = vpop.f32.mrf.mxu0  ;;  %v4521_v43 = vpop.f32.mrf.mxu1 }
  0xcd   :  { %5427 = vst [vmem:[#allocation5_spill] sm:$0xff] %v4521_v43 }
  0xce   :  { %v4523_v44 = vpop.f32.mrf.mxu0  ;;  %v4525_v45 = vpop.f32.mrf.mxu1 }
  0xcf   :  { %5428 = vst [vmem:[#allocation6_spill] sm:$0xff] %v4525_v45 }
  0xd0   :  { %v4527_v46 = vpop.f32.mrf.mxu0  ;;  %v4529_v47 = vpop.f32.mrf.mxu1 }
  0xd1   :  { %5429 = vst [vmem:[#allocation7_spill] sm:$0xff] %v4529_v47 }
  0xd2   :  { %v4531_v48 = vpop.f32.mrf.mxu0  ;;  %v4533_v49 = vpop.f32.mrf.mxu1 }
  0xd3   :  { %5430 = vst [vmem:[#allocation8_spill] sm:$0xff] %v4533_v49 }
  0xd4   :  { %v4535_v50 = vpop.f32.mrf.mxu0  ;;  %v4537_v51 = vpop.f32.mrf.mxu1 }
  0xd5   :  { %5431 = vst [vmem:[#allocation9_spill] sm:$0xff] %v4537_v51 }
  0xd6   :  { %v4539_v52 = vpop.f32.mrf.mxu0  ;;  %v4541_v53 = vpop.f32.mrf.mxu1 }
  0xd7   :  { %5432 = vst [vmem:[#allocation10_spill] sm:$0xff] %v4541_v53 }
  0xd8   :  { %v4543_v54 = vpop.f32.mrf.mxu0  ;;  %v4545_v55 = vpop.f32.mrf.mxu1 }
  0xd9   :  { %5433 = vst [vmem:[#allocation11_spill] sm:$0xff] %v4545_v55 }
  0xda   :  { %v4547_v56 = vpop.f32.mrf.mxu0  ;;  %v4549_v57 = vpop.f32.mrf.mxu1 }
  0xdb   :  { %5434 = vst [vmem:[#allocation12_spill] sm:$0xff] %v4549_v57 }
  0xdc   :  { %v4551_v58 = vpop.f32.mrf.mxu0  ;;  %v4553_v59 = vpop.f32.mrf.mxu1 }
  0xdd   :  { %5435 = vst [vmem:[#allocation13_spill] sm:$0xff] %v4553_v59 }
  0xde   :  { %v4555_v60 = vpop.f32.mrf.mxu0  ;;  %v4557_v61 = vpop.f32.mrf.mxu1 }
  0xdf   :  { %5436 = vst [vmem:[#allocation14_spill] sm:$0xff] %v4557_v61 }
  0xe0   :  { %v4559_v62 = vpop.f32.mrf.mxu0  ;;  %v4561_v63 = vpop.f32.mrf.mxu1 }
  0xe1   :  { %5437 = vst [vmem:[#allocation15_spill] sm:$0xff] %v4561_v63 }
  0xe2   :  { %v4563_v0 = vpop.f32.mrf.mxu0  ;;  %v4565_v1 = vpop.f32.mrf.mxu1 }
  0xe3   :  { %5438 = vst [vmem:[#allocation16_spill] sm:$0xff] %v4565_v1 }
  0xe4   :  { %v4567_v2 = vpop.f32.mrf.mxu0  ;;  %v4569_v3 = vpop.f32.mrf.mxu1 }
  0xe5   :  { %5439 = vst [vmem:[#allocation17_spill] sm:$0xff] %v4569_v3 }
  0xe6   :  { %v4571_v4 = vpop.f32.mrf.mxu0  ;;  %v4573_v5 = vpop.f32.mrf.mxu1 }
  0xe7   :  { %5440 = vst [vmem:[#allocation18_spill] sm:$0xff] %v4573_v5 }
  0xe8   :  { %v4575_v6 = vpop.f32.mrf.mxu0  ;;  %v4577_v7 = vpop.f32.mrf.mxu1 }
  0xe9   :  { %5441 = vst [vmem:[#allocation19_spill] sm:$0xff] %v4577_v7 }
  0xea   :  { %v4579_v8 = vpop.f32.mrf.mxu0  ;;  %v4581_v9 = vpop.f32.mrf.mxu1 }
  0xeb   :  { %5442 = vst [vmem:[#allocation20_spill] sm:$0xff] %v4581_v9 }
  0xec   :  { %v4583_v10 = vpop.f32.mrf.mxu0  ;;  %v4585_v11 = vpop.f32.mrf.mxu1 }
  0xed   :  { %5443 = vst [vmem:[#allocation21_spill] sm:$0xff] %v4585_v11 }
  0xee   :  { %v4587_v12 = vpop.f32.mrf.mxu0  ;;  %v4589_v13 = vpop.f32.mrf.mxu1 }
  0xef   :  { %5444 = vst [vmem:[#allocation22_spill] sm:$0xff] %v4589_v13 }
  0xf0   :  { %v4591_v14 = vpop.f32.mrf.mxu0  ;;  %v4593_v15 = vpop.f32.mrf.mxu1 }
  0xf1   :  { %5445 = vst [vmem:[#allocation23_spill] sm:$0xff] %v4593_v15 }
  0xf2   :  { %v4595_v16 = vpop.f32.mrf.mxu0  ;;  %v4597_v17 = vpop.f32.mrf.mxu1 }
  0xf3   :  { %5446 = vst [vmem:[#allocation24_spill] sm:$0xff] %v4597_v17 }
  0xf4   :  { %v4599_v18 = vpop.f32.mrf.mxu0  ;;  %v4601_v19 = vpop.f32.mrf.mxu1 }
  0xf5   :  { %5447 = vst [vmem:[#allocation25_spill] sm:$0xff] %v4601_v19 }
  0xf6   :  { %v4603_v20 = vpop.f32.mrf.mxu0  ;;  %v4605_v21 = vpop.f32.mrf.mxu1 }
  0xf7   :  { %5448 = vst [vmem:[#allocation26_spill] sm:$0xff] %v4605_v21 }
  0xf8   :  { %v4607_v22 = vpop.f32.mrf.mxu0  ;;  %v4609_v23 = vpop.f32.mrf.mxu1 }
  0xf9   :  { %5449 = vst [vmem:[#allocation27_spill] sm:$0xff] %v4609_v23 }
  0xfa   :  { %v4611_v24 = vpop.f32.mrf.mxu0  ;;  %v4613_v25 = vpop.f32.mrf.mxu1 }
  0xfb   :  { %5450 = vst [vmem:[#allocation28_spill] sm:$0xff] %v4613_v25 }
  0xfc   :  { %v4615_v26 = vpop.f32.mrf.mxu0  ;;  %v4617_v27 = vpop.f32.mrf.mxu1 }
  0xfd   :  { %5451 = vst [vmem:[#allocation29_spill] sm:$0xff] %v4617_v27 }
  0xfe   :  { %v4619_v28 = vpop.f32.mrf.mxu0  ;;  %v4621_v29 = vpop.f32.mrf.mxu1 }
  0xff   :  { %5452 = vst [vmem:[#allocation30_spill] sm:$0xff] %v4621_v29 }
 0x100   :  { %v4623_v30 = vpop.f32.mrf.mxu0  ;;  %v4625_v31 = vpop.f32.mrf.mxu1 }
 0x101   :  { %5453 = vst [vmem:[#allocation31_spill] sm:$0xff] %v4625_v31 }
 0x102   :  { %v4627_v32 = vpop.f32.mrf.mxu0  ;;  %v4629_v33 = vpop.f32.mrf.mxu1 }
 0x103   :  { %5454 = vst [vmem:[#allocation32_spill] sm:$0xff] %v4629_v33 }
 0x104   :  { %v4631_v34 = vpop.f32.mrf.mxu0  ;;  %v4633_v35 = vpop.f32.mrf.mxu1 }
 0x105   :  { %5455 = vst [vmem:[#allocation33_spill] sm:$0xff] %v4633_v35 }
 0x106   :  { %v3624_v23 = vpop.f32.mrf.mxu0  ;;  %v3544_v25 = vpop.f32.mrf.mxu1 }
 0x107   :  { %2329 = vrot.lane.b32.xlu0 %v3624_v23, %s3960_s5  ;;  %2073 = vrot.lane.b32.xlu1 %v3544_v25, %s3961_s6 }
 0x108   :  { %v1013_v29 = vpop.f32.mrf.mxu1  ;;  %v1622_v27 = vpop.f32.mrf.mxu0 }
 0x10a   :  { %v3545_v21 = vpop.f32.mrf.mxu1  ;;  %v3625_v31 = vpop.f32.mrf.mxu0 }
 0x10b   :  { %2069 = vrot.lane.b32.xlu0 %v1013_v29, %s3961_s6  ;;  %2075 = vrot.lane.b32.xlu1 %v3545_v21, %s3961_s6  ;;  %v4647_v29 = vpop.permute.xlu0 %3694 }
 0x10c   :  { %v1016_v33 = vpop.f32.mrf.mxu1  ;;  %v1625_v35 = vpop.f32.mrf.mxu0 }
 0x10e   :  { %v3548_v19 = vpop.f32.mrf.mxu1  ;;  %v3628_v23 = vpop.f32.mrf.mxu0 }
 0x10f   :  { %2325 = vrot.lane.b32.xlu0 %v1622_v27, %s3960_s5  ;;  %2331 = vrot.lane.b32.xlu1 %v3625_v31, %s3960_s5 }
 0x110   :  { %v1029_v15 = vpop.f32.mrf.mxu1  ;;  %v1638_v17 = vpop.f32.mrf.mxu0 }
 0x112   :  { %v3549_v25 = vpop.f32.mrf.mxu1  ;;  %v3629_v21 = vpop.f32.mrf.mxu0 }
 0x113   :  { %2071 = vrot.lane.b32.xlu0 %v1016_v33, %s3961_s6  ;;  %2327 = vrot.lane.b32.xlu1 %v1625_v35, %s3960_s5  ;;  %v4651_v33 = vpop.permute.xlu1 %3699 }
 0x114   :  { %v1032_v27 = vpop.f32.mrf.mxu1  ;;  %v1641_v35 = vpop.f32.mrf.mxu0 }
 0x116   :  { %v3552_v31 = vpop.f32.mrf.mxu1 }
 0x117   :  { %2081 = vrot.lane.b32.xlu0 %v3548_v19, %s3961_s6  ;;  %2083 = vrot.lane.b32.xlu1 %v3549_v25, %s3961_s6  ;;  %v3632_v19 = vpop.f32.mrf.mxu0  ;;  %v4657_v25 = vpop.permute.xlu1 %3709 }
 0x118   :  { %v1045_v13 = vpop.f32.mrf.mxu1 }
 0x119   :  { %v1654_v11 = vpop.f32.mrf.mxu0 }
 0x11b   :  { %2337 = vrot.lane.b32.xlu0 %v3628_v23, %s3960_s5  ;;  %2339 = vrot.lane.b32.xlu1 %v3629_v21, %s3960_s5  ;;  %v4655_v23 = vpop.permute.xlu0 %3704  ;;  %v3553_v21 = vpop.f32.mrf.mxu1 }
 0x11f   :  { %2077 = vrot.lane.b32.xlu0 %v1029_v15, %s3961_s6  ;;  %2079 = vrot.lane.b32.xlu1 %v1032_v27, %s3961_s6  ;;  %v4661_v15 = vpop.permute.xlu0 %3714  ;;  %v3633_v27 = vpop.f32.mrf.mxu0 }
 0x123   :  { %2333 = vrot.lane.b32.xlu0 %v1638_v17, %s3960_s5  ;;  %2335 = vrot.lane.b32.xlu1 %v1641_v35, %s3960_s5  ;;  %v4665_v17 = vpop.permute.xlu1 %3719  ;;  %v1048_v35 = vpop.f32.mrf.mxu1 }
 0x124   :  { %v4669_v9 = vpop.permute.xlu0 %3724 }
 0x125   :  { %v3556_v7 = vpop.f32.mrf.mxu1 }
 0x127   :  { %2089 = vrot.lane.b32.xlu0 %v3552_v31, %s3961_s6  ;;  %2091 = vrot.lane.b32.xlu1 %v3553_v21, %s3961_s6  ;;  %v1657_v31 = vpop.f32.mrf.mxu0  ;;  %v4671_v5 = vpop.permute.xlu1 %3729 }
 0x128   :  { %v1061_v21 = vpop.f32.mrf.mxu1 }
 0x129   :  { %v3636_v3 = vpop.f32.mrf.mxu0 }
 0x12b   :  { %2345 = vrot.lane.b32.xlu0 %v3632_v19, %s3960_s5  ;;  %2347 = vrot.lane.b32.xlu1 %v3633_v27, %s3960_s5  ;;  %v4675_v19 = vpop.permute.xlu0 %3734  ;;  %v3557_v27 = vpop.f32.mrf.mxu1 }
 0x12c   :  { %v1670_v63 = vpop.f32.mrf.mxu0 }
 0x12f   :  { %2085 = vrot.lane.b32.xlu0 %v1045_v13, %s3961_s6  ;;  %2087 = vrot.lane.b32.xlu1 %v1048_v35, %s3961_s6  ;;  %v4679_v13 = vpop.permute.xlu1 %3739  ;;  %v3637_v35 = vpop.f32.mrf.mxu0 }
 0x130   :  { %v4683_v1 = vpop.permute.xlu0 %3744 }
 0x133   :  { %2341 = vrot.lane.b32.xlu0 %v1654_v11, %s3960_s5  ;;  %2343 = vrot.lane.b32.xlu1 %v1657_v31, %s3960_s5  ;;  %v1064_v11 = vpop.f32.mrf.mxu1  ;;  %v4685_v61 = vpop.permute.xlu1 %3749 }
 0x134   :  { %v4689_v59 = vpop.permute.xlu0 %3754 }
 0x135   :  { %v3560_v31 = vpop.f32.mrf.mxu1 }
 0x137   :  { %2097 = vrot.lane.b32.xlu0 %v3556_v7, %s3961_s6  ;;  %2099 = vrot.lane.b32.xlu1 %v3557_v27, %s3961_s6  ;;  %v1673_v7 = vpop.f32.mrf.mxu0  ;;  %v1077_v27 = vpop.f32.mrf.mxu1 }
 0x139   :  { %v3640_v55 = vpop.f32.mrf.mxu0 }
 0x13b   :  { %2353 = vrot.lane.b32.xlu0 %v3636_v3, %s3960_s5  ;;  %2355 = vrot.lane.b32.xlu1 %v3637_v35, %s3960_s5  ;;  %v4693_v3 = vpop.permute.xlu1 %3759  ;;  %v3561_v35 = vpop.f32.mrf.mxu1 }
 0x13c   :  { %v1686_v57 = vpop.f32.mrf.mxu0 }
 0x13e   :  { %v3641_v53 = vpop.f32.mrf.mxu0 }
 0x13f   :  { %2093 = vrot.lane.b32.xlu0 %v1061_v21, %s3961_s6  ;;  %2095 = vrot.lane.b32.xlu1 %v1064_v11, %s3961_s6  ;;  %v4697_v21 = vpop.permute.xlu0 %3764  ;;  %v4699_v11 = vpop.permute.xlu1 %3769 }
 0x143   :  { %2349 = vrot.lane.b32.xlu0 %v1670_v63, %s3960_s5  ;;  %2351 = vrot.lane.b32.xlu1 %v1673_v7, %s3960_s5  ;;  %v1080_v63 = vpop.f32.mrf.mxu1  ;;  %v4703_v51 = vpop.permute.xlu0 %3774 }
 0x144   :  { %5456 = vst [vmem:[#allocation34_spill] sm:$0xff] %v4703_v51 }
 0x145   :  { %v3564_v7 = vpop.f32.mrf.mxu1 }
 0x147   :  { %2105 = vrot.lane.b32.xlu0 %v3560_v31, %s3961_s6  ;;  %2107 = vrot.lane.b32.xlu1 %v3561_v35, %s3961_s6  ;;  %v4707_v31 = vpop.permute.xlu1 %3779  ;;  %v1689_v35 = vpop.f32.mrf.mxu0 }
 0x148   :  { %v1093_v47 = vpop.f32.mrf.mxu1 }
 0x149   :  { %v3644_v49 = vpop.f32.mrf.mxu0 }
 0x14a   :  { %v3565_v45 = vpop.f32.mrf.mxu1 }
 0x14b   :  { %2361 = vrot.lane.b32.xlu0 %v3640_v55, %s3960_s5  ;;  %2363 = vrot.lane.b32.xlu1 %v3641_v53, %s3960_s5  ;;  %v4711_v55 = vpop.permute.xlu0 %3784  ;;  %v4713_v53 = vpop.permute.xlu1 %3789 }
 0x14c   :  { %5457 = vst [vmem:[#allocation35_spill] sm:$0xff] %v4711_v55  ;;  %5458 = vst [vmem:[#allocation36_spill] sm:$0xff] %v4713_v53  ;;  %v1702_v43 = vpop.f32.mrf.mxu0 }
 0x14f   :  { %2101 = vrot.lane.b32.xlu0 %v1077_v27, %s3961_s6  ;;  %2103 = vrot.lane.b32.xlu1 %v1080_v63, %s3961_s6  ;;  %v4717_v27 = vpop.permute.xlu0 %3794  ;;  %v3645_v63 = vpop.f32.mrf.mxu0 }
 0x150   :  { %5459 = vst [vmem:[#allocation37_spill] sm:$0xff] %v4717_v27 }
 0x153   :  { %2357 = vrot.lane.b32.xlu0 %v1686_v57, %s3960_s5  ;;  %2359 = vrot.lane.b32.xlu1 %v1689_v35, %s3960_s5  ;;  %v4721_v57 = vpop.permute.xlu1 %3799  ;;  %v1096_v35 = vpop.f32.mrf.mxu1 }
 0x154   :  { %5460 = vst [vmem:[#allocation38_spill] sm:$0xff] %v4721_v57  ;;  %v4725_v55 = vpop.permute.xlu0 %3804 }
 0x155   :  { %v3568_v39 = vpop.f32.mrf.mxu1  ;;  %5461 = vst [vmem:[#allocation39_spill] sm:$0xff] %v4725_v55 }
 0x157   :  { %2113 = vrot.lane.b32.xlu0 %v3564_v7, %s3961_s6  ;;  %2115 = vrot.lane.b32.xlu1 %v3565_v45, %s3961_s6  ;;  %v1705_v7 = vpop.f32.mrf.mxu0  ;;  %v4727_v53 = vpop.permute.xlu1 %3809 }
 0x158   :  { %5462 = vst [vmem:[#allocation40_spill] sm:$0xff] %v4727_v53  ;;  %v1109_v45 = vpop.f32.mrf.mxu1 }
 0x159   :  { %v3648_v27 = vpop.f32.mrf.mxu0 }
 0x15b   :  { %2369 = vrot.lane.b32.xlu0 %v3644_v49, %s3960_s5  ;;  %2371 = vrot.lane.b32.xlu1 %v3645_v63, %s3960_s5  ;;  %v4731_v49 = vpop.permute.xlu0 %3814  ;;  %v3569_v63 = vpop.f32.mrf.mxu1 }
 0x15c   :  { %5463 = vst [vmem:[#allocation41_spill] sm:$0xff] %v4731_v49  ;;  %v1718_v57 = vpop.f32.mrf.mxu0 }
 0x15f   :  { %2109 = vrot.lane.b32.xlu0 %v1093_v47, %s3961_s6  ;;  %2111 = vrot.lane.b32.xlu1 %v1096_v35, %s3961_s6  ;;  %v4735_v47 = vpop.permute.xlu1 %3819  ;;  %v3649_v35 = vpop.f32.mrf.mxu0 }
 0x160   :  { %5464 = vst [vmem:[#allocation42_spill] sm:$0xff] %v4735_v47  ;;  %v4739_v55 = vpop.permute.xlu0 %3824 }
 0x161   :  { %5465 = vst [vmem:[#allocation43_spill] sm:$0xff] %v4739_v55 }
 0x163   :  { %2365 = vrot.lane.b32.xlu0 %v1702_v43, %s3960_s5  ;;  %2367 = vrot.lane.b32.xlu1 %v1705_v7, %s3960_s5  ;;  %v1112_v43 = vpop.f32.mrf.mxu1  ;;  %v4741_v53 = vpop.permute.xlu1 %3829 }
 0x164   :  { %5466 = vst [vmem:[#allocation44_spill] sm:$0xff] %v4741_v53  ;;  %v4745_v49 = vpop.permute.xlu0 %3834 }
 0x165   :  { %v3572_v7 = vpop.f32.mrf.mxu1  ;;  %5467 = vst [vmem:[#allocation45_spill] sm:$0xff] %v4745_v49  ;;  %v3701_v49 = vunpack.i.l.bf16 %v4651_v33 }
 0x167   :  { %2121 = vrot.lane.b32.xlu0 %v3568_v39, %s3961_s6  ;;  %2123 = vrot.lane.b32.xlu1 %v3569_v63, %s3961_s6  ;;  %v1721_v39 = vpop.f32.mrf.mxu0  ;;  %v1125_v63 = vpop.f32.mrf.mxu1 }
 0x169   :  { %v3652_v47 = vpop.f32.mrf.mxu0 }
 0x16b   :  { %2377 = vrot.lane.b32.xlu0 %v3648_v27, %s3960_s5  ;;  %2379 = vrot.lane.b32.xlu1 %v3649_v35, %s3960_s5  ;;  %v4749_v27 = vpop.permute.xlu1 %3839  ;;  %v3573_v35 = vpop.f32.mrf.mxu1 }
 0x16c   :  { %5468 = vst [vmem:[#allocation46_spill] sm:$0xff] %v4749_v27  ;;  %v1734_v55 = vpop.f32.mrf.mxu0 }
 0x16e   :  { %v3653_v53 = vpop.f32.mrf.mxu0 }
 0x16f   :  { %2117 = vrot.lane.b32.xlu0 %v1109_v45, %s3961_s6  ;;  %2119 = vrot.lane.b32.xlu1 %v1112_v43, %s3961_s6 }
 0x173   :  { %2373 = vrot.lane.b32.xlu0 %v1718_v57, %s3960_s5  ;;  %2375 = vrot.lane.b32.xlu1 %v1721_v39, %s3960_s5 }
 0x177   :  { %2129 = vrot.lane.b32.xlu0 %v3572_v7, %s3961_s6  ;;  %2131 = vrot.lane.b32.xlu1 %v3573_v35, %s3961_s6  ;;  %v1128_v7 = vpop.f32.mrf.mxu1 }
 0x179   :  { %v2330_v45 = vpop.permute.xlu0 %2329  ;;  %v2074_v43 = vpop.permute.xlu1 %2073 }
 0x17a   :  { %v2776_v57 = vsel %vm2773_vm3, %v4507_v36, %v2074_v43  ;;  %v3576_v41 = vpop.f32.mrf.mxu1  ;;  %v3696_v36 = vunpack.i.l.bf16 %v4647_v29 }
 0x17b   :  { %2385 = vrot.lane.b32.xlu0 %v3652_v47, %s3960_s5  ;;  %v2840_v39 = vsel %vm252_vm1, %v2776_v57, %v2330_v45  ;;  %2387 = vrot.lane.b32.xlu1 %v3653_v53, %s3960_s5  ;;  %v1737_v47 = vpop.f32.mrf.mxu0 }
 0x17c   :  { %v2905_v35 = vsel %vm2902_vm4, %v2840_v39, %v3701_v49  ;;  %v3702_v49 = vunpack.i.h.bf16 %v4651_v33 }
 0x17d   :  { %v2070_v27 = vpop.permute.xlu0 %2069  ;;  %2970 = vst.msk [vmem:[%s5410_s7 + $0x10] sm:$0xff] %vm2967_vm5, %v2905_v35  ;;  %v2076_v51 = vpop.permute.xlu1 %2075 }
 0x17e   :  { %v2774_v53 = vsel %vm2773_vm3, %v4511_v38, %v2070_v27  ;;  %v2777_v43 = vsel %vm2773_vm3, %v4515_v40, %v2076_v51  ;;  %v1141_v35 = vpop.f32.mrf.mxu1  ;;  %v3656_v37 = vpop.f32.mrf.mxu0  ;;  %v3697_v51 = vunpack.i.h.bf16 %v4647_v29 }
 0x17f   :  { %2125 = vrot.lane.b32.xlu0 %v1125_v63, %s3961_s6  ;;  %2127 = vrot.lane.b32.xlu1 %v1128_v7, %s3961_s6 }
 0x180   :  { %v3577_v27 = vpop.f32.mrf.mxu1 }
 0x181   :  { %v2326_v45 = vpop.permute.xlu0 %2325  ;;  %v2332_v39 = vpop.permute.xlu1 %2331 }
 0x182   :  { %v2838_v57 = vsel %vm252_vm1, %v2774_v53, %v2326_v45  ;;  %v2841_v7 = vsel %vm252_vm1, %v2777_v43, %v2332_v39  ;;  %v1144_v43 = vpop.f32.mrf.mxu1  ;;  %v3712_v39 = vunpack.i.h.bf16 %v4657_v25 }
 0x183   :  { %v2903_v63 = vsel %vm2902_vm4, %v2838_v57, %v3696_v36  ;;  %2381 = vrot.lane.b32.xlu0 %v1734_v55, %s3960_s5  ;;  %v2906_v38 = vsel %vm2902_vm4, %v2841_v7, %v3702_v49  ;;  %2383 = vrot.lane.b32.xlu1 %v1737_v47, %s3960_s5  ;;  %v1750_v36 = vpop.f32.mrf.mxu0 }
 0x184   :  { %2968 = vst.msk [vmem:[%s5410_s7] sm:$0xff] %vm2967_vm5, %v2903_v63  ;;  %2971 = vst.msk [vmem:[%s5410_s7 + $0x18] sm:$0xff] %vm2967_vm5, %v2906_v38 }
 0x185   :  { %v2072_v40 = vpop.permute.xlu0 %2071  ;;  %v2328_v55 = vpop.permute.xlu1 %2327 }
 0x186   :  { %v2775_v33 = vsel %vm2773_vm3, %v4519_v42, %v2072_v40  ;;  %v3657_v49 = vpop.f32.mrf.mxu0  ;;  %v3711_v42 = vunpack.i.l.bf16 %v4657_v25  ;;  %v3580_v40 = vpop.f32.mrf.mxu1 }
 0x187   :  { %v2839_v53 = vsel %vm252_vm1, %v2775_v33, %v2328_v55  ;;  %2137 = vrot.lane.b32.xlu0 %v3576_v41, %s3961_s6  ;;  %2139 = vrot.lane.b32.xlu1 %v3577_v27, %s3961_s6 }
 0x188   :  { %v2904_v47 = vsel %vm2902_vm4, %v2839_v53, %v3697_v51  ;;  %v1157_v55 = vpop.f32.mrf.mxu1 }
 0x189   :  { %2969 = vst.msk [vmem:[%s5410_s7 + $0x8] sm:$0xff] %vm2967_vm5, %v2904_v47  ;;  %v2082_v29 = vpop.permute.xlu0 %2081  ;;  %v2084_v45 = vpop.permute.xlu1 %2083 }
 0x18a   :  { %v2780_v41 = vsel %vm2773_vm3, %v4523_v44, %v2082_v29  ;;  %v2781_v63 = vsel %vm2773_vm3, %v4531_v48, %v2084_v45  ;;  %v1753_v48 = vpop.f32.mrf.mxu0  ;;  %v3707_v29 = vunpack.i.h.bf16 %v4655_v23 }
 0x18b   :  { %2393 = vrot.lane.b32.xlu0 %v3656_v37, %s3960_s5  ;;  %2395 = vrot.lane.b32.xlu1 %v3657_v49, %s3960_s5 }
 0x18c   :  { %v3660_v27 = vpop.f32.mrf.mxu0 }
 0x18d   :  { %v2338_v57 = vpop.permute.xlu0 %2337  ;;  %v2340_v38 = vpop.permute.xlu1 %2339 }
 0x18e   :  { %v2844_v7 = vsel %vm252_vm1, %v2780_v41, %v2338_v57  ;;  %v2845_v51 = vsel %vm252_vm1, %v2781_v63, %v2340_v38  ;;  %v1766_v41 = vpop.f32.mrf.mxu0  ;;  %v3721_v63 = vunpack.i.l.bf16 %v4665_v17 }
 0x18f   :  { %v2909_v37 = vsel %vm2902_vm4, %v2844_v7, %v3711_v42  ;;  %2133 = vrot.lane.b32.xlu0 %v1141_v35, %s3961_s6  ;;  %v2910_v44 = vsel %vm2902_vm4, %v2845_v51, %v3712_v39  ;;  %2135 = vrot.lane.b32.xlu1 %v1144_v43, %s3961_s6  ;;  %v3706_v35 = vunpack.i.l.bf16 %v4655_v23  ;;  %v3581_v43 = vpop.f32.mrf.mxu1 }
 0x190   :  { %2974 = vst.msk [vmem:[%s5410_s7 + $0x30] sm:$0xff] %vm2967_vm5, %v2909_v37  ;;  %2975 = vst.msk [vmem:[%s5410_s7 + $0x38] sm:$0xff] %vm2967_vm5, %v2910_v44  ;;  %v3661_v39 = vpop.f32.mrf.mxu0  ;;  %v3722_v37 = vunpack.i.h.bf16 %v4665_v17 }
 0x191   :  { %v2078_v25 = vpop.permute.xlu0 %2077  ;;  %v2080_v33 = vpop.permute.xlu1 %2079 }
 0x192   :  { %v2778_v53 = vsel %vm2773_vm3, %v4527_v46, %v2078_v25  ;;  %v2779_v45 = vsel %vm2773_vm3, %v4535_v50, %v2080_v33  ;;  %v1160_v7 = vpop.f32.mrf.mxu1 }
 0x193   :  { %2389 = vrot.lane.b32.xlu0 %v1750_v36, %s3960_s5  ;;  %2391 = vrot.lane.b32.xlu1 %v1753_v48, %s3960_s5 }
 0x194   :  { %v3584_v25 = vpop.f32.mrf.mxu1 }
 0x195   :  { %v2334_v47 = vpop.permute.xlu0 %2333  ;;  %v2336_v42 = vpop.permute.xlu1 %2335 }
 0x196   :  { %v2842_v49 = vsel %vm252_vm1, %v2778_v53, %v2334_v47  ;;  %v2843_v57 = vsel %vm252_vm1, %v2779_v45, %v2336_v42  ;;  %v1173_v53 = vpop.f32.mrf.mxu1 }
 0x197   :  { %v2907_v36 = vsel %vm2902_vm4, %v2842_v49, %v3706_v35  ;;  %2145 = vrot.lane.b32.xlu0 %v3580_v40, %s3961_s6  ;;  %v2908_v46 = vsel %vm2902_vm4, %v2843_v57, %v3707_v29  ;;  %2147 = vrot.lane.b32.xlu1 %v3581_v43, %s3961_s6  ;;  %v3717_v49 = vunpack.i.h.bf16 %v4661_v15 }
 0x198   :  { %2972 = vst.msk [vmem:[%s5410_s7 + $0x20] sm:$0xff] %vm2967_vm5, %v2907_v36  ;;  %2973 = vst.msk [vmem:[%s5410_s7 + $0x28] sm:$0xff] %vm2967_vm5, %v2908_v46  ;;  %v3585_v57 = vpop.f32.mrf.mxu1 }
 0x199   :  { %v2090_v50 = vpop.permute.xlu0 %2089  ;;  %v2092_v23 = vpop.permute.xlu1 %2091 }
 0x19a   :  { %v2784_v38 = vsel %vm2773_vm3, %v4539_v52, %v2090_v50  ;;  %v2785_v51 = vsel %vm2773_vm3, %v4547_v56, %v2092_v23  ;;  %v1769_v56 = vpop.f32.mrf.mxu0 }
 0x19b   :  { %2401 = vrot.lane.b32.xlu0 %v3660_v27, %s3960_s5  ;;  %2403 = vrot.lane.b32.xlu1 %v3661_v39, %s3960_s5  ;;  %v3731_v39 = vunpack.i.l.bf16 %v4671_v5 }
 0x19c   :  { %v3664_v47 = vpop.f32.mrf.mxu0 }
 0x19d   :  { %v2346_v40 = vpop.permute.xlu0 %2345  ;;  %v2348_v48 = vpop.permute.xlu1 %2347 }
 0x19e   :  { %v2848_v44 = vsel %vm252_vm1, %v2784_v38, %v2346_v40  ;;  %v2849_v27 = vsel %vm252_vm1, %v2785_v51, %v2348_v48  ;;  %v1782_v46 = vpop.f32.mrf.mxu0  ;;  %v3732_v40 = vunpack.i.h.bf16 %v4671_v5 }
 0x19f   :  { %v2913_v33 = vsel %vm2902_vm4, %v2848_v44, %v3721_v63  ;;  %2141 = vrot.lane.b32.xlu0 %v1157_v55, %s3961_s6  ;;  %v2914_v52 = vsel %vm2902_vm4, %v2849_v27, %v3722_v37  ;;  %2143 = vrot.lane.b32.xlu1 %v1160_v7, %s3961_s6  ;;  %v3716_v55 = vunpack.i.l.bf16 %v4661_v15  ;;  %v1176_v63 = vpop.f32.mrf.mxu1 }
 0x1a0   :  { %2978 = vst.msk [vmem:[%s5410_s7 + $0x50] sm:$0xff] %vm2967_vm5, %v2913_v33  ;;  %2979 = vst.msk [vmem:[%s5410_s7 + $0x58] sm:$0xff] %vm2967_vm5, %v2914_v52  ;;  %v3665_v23 = vpop.f32.mrf.mxu0 }
 0x1a1   :  { %v2086_v17 = vpop.permute.xlu0 %2085  ;;  %v2088_v35 = vpop.permute.xlu1 %2087 }
 0x1a2   :  { %v2782_v29 = vsel %vm2773_vm3, %v4543_v54, %v2086_v17  ;;  %v2783_v42 = vsel %vm2773_vm3, %v4551_v58, %v2088_v35  ;;  %v3588_v48 = vpop.f32.mrf.mxu1  ;;  %v3726_v17 = vunpack.i.l.bf16 %v4669_v9 }
 0x1a3   :  { %2397 = vrot.lane.b32.xlu0 %v1766_v41, %s3960_s5  ;;  %2399 = vrot.lane.b32.xlu1 %v1769_v56, %s3960_s5 }
 0x1a4   :  { %v1189_v52 = vpop.f32.mrf.mxu1 }
 0x1a5   :  { %v2342_v45 = vpop.permute.xlu0 %2341  ;;  %v2344_v36 = vpop.permute.xlu1 %2343 }
 0x1a6   :  { %v2846_v43 = vsel %vm252_vm1, %v2782_v29, %v2342_v45  ;;  %v2847_v50 = vsel %vm252_vm1, %v2783_v42, %v2344_v36 }
 0x1a7   :  { %v2911_v41 = vsel %vm2902_vm4, %v2846_v43, %v3716_v55  ;;  %2153 = vrot.lane.b32.xlu0 %v3584_v25, %s3961_s6  ;;  %v2912_v54 = vsel %vm2902_vm4, %v2847_v50, %v3717_v49  ;;  %2155 = vrot.lane.b32.xlu1 %v3585_v57, %s3961_s6  ;;  %v3589_v49 = vpop.f32.mrf.mxu1 }
 0x1a8   :  { %2976 = vst.msk [vmem:[%s5410_s7 + $0x40] sm:$0xff] %vm2967_vm5, %v2911_v41  ;;  %2977 = vst.msk [vmem:[%s5410_s7 + $0x48] sm:$0xff] %vm2967_vm5, %v2912_v54 }
 0x1a9   :  { %v2098_v58 = vpop.permute.xlu0 %2097  ;;  %v2100_v15 = vpop.permute.xlu1 %2099 }
 0x1aa   :  { %v2788_v7 = vsel %vm2773_vm3, %v4555_v60, %v2098_v58  ;;  %v2789_v37 = vsel %vm2773_vm3, %v4563_v0, %v2100_v15  ;;  %v1785_v0 = vpop.f32.mrf.mxu0  ;;  %v1192_v41 = vpop.f32.mrf.mxu1  ;;  %v3742_v58 = vunpack.i.h.bf16 %v4679_v13 }
 0x1ab   :  { %2409 = vrot.lane.b32.xlu0 %v3664_v47, %s3960_s5  ;;  %2411 = vrot.lane.b32.xlu1 %v3665_v23, %s3960_s5  ;;  %v3727_v47 = vunpack.i.h.bf16 %v4669_v9 }
 0x1ac   :  { %v3668_v56 = vpop.f32.mrf.mxu0 }
 0x1ad   :  { %v2354_v38 = vpop.permute.xlu0 %2353  ;;  %v2356_v44 = vpop.permute.xlu1 %2355 }
 0x1ae   :  { %v2852_v51 = vsel %vm252_vm1, %v2788_v7, %v2354_v38  ;;  %v2853_v33 = vsel %vm252_vm1, %v2789_v37, %v2356_v44  ;;  %v1798_v42 = vpop.f32.mrf.mxu0  ;;  %v3736_v44 = vunpack.i.l.bf16 %v4675_v19 }
 0x1af   :  { %v2917_v25 = vsel %vm2902_vm4, %v2852_v51, %v3731_v39  ;;  %2149 = vrot.lane.b32.xlu0 %v1173_v53, %s3961_s6  ;;  %v2918_v60 = vsel %vm2902_vm4, %v2853_v33, %v3732_v40  ;;  %2151 = vrot.lane.b32.xlu1 %v1176_v63, %s3961_s6  ;;  %v3592_v63 = vpop.f32.mrf.mxu1  ;;  %v3737_v33 = vunpack.i.h.bf16 %v4675_v19 }
 0x1b0   :  { %2982 = vst.msk [vmem:[%s5410_s7 + $0x70] sm:$0xff] %vm2967_vm5, %v2917_v25  ;;  %2983 = vst.msk [vmem:[%s5410_s7 + $0x78] sm:$0xff] %vm2967_vm5, %v2918_v60  ;;  %v3669_v57 = vpop.f32.mrf.mxu0 }
 0x1b1   :  { %v2094_v5 = vpop.permute.xlu0 %2093  ;;  %v2096_v27 = vpop.permute.xlu1 %2095 }
 0x1b2   :  { %v2786_v35 = vsel %vm2773_vm3, %v4559_v62, %v2094_v5  ;;  %v2787_v55 = vsel %vm2773_vm3, %v4567_v2, %v2096_v27  ;;  %v1205_v37 = vpop.f32.mrf.mxu1 }
 0x1b3   :  { %2405 = vrot.lane.b32.xlu0 %v1782_v46, %s3960_s5  ;;  %2407 = vrot.lane.b32.xlu1 %v1785_v0, %s3960_s5  ;;  %v3741_v46 = vunpack.i.l.bf16 %v4679_v13 }
 0x1b4   :  { %v3593_v27 = vpop.f32.mrf.mxu1 }
 0x1b5   :  { %v2350_v53 = vpop.permute.xlu0 %2349  ;;  %v2352_v45 = vpop.permute.xlu1 %2351 }
 0x1b6   :  { %v2850_v29 = vsel %vm252_vm1, %v2786_v35, %v2350_v53  ;;  %v2851_v36 = vsel %vm252_vm1, %v2787_v55, %v2352_v45  ;;  %v3751_v53 = vunpack.i.l.bf16 %v4685_v61  ;;  %v3752_v45 = vunpack.i.h.bf16 %v4685_v61 }
 0x1b7   :  { %v2915_v43 = vsel %vm2902_vm4, %v2850_v29, %v3726_v17  ;;  %2161 = vrot.lane.b32.xlu0 %v3588_v48, %s3961_s6  ;;  %v2916_v62 = vsel %vm2902_vm4, %v2851_v36, %v3727_v47  ;;  %2163 = vrot.lane.b32.xlu1 %v3589_v49, %s3961_s6  ;;  %v1208_v47 = vpop.f32.mrf.mxu1 }
 0x1b8   :  { %2980 = vst.msk [vmem:[%s5410_s7 + $0x60] sm:$0xff] %vm2967_vm5, %v2915_v43  ;;  %2981 = vst.msk [vmem:[%s5410_s7 + $0x68] sm:$0xff] %vm2967_vm5, %v2916_v62 }
 0x1b9   :  { %v2106_v2 = vpop.permute.xlu0 %2105  ;;  %v2108_v9 = vpop.permute.xlu1 %2107 }
 0x1ba   :  { %v2792_v50 = vsel %vm2773_vm3, %v4571_v4, %v2106_v2  ;;  %v2793_v15 = vsel %vm2773_vm3, %v4579_v8, %v2108_v9  ;;  %v1801_v8 = vpop.f32.mrf.mxu0  ;;  %v3596_v36 = vpop.f32.mrf.mxu1 }
 0x1bb   :  { %2417 = vrot.lane.b32.xlu0 %v3668_v56, %s3960_s5  ;;  %2419 = vrot.lane.b32.xlu1 %v3669_v57, %s3960_s5 }
 0x1bc   :  { %v3672_v51 = vpop.f32.mrf.mxu0  ;;  %v1221_v57 = vpop.f32.mrf.mxu1 }
 0x1bd   :  { %v2362_v54 = vpop.permute.xlu0 %2361  ;;  %v2364_v39 = vpop.permute.xlu1 %2363 }
 0x1be   :  { %v2856_v23 = vsel %vm252_vm1, %v2792_v50, %v2362_v54  ;;  %v2857_v38 = vsel %vm252_vm1, %v2793_v15, %v2364_v39 }
 0x1bf   :  { %v2921_v7 = vsel %vm2902_vm4, %v2856_v23, %v3741_v46  ;;  %2157 = vrot.lane.b32.xlu0 %v1189_v52, %s3961_s6  ;;  %v2922_v4 = vsel %vm2902_vm4, %v2857_v38, %v3742_v58  ;;  %2159 = vrot.lane.b32.xlu1 %v1192_v41, %s3961_s6  ;;  %v1814_v52 = vpop.f32.mrf.mxu0  ;;  %v3746_v41 = vunpack.i.l.bf16 %v4683_v1  ;;  %v3747_v58 = vunpack.i.h.bf16 %v4683_v1 }
 0x1c0   :  { %2986 = vst.msk [vmem:[%s5410_s7 + $0x90] sm:$0xff] %vm2967_vm5, %v2921_v7  ;;  %2987 = vst.msk [vmem:[%s5410_s7 + $0x98] sm:$0xff] %vm2967_vm5, %v2922_v4 }
 0x1c1   :  { %v2102_v13 = vpop.permute.xlu0 %2101  ;;  %v2104_v40 = vpop.permute.xlu1 %2103 }
 0x1c2   :  { %v2790_v48 = vsel %vm2773_vm3, %v4575_v6, %v2102_v13  ;;  %v2791_v60 = vsel %vm2773_vm3, %v4583_v10, %v2104_v40  ;;  %v3673_v35 = vpop.f32.mrf.mxu0  ;;  %v3761_v13 = vunpack.i.l.bf16 %v4693_v3 }
 0x1c3   :  { %2413 = vrot.lane.b32.xlu0 %v1798_v42, %s3960_s5  ;;  %2415 = vrot.lane.b32.xlu1 %v1801_v8, %s3960_s5 }
 0x1c5   :  { %v2358_v25 = vpop.permute.xlu0 %2357  ;;  %v2360_v5 = vpop.permute.xlu1 %2359 }
 0x1c6   :  { %v2854_v0 = vsel %vm252_vm1, %v2790_v48, %v2358_v25  ;;  %v2855_v17 = vsel %vm252_vm1, %v2791_v60, %v2360_v5 }
 0x1c7   :  { %v2919_v56 = vsel %vm2902_vm4, %v2854_v0, %v3736_v44  ;;  %2169 = vrot.lane.b32.xlu0 %v3592_v63, %s3961_s6  ;;  %v2920_v6 = vsel %vm2902_vm4, %v2855_v17, %v3737_v33  ;;  %2171 = vrot.lane.b32.xlu1 %v3593_v27, %s3961_s6  ;;  %v3597_v63 = vpop.f32.mrf.mxu1  ;;  %v3762_v44 = vunpack.i.h.bf16 %v4693_v3  ;;  %v3756_v17 = vunpack.i.l.bf16 %v4689_v59 }
 0x1c8   :  { %2984 = vst.msk [vmem:[%s5410_s7 + $0x80] sm:$0xff] %vm2967_vm5, %v2919_v56  ;;  %2985 = vst.msk [vmem:[%s5410_s7 + $0x88] sm:$0xff] %vm2967_vm5, %v2920_v6 }
 0x1c9   :  { %v2114_v10 = vpop.permute.xlu0 %2113  ;;  %v2116_v19 = vpop.permute.xlu1 %2115 }
 0x1ca   :  { %v2796_v55 = vsel %vm2773_vm3, %v4587_v12, %v2114_v10  ;;  %v2797_v49 = vsel %vm2773_vm3, %v4595_v16, %v2116_v19  ;;  %v1817_v12 = vpop.f32.mrf.mxu0  ;;  %v1224_v40 = vpop.f32.mrf.mxu1  ;;  %v3757_v19 = vunpack.i.h.bf16 %v4689_v59 }
 0x1cb   :  { %2425 = vrot.lane.b32.xlu0 %v3672_v51, %s3960_s5  ;;  %2427 = vrot.lane.b32.xlu1 %v3673_v35, %s3960_s5 }
 0x1cc   :  { %v3676_v46 = vpop.f32.mrf.mxu0  ;;  %v3600_v60 = vpop.f32.mrf.mxu1 }
 0x1cd   :  { %v2370_v29 = vpop.permute.xlu0 %2369  ;;  %v2372_v43 = vpop.permute.xlu1 %2371 }
 0x1ce   :  { %v2860_v42 = vsel %vm252_vm1, %v2796_v55, %v2370_v29  ;;  %v2861_v2 = vsel %vm252_vm1, %v2797_v49, %v2372_v43  ;;  %v1830_v7 = vpop.f32.mrf.mxu0  ;;  %v3771_v43 = vunpack.i.l.bf16 %v4699_v11 }
 0x1cf   :  { %v2925_v62 = vsel %vm2902_vm4, %v2860_v42, %v3751_v53  ;;  %2165 = vrot.lane.b32.xlu0 %v1205_v37, %s3961_s6  ;;  %v2926_v61 = vsel %vm2902_vm4, %v2861_v2, %v3752_v45  ;;  %2167 = vrot.lane.b32.xlu1 %v1208_v47, %s3961_s6 }
 0x1d0   :  { %2990 = vst.msk [vmem:[%s5410_s7 + $0xb0] sm:$0xff] %vm2967_vm5, %v2925_v62  ;;  %2991 = vst.msk [vmem:[%s5410_s7 + $0xb8] sm:$0xff] %vm2967_vm5, %v2926_v61  ;;  %v3677_v8 = vpop.f32.mrf.mxu0  ;;  %v3772_v61 = vunpack.i.h.bf16 %v4699_v11 }
 0x1d1   :  { %v2110_v16 = vpop.permute.xlu0 %2109  ;;  %v2112_v9 = vpop.permute.xlu1 %2111 }
 0x1d2   :  { %v2794_v50 = vsel %vm2773_vm3, %v4591_v14, %v2110_v16  ;;  %v2795_v15 = vsel %vm2773_vm3, %v4599_v18, %v2112_v9 }
 0x1d3   :  { %2421 = vrot.lane.b32.xlu0 %v1814_v52, %s3960_s5  ;;  %2423 = vrot.lane.b32.xlu1 %v1817_v12, %s3960_s5  ;;  %v1237_v52 = vpop.f32.mrf.mxu1 }
 0x1d5   :  { %v2366_v54 = vpop.permute.xlu0 %2365  ;;  %v2368_v39 = vpop.permute.xlu1 %2367 }
 0x1d6   :  { %v2858_v23 = vsel %vm252_vm1, %v2794_v50, %v2366_v54  ;;  %v2859_v4 = vsel %vm252_vm1, %v2795_v15, %v2368_v39  ;;  %v3601_v55 = vpop.f32.mrf.mxu1  ;;  %v3766_v15 = vunpack.i.l.bf16 %v4697_v21 }
 0x1d7   :  { %v2923_v38 = vsel %vm2902_vm4, %v2858_v23, %v3746_v41  ;;  %2177 = vrot.lane.b32.xlu0 %v3596_v36, %s3961_s6  ;;  %v2924_v1 = vsel %vm2902_vm4, %v2859_v4, %v3747_v58  ;;  %2179 = vrot.lane.b32.xlu1 %v3597_v63, %s3961_s6  ;;  %v3767_v63 = vunpack.i.h.bf16 %v4697_v21 }
 0x1d8   :  { %2988 = vst.msk [vmem:[%s5410_s7 + $0xa0] sm:$0xff] %vm2967_vm5, %v2923_v38  ;;  %2989 = vst.msk [vmem:[%s5410_s7 + $0xa8] sm:$0xff] %vm2967_vm5, %v2924_v1  ;;  %v1240_v36 = vpop.f32.mrf.mxu1 }
 0x1d9   :  { %v2122_v14 = vpop.permute.xlu0 %2121  ;;  %v2124_v18 = vpop.permute.xlu1 %2123 }
 0x1da   :  { %v2800_v37 = vsel %vm2773_vm3, %v4603_v20, %v2122_v14  ;;  %v2801_v48 = vsel %vm2773_vm3, %v4611_v24, %v2124_v18  ;;  %v1833_v24 = vpop.f32.mrf.mxu0 }
 0x1db   :  { %2433 = vrot.lane.b32.xlu0 %v3676_v46, %s3960_s5  ;;  %2435 = vrot.lane.b32.xlu1 %v3677_v8, %s3960_s5 }
 0x1dc   :  { %v3680_v56 = vpop.f32.mrf.mxu0 }
 0x1dd   :  { %v2378_v51 = vpop.permute.xlu0 %2377  ;;  %v2380_v33 = vpop.permute.xlu1 %2379 }
 0x1de   :  { %v2864_v25 = vsel %vm252_vm1, %v2800_v37, %v2378_v51  ;;  %v2865_v5 = vsel %vm252_vm1, %v2801_v48, %v2380_v33  ;;  %v1846_v29 = vpop.f32.mrf.mxu0  ;;  %v3781_v37 = vunpack.i.l.bf16 %v4707_v31  ;;  %v5469_v51 = vld [vmem:[#allocation2_spill] sm:$0xff]  ;;  %v3782_v33 = vunpack.i.h.bf16 %v4707_v31 }
 0x1df   :  { %v2929_v0 = vsel %vm2902_vm4, %v2864_v25, %v3761_v13  ;;  %2173 = vrot.lane.b32.xlu0 %v1221_v57, %s3961_s6  ;;  %v2930_v20 = vsel %vm2902_vm4, %v2865_v5, %v3762_v44  ;;  %2175 = vrot.lane.b32.xlu1 %v1224_v40, %s3961_s6  ;;  %v3604_v57 = vpop.f32.mrf.mxu1  ;;  %v3363_v40 = vld [vmem:[%s5409_s3 + $0xf0] sm:$0xff]   ;;  %v3364_v25 = vld [vmem:[%s5409_s3 + $0xf8] sm:$0xff]  }
 0x1e0   :  { %2994 = vst.msk [vmem:[%s5410_s7 + $0xd0] sm:$0xff] %vm2967_vm5, %v2929_v0  ;;  %2995 = vst.msk [vmem:[%s5410_s7 + $0xd8] sm:$0xff] %vm2967_vm5, %v2930_v20  ;;  %v3681_v42 = vpop.f32.mrf.mxu0 }
 0x1e1   :  { %v2118_v3 = vpop.permute.xlu0 %2117  ;;  %v2120_v27 = vpop.permute.xlu1 %2119 }
 0x1e2   :  { %v2798_v6 = vsel %vm2773_vm3, %v4607_v22, %v2118_v3  ;;  %v2799_v35 = vsel %vm2773_vm3, %v4615_v26, %v2120_v27  ;;  %v1253_v54 = vpop.f32.mrf.mxu1 }
 0x1e3   :  { %2429 = vrot.lane.b32.xlu0 %v1830_v7, %s3960_s5  ;;  %2431 = vrot.lane.b32.xlu1 %v1833_v24, %s3960_s5 }
 0x1e4   :  { %v3605_v1 = vpop.f32.mrf.mxu1 }
 0x1e5   :  { %v2374_v10 = vpop.permute.xlu0 %2373  ;;  %v2376_v47 = vpop.permute.xlu1 %2375 }
 0x1e6   :  { %v2862_v53 = vsel %vm252_vm1, %v2798_v6, %v2374_v10  ;;  %v2863_v49 = vsel %vm252_vm1, %v2799_v35, %v2376_v47  ;;  %v1256_v24 = vpop.f32.mrf.mxu1  ;;  %v3333_v6 = vunpack.c.h.bf16 %v3364_v25 }
 0x1e7   :  { %v2927_v45 = vsel %vm2902_vm4, %v2862_v53, %v3756_v17  ;;  %2185 = vrot.lane.b32.xlu0 %v3600_v60, %s3961_s6  ;;  %v2928_v59 = vsel %vm2902_vm4, %v2863_v49, %v3757_v19  ;;  %2187 = vrot.lane.b32.xlu1 %v3601_v55, %s3961_s6  ;;  %v5470_v60 = vld [vmem:[#allocation4_spill] sm:$0xff]  ;;  %v3332_v17 = vunpack.c.l.bf16 %v3364_v25  ;;  %v5471_v55 = vld [vmem:[#allocation34_spill] sm:$0xff] }
 0x1e8   :  { %2992 = vst.msk [vmem:[%s5410_s7 + $0xc0] sm:$0xff] %vm2967_vm5, %v2927_v45  ;;  %2993 = vst.msk [vmem:[%s5410_s7 + $0xc8] sm:$0xff] %vm2967_vm5, %v2928_v59  ;;  %v5472_v45 = vld [vmem:[#allocation3_spill] sm:$0xff]  ;;  %v5480_v25 = vld [vmem:[#allocation38_spill] sm:$0xff] }
 0x1e9   :  { %v2130_v22 = vpop.permute.xlu0 %2129  ;;  %v2132_v26 = vpop.permute.xlu1 %2131  ;;  %v3848_v47 = vpack.i.bf16 %v3333_v6, %v3332_v17 }
 0x1ea   :  { %v2804_v62 = vsel %vm2773_vm3, %v4619_v28, %v2130_v22  ;;  %v2805_v12 = vsel %vm2773_vm3, %v4627_v32, %v2132_v26  ;;  %v1849_v32 = vpop.f32.mrf.mxu0  ;;  %v3777_v22 = vunpack.i.h.bf16 %v5471_v55  ;;  %v5473_v26 = vld [vmem:[#allocation5_spill] sm:$0xff] }
 0x1eb   :  { %2441 = vrot.lane.b32.xlu0 %v3680_v56, %s3960_s5  ;;  %2443 = vrot.lane.b32.xlu1 %v3681_v42, %s3960_s5  ;;  %v3329_v56 = vunpack.c.h.bf16 %v3363_v40 }
 0x1ec   :  { %v3684_v58 = vpop.f32.mrf.mxu0 }
 0x1ed   :  { %v2386_v2 = vpop.permute.xlu0 %2385  ;;  %v2388_v9 = vpop.permute.xlu1 %2387 }
 0x1ee   :  { %v2868_v16 = vsel %vm252_vm1, %v2804_v62, %v2386_v2  ;;  %v2869_v41 = vsel %vm252_vm1, %v2805_v12, %v2388_v9  ;;  %v1862_v14 = vpop.f32.mrf.mxu0  ;;  %v5474_v9 = vld [vmem:[#allocation36_spill] sm:$0xff] }
 0x1ef   :  { %v2933_v46 = vsel %vm2902_vm4, %v2868_v16, %v3771_v43  ;;  %2181 = vrot.lane.b32.xlu0 %v1237_v52, %s3961_s6  ;;  %v2934_v28 = vsel %vm2902_vm4, %v2869_v41, %v3772_v61  ;;  %2183 = vrot.lane.b32.xlu1 %v1240_v36, %s3961_s6  ;;  %v3328_v52 = vunpack.c.l.bf16 %v3363_v40 }
 0x1f0   :  { %2998 = vst.msk [vmem:[%s5410_s7 + $0xf0] sm:$0xff] %vm2967_vm5, %v2933_v46  ;;  %2999 = vst.msk [vmem:[%s5410_s7 + $0xf8] sm:$0xff] %vm2967_vm5, %v2934_v28  ;;  %v3685_v13 = vpop.f32.mrf.mxu0  ;;  %v5475_v46 = vld [vmem:[#allocation6_spill] sm:$0xff] }
 0x1f1   :  { %v2126_v11 = vpop.permute.xlu0 %2125  ;;  %v2128_v50 = vpop.permute.xlu1 %2127  ;;  %v3843_v53 = vpack.i.bf16 %v3329_v56, %v3328_v52 }
 0x1f2   :  { %v2802_v23 = vsel %vm2773_vm3, %v4623_v30, %v2126_v11  ;;  %v2803_v7 = vsel %vm2773_vm3, %v4631_v34, %v2128_v50  ;;  %v1865_v35 = vpop.f32.mrf.mxu0  ;;  %v5476_v11 = vld [vmem:[#allocation8_spill] sm:$0xff] }
 0x1f3   :  { %2437 = vrot.lane.b32.xlu0 %v1846_v29, %s3960_s5  ;;  %2439 = vrot.lane.b32.xlu1 %v1849_v32, %s3960_s5  ;;  %v3776_v29 = vunpack.i.l.bf16 %v5471_v55  ;;  %v3792_v32 = vunpack.i.h.bf16 %v5474_v9 }
 0x1f5   :  { %v2382_v39 = vpop.permute.xlu0 %2381  ;;  %v2384_v4 = vpop.permute.xlu1 %2383 }
 0x1f6   :  { %v2866_v38 = vsel %vm252_vm1, %v2802_v23, %v2382_v39  ;;  %v2867_v8 = vsel %vm252_vm1, %v2803_v7, %v2384_v4 }
 0x1f7   :  { %v2931_v18 = vsel %vm2902_vm4, %v2866_v38, %v3766_v15  ;;  %2193 = vrot.lane.b32.xlu0 %v3604_v57, %s3961_s6  ;;  %v2932_v30 = vsel %vm2902_vm4, %v2867_v8, %v3767_v63  ;;  %2195 = vrot.lane.b32.xlu1 %v3605_v1, %s3961_s6  ;;  %v3791_v57 = vunpack.i.l.bf16 %v5474_v9  ;;  %v5477_v38 = vld [vmem:[#allocation35_spill] sm:$0xff] }
 0x1f8   :  { %2996 = vst.msk [vmem:[%s5410_s7 + $0xe0] sm:$0xff] %vm2967_vm5, %v2931_v18  ;;  %2997 = vst.msk [vmem:[%s5410_s7 + $0xe8] sm:$0xff] %vm2967_vm5, %v2932_v30  ;;  %v3786_v4 = vunpack.i.l.bf16 %v5477_v38  ;;  %v5478_v1 = vld [vmem:[#allocation7_spill] sm:$0xff]  ;;  %v3787_v8 = vunpack.i.h.bf16 %v5477_v38  ;;  %v5479_v30 = vld [vmem:[#allocation9_spill] sm:$0xff] }
 0x1f9   :  { %v2138_v34 = vpop.permute.xlu0 %2137  ;;  %v2140_v21 = vpop.permute.xlu1 %2139 }
 0x1fa   :  { %v2808_v44 = vsel %vm2773_vm3, %v5469_v51, %v2138_v34  ;;  %v2809_v0 = vsel %vm2773_vm3, %v5470_v60, %v2140_v21  ;;  %v5481_v60 = vld [vmem:[#allocation10_spill] sm:$0xff] }
 0x1fb   :  { %2449 = vrot.lane.b32.xlu0 %v3684_v58, %s3960_s5  ;;  %2451 = vrot.lane.b32.xlu1 %v3685_v13, %s3960_s5 }
 0x1fd   :  { %v2394_v48 = vpop.permute.xlu0 %2393  ;;  %v2396_v20 = vpop.permute.xlu1 %2395 }
 0x1fe   :  { %v2872_v5 = vsel %vm252_vm1, %v2808_v44, %v2394_v48  ;;  %v2873_v27 = vsel %vm252_vm1, %v2809_v0, %v2396_v20  ;;  %v3802_v20 = vunpack.i.h.bf16 %v5480_v25 }
 0x1ff   :  { %v2937_v3 = vsel %vm2902_vm4, %v2872_v5, %v3781_v37  ;;  %2189 = vrot.lane.b32.xlu0 %v1253_v54, %s3961_s6  ;;  %v2938_v31 = vsel %vm2902_vm4, %v2873_v27, %v3782_v33  ;;  %2191 = vrot.lane.b32.xlu1 %v1256_v24, %s3961_s6  ;;  %v3801_v33 = vunpack.i.l.bf16 %v5480_v25  ;;  %v5482_v24 = vld [vmem:[#allocation12_spill] sm:$0xff] }
 0x200   :  { %3002 = vst.msk [vmem:[%s5410_s7 + $0x110] sm:$0xff] %vm2967_vm5, %v2937_v3  ;;  %3003 = vst.msk [vmem:[%s5410_s7 + $0x118] sm:$0xff] %vm2967_vm5, %v2938_v31 }
 0x201   :  { %v2134_v10 = vpop.permute.xlu0 %2133  ;;  %v2136_v19 = vpop.permute.xlu1 %2135 }
 0x202   :  { %v2806_v49 = vsel %vm2773_vm3, %v5472_v45, %v2134_v10  ;;  %v2807_v42 = vsel %vm2773_vm3, %v5473_v26, %v2136_v19  ;;  %v5483_v19 = vld [vmem:[#allocation37_spill] sm:$0xff] }
 0x203   :  { %2445 = vrot.lane.b32.xlu0 %v1862_v14, %s3960_s5  ;;  %2447 = vrot.lane.b32.xlu1 %v1865_v35, %s3960_s5  ;;  %v3796_v35 = vunpack.i.l.bf16 %v5483_v19  ;;  %v5485_v45 = vld [vmem:[#allocation13_spill] sm:$0xff] }
 0x205   :  { %v2390_v59 = vpop.permute.xlu0 %2389  ;;  %v2392_v36 = vpop.permute.xlu1 %2391 }
 0x206   :  { %v2870_v43 = vsel %vm252_vm1, %v2806_v49, %v2390_v59  ;;  %v2871_v2 = vsel %vm252_vm1, %v2807_v42, %v2392_v36 }
 0x207   :  { %v2935_v62 = vsel %vm2902_vm4, %v2870_v43, %v3776_v29  ;;  %3844 = vrot.lane.b32.xlu0 %v3843_v53, %s3959_s19  ;;  %v2936_v61 = vsel %vm2902_vm4, %v2871_v2, %v3777_v22  ;;  %3849 = vrot.lane.b32.xlu1 %v3848_v47, %s3959_s19  ;;  %v5484_v53 = vld [vmem:[#allocation11_spill] sm:$0xff]  ;;  %v3797_v29 = vunpack.i.h.bf16 %v5483_v19  ;;  %v5486_v2 = vld [vmem:[#allocation40_spill] sm:$0xff] }
 0x208   :  { %3000 = vst.msk [vmem:[%s5410_s7 + $0x100] sm:$0xff] %vm2967_vm5, %v2935_v62  ;;  %3001 = vst.msk [vmem:[%s5410_s7 + $0x108] sm:$0xff] %vm2967_vm5, %v2936_v61  ;;  %v3811_v61 = vunpack.i.l.bf16 %v5486_v2 }
 0x209   :  { %v2146_v12 = vpop.permute.xlu0 %2145  ;;  %v2148_v16 = vpop.permute.xlu1 %2147 }
 0x20a   :  { %v2812_v41 = vsel %vm2773_vm3, %v5475_v46, %v2146_v12  ;;  %v2813_v50 = vsel %vm2773_vm3, %v5476_v11, %v2148_v16  ;;  %v5487_v12 = vld [vmem:[#allocation14_spill] sm:$0xff]  ;;  %v5488_v46 = vld [vmem:[#allocation16_spill] sm:$0xff] }
 0x20d   :  { %v2402_v28 = vpop.permute.xlu0 %2401  ;;  %v2404_v58 = vpop.permute.xlu1 %2403 }
 0x20e   :  { %v2876_v54 = vsel %vm252_vm1, %v2812_v41, %v2402_v28  ;;  %v2877_v23 = vsel %vm252_vm1, %v2813_v50, %v2404_v58 }
 0x20f   :  { %v2941_v15 = vsel %vm2902_vm4, %v2876_v54, %v3791_v57  ;;  %v2942_v39 = vsel %vm2902_vm4, %v2877_v23, %v3792_v32  ;;  %v3812_v57 = vunpack.i.h.bf16 %v5486_v2  ;;  %v5489_v23 = vld [vmem:[#allocation39_spill] sm:$0xff] }
 0x210   :  { %3006 = vst.msk [vmem:[%s5410_s7 + $0x130] sm:$0xff] %vm2967_vm5, %v2941_v15  ;;  %3007 = vst.msk [vmem:[%s5410_s7 + $0x138] sm:$0xff] %vm2967_vm5, %v2942_v39  ;;  %v3806_v39 = vunpack.i.l.bf16 %v5489_v23 }
 0x211   :  { %v2142_v63 = vpop.permute.xlu0 %2141  ;;  %v2144_v7 = vpop.permute.xlu1 %2143 }
 0x212   :  { %v2810_v14 = vsel %vm2773_vm3, %v5478_v1, %v2142_v63  ;;  %v2811_v34 = vsel %vm2773_vm3, %v5479_v30, %v2144_v7  ;;  %v5490_v63 = vld [vmem:[#allocation15_spill] sm:$0xff]  ;;  %v5491_v1 = vld [vmem:[#allocation17_spill] sm:$0xff] }
 0x215   :  { %v2398_v18 = vpop.permute.xlu0 %2397  ;;  %v2400_v13 = vpop.permute.xlu1 %2399 }
 0x216   :  { %v2874_v21 = vsel %vm252_vm1, %v2810_v14, %v2398_v18  ;;  %v2875_v37 = vsel %vm252_vm1, %v2811_v34, %v2400_v13 }
 0x217   :  { %v2939_v40 = vsel %vm2902_vm4, %v2874_v21, %v3786_v4  ;;  %v2940_v51 = vsel %vm2902_vm4, %v2875_v37, %v3787_v8  ;;  %v3807_v4 = vunpack.i.h.bf16 %v5489_v23  ;;  %v5492_v37 = vld [vmem:[#allocation42_spill] sm:$0xff] }
 0x218   :  { %3004 = vst.msk [vmem:[%s5410_s7 + $0x120] sm:$0xff] %vm2967_vm5, %v2939_v40  ;;  %3005 = vst.msk [vmem:[%s5410_s7 + $0x128] sm:$0xff] %vm2967_vm5, %v2940_v51  ;;  %v3821_v51 = vunpack.i.l.bf16 %v5492_v37 }
 0x219   :  { %v2154_v44 = vpop.permute.xlu0 %2153  ;;  %v2156_v48 = vpop.permute.xlu1 %2155 }
 0x21a   :  { %v2816_v0 = vsel %vm2773_vm3, %v5481_v60, %v2154_v44  ;;  %v2817_v3 = vsel %vm2773_vm3, %v5482_v24, %v2156_v48  ;;  %v5493_v44 = vld [vmem:[#allocation18_spill] sm:$0xff]  ;;  %v5494_v60 = vld [vmem:[#allocation20_spill] sm:$0xff] }
 0x21d   :  { %v2410_v5 = vpop.permute.xlu0 %2409  ;;  %v2412_v52 = vpop.permute.xlu1 %2411 }
 0x21e   :  { %v2880_v27 = vsel %vm252_vm1, %v2816_v0, %v2410_v5  ;;  %v2881_v31 = vsel %vm252_vm1, %v2817_v3, %v2412_v52 }
 0x21f   :  { %v2945_v56 = vsel %vm2902_vm4, %v2880_v27, %v3801_v33  ;;  %v2946_v17 = vsel %vm2902_vm4, %v2881_v31, %v3802_v20  ;;  %v3822_v33 = vunpack.i.h.bf16 %v5492_v37  ;;  %v5495_v31 = vld [vmem:[#allocation41_spill] sm:$0xff] }
 0x220   :  { %3010 = vst.msk [vmem:[%s5410_s7 + $0x150] sm:$0xff] %vm2967_vm5, %v2945_v56  ;;  %3011 = vst.msk [vmem:[%s5410_s7 + $0x158] sm:$0xff] %vm2967_vm5, %v2946_v17  ;;  %v3816_v17 = vunpack.i.l.bf16 %v5495_v31 }
 0x221   :  { %v2150_v6 = vpop.permute.xlu0 %2149  ;;  %v2152_v10 = vpop.permute.xlu1 %2151 }
 0x222   :  { %v2814_v47 = vsel %vm2773_vm3, %v5484_v53, %v2150_v6  ;;  %v2815_v49 = vsel %vm2773_vm3, %v5485_v45, %v2152_v10  ;;  %v5496_v6 = vld [vmem:[#allocation19_spill] sm:$0xff]  ;;  %v5497_v53 = vld [vmem:[#allocation21_spill] sm:$0xff] }
 0x225   :  { %v2406_v55 = vpop.permute.xlu0 %2405  ;;  %v2408_v22 = vpop.permute.xlu1 %2407 }
 0x226   :  { %v2878_v59 = vsel %vm252_vm1, %v2814_v47, %v2406_v55  ;;  %v2879_v42 = vsel %vm252_vm1, %v2815_v49, %v2408_v22 }
 0x227   :  { %v2943_v26 = vsel %vm2902_vm4, %v2878_v59, %v3796_v35  ;;  %v2944_v43 = vsel %vm2902_vm4, %v2879_v42, %v3797_v29  ;;  %v3817_v35 = vunpack.i.h.bf16 %v5495_v31  ;;  %v5498_v42 = vld [vmem:[#allocation44_spill] sm:$0xff] }
 0x228   :  { %3008 = vst.msk [vmem:[%s5410_s7 + $0x140] sm:$0xff] %vm2967_vm5, %v2943_v26  ;;  %3009 = vst.msk [vmem:[%s5410_s7 + $0x148] sm:$0xff] %vm2967_vm5, %v2944_v43  ;;  %v3831_v43 = vunpack.i.l.bf16 %v5498_v42 }
 0x229   :  { %v2162_v36 = vpop.permute.xlu0 %2161  ;;  %v2164_v62 = vpop.permute.xlu1 %2163 }
 0x22a   :  { %v2820_v16 = vsel %vm2773_vm3, %v5487_v12, %v2162_v36  ;;  %v2821_v41 = vsel %vm2773_vm3, %v5488_v46, %v2164_v62  ;;  %v5499_v36 = vld [vmem:[#allocation22_spill] sm:$0xff]  ;;  %v5500_v12 = vld [vmem:[#allocation24_spill] sm:$0xff] }
 0x22d   :  { %v2418_v9 = vpop.permute.xlu0 %2417  ;;  %v2420_v32 = vpop.permute.xlu1 %2419 }
 0x22e   :  { %v2884_v28 = vsel %vm252_vm1, %v2820_v16, %v2418_v9  ;;  %v2885_v50 = vsel %vm252_vm1, %v2821_v41, %v2420_v32 }
 0x22f   :  { %v2949_v11 = vsel %vm2902_vm4, %v2884_v28, %v3811_v61  ;;  %v2950_v54 = vsel %vm2902_vm4, %v2885_v50, %v3812_v57  ;;  %v3832_v61 = vunpack.i.h.bf16 %v5498_v42  ;;  %v5501_v50 = vld [vmem:[#allocation43_spill] sm:$0xff] }
 0x230   :  { %3014 = vst.msk [vmem:[%s5410_s7 + $0x170] sm:$0xff] %vm2967_vm5, %v2949_v11  ;;  %3015 = vst.msk [vmem:[%s5410_s7 + $0x178] sm:$0xff] %vm2967_vm5, %v2950_v54  ;;  %v3826_v54 = vunpack.i.l.bf16 %v5501_v50 }
 0x231   :  { %v2158_v58 = vpop.permute.xlu0 %2157  ;;  %v2160_v15 = vpop.permute.xlu1 %2159 }
 0x232   :  { %v2818_v7 = vsel %vm2773_vm3, %v5490_v63, %v2158_v58  ;;  %v2819_v14 = vsel %vm2773_vm3, %v5491_v1, %v2160_v15  ;;  %v5502_v58 = vld [vmem:[#allocation23_spill] sm:$0xff]  ;;  %v5503_v63 = vld [vmem:[#allocation25_spill] sm:$0xff] }
 0x235   :  { %v2414_v38 = vpop.permute.xlu0 %2413  ;;  %v2416_v8 = vpop.permute.xlu1 %2415 }
 0x236   :  { %v2882_v18 = vsel %vm252_vm1, %v2818_v7, %v2414_v38  ;;  %v2883_v34 = vsel %vm252_vm1, %v2819_v14, %v2416_v8 }
 0x237   :  { %v2947_v30 = vsel %vm2902_vm4, %v2882_v18, %v3806_v39  ;;  %v2948_v21 = vsel %vm2902_vm4, %v2883_v34, %v3807_v4  ;;  %v3827_v39 = vunpack.i.h.bf16 %v5501_v50  ;;  %v5504_v34 = vld [vmem:[#allocation46_spill] sm:$0xff] }
 0x238   :  { %3012 = vst.msk [vmem:[%s5410_s7 + $0x160] sm:$0xff] %vm2967_vm5, %v2947_v30  ;;  %3013 = vst.msk [vmem:[%s5410_s7 + $0x168] sm:$0xff] %vm2967_vm5, %v2948_v21  ;;  %v3841_v21 = vunpack.i.l.bf16 %v5504_v34 }
 0x239   :  { %v2170_v13 = vpop.permute.xlu0 %2169  ;;  %v2172_v40 = vpop.permute.xlu1 %2171 }
 0x23a   :  { %v2824_v48 = vsel %vm2773_vm3, %v5493_v44, %v2170_v13  ;;  %v2825_v0 = vsel %vm2773_vm3, %v5494_v60, %v2172_v40  ;;  %v5505_v13 = vld [vmem:[#allocation26_spill] sm:$0xff]  ;;  %v5506_v44 = vld [vmem:[#allocation28_spill] sm:$0xff] }
 0x23d   :  { %v2426_v25 = vpop.permute.xlu0 %2425  ;;  %v2428_v20 = vpop.permute.xlu1 %2427 }
 0x23e   :  { %v2888_v5 = vsel %vm252_vm1, %v2824_v48, %v2426_v25  ;;  %v2889_v3 = vsel %vm252_vm1, %v2825_v0, %v2428_v20 }
 0x23f   :  { %v2953_v24 = vsel %vm2902_vm4, %v2888_v5, %v3821_v51  ;;  %v2954_v27 = vsel %vm2902_vm4, %v2889_v3, %v3822_v33  ;;  %v3842_v51 = vunpack.i.h.bf16 %v5504_v34  ;;  %v5507_v3 = vld [vmem:[#allocation45_spill] sm:$0xff] }
 0x240   :  { %3018 = vst.msk [vmem:[%s5410_s7 + $0x190] sm:$0xff] %vm2967_vm5, %v2953_v24  ;;  %3019 = vst.msk [vmem:[%s5410_s7 + $0x198] sm:$0xff] %vm2967_vm5, %v2954_v27  ;;  %v3836_v27 = vunpack.i.l.bf16 %v5507_v3 }
 0x241   :  { %v2166_v52 = vpop.permute.xlu0 %2165  ;;  %v2168_v56 = vpop.permute.xlu1 %2167 }
 0x242   :  { %v2822_v10 = vsel %vm2773_vm3, %v5496_v6, %v2166_v52  ;;  %v2823_v47 = vsel %vm2773_vm3, %v5497_v53, %v2168_v56  ;;  %v5508_v52 = vld [vmem:[#allocation27_spill] sm:$0xff]  ;;  %v5509_v6 = vld [vmem:[#allocation29_spill] sm:$0xff] }
 0x245   :  { %v2422_v19 = vpop.permute.xlu0 %2421  ;;  %v2424_v29 = vpop.permute.xlu1 %2423 }
 0x246   :  { %v2886_v55 = vsel %vm252_vm1, %v2822_v10, %v2422_v19  ;;  %v2887_v49 = vsel %vm252_vm1, %v2823_v47, %v2424_v29 }
 0x247   :  { %v2951_v45 = vsel %vm2902_vm4, %v2886_v55, %v3816_v17  ;;  %v2952_v59 = vsel %vm2902_vm4, %v2887_v49, %v3817_v35  ;;  %v3837_v17 = vunpack.i.h.bf16 %v5507_v3 }
 0x248   :  { %3016 = vst.msk [vmem:[%s5410_s7 + $0x180] sm:$0xff] %vm2967_vm5, %v2951_v45  ;;  %3017 = vst.msk [vmem:[%s5410_s7 + $0x188] sm:$0xff] %vm2967_vm5, %v2952_v59 }
 0x249   :  { %v2178_v22 = vpop.permute.xlu0 %2177  ;;  %v2180_v26 = vpop.permute.xlu1 %2179 }
 0x24a   :  { %v2828_v62 = vsel %vm2773_vm3, %v5499_v36, %v2178_v22  ;;  %v2829_v16 = vsel %vm2773_vm3, %v5500_v12, %v2180_v26  ;;  %v5510_v36 = vld [vmem:[#allocation30_spill] sm:$0xff] }
 0x24d   :  { %v2434_v2 = vpop.permute.xlu0 %2433  ;;  %v2436_v57 = vpop.permute.xlu1 %2435 }
 0x24e   :  { %v2892_v9 = vsel %vm252_vm1, %v2828_v62, %v2434_v2  ;;  %v2893_v41 = vsel %vm252_vm1, %v2829_v16, %v2436_v57  ;;  %v5511_v2 = vld [vmem:[#allocation32_spill] sm:$0xff]  ;;  %v5512_v16 = vld [vmem:[#allocation31_spill] sm:$0xff]  ;;  %v5513_v57 = vld [vmem:[#allocation33_spill] sm:$0xff] }
 0x24f   :  { %v2957_v46 = vsel %vm2902_vm4, %v2892_v9, %v3831_v43  ;;  %v2958_v28 = vsel %vm2902_vm4, %v2893_v41, %v3832_v61 }
 0x250   :  { %3022 = vst.msk [vmem:[%s5410_s7 + $0x1b0] sm:$0xff] %vm2967_vm5, %v2957_v46  ;;  %3023 = vst.msk [vmem:[%s5410_s7 + $0x1b8] sm:$0xff] %vm2967_vm5, %v2958_v28 }
 0x251   :  { %v2174_v32 = vpop.permute.xlu0 %2173  ;;  %v2176_v11 = vpop.permute.xlu1 %2175 }
 0x252   :  { %v2826_v15 = vsel %vm2773_vm3, %v5502_v58, %v2174_v32  ;;  %v2827_v7 = vsel %vm2773_vm3, %v5503_v63, %v2176_v11 }
 0x255   :  { %v2430_v23 = vpop.permute.xlu0 %2429  ;;  %v2432_v4 = vpop.permute.xlu1 %2431 }
 0x256   :  { %v2890_v38 = vsel %vm252_vm1, %v2826_v15, %v2430_v23  ;;  %v2891_v14 = vsel %vm252_vm1, %v2827_v7, %v2432_v4 }
 0x257   :  { %v2955_v1 = vsel %vm2902_vm4, %v2890_v38, %v3826_v54  ;;  %v2956_v18 = vsel %vm2902_vm4, %v2891_v14, %v3827_v39 }
 0x258   :  { %3020 = vst.msk [vmem:[%s5410_s7 + $0x1a0] sm:$0xff] %vm2967_vm5, %v2955_v1  ;;  %3021 = vst.msk [vmem:[%s5410_s7 + $0x1a8] sm:$0xff] %vm2967_vm5, %v2956_v18 }
 0x259   :  { %v2186_v8 = vpop.permute.xlu0 %2185  ;;  %v2188_v30 = vpop.permute.xlu1 %2187 }
 0x25a   :  { %v2832_v40 = vsel %vm2773_vm3, %v5505_v13, %v2186_v8  ;;  %v2833_v48 = vsel %vm2773_vm3, %v5506_v44, %v2188_v30 }
 0x25d   :  { %v2442_v37 = vpop.permute.xlu0 %2441  ;;  %v2444_v33 = vpop.permute.xlu1 %2443 }
 0x25e   :  { %v2896_v25 = vsel %vm252_vm1, %v2832_v40, %v2442_v37  ;;  %v2897_v0 = vsel %vm252_vm1, %v2833_v48, %v2444_v33 }
 0x25f   :  { %v2961_v60 = vsel %vm2902_vm4, %v2896_v25, %v3841_v21  ;;  %v2962_v5 = vsel %vm2902_vm4, %v2897_v0, %v3842_v51 }
 0x260   :  { %3026 = vst.msk [vmem:[%s5410_s7 + $0x1d0] sm:$0xff] %vm2967_vm5, %v2961_v60  ;;  %3027 = vst.msk [vmem:[%s5410_s7 + $0x1d8] sm:$0xff] %vm2967_vm5, %v2962_v5 }
 0x261   :  { %v2182_v20 = vpop.permute.xlu0 %2181  ;;  %v2184_v24 = vpop.permute.xlu1 %2183 }
 0x262   :  { %v2830_v56 = vsel %vm2773_vm3, %v5508_v52, %v2182_v20  ;;  %v2831_v10 = vsel %vm2773_vm3, %v5509_v6, %v2184_v24 }
 0x265   :  { %v2438_v31 = vpop.permute.xlu0 %2437  ;;  %v2440_v35 = vpop.permute.xlu1 %2439 }
 0x266   :  { %v2894_v19 = vsel %vm252_vm1, %v2830_v56, %v2438_v31  ;;  %v2895_v47 = vsel %vm252_vm1, %v2831_v10, %v2440_v35 }
 0x267   :  { %v2959_v53 = vsel %vm2902_vm4, %v2894_v19, %v3836_v27  ;;  %v2960_v55 = vsel %vm2902_vm4, %v2895_v47, %v3837_v17 }
 0x268   :  { %3024 = vst.msk [vmem:[%s5410_s7 + $0x1c0] sm:$0xff] %vm2967_vm5, %v2959_v53  ;;  %3025 = vst.msk [vmem:[%s5410_s7 + $0x1c8] sm:$0xff] %vm2967_vm5, %v2960_v55 }
 0x269   :  { %v2194_v29 = vpop.permute.xlu0 %2193  ;;  %v2196_v45 = vpop.permute.xlu1 %2195 }
 0x26a   :  { %v2836_v62 = vsel %vm2773_vm3, %v5510_v36, %v2194_v29  ;;  %v2837_v61 = vsel %vm2773_vm3, %v5511_v2, %v2196_v45 }
 0x26d   :  { %v2450_v49 = vpop.permute.xlu0 %2449  ;;  %v2452_v59 = vpop.permute.xlu1 %2451 }
 0x26e   :  { %v2900_v15 = vsel %vm252_vm1, %v2836_v62, %v2450_v49  ;;  %v2901_v23 = vsel %vm252_vm1, %v2837_v61, %v2452_v59 }
 0x271   :  { %v2190_v22 = vpop.permute.xlu0 %2189  ;;  %v2192_v26 = vpop.permute.xlu1 %2191 }
 0x272   :  { %v2834_v9 = vsel %vm2773_vm3, %v5512_v16, %v2190_v22  ;;  %v2835_v46 = vsel %vm2773_vm3, %v5513_v57, %v2192_v26 }
 0x275   :  { %v2446_v42 = vpop.permute.xlu0 %2445  ;;  %v2448_v43 = vpop.permute.xlu1 %2447 }
 0x276   :  { %v2898_v11 = vsel %vm252_vm1, %v2834_v9, %v2446_v42  ;;  %v2899_v50 = vsel %vm252_vm1, %v2835_v46, %v2448_v43 }
 0x279   :  { %v3845_v12 = vpop.permute.xlu0 %3844  ;;  %v3850_v32 = vpop.permute.xlu1 %3849 }
 0x27a   :  { %v3847_v41 = vunpack.i.h.bf16 %v3845_v12  ;;  %v3846_v28 = vunpack.i.l.bf16 %v3845_v12  ;;  %v3852_v54 = vunpack.i.h.bf16 %v3850_v32  ;;  %v3851_v58 = vunpack.i.l.bf16 %v3850_v32 }
 0x27c   :  { %v2963_v39 = vsel %vm2902_vm4, %v2898_v11, %v3846_v28  ;;  %v2964_v63 = vsel %vm2902_vm4, %v2899_v50, %v3847_v41  ;;  %v2966_v7 = vsel %vm2902_vm4, %v2901_v23, %v3852_v54  ;;  %v2965_v38 = vsel %vm2902_vm4, %v2900_v15, %v3851_v58 }
 0x27d   :  { %3028 = vst.msk [vmem:[%s5410_s7 + $0x1e0] sm:$0xff] %vm2967_vm5, %v2963_v39  ;;  %3029 = vst.msk [vmem:[%s5410_s7 + $0x1e8] sm:$0xff] %vm2967_vm5, %v2964_v63 }
 0x27e   :  { %3031 = vst.msk [vmem:[%s5410_s7 + $0x1f8] sm:$0xff] %vm2967_vm5, %v2966_v7  ;;  %3030 = vst.msk [vmem:[%s5410_s7 + $0x1f0] sm:$0xff] %vm2967_vm5, %v2965_v38 }

</bundles_post_ra>
